<compile_context>
chip_gen: v5e
topology: v5e:2x2
jax: 0.10.0
libtpu: 0.0.40
codegen_flags: <defaults>
</compile_context>

<pallas_src>
import functools

import jax
import jax.numpy as jnp
from jax.experimental import pallas as pl
from jax.experimental.pallas import tpu as pltpu


# ----------------------------- in-kernel helpers ----------------------------

def _ln(x, g, b, eps=1e-5):
    """LayerNorm over last dim. x: (M, D) f32; g/b: (1, D) f32."""
    mu = jnp.mean(x, axis=-1, keepdims=True)
    var = jnp.mean(jnp.square(x - mu), axis=-1, keepdims=True)
    return (x - mu) * jax.lax.rsqrt(var + eps) * g + b


def _mha_from_qkv(q_all, k_all, v_all, num_heads, mask=None):
    """Multi-head attention on already-projected activations.

    q_all: (Sq, D), k_all/v_all: (Sk, D) f32.  Heads are static lane-slices of the
    packed feature dim (no transposes, no HBM round-trips); returns (Sq, D) f32.
    """
    Sq, D = q_all.shape
    dh = D // num_heads
    scale = 1.0 / (dh ** 0.5)
    outs = []
    for h in range(num_heads):
        q = q_all[:, h * dh:(h + 1) * dh].astype(jnp.bfloat16)
        k = k_all[:, h * dh:(h + 1) * dh].astype(jnp.bfloat16)
        v = v_all[:, h * dh:(h + 1) * dh].astype(jnp.bfloat16)
        # q @ k.T without an explicit transpose (contract last dims).
        s = jax.lax.dot_general(q, k, (((1,), (1,)), ((), ())),
                                preferred_element_type=jnp.float32) * scale
        if mask is not None:
            s = jnp.where(mask, s, -1e30)
        m = jnp.max(s, axis=-1, keepdims=True)
        p = jnp.exp(s - m)
        denom = jnp.sum(p, axis=-1, keepdims=True)
        p = p * pl.reciprocal(denom, approx=True)     # EUP reciprocal, off the VPU path
        outs.append(jnp.dot(p.astype(jnp.bfloat16), v,
                            preferred_element_type=jnp.float32))
    return jnp.concatenate(outs, axis=-1)             # (Sq, D) f32


# ----------------------------- fused model kernel ----------------------------

def _double_trouble_kernel(
    # per-batch inputs
    tok_ref, patch_ref,
    # encoder weights (layer weights stacked on leading L axis)
    pe_w_ref, pe_b_ref, enc_pos_ref,
    e_ln1g_ref, e_ln1b_ref, e_wqkv_ref, e_bqkv_ref, e_wo_ref, e_bo_ref,
    e_ln2g_ref, e_ln2b_ref, e_w1_ref, e_b1_ref, e_w2_ref, e_b2_ref,
    # decoder weights
    tok_emb_ref, dec_pos_ref,
    d_ln1g_ref, d_ln1b_ref, sa_wqkv_ref, sa_bqkv_ref, sa_wo_ref, sa_bo_ref,
    d_ln2g_ref, d_ln2b_ref, ca_wq_ref, ca_bq_ref, ca_wkv_ref, ca_bkv_ref,
    ca_wo_ref, ca_bo_ref, d_ln3g_ref, d_ln3b_ref,
    ff_w1_ref, ff_b1_ref, ff_w2_ref, ff_b2_ref,
    lnfg_ref, lnfb_ref, out_w_ref, out_b_ref,
    # output
    o_ref,
    *, num_heads_enc, num_heads_dec, num_layers_enc):
    """Full forward pass (encoder + decoder) for one batch element."""

    # ================================ Encoder ================================
    px = patch_ref[0].astype(jnp.bfloat16)                       # (NP, Pd)
    h = jnp.dot(px, pe_w_ref[...], preferred_element_type=jnp.float32)
    h = h + pe_b_ref[...] + enc_pos_ref[...]                      # (NP, D) f32
    D = h.shape[-1]

    for li in range(num_layers_enc):   # static unrolled layer loop, weights resident
        # LN -> fused QKV (single (D,3D) matmul) -> MHA -> out proj -> residual
        hn = _ln(h, e_ln1g_ref[li], e_ln1b_ref[li])
        qkv = jnp.dot(hn.astype(jnp.bfloat16), e_wqkv_ref[li],
                      preferred_element_type=jnp.float32) + e_bqkv_ref[li]
        attn = _mha_from_qkv(qkv[:, :D], qkv[:, D:2 * D], qkv[:, 2 * D:],
                             num_heads_enc)
        attn = jnp.dot(attn.astype(jnp.bfloat16), e_wo_ref[li],
                       preferred_element_type=jnp.float32) + e_bo_ref[li]
        h = h + attn
        # LN -> FFN (w1 + GELU + w2, intermediate stays in vregs) -> residual
        hn = _ln(h, e_ln2g_ref[li], e_ln2b_ref[li])
        ff = jnp.dot(hn.astype(jnp.bfloat16), e_w1_ref[li],
                     preferred_element_type=jnp.float32) + e_b1_ref[li]
        # TODO(synk): jax.nn.gelu uses the tanh approximation; PyTorch nn.GELU default is exact erf.
        ff = jax.nn.gelu(ff)
        ff = jnp.dot(ff.astype(jnp.bfloat16), e_w2_ref[li],
                     preferred_element_type=jnp.float32) + e_b2_ref[li]
        h = h + ff

    img = h.astype(jnp.bfloat16)     # (NP, D_img): stays on-chip, no HBM round-trip

    # ================================ Decoder ================================
    tok = tok_ref[0]                                              # (S, 1) int32
    S = tok.shape[0]
    V, Dw = tok_emb_ref.shape

    # Token embedding as one-hot matmul (tiny vocab; avoids an in-kernel gather).
    ids = jax.lax.broadcasted_iota(jnp.int32, (S, V), 1)
    onehot = (ids == tok).astype(jnp.bfloat16)
    x = jnp.dot(onehot, tok_emb_ref[...],
                preferred_element_type=jnp.float32) + dec_pos_ref[...]

    # --- causal self-attention (mask generated in-kernel) ---
    xn = _ln(x, d_ln1g_ref[...], d_ln1b_ref[...])
    qkv = jnp.dot(xn.astype(jnp.bfloat16), sa_wqkv_ref[...],
                  preferred_element_type=jnp.float32) + sa_bqkv_ref[...]
    row = jax.lax.broadcasted_iota(jnp.int32, (S, S), 0)
    col = jax.lax.broadcasted_iota(jnp.int32, (S, S), 1)
    attn = _mha_from_qkv(qkv[:, :Dw], qkv[:, Dw:2 * Dw], qkv[:, 2 * Dw:],
                         num_heads_dec, mask=col <= row)
    attn = jnp.dot(attn.astype(jnp.bfloat16), sa_wo_ref[...],
                   preferred_element_type=jnp.float32) + sa_bo_ref[...]
    x = x + attn

    # --- cross-attention to image embeddings (fused KV projection) ---
    xn = _ln(x, d_ln2g_ref[...], d_ln2b_ref[...])
    q = jnp.dot(xn.astype(jnp.bfloat16), ca_wq_ref[...],
                preferred_element_type=jnp.float32) + ca_bq_ref[...]
    kv = jnp.dot(img, ca_wkv_ref[...],
                 preferred_element_type=jnp.float32) + ca_bkv_ref[...]
    attn = _mha_from_qkv(q, kv[:, :Dw], kv[:, Dw:], num_heads_dec)
    attn = jnp.dot(attn.astype(jnp.bfloat16), ca_wo_ref[...],
                   preferred_element_type=jnp.float32) + ca_bo_ref[...]
    x = x + attn

    # --- FFN ---
    xn = _ln(x, d_ln3g_ref[...], d_ln3b_ref[...])
    ff = jnp.dot(xn.astype(jnp.bfloat16), ff_w1_ref[...],
                 preferred_element_type=jnp.float32) + ff_b1_ref[...]
    ff = jax.nn.gelu(ff)
    ff = jnp.dot(ff.astype(jnp.bfloat16), ff_w2_ref[...],
                 preferred_element_type=jnp.float32) + ff_b2_ref[...]
    x = x + ff

    # --- final LN + vocab projection (lane-dense (S, V) output) ---
    x = _ln(x, lnfg_ref[...], lnfb_ref[...])
    logits = jnp.dot(x.astype(jnp.bfloat16), out_w_ref[...],
                     preferred_element_type=jnp.float32) + out_b_ref[...]
    o_ref[0] = logits.astype(o_ref.dtype)


# ------------------------------ pallas_call glue -----------------------------

def _rep_spec(x):
    """Whole-array, grid-invariant BlockSpec (weights DMA'd once, resident in VMEM)."""
    nd = x.ndim
    return pl.BlockSpec(x.shape, lambda b, nd=nd: (0,) * nd)


def _batch_spec(shape):
    """Block = one batch element; grid index b selects it."""
    nd = len(shape)
    return pl.BlockSpec((1,) + tuple(shape[1:]), lambda b, nd=nd: (b,) + (0,) * (nd - 1))


@functools.partial(jax.jit, static_argnames=("num_heads_enc", "num_heads_dec"))
def double_trouble_forward(tokens, patches, params, num_heads_enc, num_heads_dec):
    enc = params["encoder"]
    dec = params["decoder"]
    B, S = tokens.shape
    V = dec["out_w"].shape[1]
    num_layers_enc = int(enc["wqkv"].shape[0])

    tok3 = tokens.reshape(B, S, 1).astype(jnp.int32)
    dec_pos = dec["pos"][:S]          # host-side slice of a tiny parameter (glue)

    weight_args = (
        # encoder
        enc["patch_w"], enc["patch_b"], enc["pos"],
        enc["ln1_g"], enc["ln1_b"], enc["wqkv"], enc["bqkv"], enc["wo"], enc["bo"],
        enc["ln2_g"], enc["ln2_b"], enc["w1"], enc["b1"], enc["w2"], enc["b2"],
        # decoder
        dec["tok_emb"], dec_pos,
        dec["ln1_g"], dec["ln1_b"], dec["sa_wqkv"], dec["sa_bqkv"],
        dec["sa_wo"], dec["sa_bo"],
        dec["ln2_g"], dec["ln2_b"], dec["ca_wq"], dec["ca_bq"],
        dec["ca_wkv"], dec["ca_bkv"], dec["ca_wo"], dec["ca_bo"],
        dec["ln3_g"], dec["ln3_b"],
        dec["ff_w1"], dec["ff_b1"], dec["ff_w2"], dec["ff_b2"],
        dec["lnf_g"], dec["lnf_b"], dec["out_w"], dec["out_b"])

    in_specs = ([_batch_spec(tok3.shape), _batch_spec(patches.shape)]
                + [_rep_spec(a) for a in weight_args])

    return pl.pallas_call(
        functools.partial(_double_trouble_kernel,
                          num_heads_enc=num_heads_enc,
                          num_heads_dec=num_heads_dec,
                          num_layers_enc=num_layers_enc),
        out_shape=jax.ShapeDtypeStruct((B, S, V), jnp.float32),
        grid=(B,),
        in_specs=in_specs,
        out_specs=_batch_spec((B, S, V)),
        compiler_params=pltpu.CompilerParams(dimension_semantics=("parallel",)),
    )(tok3, patches, *weight_args)


# -------------------------------- param init --------------------------------

def _dense(key, din, dout):
    """Matmul weights stored in bf16 (MXU-native); biases (1, dout) f32."""
    w = (0.02 * jax.random.normal(key, (din, dout), jnp.float32)).astype(jnp.bfloat16)
    b = jnp.zeros((1, dout), jnp.float32)
    return w, b


def init_encoder_params(key, patch_dim, img_dim, ff_dim, num_patches, num_layers):
    keys = jax.random.split(key, 2 + num_layers)
    patch_w, patch_b = _dense(keys[0], patch_dim, img_dim)
    pos = 0.02 * jax.random.normal(keys[1], (num_patches, img_dim), jnp.float32)
    stacks = {k: [] for k in ("wqkv", "bqkv", "wo", "bo", "w1", "b1", "w2", "b2")}
    for li in range(num_layers):
        lk = jax.random.split(keys[2 + li], 4)
        w, b = _dense(lk[0], img_dim, 3 * img_dim)   # fused Q|K|V
        stacks["wqkv"].append(w); stacks["bqkv"].append(b)
        w, b = _dense(lk[1], img_dim, img_dim)
        stacks["wo"].append(w); stacks["bo"].append(b)
        w, b = _dense(lk[2], img_dim, ff_dim)
        stacks["w1"].append(w); stacks["b1"].append(b)
        w, b = _dense(lk[3], ff_dim, img_dim)
        stacks["w2"].append(w); stacks["b2"].append(b)
    p = dict(patch_w=patch_w, patch_b=patch_b, pos=pos,
             ln1_g=jnp.ones((num_layers, 1, img_dim), jnp.float32),
             ln1_b=jnp.zeros((num_layers, 1, img_dim), jnp.float32),
             ln2_g=jnp.ones((num_layers, 1, img_dim), jnp.float32),
             ln2_b=jnp.zeros((num_layers, 1, img_dim), jnp.float32))
    p.update({k: jnp.stack(v) for k, v in stacks.items()})
    return p


def init_decoder_params(key, vocab, word_dim, img_dim, ff_dim, context):
    k = jax.random.split(key, 10)
    tok_emb = (0.02 * jax.random.normal(k[0], (vocab, word_dim), jnp.float32)).astype(jnp.bfloat16)
    pos = 0.02 * jax.random.normal(k[1], (context, word_dim), jnp.float32)
    sa_wqkv, sa_bqkv = _dense(k[2], word_dim, 3 * word_dim)   # fused Q|K|V (self-attn)
    sa_wo, sa_bo = _dense(k[3], word_dim, word_dim)
    ca_wq, ca_bq = _dense(k[4], word_dim, word_dim)
    ca_wkv, ca_bkv = _dense(k[5], img_dim, 2 * word_dim)      # fused K|V (cross-attn)
    ca_wo, ca_bo = _dense(k[6], word_dim, word_dim)
    ff_w1, ff_b1 = _dense(k[7], word_dim, ff_dim)
    ff_w2, ff_b2 = _dense(k[8], ff_dim, word_dim)
    out_w, out_b = _dense(k[9], word_dim, vocab)
    ones = lambda: jnp.ones((1, word_dim), jnp.float32)
    zeros = lambda: jnp.zeros((1, word_dim), jnp.float32)
    return dict(tok_emb=tok_emb, pos=pos,
                sa_wqkv=sa_wqkv, sa_bqkv=sa_bqkv, sa_wo=sa_wo, sa_bo=sa_bo,
                ca_wq=ca_wq, ca_bq=ca_bq, ca_wkv=ca_wkv, ca_bkv=ca_bkv,
                ca_wo=ca_wo, ca_bo=ca_bo,
                ff_w1=ff_w1, ff_b1=ff_b1, ff_w2=ff_w2, ff_b2=ff_b2,
                ln1_g=ones(), ln1_b=zeros(), ln2_g=ones(), ln2_b=zeros(),
                ln3_g=ones(), ln3_b=zeros(), lnf_g=ones(), lnf_b=zeros(),
                out_w=out_w, out_b=out_b)


# ----------------------------------- main -----------------------------------

if __name__ == "__main__":
    # Small but 128-aligned hyperparameters (lane-dense kernel output on TPU).
    vocab_size = 128
    patch_size = 4
    word_embed_dim = 128
    img_embed_dim = 128
    ff_dim_decoder = 256
    context_size = 8
    num_patches = 16
    num_layers_encoder = 2
    num_heads_encoder = 4
    num_heads_decoder = 4
    ff_dim_encoder = 256
    batch = 2
    patch_dim = 3 * patch_size * patch_size   # flattened RGB patch (48)

    kp = jax.random.PRNGKey(1234)
    ke, kd = jax.random.split(kp)
    params = dict(
        encoder=init_encoder_params(ke, patch_dim, img_embed_dim, ff_dim_encoder,
                                    num_patches, num_layers_encoder),
        decoder=init_decoder_params(kd, vocab_size, word_embed_dim, img_embed_dim,
                                    ff_dim_decoder, context_size))

    key = jax.random.PRNGKey(0)
    k_tok, k_patch = jax.random.split(key)
    tokens = jax.random.randint(k_tok, (batch, context_size), 0, vocab_size, dtype=jnp.int32)
    patches = jax.random.normal(k_patch, (batch, num_patches, patch_dim), jnp.float32)

    logits = double_trouble_forward(tokens, patches, params,
                                    num_heads_encoder, num_heads_decoder)
    logits = jax.block_until_ready(logits)
    assert logits.shape == (batch, context_size, vocab_size)
    assert bool(jnp.all(jnp.isfinite(logits)))
    print("KERNEL_OK")
</pallas_src>

<mosaic_0001>
module attributes {stable_mosaic.version = 11 : i64} {
  func.func @_double_trouble_kernel(%arg0: i32, %arg1: memref<1x8x1xi32, #tpu.memory_space<vmem>>, %arg2: memref<1x16x48xf32, #tpu.memory_space<vmem>>, %arg3: memref<48x128xbf16, #tpu.memory_space<vmem>>, %arg4: memref<1x128xf32, #tpu.memory_space<vmem>>, %arg5: memref<16x128xf32, #tpu.memory_space<vmem>>, %arg6: memref<2x1x128xf32, #tpu.memory_space<vmem>>, %arg7: memref<2x1x128xf32, #tpu.memory_space<vmem>>, %arg8: memref<2x128x384xbf16, #tpu.memory_space<vmem>>, %arg9: memref<2x1x384xf32, #tpu.memory_space<vmem>>, %arg10: memref<2x128x128xbf16, #tpu.memory_space<vmem>>, %arg11: memref<2x1x128xf32, #tpu.memory_space<vmem>>, %arg12: memref<2x1x128xf32, #tpu.memory_space<vmem>>, %arg13: memref<2x1x128xf32, #tpu.memory_space<vmem>>, %arg14: memref<2x128x256xbf16, #tpu.memory_space<vmem>>, %arg15: memref<2x1x256xf32, #tpu.memory_space<vmem>>, %arg16: memref<2x256x128xbf16, #tpu.memory_space<vmem>>, %arg17: memref<2x1x128xf32, #tpu.memory_space<vmem>>, %arg18: memref<128x128xbf16, #tpu.memory_space<vmem>>, %arg19: memref<8x128xf32, #tpu.memory_space<vmem>>, %arg20: memref<1x128xf32, #tpu.memory_space<vmem>>, %arg21: memref<1x128xf32, #tpu.memory_space<vmem>>, %arg22: memref<128x384xbf16, #tpu.memory_space<vmem>>, %arg23: memref<1x384xf32, #tpu.memory_space<vmem>>, %arg24: memref<128x128xbf16, #tpu.memory_space<vmem>>, %arg25: memref<1x128xf32, #tpu.memory_space<vmem>>, %arg26: memref<1x128xf32, #tpu.memory_space<vmem>>, %arg27: memref<1x128xf32, #tpu.memory_space<vmem>>, %arg28: memref<128x128xbf16, #tpu.memory_space<vmem>>, %arg29: memref<1x128xf32, #tpu.memory_space<vmem>>, %arg30: memref<128x256xbf16, #tpu.memory_space<vmem>>, %arg31: memref<1x256xf32, #tpu.memory_space<vmem>>, %arg32: memref<128x128xbf16, #tpu.memory_space<vmem>>, %arg33: memref<1x128xf32, #tpu.memory_space<vmem>>, %arg34: memref<1x128xf32, #tpu.memory_space<vmem>>, %arg35: memref<1x128xf32, #tpu.memory_space<vmem>>, %arg36: memref<128x256xbf16, #tpu.memory_space<vmem>>, %arg37: memref<1x256xf32, #tpu.memory_space<vmem>>, %arg38: memref<256x128xbf16, #tpu.memory_space<vmem>>, %arg39: memref<1x128xf32, #tpu.memory_space<vmem>>, %arg40: memref<1x128xf32, #tpu.memory_space<vmem>>, %arg41: memref<1x128xf32, #tpu.memory_space<vmem>>, %arg42: memref<128x128xbf16, #tpu.memory_space<vmem>>, %arg43: memref<1x128xf32, #tpu.memory_space<vmem>>, %arg44: memref<1x8x128xf32, #tpu.memory_space<vmem>>) attributes {dimension_semantics = [#tpu.dimension_semantics<parallel>], iteration_bounds = array<i64: 2>, scalar_prefetch = 0 : i64, scratch_operands = 0 : i64, tpu.core_type = #tpu.core_type<tc>, window_params = [{transform_indices = @transform_0, window_bounds = array<i64: 1, 8, 1>}, {transform_indices = @transform_1, window_bounds = array<i64: 1, 16, 48>}, {pipeline_mode = #tpu.pipeline_mode<synchronous>, transform_indices = @transform_2, window_bounds = array<i64: 48, 128>}, {pipeline_mode = #tpu.pipeline_mode<synchronous>, transform_indices = @transform_3, window_bounds = array<i64: 1, 128>}, {pipeline_mode = #tpu.pipeline_mode<synchronous>, transform_indices = @transform_4, window_bounds = array<i64: 16, 128>}, {pipeline_mode = #tpu.pipeline_mode<synchronous>, transform_indices = @transform_5, window_bounds = array<i64: 2, 1, 128>}, {pipeline_mode = #tpu.pipeline_mode<synchronous>, transform_indices = @transform_6, window_bounds = array<i64: 2, 1, 128>}, {pipeline_mode = #tpu.pipeline_mode<synchronous>, transform_indices = @transform_7, window_bounds = array<i64: 2, 128, 384>}, {pipeline_mode = #tpu.pipeline_mode<synchronous>, transform_indices = @transform_8, window_bounds = array<i64: 2, 1, 384>}, {pipeline_mode = #tpu.pipeline_mode<synchronous>, transform_indices = @transform_9, window_bounds = array<i64: 2, 128, 128>}, {pipeline_mode = #tpu.pipeline_mode<synchronous>, transform_indices = @transform_10, window_bounds = array<i64: 2, 1, 128>}, {pipeline_mode = #tpu.pipeline_mode<synchronous>, transform_indices = @transform_11, window_bounds = array<i64: 2, 1, 128>}, {pipeline_mode = #tpu.pipeline_mode<synchronous>, transform_indices = @transform_12, window_bounds = array<i64: 2, 1, 128>}, {pipeline_mode = #tpu.pipeline_mode<synchronous>, transform_indices = @transform_13, window_bounds = array<i64: 2, 128, 256>}, {pipeline_mode = #tpu.pipeline_mode<synchronous>, transform_indices = @transform_14, window_bounds = array<i64: 2, 1, 256>}, {pipeline_mode = #tpu.pipeline_mode<synchronous>, transform_indices = @transform_15, window_bounds = array<i64: 2, 256, 128>}, {pipeline_mode = #tpu.pipeline_mode<synchronous>, transform_indices = @transform_16, window_bounds = array<i64: 2, 1, 128>}, {pipeline_mode = #tpu.pipeline_mode<synchronous>, transform_indices = @transform_17, window_bounds = array<i64: 128, 128>}, {pipeline_mode = #tpu.pipeline_mode<synchronous>, transform_indices = @transform_18, window_bounds = array<i64: 8, 128>}, {pipeline_mode = #tpu.pipeline_mode<synchronous>, transform_indices = @transform_19, window_bounds = array<i64: 1, 128>}, {pipeline_mode = #tpu.pipeline_mode<synchronous>, transform_indices = @transform_20, window_bounds = array<i64: 1, 128>}, {pipeline_mode = #tpu.pipeline_mode<synchronous>, transform_indices = @transform_21, window_bounds = array<i64: 128, 384>}, {pipeline_mode = #tpu.pipeline_mode<synchronous>, transform_indices = @transform_22, window_bounds = array<i64: 1, 384>}, {pipeline_mode = #tpu.pipeline_mode<synchronous>, transform_indices = @transform_23, window_bounds = array<i64: 128, 128>}, {pipeline_mode = #tpu.pipeline_mode<synchronous>, transform_indices = @transform_24, window_bounds = array<i64: 1, 128>}, {pipeline_mode = #tpu.pipeline_mode<synchronous>, transform_indices = @transform_25, window_bounds = array<i64: 1, 128>}, {pipeline_mode = #tpu.pipeline_mode<synchronous>, transform_indices = @transform_26, window_bounds = array<i64: 1, 128>}, {pipeline_mode = #tpu.pipeline_mode<synchronous>, transform_indices = @transform_27, window_bounds = array<i64: 128, 128>}, {pipeline_mode = #tpu.pipeline_mode<synchronous>, transform_indices = @transform_28, window_bounds = array<i64: 1, 128>}, {pipeline_mode = #tpu.pipeline_mode<synchronous>, transform_indices = @transform_29, window_bounds = array<i64: 128, 256>}, {pipeline_mode = #tpu.pipeline_mode<synchronous>, transform_indices = @transform_30, window_bounds = array<i64: 1, 256>}, {pipeline_mode = #tpu.pipeline_mode<synchronous>, transform_indices = @transform_31, window_bounds = array<i64: 128, 128>}, {pipeline_mode = #tpu.pipeline_mode<synchronous>, transform_indices = @transform_32, window_bounds = array<i64: 1, 128>}, {pipeline_mode = #tpu.pipeline_mode<synchronous>, transform_indices = @transform_33, window_bounds = array<i64: 1, 128>}, {pipeline_mode = #tpu.pipeline_mode<synchronous>, transform_indices = @transform_34, window_bounds = array<i64: 1, 128>}, {pipeline_mode = #tpu.pipeline_mode<synchronous>, transform_indices = @transform_35, window_bounds = array<i64: 128, 256>}, {pipeline_mode = #tpu.pipeline_mode<synchronous>, transform_indices = @transform_36, window_bounds = array<i64: 1, 256>}, {pipeline_mode = #tpu.pipeline_mode<synchronous>, transform_indices = @transform_37, window_bounds = array<i64: 256, 128>}, {pipeline_mode = #tpu.pipeline_mode<synchronous>, transform_indices = @transform_38, window_bounds = array<i64: 1, 128>}, {pipeline_mode = #tpu.pipeline_mode<synchronous>, transform_indices = @transform_39, window_bounds = array<i64: 1, 128>}, {pipeline_mode = #tpu.pipeline_mode<synchronous>, transform_indices = @transform_40, window_bounds = array<i64: 1, 128>}, {pipeline_mode = #tpu.pipeline_mode<synchronous>, transform_indices = @transform_41, window_bounds = array<i64: 128, 128>}, {pipeline_mode = #tpu.pipeline_mode<synchronous>, transform_indices = @transform_42, window_bounds = array<i64: 1, 128>}, {transform_indices = @transform_43, window_bounds = array<i64: 1, 8, 128>}]} {
    %c0 = arith.constant 0 : index
    %c0_0 = arith.constant 0 : index
    %c0_1 = arith.constant 0 : index
    %0 = vector.load %arg2[%c0, %c0_0, %c0_1] : memref<1x16x48xf32, #tpu.memory_space<vmem>>, vector<1x16x48xf32>
    %1 = vector.shape_cast %0 : vector<1x16x48xf32> to vector<16x48xf32>
    %2 = arith.truncf %1 : vector<16x48xf32> to vector<16x48xbf16>
    %c0_2 = arith.constant 0 : index
    %c0_3 = arith.constant 0 : index
    %3 = vector.load %arg3[%c0_2, %c0_3] : memref<48x128xbf16, #tpu.memory_space<vmem>>, vector<48x128xbf16>
    %cst = arith.constant dense<0.000000e+00> : vector<16x128xf32>
    %4 = tpu.matmul %2, %3, %cst {dimension_numbers = #tpu.dot_dimension_numbers<[1], [0], [0], [1], [0, 0, 1, 1], [], []>} : vector<16x48xbf16>, vector<48x128xbf16>, vector<16x128xf32> -> vector<16x128xf32>
    %c0_4 = arith.constant 0 : index
    %c0_5 = arith.constant 0 : index
    %5 = vector.load %arg4[%c0_4, %c0_5] : memref<1x128xf32, #tpu.memory_space<vmem>>, vector<1x128xf32>
    %6 = vector.broadcast %5 : vector<1x128xf32> to vector<16x128xf32>
    %7 = arith.addf %4, %6 : vector<16x128xf32>
    %c0_6 = arith.constant 0 : index
    %c0_7 = arith.constant 0 : index
    %8 = vector.load %arg5[%c0_6, %c0_7] : memref<16x128xf32, #tpu.memory_space<vmem>>, vector<16x128xf32>
    %9 = arith.addf %7, %8 : vector<16x128xf32>
    %c0_8 = arith.constant 0 : index
    %c0_9 = arith.constant 0 : index
    %c0_10 = arith.constant 0 : index
    %10 = vector.load %arg6[%c0_8, %c0_9, %c0_10] : memref<2x1x128xf32, #tpu.memory_space<vmem>>, vector<1x1x128xf32>
    %11 = vector.shape_cast %10 : vector<1x1x128xf32> to vector<1x128xf32>
    %c0_11 = arith.constant 0 : index
    %c0_12 = arith.constant 0 : index
    %c0_13 = arith.constant 0 : index
    %12 = vector.load %arg7[%c0_11, %c0_12, %c0_13] : memref<2x1x128xf32, #tpu.memory_space<vmem>>, vector<1x1x128xf32>
    %13 = vector.shape_cast %12 : vector<1x1x128xf32> to vector<1x128xf32>
    %cst_14 = arith.constant dense<0.000000e+00> : vector<16xf32>
    %14 = vector.multi_reduction <add>, %9, %cst_14 [1] : vector<16x128xf32> to vector<16xf32>
    %15 = vector.shape_cast %14 : vector<16xf32> to vector<16x1xf32>
    %cst_15 = arith.constant 1.280000e+02 : f32
    %16 = vector.broadcast %cst_15 : f32 to vector<16x1xf32>
    %17 = arith.divf %15, %16 : vector<16x1xf32>
    %18 = vector.broadcast %17 : vector<16x1xf32> to vector<16x128xf32>
    %19 = arith.subf %9, %18 : vector<16x128xf32>
    %20 = arith.mulf %19, %19 : vector<16x128xf32>
    %cst_16 = arith.constant dense<0.000000e+00> : vector<16xf32>
    %21 = vector.multi_reduction <add>, %20, %cst_16 [1] : vector<16x128xf32> to vector<16xf32>
    %22 = vector.shape_cast %21 : vector<16xf32> to vector<16x1xf32>
    %cst_17 = arith.constant 1.280000e+02 : f32
    %23 = vector.broadcast %cst_17 : f32 to vector<16x1xf32>
    %24 = arith.divf %22, %23 : vector<16x1xf32>
    %25 = vector.broadcast %17 : vector<16x1xf32> to vector<16x128xf32>
    %26 = arith.subf %9, %25 : vector<16x128xf32>
    %cst_18 = arith.constant 9.99999974E-6 : f32
    %27 = vector.broadcast %cst_18 : f32 to vector<16x1xf32>
    %28 = arith.addf %24, %27 : vector<16x1xf32>
    %29 = math.rsqrt %28 : vector<16x1xf32>
    %30 = vector.broadcast %29 : vector<16x1xf32> to vector<16x128xf32>
    %31 = arith.mulf %26, %30 : vector<16x128xf32>
    %32 = vector.broadcast %11 : vector<1x128xf32> to vector<16x128xf32>
    %33 = arith.mulf %31, %32 : vector<16x128xf32>
    %34 = vector.broadcast %13 : vector<1x128xf32> to vector<16x128xf32>
    %35 = arith.addf %33, %34 : vector<16x128xf32>
    %36 = arith.truncf %35 : vector<16x128xf32> to vector<16x128xbf16>
    %c0_19 = arith.constant 0 : index
    %c0_20 = arith.constant 0 : index
    %c0_21 = arith.constant 0 : index
    %37 = vector.load %arg8[%c0_19, %c0_20, %c0_21] : memref<2x128x384xbf16, #tpu.memory_space<vmem>>, vector<1x128x384xbf16>
    %38 = vector.shape_cast %37 : vector<1x128x384xbf16> to vector<128x384xbf16>
    %cst_22 = arith.constant dense<0.000000e+00> : vector<16x384xf32>
    %39 = tpu.matmul %36, %38, %cst_22 {dimension_numbers = #tpu.dot_dimension_numbers<[1], [0], [0], [1], [0, 0, 1, 1], [], []>} : vector<16x128xbf16>, vector<128x384xbf16>, vector<16x384xf32> -> vector<16x384xf32>
    %c0_23 = arith.constant 0 : index
    %c0_24 = arith.constant 0 : index
    %c0_25 = arith.constant 0 : index
    %40 = vector.load %arg9[%c0_23, %c0_24, %c0_25] : memref<2x1x384xf32, #tpu.memory_space<vmem>>, vector<1x1x384xf32>
    %41 = vector.shape_cast %40 : vector<1x1x384xf32> to vector<1x384xf32>
    %42 = vector.broadcast %41 : vector<1x384xf32> to vector<16x384xf32>
    %43 = arith.addf %39, %42 : vector<16x384xf32>
    %44 = vector.extract_strided_slice %43 {offsets = [0, 0], sizes = [16, 128], strides = [1, 1]} : vector<16x384xf32> to vector<16x128xf32>
    %45 = vector.extract_strided_slice %43 {offsets = [0, 128], sizes = [16, 128], strides = [1, 1]} : vector<16x384xf32> to vector<16x128xf32>
    %46 = vector.extract_strided_slice %43 {offsets = [0, 256], sizes = [16, 128], strides = [1, 1]} : vector<16x384xf32> to vector<16x128xf32>
    %47 = vector.extract_strided_slice %44 {offsets = [0, 0], sizes = [16, 32], strides = [1, 1]} : vector<16x128xf32> to vector<16x32xf32>
    %48 = arith.truncf %47 : vector<16x32xf32> to vector<16x32xbf16>
    %49 = vector.extract_strided_slice %45 {offsets = [0, 0], sizes = [16, 32], strides = [1, 1]} : vector<16x128xf32> to vector<16x32xf32>
    %50 = arith.truncf %49 : vector<16x32xf32> to vector<16x32xbf16>
    %51 = vector.extract_strided_slice %46 {offsets = [0, 0], sizes = [16, 32], strides = [1, 1]} : vector<16x128xf32> to vector<16x32xf32>
    %52 = arith.truncf %51 : vector<16x32xf32> to vector<16x32xbf16>
    %cst_26 = arith.constant dense<0.000000e+00> : vector<16x16xf32>
    %53 = tpu.matmul %48, %50, %cst_26 {dimension_numbers = #tpu.dot_dimension_numbers<[1], [1], [0], [0], [0, 0, 1, 0], [], []>} : vector<16x32xbf16>, vector<16x32xbf16>, vector<16x16xf32> -> vector<16x16xf32>
    %cst_27 = arith.constant 0.176776692 : f32
    %54 = vector.broadcast %cst_27 : f32 to vector<16x16xf32>
    %55 = arith.mulf %53, %54 : vector<16x16xf32>
    %cst_28 = arith.constant dense<0xFF800000> : vector<16xf32>
    %56 = vector.multi_reduction <maximumf>, %55, %cst_28 [1] : vector<16x16xf32> to vector<16xf32>
    %57 = vector.shape_cast %56 : vector<16xf32> to vector<16x1xf32>
    %58 = vector.broadcast %57 : vector<16x1xf32> to vector<16x16xf32>
    %59 = arith.subf %55, %58 : vector<16x16xf32>
    %60 = math.exp %59 : vector<16x16xf32>
    %cst_29 = arith.constant dense<0.000000e+00> : vector<16xf32>
    %61 = vector.multi_reduction <add>, %60, %cst_29 [1] : vector<16x16xf32> to vector<16xf32>
    %62 = vector.shape_cast %61 : vector<16xf32> to vector<16x1xf32>
    %63 = tpu.reciprocal %62 {approx = true} : vector<16x1xf32> -> vector<16x1xf32>
    %64 = vector.broadcast %63 : vector<16x1xf32> to vector<16x16xf32>
    %65 = arith.mulf %60, %64 : vector<16x16xf32>
    %66 = arith.truncf %65 : vector<16x16xf32> to vector<16x16xbf16>
    %cst_30 = arith.constant dense<0.000000e+00> : vector<16x32xf32>
    %67 = tpu.matmul %66, %52, %cst_30 {dimension_numbers = #tpu.dot_dimension_numbers<[1], [0], [0], [1], [0, 0, 1, 1], [], []>} : vector<16x16xbf16>, vector<16x32xbf16>, vector<16x32xf32> -> vector<16x32xf32>
    %68 = vector.extract_strided_slice %44 {offsets = [0, 32], sizes = [16, 32], strides = [1, 1]} : vector<16x128xf32> to vector<16x32xf32>
    %69 = arith.truncf %68 : vector<16x32xf32> to vector<16x32xbf16>
    %70 = vector.extract_strided_slice %45 {offsets = [0, 32], sizes = [16, 32], strides = [1, 1]} : vector<16x128xf32> to vector<16x32xf32>
    %71 = arith.truncf %70 : vector<16x32xf32> to vector<16x32xbf16>
    %72 = vector.extract_strided_slice %46 {offsets = [0, 32], sizes = [16, 32], strides = [1, 1]} : vector<16x128xf32> to vector<16x32xf32>
    %73 = arith.truncf %72 : vector<16x32xf32> to vector<16x32xbf16>
    %cst_31 = arith.constant dense<0.000000e+00> : vector<16x16xf32>
    %74 = tpu.matmul %69, %71, %cst_31 {dimension_numbers = #tpu.dot_dimension_numbers<[1], [1], [0], [0], [0, 0, 1, 0], [], []>} : vector<16x32xbf16>, vector<16x32xbf16>, vector<16x16xf32> -> vector<16x16xf32>
    %cst_32 = arith.constant 0.176776692 : f32
    %75 = vector.broadcast %cst_32 : f32 to vector<16x16xf32>
    %76 = arith.mulf %74, %75 : vector<16x16xf32>
    %cst_33 = arith.constant dense<0xFF800000> : vector<16xf32>
    %77 = vector.multi_reduction <maximumf>, %76, %cst_33 [1] : vector<16x16xf32> to vector<16xf32>
    %78 = vector.shape_cast %77 : vector<16xf32> to vector<16x1xf32>
    %79 = vector.broadcast %78 : vector<16x1xf32> to vector<16x16xf32>
    %80 = arith.subf %76, %79 : vector<16x16xf32>
    %81 = math.exp %80 : vector<16x16xf32>
    %cst_34 = arith.constant dense<0.000000e+00> : vector<16xf32>
    %82 = vector.multi_reduction <add>, %81, %cst_34 [1] : vector<16x16xf32> to vector<16xf32>
    %83 = vector.shape_cast %82 : vector<16xf32> to vector<16x1xf32>
    %84 = tpu.reciprocal %83 {approx = true} : vector<16x1xf32> -> vector<16x1xf32>
    %85 = vector.broadcast %84 : vector<16x1xf32> to vector<16x16xf32>
    %86 = arith.mulf %81, %85 : vector<16x16xf32>
    %87 = arith.truncf %86 : vector<16x16xf32> to vector<16x16xbf16>
    %cst_35 = arith.constant dense<0.000000e+00> : vector<16x32xf32>
    %88 = tpu.matmul %87, %73, %cst_35 {dimension_numbers = #tpu.dot_dimension_numbers<[1], [0], [0], [1], [0, 0, 1, 1], [], []>} : vector<16x16xbf16>, vector<16x32xbf16>, vector<16x32xf32> -> vector<16x32xf32>
    %89 = vector.extract_strided_slice %44 {offsets = [0, 64], sizes = [16, 32], strides = [1, 1]} : vector<16x128xf32> to vector<16x32xf32>
    %90 = arith.truncf %89 : vector<16x32xf32> to vector<16x32xbf16>
    %91 = vector.extract_strided_slice %45 {offsets = [0, 64], sizes = [16, 32], strides = [1, 1]} : vector<16x128xf32> to vector<16x32xf32>
    %92 = arith.truncf %91 : vector<16x32xf32> to vector<16x32xbf16>
    %93 = vector.extract_strided_slice %46 {offsets = [0, 64], sizes = [16, 32], strides = [1, 1]} : vector<16x128xf32> to vector<16x32xf32>
    %94 = arith.truncf %93 : vector<16x32xf32> to vector<16x32xbf16>
    %cst_36 = arith.constant dense<0.000000e+00> : vector<16x16xf32>
    %95 = tpu.matmul %90, %92, %cst_36 {dimension_numbers = #tpu.dot_dimension_numbers<[1], [1], [0], [0], [0, 0, 1, 0], [], []>} : vector<16x32xbf16>, vector<16x32xbf16>, vector<16x16xf32> -> vector<16x16xf32>
    %cst_37 = arith.constant 0.176776692 : f32
    %96 = vector.broadcast %cst_37 : f32 to vector<16x16xf32>
    %97 = arith.mulf %95, %96 : vector<16x16xf32>
    %cst_38 = arith.constant dense<0xFF800000> : vector<16xf32>
    %98 = vector.multi_reduction <maximumf>, %97, %cst_38 [1] : vector<16x16xf32> to vector<16xf32>
    %99 = vector.shape_cast %98 : vector<16xf32> to vector<16x1xf32>
    %100 = vector.broadcast %99 : vector<16x1xf32> to vector<16x16xf32>
    %101 = arith.subf %97, %100 : vector<16x16xf32>
    %102 = math.exp %101 : vector<16x16xf32>
    %cst_39 = arith.constant dense<0.000000e+00> : vector<16xf32>
    %103 = vector.multi_reduction <add>, %102, %cst_39 [1] : vector<16x16xf32> to vector<16xf32>
    %104 = vector.shape_cast %103 : vector<16xf32> to vector<16x1xf32>
    %105 = tpu.reciprocal %104 {approx = true} : vector<16x1xf32> -> vector<16x1xf32>
    %106 = vector.broadcast %105 : vector<16x1xf32> to vector<16x16xf32>
    %107 = arith.mulf %102, %106 : vector<16x16xf32>
    %108 = arith.truncf %107 : vector<16x16xf32> to vector<16x16xbf16>
    %cst_40 = arith.constant dense<0.000000e+00> : vector<16x32xf32>
    %109 = tpu.matmul %108, %94, %cst_40 {dimension_numbers = #tpu.dot_dimension_numbers<[1], [0], [0], [1], [0, 0, 1, 1], [], []>} : vector<16x16xbf16>, vector<16x32xbf16>, vector<16x32xf32> -> vector<16x32xf32>
    %110 = vector.extract_strided_slice %44 {offsets = [0, 96], sizes = [16, 32], strides = [1, 1]} : vector<16x128xf32> to vector<16x32xf32>
    %111 = arith.truncf %110 : vector<16x32xf32> to vector<16x32xbf16>
    %112 = vector.extract_strided_slice %45 {offsets = [0, 96], sizes = [16, 32], strides = [1, 1]} : vector<16x128xf32> to vector<16x32xf32>
    %113 = arith.truncf %112 : vector<16x32xf32> to vector<16x32xbf16>
    %114 = vector.extract_strided_slice %46 {offsets = [0, 96], sizes = [16, 32], strides = [1, 1]} : vector<16x128xf32> to vector<16x32xf32>
    %115 = arith.truncf %114 : vector<16x32xf32> to vector<16x32xbf16>
    %cst_41 = arith.constant dense<0.000000e+00> : vector<16x16xf32>
    %116 = tpu.matmul %111, %113, %cst_41 {dimension_numbers = #tpu.dot_dimension_numbers<[1], [1], [0], [0], [0, 0, 1, 0], [], []>} : vector<16x32xbf16>, vector<16x32xbf16>, vector<16x16xf32> -> vector<16x16xf32>
    %cst_42 = arith.constant 0.176776692 : f32
    %117 = vector.broadcast %cst_42 : f32 to vector<16x16xf32>
    %118 = arith.mulf %116, %117 : vector<16x16xf32>
    %cst_43 = arith.constant dense<0xFF800000> : vector<16xf32>
    %119 = vector.multi_reduction <maximumf>, %118, %cst_43 [1] : vector<16x16xf32> to vector<16xf32>
    %120 = vector.shape_cast %119 : vector<16xf32> to vector<16x1xf32>
    %121 = vector.broadcast %120 : vector<16x1xf32> to vector<16x16xf32>
    %122 = arith.subf %118, %121 : vector<16x16xf32>
    %123 = math.exp %122 : vector<16x16xf32>
    %cst_44 = arith.constant dense<0.000000e+00> : vector<16xf32>
    %124 = vector.multi_reduction <add>, %123, %cst_44 [1] : vector<16x16xf32> to vector<16xf32>
    %125 = vector.shape_cast %124 : vector<16xf32> to vector<16x1xf32>
    %126 = tpu.reciprocal %125 {approx = true} : vector<16x1xf32> -> vector<16x1xf32>
    %127 = vector.broadcast %126 : vector<16x1xf32> to vector<16x16xf32>
    %128 = arith.mulf %123, %127 : vector<16x16xf32>
    %129 = arith.truncf %128 : vector<16x16xf32> to vector<16x16xbf16>
    %cst_45 = arith.constant dense<0.000000e+00> : vector<16x32xf32>
    %130 = tpu.matmul %129, %115, %cst_45 {dimension_numbers = #tpu.dot_dimension_numbers<[1], [0], [0], [1], [0, 0, 1, 1], [], []>} : vector<16x16xbf16>, vector<16x32xbf16>, vector<16x32xf32> -> vector<16x32xf32>
    %131 = tpu.concatenate %67, %88, %109, %130 in 1 : vector<16x32xf32>, vector<16x32xf32>, vector<16x32xf32>, vector<16x32xf32> -> vector<16x128xf32>
    %132 = arith.truncf %131 : vector<16x128xf32> to vector<16x128xbf16>
    %c0_46 = arith.constant 0 : index
    %c0_47 = arith.constant 0 : index
    %c0_48 = arith.constant 0 : index
    %133 = vector.load %arg10[%c0_46, %c0_47, %c0_48] : memref<2x128x128xbf16, #tpu.memory_space<vmem>>, vector<1x128x128xbf16>
    %134 = vector.shape_cast %133 : vector<1x128x128xbf16> to vector<128x128xbf16>
    %cst_49 = arith.constant dense<0.000000e+00> : vector<16x128xf32>
    %135 = tpu.matmul %132, %134, %cst_49 {dimension_numbers = #tpu.dot_dimension_numbers<[1], [0], [0], [1], [0, 0, 1, 1], [], []>} : vector<16x128xbf16>, vector<128x128xbf16>, vector<16x128xf32> -> vector<16x128xf32>
    %c0_50 = arith.constant 0 : index
    %c0_51 = arith.constant 0 : index
    %c0_52 = arith.constant 0 : index
    %136 = vector.load %arg11[%c0_50, %c0_51, %c0_52] : memref<2x1x128xf32, #tpu.memory_space<vmem>>, vector<1x1x128xf32>
    %137 = vector.shape_cast %136 : vector<1x1x128xf32> to vector<1x128xf32>
    %138 = vector.broadcast %137 : vector<1x128xf32> to vector<16x128xf32>
    %139 = arith.addf %135, %138 : vector<16x128xf32>
    %140 = arith.addf %9, %139 : vector<16x128xf32>
    %c0_53 = arith.constant 0 : index
    %c0_54 = arith.constant 0 : index
    %c0_55 = arith.constant 0 : index
    %141 = vector.load %arg12[%c0_53, %c0_54, %c0_55] : memref<2x1x128xf32, #tpu.memory_space<vmem>>, vector<1x1x128xf32>
    %142 = vector.shape_cast %141 : vector<1x1x128xf32> to vector<1x128xf32>
    %c0_56 = arith.constant 0 : index
    %c0_57 = arith.constant 0 : index
    %c0_58 = arith.constant 0 : index
    %143 = vector.load %arg13[%c0_56, %c0_57, %c0_58] : memref<2x1x128xf32, #tpu.memory_space<vmem>>, vector<1x1x128xf32>
    %144 = vector.shape_cast %143 : vector<1x1x128xf32> to vector<1x128xf32>
    %cst_59 = arith.constant dense<0.000000e+00> : vector<16xf32>
    %145 = vector.multi_reduction <add>, %140, %cst_59 [1] : vector<16x128xf32> to vector<16xf32>
    %146 = vector.shape_cast %145 : vector<16xf32> to vector<16x1xf32>
    %cst_60 = arith.constant 1.280000e+02 : f32
    %147 = vector.broadcast %cst_60 : f32 to vector<16x1xf32>
    %148 = arith.divf %146, %147 : vector<16x1xf32>
    %149 = vector.broadcast %148 : vector<16x1xf32> to vector<16x128xf32>
    %150 = arith.subf %140, %149 : vector<16x128xf32>
    %151 = arith.mulf %150, %150 : vector<16x128xf32>
    %cst_61 = arith.constant dense<0.000000e+00> : vector<16xf32>
    %152 = vector.multi_reduction <add>, %151, %cst_61 [1] : vector<16x128xf32> to vector<16xf32>
    %153 = vector.shape_cast %152 : vector<16xf32> to vector<16x1xf32>
    %cst_62 = arith.constant 1.280000e+02 : f32
    %154 = vector.broadcast %cst_62 : f32 to vector<16x1xf32>
    %155 = arith.divf %153, %154 : vector<16x1xf32>
    %156 = vector.broadcast %148 : vector<16x1xf32> to vector<16x128xf32>
    %157 = arith.subf %140, %156 : vector<16x128xf32>
    %cst_63 = arith.constant 9.99999974E-6 : f32
    %158 = vector.broadcast %cst_63 : f32 to vector<16x1xf32>
    %159 = arith.addf %155, %158 : vector<16x1xf32>
    %160 = math.rsqrt %159 : vector<16x1xf32>
    %161 = vector.broadcast %160 : vector<16x1xf32> to vector<16x128xf32>
    %162 = arith.mulf %157, %161 : vector<16x128xf32>
    %163 = vector.broadcast %142 : vector<1x128xf32> to vector<16x128xf32>
    %164 = arith.mulf %162, %163 : vector<16x128xf32>
    %165 = vector.broadcast %144 : vector<1x128xf32> to vector<16x128xf32>
    %166 = arith.addf %164, %165 : vector<16x128xf32>
    %167 = arith.truncf %166 : vector<16x128xf32> to vector<16x128xbf16>
    %c0_64 = arith.constant 0 : index
    %c0_65 = arith.constant 0 : index
    %c0_66 = arith.constant 0 : index
    %168 = vector.load %arg14[%c0_64, %c0_65, %c0_66] : memref<2x128x256xbf16, #tpu.memory_space<vmem>>, vector<1x128x256xbf16>
    %169 = vector.shape_cast %168 : vector<1x128x256xbf16> to vector<128x256xbf16>
    %cst_67 = arith.constant dense<0.000000e+00> : vector<16x256xf32>
    %170 = tpu.matmul %167, %169, %cst_67 {dimension_numbers = #tpu.dot_dimension_numbers<[1], [0], [0], [1], [0, 0, 1, 1], [], []>} : vector<16x128xbf16>, vector<128x256xbf16>, vector<16x256xf32> -> vector<16x256xf32>
    %c0_68 = arith.constant 0 : index
    %c0_69 = arith.constant 0 : index
    %c0_70 = arith.constant 0 : index
    %171 = vector.load %arg15[%c0_68, %c0_69, %c0_70] : memref<2x1x256xf32, #tpu.memory_space<vmem>>, vector<1x1x256xf32>
    %172 = vector.shape_cast %171 : vector<1x1x256xf32> to vector<1x256xf32>
    %173 = vector.broadcast %172 : vector<1x256xf32> to vector<16x256xf32>
    %174 = arith.addf %170, %173 : vector<16x256xf32>
    %175 = arith.mulf %174, %174 : vector<16x256xf32>
    %176 = arith.mulf %174, %175 : vector<16x256xf32>
    %cst_71 = arith.constant 4.471500e-02 : f32
    %177 = vector.broadcast %cst_71 : f32 to vector<16x256xf32>
    %178 = arith.mulf %177, %176 : vector<16x256xf32>
    %179 = arith.addf %174, %178 : vector<16x256xf32>
    %cst_72 = arith.constant 0.797884583 : f32
    %180 = vector.broadcast %cst_72 : f32 to vector<16x256xf32>
    %181 = arith.mulf %180, %179 : vector<16x256xf32>
    %182 = math.tanh %181 : vector<16x256xf32>
    %cst_73 = arith.constant 1.000000e+00 : f32
    %183 = vector.broadcast %cst_73 : f32 to vector<16x256xf32>
    %184 = arith.addf %183, %182 : vector<16x256xf32>
    %cst_74 = arith.constant 5.000000e-01 : f32
    %185 = vector.broadcast %cst_74 : f32 to vector<16x256xf32>
    %186 = arith.mulf %185, %184 : vector<16x256xf32>
    %187 = arith.mulf %174, %186 : vector<16x256xf32>
    %188 = arith.truncf %187 : vector<16x256xf32> to vector<16x256xbf16>
    %c0_75 = arith.constant 0 : index
    %c0_76 = arith.constant 0 : index
    %c0_77 = arith.constant 0 : index
    %189 = vector.load %arg16[%c0_75, %c0_76, %c0_77] : memref<2x256x128xbf16, #tpu.memory_space<vmem>>, vector<1x256x128xbf16>
    %190 = vector.shape_cast %189 : vector<1x256x128xbf16> to vector<256x128xbf16>
    %cst_78 = arith.constant dense<0.000000e+00> : vector<16x128xf32>
    %191 = tpu.matmul %188, %190, %cst_78 {dimension_numbers = #tpu.dot_dimension_numbers<[1], [0], [0], [1], [0, 0, 1, 1], [], []>} : vector<16x256xbf16>, vector<256x128xbf16>, vector<16x128xf32> -> vector<16x128xf32>
    %c0_79 = arith.constant 0 : index
    %c0_80 = arith.constant 0 : index
    %c0_81 = arith.constant 0 : index
    %192 = vector.load %arg17[%c0_79, %c0_80, %c0_81] : memref<2x1x128xf32, #tpu.memory_space<vmem>>, vector<1x1x128xf32>
    %193 = vector.shape_cast %192 : vector<1x1x128xf32> to vector<1x128xf32>
    %194 = vector.broadcast %193 : vector<1x128xf32> to vector<16x128xf32>
    %195 = arith.addf %191, %194 : vector<16x128xf32>
    %196 = arith.addf %140, %195 : vector<16x128xf32>
    %c1 = arith.constant 1 : index
    %c0_82 = arith.constant 0 : index
    %c0_83 = arith.constant 0 : index
    %197 = vector.load %arg6[%c1, %c0_82, %c0_83] : memref<2x1x128xf32, #tpu.memory_space<vmem>>, vector<1x1x128xf32>
    %198 = vector.shape_cast %197 : vector<1x1x128xf32> to vector<1x128xf32>
    %c1_84 = arith.constant 1 : index
    %c0_85 = arith.constant 0 : index
    %c0_86 = arith.constant 0 : index
    %199 = vector.load %arg7[%c1_84, %c0_85, %c0_86] : memref<2x1x128xf32, #tpu.memory_space<vmem>>, vector<1x1x128xf32>
    %200 = vector.shape_cast %199 : vector<1x1x128xf32> to vector<1x128xf32>
    %cst_87 = arith.constant dense<0.000000e+00> : vector<16xf32>
    %201 = vector.multi_reduction <add>, %196, %cst_87 [1] : vector<16x128xf32> to vector<16xf32>
    %202 = vector.shape_cast %201 : vector<16xf32> to vector<16x1xf32>
    %cst_88 = arith.constant 1.280000e+02 : f32
    %203 = vector.broadcast %cst_88 : f32 to vector<16x1xf32>
    %204 = arith.divf %202, %203 : vector<16x1xf32>
    %205 = vector.broadcast %204 : vector<16x1xf32> to vector<16x128xf32>
    %206 = arith.subf %196, %205 : vector<16x128xf32>
    %207 = arith.mulf %206, %206 : vector<16x128xf32>
    %cst_89 = arith.constant dense<0.000000e+00> : vector<16xf32>
    %208 = vector.multi_reduction <add>, %207, %cst_89 [1] : vector<16x128xf32> to vector<16xf32>
    %209 = vector.shape_cast %208 : vector<16xf32> to vector<16x1xf32>
    %cst_90 = arith.constant 1.280000e+02 : f32
    %210 = vector.broadcast %cst_90 : f32 to vector<16x1xf32>
    %211 = arith.divf %209, %210 : vector<16x1xf32>
    %212 = vector.broadcast %204 : vector<16x1xf32> to vector<16x128xf32>
    %213 = arith.subf %196, %212 : vector<16x128xf32>
    %cst_91 = arith.constant 9.99999974E-6 : f32
    %214 = vector.broadcast %cst_91 : f32 to vector<16x1xf32>
    %215 = arith.addf %211, %214 : vector<16x1xf32>
    %216 = math.rsqrt %215 : vector<16x1xf32>
    %217 = vector.broadcast %216 : vector<16x1xf32> to vector<16x128xf32>
    %218 = arith.mulf %213, %217 : vector<16x128xf32>
    %219 = vector.broadcast %198 : vector<1x128xf32> to vector<16x128xf32>
    %220 = arith.mulf %218, %219 : vector<16x128xf32>
    %221 = vector.broadcast %200 : vector<1x128xf32> to vector<16x128xf32>
    %222 = arith.addf %220, %221 : vector<16x128xf32>
    %223 = arith.truncf %222 : vector<16x128xf32> to vector<16x128xbf16>
    %c1_92 = arith.constant 1 : index
    %c0_93 = arith.constant 0 : index
    %c0_94 = arith.constant 0 : index
    %224 = vector.load %arg8[%c1_92, %c0_93, %c0_94] : memref<2x128x384xbf16, #tpu.memory_space<vmem>>, vector<1x128x384xbf16>
    %225 = vector.shape_cast %224 : vector<1x128x384xbf16> to vector<128x384xbf16>
    %cst_95 = arith.constant dense<0.000000e+00> : vector<16x384xf32>
    %226 = tpu.matmul %223, %225, %cst_95 {dimension_numbers = #tpu.dot_dimension_numbers<[1], [0], [0], [1], [0, 0, 1, 1], [], []>} : vector<16x128xbf16>, vector<128x384xbf16>, vector<16x384xf32> -> vector<16x384xf32>
    %c1_96 = arith.constant 1 : index
    %c0_97 = arith.constant 0 : index
    %c0_98 = arith.constant 0 : index
    %227 = vector.load %arg9[%c1_96, %c0_97, %c0_98] : memref<2x1x384xf32, #tpu.memory_space<vmem>>, vector<1x1x384xf32>
    %228 = vector.shape_cast %227 : vector<1x1x384xf32> to vector<1x384xf32>
    %229 = vector.broadcast %228 : vector<1x384xf32> to vector<16x384xf32>
    %230 = arith.addf %226, %229 : vector<16x384xf32>
    %231 = vector.extract_strided_slice %230 {offsets = [0, 0], sizes = [16, 128], strides = [1, 1]} : vector<16x384xf32> to vector<16x128xf32>
    %232 = vector.extract_strided_slice %230 {offsets = [0, 128], sizes = [16, 128], strides = [1, 1]} : vector<16x384xf32> to vector<16x128xf32>
    %233 = vector.extract_strided_slice %230 {offsets = [0, 256], sizes = [16, 128], strides = [1, 1]} : vector<16x384xf32> to vector<16x128xf32>
    %234 = vector.extract_strided_slice %231 {offsets = [0, 0], sizes = [16, 32], strides = [1, 1]} : vector<16x128xf32> to vector<16x32xf32>
    %235 = arith.truncf %234 : vector<16x32xf32> to vector<16x32xbf16>
    %236 = vector.extract_strided_slice %232 {offsets = [0, 0], sizes = [16, 32], strides = [1, 1]} : vector<16x128xf32> to vector<16x32xf32>
    %237 = arith.truncf %236 : vector<16x32xf32> to vector<16x32xbf16>
    %238 = vector.extract_strided_slice %233 {offsets = [0, 0], sizes = [16, 32], strides = [1, 1]} : vector<16x128xf32> to vector<16x32xf32>
    %239 = arith.truncf %238 : vector<16x32xf32> to vector<16x32xbf16>
    %cst_99 = arith.constant dense<0.000000e+00> : vector<16x16xf32>
    %240 = tpu.matmul %235, %237, %cst_99 {dimension_numbers = #tpu.dot_dimension_numbers<[1], [1], [0], [0], [0, 0, 1, 0], [], []>} : vector<16x32xbf16>, vector<16x32xbf16>, vector<16x16xf32> -> vector<16x16xf32>
    %cst_100 = arith.constant 0.176776692 : f32
    %241 = vector.broadcast %cst_100 : f32 to vector<16x16xf32>
    %242 = arith.mulf %240, %241 : vector<16x16xf32>
    %cst_101 = arith.constant dense<0xFF800000> : vector<16xf32>
    %243 = vector.multi_reduction <maximumf>, %242, %cst_101 [1] : vector<16x16xf32> to vector<16xf32>
    %244 = vector.shape_cast %243 : vector<16xf32> to vector<16x1xf32>
    %245 = vector.broadcast %244 : vector<16x1xf32> to vector<16x16xf32>
    %246 = arith.subf %242, %245 : vector<16x16xf32>
    %247 = math.exp %246 : vector<16x16xf32>
    %cst_102 = arith.constant dense<0.000000e+00> : vector<16xf32>
    %248 = vector.multi_reduction <add>, %247, %cst_102 [1] : vector<16x16xf32> to vector<16xf32>
    %249 = vector.shape_cast %248 : vector<16xf32> to vector<16x1xf32>
    %250 = tpu.reciprocal %249 {approx = true} : vector<16x1xf32> -> vector<16x1xf32>
    %251 = vector.broadcast %250 : vector<16x1xf32> to vector<16x16xf32>
    %252 = arith.mulf %247, %251 : vector<16x16xf32>
    %253 = arith.truncf %252 : vector<16x16xf32> to vector<16x16xbf16>
    %cst_103 = arith.constant dense<0.000000e+00> : vector<16x32xf32>
    %254 = tpu.matmul %253, %239, %cst_103 {dimension_numbers = #tpu.dot_dimension_numbers<[1], [0], [0], [1], [0, 0, 1, 1], [], []>} : vector<16x16xbf16>, vector<16x32xbf16>, vector<16x32xf32> -> vector<16x32xf32>
    %255 = vector.extract_strided_slice %231 {offsets = [0, 32], sizes = [16, 32], strides = [1, 1]} : vector<16x128xf32> to vector<16x32xf32>
    %256 = arith.truncf %255 : vector<16x32xf32> to vector<16x32xbf16>
    %257 = vector.extract_strided_slice %232 {offsets = [0, 32], sizes = [16, 32], strides = [1, 1]} : vector<16x128xf32> to vector<16x32xf32>
    %258 = arith.truncf %257 : vector<16x32xf32> to vector<16x32xbf16>
    %259 = vector.extract_strided_slice %233 {offsets = [0, 32], sizes = [16, 32], strides = [1, 1]} : vector<16x128xf32> to vector<16x32xf32>
    %260 = arith.truncf %259 : vector<16x32xf32> to vector<16x32xbf16>
    %cst_104 = arith.constant dense<0.000000e+00> : vector<16x16xf32>
    %261 = tpu.matmul %256, %258, %cst_104 {dimension_numbers = #tpu.dot_dimension_numbers<[1], [1], [0], [0], [0, 0, 1, 0], [], []>} : vector<16x32xbf16>, vector<16x32xbf16>, vector<16x16xf32> -> vector<16x16xf32>
    %cst_105 = arith.constant 0.176776692 : f32
    %262 = vector.broadcast %cst_105 : f32 to vector<16x16xf32>
    %263 = arith.mulf %261, %262 : vector<16x16xf32>
    %cst_106 = arith.constant dense<0xFF800000> : vector<16xf32>
    %264 = vector.multi_reduction <maximumf>, %263, %cst_106 [1] : vector<16x16xf32> to vector<16xf32>
    %265 = vector.shape_cast %264 : vector<16xf32> to vector<16x1xf32>
    %266 = vector.broadcast %265 : vector<16x1xf32> to vector<16x16xf32>
    %267 = arith.subf %263, %266 : vector<16x16xf32>
    %268 = math.exp %267 : vector<16x16xf32>
    %cst_107 = arith.constant dense<0.000000e+00> : vector<16xf32>
    %269 = vector.multi_reduction <add>, %268, %cst_107 [1] : vector<16x16xf32> to vector<16xf32>
    %270 = vector.shape_cast %269 : vector<16xf32> to vector<16x1xf32>
    %271 = tpu.reciprocal %270 {approx = true} : vector<16x1xf32> -> vector<16x1xf32>
    %272 = vector.broadcast %271 : vector<16x1xf32> to vector<16x16xf32>
    %273 = arith.mulf %268, %272 : vector<16x16xf32>
    %274 = arith.truncf %273 : vector<16x16xf32> to vector<16x16xbf16>
    %cst_108 = arith.constant dense<0.000000e+00> : vector<16x32xf32>
    %275 = tpu.matmul %274, %260, %cst_108 {dimension_numbers = #tpu.dot_dimension_numbers<[1], [0], [0], [1], [0, 0, 1, 1], [], []>} : vector<16x16xbf16>, vector<16x32xbf16>, vector<16x32xf32> -> vector<16x32xf32>
    %276 = vector.extract_strided_slice %231 {offsets = [0, 64], sizes = [16, 32], strides = [1, 1]} : vector<16x128xf32> to vector<16x32xf32>
    %277 = arith.truncf %276 : vector<16x32xf32> to vector<16x32xbf16>
    %278 = vector.extract_strided_slice %232 {offsets = [0, 64], sizes = [16, 32], strides = [1, 1]} : vector<16x128xf32> to vector<16x32xf32>
    %279 = arith.truncf %278 : vector<16x32xf32> to vector<16x32xbf16>
    %280 = vector.extract_strided_slice %233 {offsets = [0, 64], sizes = [16, 32], strides = [1, 1]} : vector<16x128xf32> to vector<16x32xf32>
    %281 = arith.truncf %280 : vector<16x32xf32> to vector<16x32xbf16>
    %cst_109 = arith.constant dense<0.000000e+00> : vector<16x16xf32>
    %282 = tpu.matmul %277, %279, %cst_109 {dimension_numbers = #tpu.dot_dimension_numbers<[1], [1], [0], [0], [0, 0, 1, 0], [], []>} : vector<16x32xbf16>, vector<16x32xbf16>, vector<16x16xf32> -> vector<16x16xf32>
    %cst_110 = arith.constant 0.176776692 : f32
    %283 = vector.broadcast %cst_110 : f32 to vector<16x16xf32>
    %284 = arith.mulf %282, %283 : vector<16x16xf32>
    %cst_111 = arith.constant dense<0xFF800000> : vector<16xf32>
    %285 = vector.multi_reduction <maximumf>, %284, %cst_111 [1] : vector<16x16xf32> to vector<16xf32>
    %286 = vector.shape_cast %285 : vector<16xf32> to vector<16x1xf32>
    %287 = vector.broadcast %286 : vector<16x1xf32> to vector<16x16xf32>
    %288 = arith.subf %284, %287 : vector<16x16xf32>
    %289 = math.exp %288 : vector<16x16xf32>
    %cst_112 = arith.constant dense<0.000000e+00> : vector<16xf32>
    %290 = vector.multi_reduction <add>, %289, %cst_112 [1] : vector<16x16xf32> to vector<16xf32>
    %291 = vector.shape_cast %290 : vector<16xf32> to vector<16x1xf32>
    %292 = tpu.reciprocal %291 {approx = true} : vector<16x1xf32> -> vector<16x1xf32>
    %293 = vector.broadcast %292 : vector<16x1xf32> to vector<16x16xf32>
    %294 = arith.mulf %289, %293 : vector<16x16xf32>
    %295 = arith.truncf %294 : vector<16x16xf32> to vector<16x16xbf16>
    %cst_113 = arith.constant dense<0.000000e+00> : vector<16x32xf32>
    %296 = tpu.matmul %295, %281, %cst_113 {dimension_numbers = #tpu.dot_dimension_numbers<[1], [0], [0], [1], [0, 0, 1, 1], [], []>} : vector<16x16xbf16>, vector<16x32xbf16>, vector<16x32xf32> -> vector<16x32xf32>
    %297 = vector.extract_strided_slice %231 {offsets = [0, 96], sizes = [16, 32], strides = [1, 1]} : vector<16x128xf32> to vector<16x32xf32>
    %298 = arith.truncf %297 : vector<16x32xf32> to vector<16x32xbf16>
    %299 = vector.extract_strided_slice %232 {offsets = [0, 96], sizes = [16, 32], strides = [1, 1]} : vector<16x128xf32> to vector<16x32xf32>
    %300 = arith.truncf %299 : vector<16x32xf32> to vector<16x32xbf16>
    %301 = vector.extract_strided_slice %233 {offsets = [0, 96], sizes = [16, 32], strides = [1, 1]} : vector<16x128xf32> to vector<16x32xf32>
    %302 = arith.truncf %301 : vector<16x32xf32> to vector<16x32xbf16>
    %cst_114 = arith.constant dense<0.000000e+00> : vector<16x16xf32>
    %303 = tpu.matmul %298, %300, %cst_114 {dimension_numbers = #tpu.dot_dimension_numbers<[1], [1], [0], [0], [0, 0, 1, 0], [], []>} : vector<16x32xbf16>, vector<16x32xbf16>, vector<16x16xf32> -> vector<16x16xf32>
    %cst_115 = arith.constant 0.176776692 : f32
    %304 = vector.broadcast %cst_115 : f32 to vector<16x16xf32>
    %305 = arith.mulf %303, %304 : vector<16x16xf32>
    %cst_116 = arith.constant dense<0xFF800000> : vector<16xf32>
    %306 = vector.multi_reduction <maximumf>, %305, %cst_116 [1] : vector<16x16xf32> to vector<16xf32>
    %307 = vector.shape_cast %306 : vector<16xf32> to vector<16x1xf32>
    %308 = vector.broadcast %307 : vector<16x1xf32> to vector<16x16xf32>
    %309 = arith.subf %305, %308 : vector<16x16xf32>
    %310 = math.exp %309 : vector<16x16xf32>
    %cst_117 = arith.constant dense<0.000000e+00> : vector<16xf32>
    %311 = vector.multi_reduction <add>, %310, %cst_117 [1] : vector<16x16xf32> to vector<16xf32>
    %312 = vector.shape_cast %311 : vector<16xf32> to vector<16x1xf32>
    %313 = tpu.reciprocal %312 {approx = true} : vector<16x1xf32> -> vector<16x1xf32>
    %314 = vector.broadcast %313 : vector<16x1xf32> to vector<16x16xf32>
    %315 = arith.mulf %310, %314 : vector<16x16xf32>
    %316 = arith.truncf %315 : vector<16x16xf32> to vector<16x16xbf16>
    %cst_118 = arith.constant dense<0.000000e+00> : vector<16x32xf32>
    %317 = tpu.matmul %316, %302, %cst_118 {dimension_numbers = #tpu.dot_dimension_numbers<[1], [0], [0], [1], [0, 0, 1, 1], [], []>} : vector<16x16xbf16>, vector<16x32xbf16>, vector<16x32xf32> -> vector<16x32xf32>
    %318 = tpu.concatenate %254, %275, %296, %317 in 1 : vector<16x32xf32>, vector<16x32xf32>, vector<16x32xf32>, vector<16x32xf32> -> vector<16x128xf32>
    %319 = arith.truncf %318 : vector<16x128xf32> to vector<16x128xbf16>
    %c1_119 = arith.constant 1 : index
    %c0_120 = arith.constant 0 : index
    %c0_121 = arith.constant 0 : index
    %320 = vector.load %arg10[%c1_119, %c0_120, %c0_121] : memref<2x128x128xbf16, #tpu.memory_space<vmem>>, vector<1x128x128xbf16>
    %321 = vector.shape_cast %320 : vector<1x128x128xbf16> to vector<128x128xbf16>
    %cst_122 = arith.constant dense<0.000000e+00> : vector<16x128xf32>
    %322 = tpu.matmul %319, %321, %cst_122 {dimension_numbers = #tpu.dot_dimension_numbers<[1], [0], [0], [1], [0, 0, 1, 1], [], []>} : vector<16x128xbf16>, vector<128x128xbf16>, vector<16x128xf32> -> vector<16x128xf32>
    %c1_123 = arith.constant 1 : index
    %c0_124 = arith.constant 0 : index
    %c0_125 = arith.constant 0 : index
    %323 = vector.load %arg11[%c1_123, %c0_124, %c0_125] : memref<2x1x128xf32, #tpu.memory_space<vmem>>, vector<1x1x128xf32>
    %324 = vector.shape_cast %323 : vector<1x1x128xf32> to vector<1x128xf32>
    %325 = vector.broadcast %324 : vector<1x128xf32> to vector<16x128xf32>
    %326 = arith.addf %322, %325 : vector<16x128xf32>
    %327 = arith.addf %196, %326 : vector<16x128xf32>
    %c1_126 = arith.constant 1 : index
    %c0_127 = arith.constant 0 : index
    %c0_128 = arith.constant 0 : index
    %328 = vector.load %arg12[%c1_126, %c0_127, %c0_128] : memref<2x1x128xf32, #tpu.memory_space<vmem>>, vector<1x1x128xf32>
    %329 = vector.shape_cast %328 : vector<1x1x128xf32> to vector<1x128xf32>
    %c1_129 = arith.constant 1 : index
    %c0_130 = arith.constant 0 : index
    %c0_131 = arith.constant 0 : index
    %330 = vector.load %arg13[%c1_129, %c0_130, %c0_131] : memref<2x1x128xf32, #tpu.memory_space<vmem>>, vector<1x1x128xf32>
    %331 = vector.shape_cast %330 : vector<1x1x128xf32> to vector<1x128xf32>
    %cst_132 = arith.constant dense<0.000000e+00> : vector<16xf32>
    %332 = vector.multi_reduction <add>, %327, %cst_132 [1] : vector<16x128xf32> to vector<16xf32>
    %333 = vector.shape_cast %332 : vector<16xf32> to vector<16x1xf32>
    %cst_133 = arith.constant 1.280000e+02 : f32
    %334 = vector.broadcast %cst_133 : f32 to vector<16x1xf32>
    %335 = arith.divf %333, %334 : vector<16x1xf32>
    %336 = vector.broadcast %335 : vector<16x1xf32> to vector<16x128xf32>
    %337 = arith.subf %327, %336 : vector<16x128xf32>
    %338 = arith.mulf %337, %337 : vector<16x128xf32>
    %cst_134 = arith.constant dense<0.000000e+00> : vector<16xf32>
    %339 = vector.multi_reduction <add>, %338, %cst_134 [1] : vector<16x128xf32> to vector<16xf32>
    %340 = vector.shape_cast %339 : vector<16xf32> to vector<16x1xf32>
    %cst_135 = arith.constant 1.280000e+02 : f32
    %341 = vector.broadcast %cst_135 : f32 to vector<16x1xf32>
    %342 = arith.divf %340, %341 : vector<16x1xf32>
    %343 = vector.broadcast %335 : vector<16x1xf32> to vector<16x128xf32>
    %344 = arith.subf %327, %343 : vector<16x128xf32>
    %cst_136 = arith.constant 9.99999974E-6 : f32
    %345 = vector.broadcast %cst_136 : f32 to vector<16x1xf32>
    %346 = arith.addf %342, %345 : vector<16x1xf32>
    %347 = math.rsqrt %346 : vector<16x1xf32>
    %348 = vector.broadcast %347 : vector<16x1xf32> to vector<16x128xf32>
    %349 = arith.mulf %344, %348 : vector<16x128xf32>
    %350 = vector.broadcast %329 : vector<1x128xf32> to vector<16x128xf32>
    %351 = arith.mulf %349, %350 : vector<16x128xf32>
    %352 = vector.broadcast %331 : vector<1x128xf32> to vector<16x128xf32>
    %353 = arith.addf %351, %352 : vector<16x128xf32>
    %354 = arith.truncf %353 : vector<16x128xf32> to vector<16x128xbf16>
    %c1_137 = arith.constant 1 : index
    %c0_138 = arith.constant 0 : index
    %c0_139 = arith.constant 0 : index
    %355 = vector.load %arg14[%c1_137, %c0_138, %c0_139] : memref<2x128x256xbf16, #tpu.memory_space<vmem>>, vector<1x128x256xbf16>
    %356 = vector.shape_cast %355 : vector<1x128x256xbf16> to vector<128x256xbf16>
    %cst_140 = arith.constant dense<0.000000e+00> : vector<16x256xf32>
    %357 = tpu.matmul %354, %356, %cst_140 {dimension_numbers = #tpu.dot_dimension_numbers<[1], [0], [0], [1], [0, 0, 1, 1], [], []>} : vector<16x128xbf16>, vector<128x256xbf16>, vector<16x256xf32> -> vector<16x256xf32>
    %c1_141 = arith.constant 1 : index
    %c0_142 = arith.constant 0 : index
    %c0_143 = arith.constant 0 : index
    %358 = vector.load %arg15[%c1_141, %c0_142, %c0_143] : memref<2x1x256xf32, #tpu.memory_space<vmem>>, vector<1x1x256xf32>
    %359 = vector.shape_cast %358 : vector<1x1x256xf32> to vector<1x256xf32>
    %360 = vector.broadcast %359 : vector<1x256xf32> to vector<16x256xf32>
    %361 = arith.addf %357, %360 : vector<16x256xf32>
    %362 = arith.mulf %361, %361 : vector<16x256xf32>
    %363 = arith.mulf %361, %362 : vector<16x256xf32>
    %cst_144 = arith.constant 4.471500e-02 : f32
    %364 = vector.broadcast %cst_144 : f32 to vector<16x256xf32>
    %365 = arith.mulf %364, %363 : vector<16x256xf32>
    %366 = arith.addf %361, %365 : vector<16x256xf32>
    %cst_145 = arith.constant 0.797884583 : f32
    %367 = vector.broadcast %cst_145 : f32 to vector<16x256xf32>
    %368 = arith.mulf %367, %366 : vector<16x256xf32>
    %369 = math.tanh %368 : vector<16x256xf32>
    %cst_146 = arith.constant 1.000000e+00 : f32
    %370 = vector.broadcast %cst_146 : f32 to vector<16x256xf32>
    %371 = arith.addf %370, %369 : vector<16x256xf32>
    %cst_147 = arith.constant 5.000000e-01 : f32
    %372 = vector.broadcast %cst_147 : f32 to vector<16x256xf32>
    %373 = arith.mulf %372, %371 : vector<16x256xf32>
    %374 = arith.mulf %361, %373 : vector<16x256xf32>
    %375 = arith.truncf %374 : vector<16x256xf32> to vector<16x256xbf16>
    %c1_148 = arith.constant 1 : index
    %c0_149 = arith.constant 0 : index
    %c0_150 = arith.constant 0 : index
    %376 = vector.load %arg16[%c1_148, %c0_149, %c0_150] : memref<2x256x128xbf16, #tpu.memory_space<vmem>>, vector<1x256x128xbf16>
    %377 = vector.shape_cast %376 : vector<1x256x128xbf16> to vector<256x128xbf16>
    %cst_151 = arith.constant dense<0.000000e+00> : vector<16x128xf32>
    %378 = tpu.matmul %375, %377, %cst_151 {dimension_numbers = #tpu.dot_dimension_numbers<[1], [0], [0], [1], [0, 0, 1, 1], [], []>} : vector<16x256xbf16>, vector<256x128xbf16>, vector<16x128xf32> -> vector<16x128xf32>
    %c1_152 = arith.constant 1 : index
    %c0_153 = arith.constant 0 : index
    %c0_154 = arith.constant 0 : index
    %379 = vector.load %arg17[%c1_152, %c0_153, %c0_154] : memref<2x1x128xf32, #tpu.memory_space<vmem>>, vector<1x1x128xf32>
    %380 = vector.shape_cast %379 : vector<1x1x128xf32> to vector<1x128xf32>
    %381 = vector.broadcast %380 : vector<1x128xf32> to vector<16x128xf32>
    %382 = arith.addf %378, %381 : vector<16x128xf32>
    %383 = arith.addf %327, %382 : vector<16x128xf32>
    %384 = arith.truncf %383 : vector<16x128xf32> to vector<16x128xbf16>
    %c0_155 = arith.constant 0 : index
    %c0_156 = arith.constant 0 : index
    %c0_157 = arith.constant 0 : index
    %385 = vector.load %arg1[%c0_155, %c0_156, %c0_157] : memref<1x8x1xi32, #tpu.memory_space<vmem>>, vector<1x8x1xi32>
    %386 = vector.shape_cast %385 : vector<1x8x1xi32> to vector<8x1xi32>
    %387 = tpu.iota {dimensions = array<i32: 1>} : vector<8x128xi32>
    %388 = vector.broadcast %386 : vector<8x1xi32> to vector<8x128xi32>
    %389 = arith.cmpi eq, %387, %388 : vector<8x128xi32>
    %390 = arith.extui %389 : vector<8x128xi1> to vector<8x128xi32>
    %391 = arith.sitofp %390 : vector<8x128xi32> to vector<8x128xf32>
    %392 = arith.truncf %391 : vector<8x128xf32> to vector<8x128xbf16>
    %c0_158 = arith.constant 0 : index
    %c0_159 = arith.constant 0 : index
    %393 = vector.load %arg18[%c0_158, %c0_159] : memref<128x128xbf16, #tpu.memory_space<vmem>>, vector<128x128xbf16>
    %cst_160 = arith.constant dense<0.000000e+00> : vector<8x128xf32>
    %394 = tpu.matmul %392, %393, %cst_160 {dimension_numbers = #tpu.dot_dimension_numbers<[1], [0], [0], [1], [0, 0, 1, 1], [], []>} : vector<8x128xbf16>, vector<128x128xbf16>, vector<8x128xf32> -> vector<8x128xf32>
    %c0_161 = arith.constant 0 : index
    %c0_162 = arith.constant 0 : index
    %395 = vector.load %arg19[%c0_161, %c0_162] : memref<8x128xf32, #tpu.memory_space<vmem>>, vector<8x128xf32>
    %396 = arith.addf %394, %395 : vector<8x128xf32>
    %c0_163 = arith.constant 0 : index
    %c0_164 = arith.constant 0 : index
    %397 = vector.load %arg20[%c0_163, %c0_164] : memref<1x128xf32, #tpu.memory_space<vmem>>, vector<1x128xf32>
    %c0_165 = arith.constant 0 : index
    %c0_166 = arith.constant 0 : index
    %398 = vector.load %arg21[%c0_165, %c0_166] : memref<1x128xf32, #tpu.memory_space<vmem>>, vector<1x128xf32>
    %cst_167 = arith.constant dense<0.000000e+00> : vector<8xf32>
    %399 = vector.multi_reduction <add>, %396, %cst_167 [1] : vector<8x128xf32> to vector<8xf32>
    %400 = vector.shape_cast %399 : vector<8xf32> to vector<8x1xf32>
    %cst_168 = arith.constant 1.280000e+02 : f32
    %401 = vector.broadcast %cst_168 : f32 to vector<8x1xf32>
    %402 = arith.divf %400, %401 : vector<8x1xf32>
    %403 = vector.broadcast %402 : vector<8x1xf32> to vector<8x128xf32>
    %404 = arith.subf %396, %403 : vector<8x128xf32>
    %405 = arith.mulf %404, %404 : vector<8x128xf32>
    %cst_169 = arith.constant dense<0.000000e+00> : vector<8xf32>
    %406 = vector.multi_reduction <add>, %405, %cst_169 [1] : vector<8x128xf32> to vector<8xf32>
    %407 = vector.shape_cast %406 : vector<8xf32> to vector<8x1xf32>
    %cst_170 = arith.constant 1.280000e+02 : f32
    %408 = vector.broadcast %cst_170 : f32 to vector<8x1xf32>
    %409 = arith.divf %407, %408 : vector<8x1xf32>
    %410 = vector.broadcast %402 : vector<8x1xf32> to vector<8x128xf32>
    %411 = arith.subf %396, %410 : vector<8x128xf32>
    %cst_171 = arith.constant 9.99999974E-6 : f32
    %412 = vector.broadcast %cst_171 : f32 to vector<8x1xf32>
    %413 = arith.addf %409, %412 : vector<8x1xf32>
    %414 = math.rsqrt %413 : vector<8x1xf32>
    %415 = vector.broadcast %414 : vector<8x1xf32> to vector<8x128xf32>
    %416 = arith.mulf %411, %415 : vector<8x128xf32>
    %417 = vector.broadcast %397 : vector<1x128xf32> to vector<8x128xf32>
    %418 = arith.mulf %416, %417 : vector<8x128xf32>
    %419 = vector.broadcast %398 : vector<1x128xf32> to vector<8x128xf32>
    %420 = arith.addf %418, %419 : vector<8x128xf32>
    %421 = arith.truncf %420 : vector<8x128xf32> to vector<8x128xbf16>
    %c0_172 = arith.constant 0 : index
    %c0_173 = arith.constant 0 : index
    %422 = vector.load %arg22[%c0_172, %c0_173] : memref<128x384xbf16, #tpu.memory_space<vmem>>, vector<128x384xbf16>
    %cst_174 = arith.constant dense<0.000000e+00> : vector<8x384xf32>
    %423 = tpu.matmul %421, %422, %cst_174 {dimension_numbers = #tpu.dot_dimension_numbers<[1], [0], [0], [1], [0, 0, 1, 1], [], []>} : vector<8x128xbf16>, vector<128x384xbf16>, vector<8x384xf32> -> vector<8x384xf32>
    %c0_175 = arith.constant 0 : index
    %c0_176 = arith.constant 0 : index
    %424 = vector.load %arg23[%c0_175, %c0_176] : memref<1x384xf32, #tpu.memory_space<vmem>>, vector<1x384xf32>
    %425 = vector.broadcast %424 : vector<1x384xf32> to vector<8x384xf32>
    %426 = arith.addf %423, %425 : vector<8x384xf32>
    %427 = tpu.iota {dimensions = array<i32: 0>} : vector<8x8xi32>
    %428 = tpu.iota {dimensions = array<i32: 1>} : vector<8x8xi32>
    %429 = vector.extract_strided_slice %426 {offsets = [0, 0], sizes = [8, 128], strides = [1, 1]} : vector<8x384xf32> to vector<8x128xf32>
    %430 = vector.extract_strided_slice %426 {offsets = [0, 128], sizes = [8, 128], strides = [1, 1]} : vector<8x384xf32> to vector<8x128xf32>
    %431 = vector.extract_strided_slice %426 {offsets = [0, 256], sizes = [8, 128], strides = [1, 1]} : vector<8x384xf32> to vector<8x128xf32>
    %432 = arith.cmpi sle, %428, %427 : vector<8x8xi32>
    %433 = vector.extract_strided_slice %429 {offsets = [0, 0], sizes = [8, 32], strides = [1, 1]} : vector<8x128xf32> to vector<8x32xf32>
    %434 = arith.truncf %433 : vector<8x32xf32> to vector<8x32xbf16>
    %435 = vector.extract_strided_slice %430 {offsets = [0, 0], sizes = [8, 32], strides = [1, 1]} : vector<8x128xf32> to vector<8x32xf32>
    %436 = arith.truncf %435 : vector<8x32xf32> to vector<8x32xbf16>
    %437 = vector.extract_strided_slice %431 {offsets = [0, 0], sizes = [8, 32], strides = [1, 1]} : vector<8x128xf32> to vector<8x32xf32>
    %438 = arith.truncf %437 : vector<8x32xf32> to vector<8x32xbf16>
    %cst_177 = arith.constant dense<0.000000e+00> : vector<8x8xf32>
    %439 = tpu.matmul %434, %436, %cst_177 {dimension_numbers = #tpu.dot_dimension_numbers<[1], [1], [0], [0], [0, 0, 1, 0], [], []>} : vector<8x32xbf16>, vector<8x32xbf16>, vector<8x8xf32> -> vector<8x8xf32>
    %cst_178 = arith.constant 0.176776692 : f32
    %440 = vector.broadcast %cst_178 : f32 to vector<8x8xf32>
    %441 = arith.mulf %439, %440 : vector<8x8xf32>
    %cst_179 = arith.constant -1.000000e+30 : f32
    %442 = vector.broadcast %cst_179 : f32 to vector<8x8xf32>
    %443 = arith.select %432, %441, %442 : vector<8x8xi1>, vector<8x8xf32>
    %cst_180 = arith.constant dense<0xFF800000> : vector<8xf32>
    %444 = vector.multi_reduction <maximumf>, %443, %cst_180 [1] : vector<8x8xf32> to vector<8xf32>
    %445 = vector.shape_cast %444 : vector<8xf32> to vector<8x1xf32>
    %446 = vector.broadcast %445 : vector<8x1xf32> to vector<8x8xf32>
    %447 = arith.subf %443, %446 : vector<8x8xf32>
    %448 = math.exp %447 : vector<8x8xf32>
    %cst_181 = arith.constant dense<0.000000e+00> : vector<8xf32>
    %449 = vector.multi_reduction <add>, %448, %cst_181 [1] : vector<8x8xf32> to vector<8xf32>
    %450 = vector.shape_cast %449 : vector<8xf32> to vector<8x1xf32>
    %451 = tpu.reciprocal %450 {approx = true} : vector<8x1xf32> -> vector<8x1xf32>
    %452 = vector.broadcast %451 : vector<8x1xf32> to vector<8x8xf32>
    %453 = arith.mulf %448, %452 : vector<8x8xf32>
    %454 = arith.truncf %453 : vector<8x8xf32> to vector<8x8xbf16>
    %cst_182 = arith.constant dense<0.000000e+00> : vector<8x32xf32>
    %455 = tpu.matmul %454, %438, %cst_182 {dimension_numbers = #tpu.dot_dimension_numbers<[1], [0], [0], [1], [0, 0, 1, 1], [], []>} : vector<8x8xbf16>, vector<8x32xbf16>, vector<8x32xf32> -> vector<8x32xf32>
    %456 = vector.extract_strided_slice %429 {offsets = [0, 32], sizes = [8, 32], strides = [1, 1]} : vector<8x128xf32> to vector<8x32xf32>
    %457 = arith.truncf %456 : vector<8x32xf32> to vector<8x32xbf16>
    %458 = vector.extract_strided_slice %430 {offsets = [0, 32], sizes = [8, 32], strides = [1, 1]} : vector<8x128xf32> to vector<8x32xf32>
    %459 = arith.truncf %458 : vector<8x32xf32> to vector<8x32xbf16>
    %460 = vector.extract_strided_slice %431 {offsets = [0, 32], sizes = [8, 32], strides = [1, 1]} : vector<8x128xf32> to vector<8x32xf32>
    %461 = arith.truncf %460 : vector<8x32xf32> to vector<8x32xbf16>
    %cst_183 = arith.constant dense<0.000000e+00> : vector<8x8xf32>
    %462 = tpu.matmul %457, %459, %cst_183 {dimension_numbers = #tpu.dot_dimension_numbers<[1], [1], [0], [0], [0, 0, 1, 0], [], []>} : vector<8x32xbf16>, vector<8x32xbf16>, vector<8x8xf32> -> vector<8x8xf32>
    %cst_184 = arith.constant 0.176776692 : f32
    %463 = vector.broadcast %cst_184 : f32 to vector<8x8xf32>
    %464 = arith.mulf %462, %463 : vector<8x8xf32>
    %cst_185 = arith.constant -1.000000e+30 : f32
    %465 = vector.broadcast %cst_185 : f32 to vector<8x8xf32>
    %466 = arith.select %432, %464, %465 : vector<8x8xi1>, vector<8x8xf32>
    %cst_186 = arith.constant dense<0xFF800000> : vector<8xf32>
    %467 = vector.multi_reduction <maximumf>, %466, %cst_186 [1] : vector<8x8xf32> to vector<8xf32>
    %468 = vector.shape_cast %467 : vector<8xf32> to vector<8x1xf32>
    %469 = vector.broadcast %468 : vector<8x1xf32> to vector<8x8xf32>
    %470 = arith.subf %466, %469 : vector<8x8xf32>
    %471 = math.exp %470 : vector<8x8xf32>
    %cst_187 = arith.constant dense<0.000000e+00> : vector<8xf32>
    %472 = vector.multi_reduction <add>, %471, %cst_187 [1] : vector<8x8xf32> to vector<8xf32>
    %473 = vector.shape_cast %472 : vector<8xf32> to vector<8x1xf32>
    %474 = tpu.reciprocal %473 {approx = true} : vector<8x1xf32> -> vector<8x1xf32>
    %475 = vector.broadcast %474 : vector<8x1xf32> to vector<8x8xf32>
    %476 = arith.mulf %471, %475 : vector<8x8xf32>
    %477 = arith.truncf %476 : vector<8x8xf32> to vector<8x8xbf16>
    %cst_188 = arith.constant dense<0.000000e+00> : vector<8x32xf32>
    %478 = tpu.matmul %477, %461, %cst_188 {dimension_numbers = #tpu.dot_dimension_numbers<[1], [0], [0], [1], [0, 0, 1, 1], [], []>} : vector<8x8xbf16>, vector<8x32xbf16>, vector<8x32xf32> -> vector<8x32xf32>
    %479 = vector.extract_strided_slice %429 {offsets = [0, 64], sizes = [8, 32], strides = [1, 1]} : vector<8x128xf32> to vector<8x32xf32>
    %480 = arith.truncf %479 : vector<8x32xf32> to vector<8x32xbf16>
    %481 = vector.extract_strided_slice %430 {offsets = [0, 64], sizes = [8, 32], strides = [1, 1]} : vector<8x128xf32> to vector<8x32xf32>
    %482 = arith.truncf %481 : vector<8x32xf32> to vector<8x32xbf16>
    %483 = vector.extract_strided_slice %431 {offsets = [0, 64], sizes = [8, 32], strides = [1, 1]} : vector<8x128xf32> to vector<8x32xf32>
    %484 = arith.truncf %483 : vector<8x32xf32> to vector<8x32xbf16>
    %cst_189 = arith.constant dense<0.000000e+00> : vector<8x8xf32>
    %485 = tpu.matmul %480, %482, %cst_189 {dimension_numbers = #tpu.dot_dimension_numbers<[1], [1], [0], [0], [0, 0, 1, 0], [], []>} : vector<8x32xbf16>, vector<8x32xbf16>, vector<8x8xf32> -> vector<8x8xf32>
    %cst_190 = arith.constant 0.176776692 : f32
    %486 = vector.broadcast %cst_190 : f32 to vector<8x8xf32>
    %487 = arith.mulf %485, %486 : vector<8x8xf32>
    %cst_191 = arith.constant -1.000000e+30 : f32
    %488 = vector.broadcast %cst_191 : f32 to vector<8x8xf32>
    %489 = arith.select %432, %487, %488 : vector<8x8xi1>, vector<8x8xf32>
    %cst_192 = arith.constant dense<0xFF800000> : vector<8xf32>
    %490 = vector.multi_reduction <maximumf>, %489, %cst_192 [1] : vector<8x8xf32> to vector<8xf32>
    %491 = vector.shape_cast %490 : vector<8xf32> to vector<8x1xf32>
    %492 = vector.broadcast %491 : vector<8x1xf32> to vector<8x8xf32>
    %493 = arith.subf %489, %492 : vector<8x8xf32>
    %494 = math.exp %493 : vector<8x8xf32>
    %cst_193 = arith.constant dense<0.000000e+00> : vector<8xf32>
    %495 = vector.multi_reduction <add>, %494, %cst_193 [1] : vector<8x8xf32> to vector<8xf32>
    %496 = vector.shape_cast %495 : vector<8xf32> to vector<8x1xf32>
    %497 = tpu.reciprocal %496 {approx = true} : vector<8x1xf32> -> vector<8x1xf32>
    %498 = vector.broadcast %497 : vector<8x1xf32> to vector<8x8xf32>
    %499 = arith.mulf %494, %498 : vector<8x8xf32>
    %500 = arith.truncf %499 : vector<8x8xf32> to vector<8x8xbf16>
    %cst_194 = arith.constant dense<0.000000e+00> : vector<8x32xf32>
    %501 = tpu.matmul %500, %484, %cst_194 {dimension_numbers = #tpu.dot_dimension_numbers<[1], [0], [0], [1], [0, 0, 1, 1], [], []>} : vector<8x8xbf16>, vector<8x32xbf16>, vector<8x32xf32> -> vector<8x32xf32>
    %502 = vector.extract_strided_slice %429 {offsets = [0, 96], sizes = [8, 32], strides = [1, 1]} : vector<8x128xf32> to vector<8x32xf32>
    %503 = arith.truncf %502 : vector<8x32xf32> to vector<8x32xbf16>
    %504 = vector.extract_strided_slice %430 {offsets = [0, 96], sizes = [8, 32], strides = [1, 1]} : vector<8x128xf32> to vector<8x32xf32>
    %505 = arith.truncf %504 : vector<8x32xf32> to vector<8x32xbf16>
    %506 = vector.extract_strided_slice %431 {offsets = [0, 96], sizes = [8, 32], strides = [1, 1]} : vector<8x128xf32> to vector<8x32xf32>
    %507 = arith.truncf %506 : vector<8x32xf32> to vector<8x32xbf16>
    %cst_195 = arith.constant dense<0.000000e+00> : vector<8x8xf32>
    %508 = tpu.matmul %503, %505, %cst_195 {dimension_numbers = #tpu.dot_dimension_numbers<[1], [1], [0], [0], [0, 0, 1, 0], [], []>} : vector<8x32xbf16>, vector<8x32xbf16>, vector<8x8xf32> -> vector<8x8xf32>
    %cst_196 = arith.constant 0.176776692 : f32
    %509 = vector.broadcast %cst_196 : f32 to vector<8x8xf32>
    %510 = arith.mulf %508, %509 : vector<8x8xf32>
    %cst_197 = arith.constant -1.000000e+30 : f32
    %511 = vector.broadcast %cst_197 : f32 to vector<8x8xf32>
    %512 = arith.select %432, %510, %511 : vector<8x8xi1>, vector<8x8xf32>
    %cst_198 = arith.constant dense<0xFF800000> : vector<8xf32>
    %513 = vector.multi_reduction <maximumf>, %512, %cst_198 [1] : vector<8x8xf32> to vector<8xf32>
    %514 = vector.shape_cast %513 : vector<8xf32> to vector<8x1xf32>
    %515 = vector.broadcast %514 : vector<8x1xf32> to vector<8x8xf32>
    %516 = arith.subf %512, %515 : vector<8x8xf32>
    %517 = math.exp %516 : vector<8x8xf32>
    %cst_199 = arith.constant dense<0.000000e+00> : vector<8xf32>
    %518 = vector.multi_reduction <add>, %517, %cst_199 [1] : vector<8x8xf32> to vector<8xf32>
    %519 = vector.shape_cast %518 : vector<8xf32> to vector<8x1xf32>
    %520 = tpu.reciprocal %519 {approx = true} : vector<8x1xf32> -> vector<8x1xf32>
    %521 = vector.broadcast %520 : vector<8x1xf32> to vector<8x8xf32>
    %522 = arith.mulf %517, %521 : vector<8x8xf32>
    %523 = arith.truncf %522 : vector<8x8xf32> to vector<8x8xbf16>
    %cst_200 = arith.constant dense<0.000000e+00> : vector<8x32xf32>
    %524 = tpu.matmul %523, %507, %cst_200 {dimension_numbers = #tpu.dot_dimension_numbers<[1], [0], [0], [1], [0, 0, 1, 1], [], []>} : vector<8x8xbf16>, vector<8x32xbf16>, vector<8x32xf32> -> vector<8x32xf32>
    %525 = tpu.concatenate %455, %478, %501, %524 in 1 : vector<8x32xf32>, vector<8x32xf32>, vector<8x32xf32>, vector<8x32xf32> -> vector<8x128xf32>
    %526 = arith.truncf %525 : vector<8x128xf32> to vector<8x128xbf16>
    %c0_201 = arith.constant 0 : index
    %c0_202 = arith.constant 0 : index
    %527 = vector.load %arg24[%c0_201, %c0_202] : memref<128x128xbf16, #tpu.memory_space<vmem>>, vector<128x128xbf16>
    %cst_203 = arith.constant dense<0.000000e+00> : vector<8x128xf32>
    %528 = tpu.matmul %526, %527, %cst_203 {dimension_numbers = #tpu.dot_dimension_numbers<[1], [0], [0], [1], [0, 0, 1, 1], [], []>} : vector<8x128xbf16>, vector<128x128xbf16>, vector<8x128xf32> -> vector<8x128xf32>
    %c0_204 = arith.constant 0 : index
    %c0_205 = arith.constant 0 : index
    %529 = vector.load %arg25[%c0_204, %c0_205] : memref<1x128xf32, #tpu.memory_space<vmem>>, vector<1x128xf32>
    %530 = vector.broadcast %529 : vector<1x128xf32> to vector<8x128xf32>
    %531 = arith.addf %528, %530 : vector<8x128xf32>
    %532 = arith.addf %396, %531 : vector<8x128xf32>
    %c0_206 = arith.constant 0 : index
    %c0_207 = arith.constant 0 : index
    %533 = vector.load %arg26[%c0_206, %c0_207] : memref<1x128xf32, #tpu.memory_space<vmem>>, vector<1x128xf32>
    %c0_208 = arith.constant 0 : index
    %c0_209 = arith.constant 0 : index
    %534 = vector.load %arg27[%c0_208, %c0_209] : memref<1x128xf32, #tpu.memory_space<vmem>>, vector<1x128xf32>
    %cst_210 = arith.constant dense<0.000000e+00> : vector<8xf32>
    %535 = vector.multi_reduction <add>, %532, %cst_210 [1] : vector<8x128xf32> to vector<8xf32>
    %536 = vector.shape_cast %535 : vector<8xf32> to vector<8x1xf32>
    %cst_211 = arith.constant 1.280000e+02 : f32
    %537 = vector.broadcast %cst_211 : f32 to vector<8x1xf32>
    %538 = arith.divf %536, %537 : vector<8x1xf32>
    %539 = vector.broadcast %538 : vector<8x1xf32> to vector<8x128xf32>
    %540 = arith.subf %532, %539 : vector<8x128xf32>
    %541 = arith.mulf %540, %540 : vector<8x128xf32>
    %cst_212 = arith.constant dense<0.000000e+00> : vector<8xf32>
    %542 = vector.multi_reduction <add>, %541, %cst_212 [1] : vector<8x128xf32> to vector<8xf32>
    %543 = vector.shape_cast %542 : vector<8xf32> to vector<8x1xf32>
    %cst_213 = arith.constant 1.280000e+02 : f32
    %544 = vector.broadcast %cst_213 : f32 to vector<8x1xf32>
    %545 = arith.divf %543, %544 : vector<8x1xf32>
    %546 = vector.broadcast %538 : vector<8x1xf32> to vector<8x128xf32>
    %547 = arith.subf %532, %546 : vector<8x128xf32>
    %cst_214 = arith.constant 9.99999974E-6 : f32
    %548 = vector.broadcast %cst_214 : f32 to vector<8x1xf32>
    %549 = arith.addf %545, %548 : vector<8x1xf32>
    %550 = math.rsqrt %549 : vector<8x1xf32>
    %551 = vector.broadcast %550 : vector<8x1xf32> to vector<8x128xf32>
    %552 = arith.mulf %547, %551 : vector<8x128xf32>
    %553 = vector.broadcast %533 : vector<1x128xf32> to vector<8x128xf32>
    %554 = arith.mulf %552, %553 : vector<8x128xf32>
    %555 = vector.broadcast %534 : vector<1x128xf32> to vector<8x128xf32>
    %556 = arith.addf %554, %555 : vector<8x128xf32>
    %557 = arith.truncf %556 : vector<8x128xf32> to vector<8x128xbf16>
    %c0_215 = arith.constant 0 : index
    %c0_216 = arith.constant 0 : index
    %558 = vector.load %arg28[%c0_215, %c0_216] : memref<128x128xbf16, #tpu.memory_space<vmem>>, vector<128x128xbf16>
    %cst_217 = arith.constant dense<0.000000e+00> : vector<8x128xf32>
    %559 = tpu.matmul %557, %558, %cst_217 {dimension_numbers = #tpu.dot_dimension_numbers<[1], [0], [0], [1], [0, 0, 1, 1], [], []>} : vector<8x128xbf16>, vector<128x128xbf16>, vector<8x128xf32> -> vector<8x128xf32>
    %c0_218 = arith.constant 0 : index
    %c0_219 = arith.constant 0 : index
    %560 = vector.load %arg29[%c0_218, %c0_219] : memref<1x128xf32, #tpu.memory_space<vmem>>, vector<1x128xf32>
    %561 = vector.broadcast %560 : vector<1x128xf32> to vector<8x128xf32>
    %562 = arith.addf %559, %561 : vector<8x128xf32>
    %c0_220 = arith.constant 0 : index
    %c0_221 = arith.constant 0 : index
    %563 = vector.load %arg30[%c0_220, %c0_221] : memref<128x256xbf16, #tpu.memory_space<vmem>>, vector<128x256xbf16>
    %cst_222 = arith.constant dense<0.000000e+00> : vector<16x256xf32>
    %564 = tpu.matmul %384, %563, %cst_222 {dimension_numbers = #tpu.dot_dimension_numbers<[1], [0], [0], [1], [0, 0, 1, 1], [], []>} : vector<16x128xbf16>, vector<128x256xbf16>, vector<16x256xf32> -> vector<16x256xf32>
    %c0_223 = arith.constant 0 : index
    %c0_224 = arith.constant 0 : index
    %565 = vector.load %arg31[%c0_223, %c0_224] : memref<1x256xf32, #tpu.memory_space<vmem>>, vector<1x256xf32>
    %566 = vector.broadcast %565 : vector<1x256xf32> to vector<16x256xf32>
    %567 = arith.addf %564, %566 : vector<16x256xf32>
    %568 = vector.extract_strided_slice %567 {offsets = [0, 0], sizes = [16, 128], strides = [1, 1]} : vector<16x256xf32> to vector<16x128xf32>
    %569 = vector.extract_strided_slice %567 {offsets = [0, 128], sizes = [16, 128], strides = [1, 1]} : vector<16x256xf32> to vector<16x128xf32>
    %570 = vector.extract_strided_slice %562 {offsets = [0, 0], sizes = [8, 32], strides = [1, 1]} : vector<8x128xf32> to vector<8x32xf32>
    %571 = arith.truncf %570 : vector<8x32xf32> to vector<8x32xbf16>
    %572 = vector.extract_strided_slice %568 {offsets = [0, 0], sizes = [16, 32], strides = [1, 1]} : vector<16x128xf32> to vector<16x32xf32>
    %573 = arith.truncf %572 : vector<16x32xf32> to vector<16x32xbf16>
    %574 = vector.extract_strided_slice %569 {offsets = [0, 0], sizes = [16, 32], strides = [1, 1]} : vector<16x128xf32> to vector<16x32xf32>
    %575 = arith.truncf %574 : vector<16x32xf32> to vector<16x32xbf16>
    %cst_225 = arith.constant dense<0.000000e+00> : vector<8x16xf32>
    %576 = tpu.matmul %571, %573, %cst_225 {dimension_numbers = #tpu.dot_dimension_numbers<[1], [1], [0], [0], [0, 0, 1, 0], [], []>} : vector<8x32xbf16>, vector<16x32xbf16>, vector<8x16xf32> -> vector<8x16xf32>
    %cst_226 = arith.constant 0.176776692 : f32
    %577 = vector.broadcast %cst_226 : f32 to vector<8x16xf32>
    %578 = arith.mulf %576, %577 : vector<8x16xf32>
    %cst_227 = arith.constant dense<0xFF800000> : vector<8xf32>
    %579 = vector.multi_reduction <maximumf>, %578, %cst_227 [1] : vector<8x16xf32> to vector<8xf32>
    %580 = vector.shape_cast %579 : vector<8xf32> to vector<8x1xf32>
    %581 = vector.broadcast %580 : vector<8x1xf32> to vector<8x16xf32>
    %582 = arith.subf %578, %581 : vector<8x16xf32>
    %583 = math.exp %582 : vector<8x16xf32>
    %cst_228 = arith.constant dense<0.000000e+00> : vector<8xf32>
    %584 = vector.multi_reduction <add>, %583, %cst_228 [1] : vector<8x16xf32> to vector<8xf32>
    %585 = vector.shape_cast %584 : vector<8xf32> to vector<8x1xf32>
    %586 = tpu.reciprocal %585 {approx = true} : vector<8x1xf32> -> vector<8x1xf32>
    %587 = vector.broadcast %586 : vector<8x1xf32> to vector<8x16xf32>
    %588 = arith.mulf %583, %587 : vector<8x16xf32>
    %589 = arith.truncf %588 : vector<8x16xf32> to vector<8x16xbf16>
    %cst_229 = arith.constant dense<0.000000e+00> : vector<8x32xf32>
    %590 = tpu.matmul %589, %575, %cst_229 {dimension_numbers = #tpu.dot_dimension_numbers<[1], [0], [0], [1], [0, 0, 1, 1], [], []>} : vector<8x16xbf16>, vector<16x32xbf16>, vector<8x32xf32> -> vector<8x32xf32>
    %591 = vector.extract_strided_slice %562 {offsets = [0, 32], sizes = [8, 32], strides = [1, 1]} : vector<8x128xf32> to vector<8x32xf32>
    %592 = arith.truncf %591 : vector<8x32xf32> to vector<8x32xbf16>
    %593 = vector.extract_strided_slice %568 {offsets = [0, 32], sizes = [16, 32], strides = [1, 1]} : vector<16x128xf32> to vector<16x32xf32>
    %594 = arith.truncf %593 : vector<16x32xf32> to vector<16x32xbf16>
    %595 = vector.extract_strided_slice %569 {offsets = [0, 32], sizes = [16, 32], strides = [1, 1]} : vector<16x128xf32> to vector<16x32xf32>
    %596 = arith.truncf %595 : vector<16x32xf32> to vector<16x32xbf16>
    %cst_230 = arith.constant dense<0.000000e+00> : vector<8x16xf32>
    %597 = tpu.matmul %592, %594, %cst_230 {dimension_numbers = #tpu.dot_dimension_numbers<[1], [1], [0], [0], [0, 0, 1, 0], [], []>} : vector<8x32xbf16>, vector<16x32xbf16>, vector<8x16xf32> -> vector<8x16xf32>
    %cst_231 = arith.constant 0.176776692 : f32
    %598 = vector.broadcast %cst_231 : f32 to vector<8x16xf32>
    %599 = arith.mulf %597, %598 : vector<8x16xf32>
    %cst_232 = arith.constant dense<0xFF800000> : vector<8xf32>
    %600 = vector.multi_reduction <maximumf>, %599, %cst_232 [1] : vector<8x16xf32> to vector<8xf32>
    %601 = vector.shape_cast %600 : vector<8xf32> to vector<8x1xf32>
    %602 = vector.broadcast %601 : vector<8x1xf32> to vector<8x16xf32>
    %603 = arith.subf %599, %602 : vector<8x16xf32>
    %604 = math.exp %603 : vector<8x16xf32>
    %cst_233 = arith.constant dense<0.000000e+00> : vector<8xf32>
    %605 = vector.multi_reduction <add>, %604, %cst_233 [1] : vector<8x16xf32> to vector<8xf32>
    %606 = vector.shape_cast %605 : vector<8xf32> to vector<8x1xf32>
    %607 = tpu.reciprocal %606 {approx = true} : vector<8x1xf32> -> vector<8x1xf32>
    %608 = vector.broadcast %607 : vector<8x1xf32> to vector<8x16xf32>
    %609 = arith.mulf %604, %608 : vector<8x16xf32>
    %610 = arith.truncf %609 : vector<8x16xf32> to vector<8x16xbf16>
    %cst_234 = arith.constant dense<0.000000e+00> : vector<8x32xf32>
    %611 = tpu.matmul %610, %596, %cst_234 {dimension_numbers = #tpu.dot_dimension_numbers<[1], [0], [0], [1], [0, 0, 1, 1], [], []>} : vector<8x16xbf16>, vector<16x32xbf16>, vector<8x32xf32> -> vector<8x32xf32>
    %612 = vector.extract_strided_slice %562 {offsets = [0, 64], sizes = [8, 32], strides = [1, 1]} : vector<8x128xf32> to vector<8x32xf32>
    %613 = arith.truncf %612 : vector<8x32xf32> to vector<8x32xbf16>
    %614 = vector.extract_strided_slice %568 {offsets = [0, 64], sizes = [16, 32], strides = [1, 1]} : vector<16x128xf32> to vector<16x32xf32>
    %615 = arith.truncf %614 : vector<16x32xf32> to vector<16x32xbf16>
    %616 = vector.extract_strided_slice %569 {offsets = [0, 64], sizes = [16, 32], strides = [1, 1]} : vector<16x128xf32> to vector<16x32xf32>
    %617 = arith.truncf %616 : vector<16x32xf32> to vector<16x32xbf16>
    %cst_235 = arith.constant dense<0.000000e+00> : vector<8x16xf32>
    %618 = tpu.matmul %613, %615, %cst_235 {dimension_numbers = #tpu.dot_dimension_numbers<[1], [1], [0], [0], [0, 0, 1, 0], [], []>} : vector<8x32xbf16>, vector<16x32xbf16>, vector<8x16xf32> -> vector<8x16xf32>
    %cst_236 = arith.constant 0.176776692 : f32
    %619 = vector.broadcast %cst_236 : f32 to vector<8x16xf32>
    %620 = arith.mulf %618, %619 : vector<8x16xf32>
    %cst_237 = arith.constant dense<0xFF800000> : vector<8xf32>
    %621 = vector.multi_reduction <maximumf>, %620, %cst_237 [1] : vector<8x16xf32> to vector<8xf32>
    %622 = vector.shape_cast %621 : vector<8xf32> to vector<8x1xf32>
    %623 = vector.broadcast %622 : vector<8x1xf32> to vector<8x16xf32>
    %624 = arith.subf %620, %623 : vector<8x16xf32>
    %625 = math.exp %624 : vector<8x16xf32>
    %cst_238 = arith.constant dense<0.000000e+00> : vector<8xf32>
    %626 = vector.multi_reduction <add>, %625, %cst_238 [1] : vector<8x16xf32> to vector<8xf32>
    %627 = vector.shape_cast %626 : vector<8xf32> to vector<8x1xf32>
    %628 = tpu.reciprocal %627 {approx = true} : vector<8x1xf32> -> vector<8x1xf32>
    %629 = vector.broadcast %628 : vector<8x1xf32> to vector<8x16xf32>
    %630 = arith.mulf %625, %629 : vector<8x16xf32>
    %631 = arith.truncf %630 : vector<8x16xf32> to vector<8x16xbf16>
    %cst_239 = arith.constant dense<0.000000e+00> : vector<8x32xf32>
    %632 = tpu.matmul %631, %617, %cst_239 {dimension_numbers = #tpu.dot_dimension_numbers<[1], [0], [0], [1], [0, 0, 1, 1], [], []>} : vector<8x16xbf16>, vector<16x32xbf16>, vector<8x32xf32> -> vector<8x32xf32>
    %633 = vector.extract_strided_slice %562 {offsets = [0, 96], sizes = [8, 32], strides = [1, 1]} : vector<8x128xf32> to vector<8x32xf32>
    %634 = arith.truncf %633 : vector<8x32xf32> to vector<8x32xbf16>
    %635 = vector.extract_strided_slice %568 {offsets = [0, 96], sizes = [16, 32], strides = [1, 1]} : vector<16x128xf32> to vector<16x32xf32>
    %636 = arith.truncf %635 : vector<16x32xf32> to vector<16x32xbf16>
    %637 = vector.extract_strided_slice %569 {offsets = [0, 96], sizes = [16, 32], strides = [1, 1]} : vector<16x128xf32> to vector<16x32xf32>
    %638 = arith.truncf %637 : vector<16x32xf32> to vector<16x32xbf16>
    %cst_240 = arith.constant dense<0.000000e+00> : vector<8x16xf32>
    %639 = tpu.matmul %634, %636, %cst_240 {dimension_numbers = #tpu.dot_dimension_numbers<[1], [1], [0], [0], [0, 0, 1, 0], [], []>} : vector<8x32xbf16>, vector<16x32xbf16>, vector<8x16xf32> -> vector<8x16xf32>
    %cst_241 = arith.constant 0.176776692 : f32
    %640 = vector.broadcast %cst_241 : f32 to vector<8x16xf32>
    %641 = arith.mulf %639, %640 : vector<8x16xf32>
    %cst_242 = arith.constant dense<0xFF800000> : vector<8xf32>
    %642 = vector.multi_reduction <maximumf>, %641, %cst_242 [1] : vector<8x16xf32> to vector<8xf32>
    %643 = vector.shape_cast %642 : vector<8xf32> to vector<8x1xf32>
    %644 = vector.broadcast %643 : vector<8x1xf32> to vector<8x16xf32>
    %645 = arith.subf %641, %644 : vector<8x16xf32>
    %646 = math.exp %645 : vector<8x16xf32>
    %cst_243 = arith.constant dense<0.000000e+00> : vector<8xf32>
    %647 = vector.multi_reduction <add>, %646, %cst_243 [1] : vector<8x16xf32> to vector<8xf32>
    %648 = vector.shape_cast %647 : vector<8xf32> to vector<8x1xf32>
    %649 = tpu.reciprocal %648 {approx = true} : vector<8x1xf32> -> vector<8x1xf32>
    %650 = vector.broadcast %649 : vector<8x1xf32> to vector<8x16xf32>
    %651 = arith.mulf %646, %650 : vector<8x16xf32>
    %652 = arith.truncf %651 : vector<8x16xf32> to vector<8x16xbf16>
    %cst_244 = arith.constant dense<0.000000e+00> : vector<8x32xf32>
    %653 = tpu.matmul %652, %638, %cst_244 {dimension_numbers = #tpu.dot_dimension_numbers<[1], [0], [0], [1], [0, 0, 1, 1], [], []>} : vector<8x16xbf16>, vector<16x32xbf16>, vector<8x32xf32> -> vector<8x32xf32>
    %654 = tpu.concatenate %590, %611, %632, %653 in 1 : vector<8x32xf32>, vector<8x32xf32>, vector<8x32xf32>, vector<8x32xf32> -> vector<8x128xf32>
    %655 = arith.truncf %654 : vector<8x128xf32> to vector<8x128xbf16>
    %c0_245 = arith.constant 0 : index
    %c0_246 = arith.constant 0 : index
    %656 = vector.load %arg32[%c0_245, %c0_246] : memref<128x128xbf16, #tpu.memory_space<vmem>>, vector<128x128xbf16>
    %cst_247 = arith.constant dense<0.000000e+00> : vector<8x128xf32>
    %657 = tpu.matmul %655, %656, %cst_247 {dimension_numbers = #tpu.dot_dimension_numbers<[1], [0], [0], [1], [0, 0, 1, 1], [], []>} : vector<8x128xbf16>, vector<128x128xbf16>, vector<8x128xf32> -> vector<8x128xf32>
    %c0_248 = arith.constant 0 : index
    %c0_249 = arith.constant 0 : index
    %658 = vector.load %arg33[%c0_248, %c0_249] : memref<1x128xf32, #tpu.memory_space<vmem>>, vector<1x128xf32>
    %659 = vector.broadcast %658 : vector<1x128xf32> to vector<8x128xf32>
    %660 = arith.addf %657, %659 : vector<8x128xf32>
    %661 = arith.addf %532, %660 : vector<8x128xf32>
    %c0_250 = arith.constant 0 : index
    %c0_251 = arith.constant 0 : index
    %662 = vector.load %arg34[%c0_250, %c0_251] : memref<1x128xf32, #tpu.memory_space<vmem>>, vector<1x128xf32>
    %c0_252 = arith.constant 0 : index
    %c0_253 = arith.constant 0 : index
    %663 = vector.load %arg35[%c0_252, %c0_253] : memref<1x128xf32, #tpu.memory_space<vmem>>, vector<1x128xf32>
    %cst_254 = arith.constant dense<0.000000e+00> : vector<8xf32>
    %664 = vector.multi_reduction <add>, %661, %cst_254 [1] : vector<8x128xf32> to vector<8xf32>
    %665 = vector.shape_cast %664 : vector<8xf32> to vector<8x1xf32>
    %cst_255 = arith.constant 1.280000e+02 : f32
    %666 = vector.broadcast %cst_255 : f32 to vector<8x1xf32>
    %667 = arith.divf %665, %666 : vector<8x1xf32>
    %668 = vector.broadcast %667 : vector<8x1xf32> to vector<8x128xf32>
    %669 = arith.subf %661, %668 : vector<8x128xf32>
    %670 = arith.mulf %669, %669 : vector<8x128xf32>
    %cst_256 = arith.constant dense<0.000000e+00> : vector<8xf32>
    %671 = vector.multi_reduction <add>, %670, %cst_256 [1] : vector<8x128xf32> to vector<8xf32>
    %672 = vector.shape_cast %671 : vector<8xf32> to vector<8x1xf32>
    %cst_257 = arith.constant 1.280000e+02 : f32
    %673 = vector.broadcast %cst_257 : f32 to vector<8x1xf32>
    %674 = arith.divf %672, %673 : vector<8x1xf32>
    %675 = vector.broadcast %667 : vector<8x1xf32> to vector<8x128xf32>
    %676 = arith.subf %661, %675 : vector<8x128xf32>
    %cst_258 = arith.constant 9.99999974E-6 : f32
    %677 = vector.broadcast %cst_258 : f32 to vector<8x1xf32>
    %678 = arith.addf %674, %677 : vector<8x1xf32>
    %679 = math.rsqrt %678 : vector<8x1xf32>
    %680 = vector.broadcast %679 : vector<8x1xf32> to vector<8x128xf32>
    %681 = arith.mulf %676, %680 : vector<8x128xf32>
    %682 = vector.broadcast %662 : vector<1x128xf32> to vector<8x128xf32>
    %683 = arith.mulf %681, %682 : vector<8x128xf32>
    %684 = vector.broadcast %663 : vector<1x128xf32> to vector<8x128xf32>
    %685 = arith.addf %683, %684 : vector<8x128xf32>
    %686 = arith.truncf %685 : vector<8x128xf32> to vector<8x128xbf16>
    %c0_259 = arith.constant 0 : index
    %c0_260 = arith.constant 0 : index
    %687 = vector.load %arg36[%c0_259, %c0_260] : memref<128x256xbf16, #tpu.memory_space<vmem>>, vector<128x256xbf16>
    %cst_261 = arith.constant dense<0.000000e+00> : vector<8x256xf32>
    %688 = tpu.matmul %686, %687, %cst_261 {dimension_numbers = #tpu.dot_dimension_numbers<[1], [0], [0], [1], [0, 0, 1, 1], [], []>} : vector<8x128xbf16>, vector<128x256xbf16>, vector<8x256xf32> -> vector<8x256xf32>
    %c0_262 = arith.constant 0 : index
    %c0_263 = arith.constant 0 : index
    %689 = vector.load %arg37[%c0_262, %c0_263] : memref<1x256xf32, #tpu.memory_space<vmem>>, vector<1x256xf32>
    %690 = vector.broadcast %689 : vector<1x256xf32> to vector<8x256xf32>
    %691 = arith.addf %688, %690 : vector<8x256xf32>
    %692 = arith.mulf %691, %691 : vector<8x256xf32>
    %693 = arith.mulf %691, %692 : vector<8x256xf32>
    %cst_264 = arith.constant 4.471500e-02 : f32
    %694 = vector.broadcast %cst_264 : f32 to vector<8x256xf32>
    %695 = arith.mulf %694, %693 : vector<8x256xf32>
    %696 = arith.addf %691, %695 : vector<8x256xf32>
    %cst_265 = arith.constant 0.797884583 : f32
    %697 = vector.broadcast %cst_265 : f32 to vector<8x256xf32>
    %698 = arith.mulf %697, %696 : vector<8x256xf32>
    %699 = math.tanh %698 : vector<8x256xf32>
    %cst_266 = arith.constant 1.000000e+00 : f32
    %700 = vector.broadcast %cst_266 : f32 to vector<8x256xf32>
    %701 = arith.addf %700, %699 : vector<8x256xf32>
    %cst_267 = arith.constant 5.000000e-01 : f32
    %702 = vector.broadcast %cst_267 : f32 to vector<8x256xf32>
    %703 = arith.mulf %702, %701 : vector<8x256xf32>
    %704 = arith.mulf %691, %703 : vector<8x256xf32>
    %705 = arith.truncf %704 : vector<8x256xf32> to vector<8x256xbf16>
    %c0_268 = arith.constant 0 : index
    %c0_269 = arith.constant 0 : index
    %706 = vector.load %arg38[%c0_268, %c0_269] : memref<256x128xbf16, #tpu.memory_space<vmem>>, vector<256x128xbf16>
    %cst_270 = arith.constant dense<0.000000e+00> : vector<8x128xf32>
    %707 = tpu.matmul %705, %706, %cst_270 {dimension_numbers = #tpu.dot_dimension_numbers<[1], [0], [0], [1], [0, 0, 1, 1], [], []>} : vector<8x256xbf16>, vector<256x128xbf16>, vector<8x128xf32> -> vector<8x128xf32>
    %c0_271 = arith.constant 0 : index
    %c0_272 = arith.constant 0 : index
    %708 = vector.load %arg39[%c0_271, %c0_272] : memref<1x128xf32, #tpu.memory_space<vmem>>, vector<1x128xf32>
    %709 = vector.broadcast %708 : vector<1x128xf32> to vector<8x128xf32>
    %710 = arith.addf %707, %709 : vector<8x128xf32>
    %711 = arith.addf %661, %710 : vector<8x128xf32>
    %c0_273 = arith.constant 0 : index
    %c0_274 = arith.constant 0 : index
    %712 = vector.load %arg40[%c0_273, %c0_274] : memref<1x128xf32, #tpu.memory_space<vmem>>, vector<1x128xf32>
    %c0_275 = arith.constant 0 : index
    %c0_276 = arith.constant 0 : index
    %713 = vector.load %arg41[%c0_275, %c0_276] : memref<1x128xf32, #tpu.memory_space<vmem>>, vector<1x128xf32>
    %cst_277 = arith.constant dense<0.000000e+00> : vector<8xf32>
    %714 = vector.multi_reduction <add>, %711, %cst_277 [1] : vector<8x128xf32> to vector<8xf32>
    %715 = vector.shape_cast %714 : vector<8xf32> to vector<8x1xf32>
    %cst_278 = arith.constant 1.280000e+02 : f32
    %716 = vector.broadcast %cst_278 : f32 to vector<8x1xf32>
    %717 = arith.divf %715, %716 : vector<8x1xf32>
    %718 = vector.broadcast %717 : vector<8x1xf32> to vector<8x128xf32>
    %719 = arith.subf %711, %718 : vector<8x128xf32>
    %720 = arith.mulf %719, %719 : vector<8x128xf32>
    %cst_279 = arith.constant dense<0.000000e+00> : vector<8xf32>
    %721 = vector.multi_reduction <add>, %720, %cst_279 [1] : vector<8x128xf32> to vector<8xf32>
    %722 = vector.shape_cast %721 : vector<8xf32> to vector<8x1xf32>
    %cst_280 = arith.constant 1.280000e+02 : f32
    %723 = vector.broadcast %cst_280 : f32 to vector<8x1xf32>
    %724 = arith.divf %722, %723 : vector<8x1xf32>
    %725 = vector.broadcast %717 : vector<8x1xf32> to vector<8x128xf32>
    %726 = arith.subf %711, %725 : vector<8x128xf32>
    %cst_281 = arith.constant 9.99999974E-6 : f32
    %727 = vector.broadcast %cst_281 : f32 to vector<8x1xf32>
    %728 = arith.addf %724, %727 : vector<8x1xf32>
    %729 = math.rsqrt %728 : vector<8x1xf32>
    %730 = vector.broadcast %729 : vector<8x1xf32> to vector<8x128xf32>
    %731 = arith.mulf %726, %730 : vector<8x128xf32>
    %732 = vector.broadcast %712 : vector<1x128xf32> to vector<8x128xf32>
    %733 = arith.mulf %731, %732 : vector<8x128xf32>
    %734 = vector.broadcast %713 : vector<1x128xf32> to vector<8x128xf32>
    %735 = arith.addf %733, %734 : vector<8x128xf32>
    %736 = arith.truncf %735 : vector<8x128xf32> to vector<8x128xbf16>
    %c0_282 = arith.constant 0 : index
    %c0_283 = arith.constant 0 : index
    %737 = vector.load %arg42[%c0_282, %c0_283] : memref<128x128xbf16, #tpu.memory_space<vmem>>, vector<128x128xbf16>
    %cst_284 = arith.constant dense<0.000000e+00> : vector<8x128xf32>
    %738 = tpu.matmul %736, %737, %cst_284 {dimension_numbers = #tpu.dot_dimension_numbers<[1], [0], [0], [1], [0, 0, 1, 1], [], []>} : vector<8x128xbf16>, vector<128x128xbf16>, vector<8x128xf32> -> vector<8x128xf32>
    %c0_285 = arith.constant 0 : index
    %c0_286 = arith.constant 0 : index
    %739 = vector.load %arg43[%c0_285, %c0_286] : memref<1x128xf32, #tpu.memory_space<vmem>>, vector<1x128xf32>
    %740 = vector.broadcast %739 : vector<1x128xf32> to vector<8x128xf32>
    %741 = arith.addf %738, %740 : vector<8x128xf32>
    %c0_287 = arith.constant 0 : index
    %c0_288 = arith.constant 0 : index
    %c0_289 = arith.constant 0 : index
    %742 = vector.load %arg44[%c0_287, %c0_288, %c0_289] : memref<1x8x128xf32, #tpu.memory_space<vmem>>, vector<1x8x128xf32>
    %743 = vector.shape_cast %742 : vector<1x8x128xf32> to vector<8x128xf32>
    %744 = vector.shape_cast %741 : vector<8x128xf32> to vector<1x8x128xf32>
    tpu.vector_store %arg44[%c0_287, %c0_288, %c0_289], %744 {strides = array<i32>} : memref<1x8x128xf32, #tpu.memory_space<vmem>>, vector<1x8x128xf32>,
    return
  }
  func.func @transform_0(%arg0: i32) -> (i32, i32, i32) {
    %c0_i32 = arith.constant 0 : i32
    %c0_i32_0 = arith.constant 0 : i32
    %c0_i32_1 = arith.constant 0 : i32
    return %arg0, %c0_i32, %c0_i32_0 : i32, i32, i32
  }
  func.func @transform_1(%arg0: i32) -> (i32, i32, i32) {
    %c0_i32 = arith.constant 0 : i32
    %c0_i32_0 = arith.constant 0 : i32
    %c0_i32_1 = arith.constant 0 : i32
    return %arg0, %c0_i32, %c0_i32_0 : i32, i32, i32
  }
  func.func @transform_2(%arg0: i32) -> (i32, i32) {
    %c0_i32 = arith.constant 0 : i32
    %c0_i32_0 = arith.constant 0 : i32
    %c0_i32_1 = arith.constant 0 : i32
    return %c0_i32, %c0_i32_0 : i32, i32
  }
  func.func @transform_3(%arg0: i32) -> (i32, i32) {
    %c0_i32 = arith.constant 0 : i32
    %c0_i32_0 = arith.constant 0 : i32
    %c0_i32_1 = arith.constant 0 : i32
    return %c0_i32, %c0_i32_0 : i32, i32
  }
  func.func @transform_4(%arg0: i32) -> (i32, i32) {
    %c0_i32 = arith.constant 0 : i32
    %c0_i32_0 = arith.constant 0 : i32
    %c0_i32_1 = arith.constant 0 : i32
    return %c0_i32, %c0_i32_0 : i32, i32
  }
  func.func @transform_5(%arg0: i32) -> (i32, i32, i32) {
    %c0_i32 = arith.constant 0 : i32
    %c0_i32_0 = arith.constant 0 : i32
    %c0_i32_1 = arith.constant 0 : i32
    %c0_i32_2 = arith.constant 0 : i32
    return %c0_i32, %c0_i32_0, %c0_i32_1 : i32, i32, i32
  }
  func.func @transform_6(%arg0: i32) -> (i32, i32, i32) {
    %c0_i32 = arith.constant 0 : i32
    %c0_i32_0 = arith.constant 0 : i32
    %c0_i32_1 = arith.constant 0 : i32
    %c0_i32_2 = arith.constant 0 : i32
    return %c0_i32, %c0_i32_0, %c0_i32_1 : i32, i32, i32
  }
  func.func @transform_7(%arg0: i32) -> (i32, i32, i32) {
    %c0_i32 = arith.constant 0 : i32
    %c0_i32_0 = arith.constant 0 : i32
    %c0_i32_1 = arith.constant 0 : i32
    %c0_i32_2 = arith.constant 0 : i32
    return %c0_i32, %c0_i32_0, %c0_i32_1 : i32, i32, i32
  }
  func.func @transform_8(%arg0: i32) -> (i32, i32, i32) {
    %c0_i32 = arith.constant 0 : i32
    %c0_i32_0 = arith.constant 0 : i32
    %c0_i32_1 = arith.constant 0 : i32
    %c0_i32_2 = arith.constant 0 : i32
    return %c0_i32, %c0_i32_0, %c0_i32_1 : i32, i32, i32
  }
  func.func @transform_9(%arg0: i32) -> (i32, i32, i32) {
    %c0_i32 = arith.constant 0 : i32
    %c0_i32_0 = arith.constant 0 : i32
    %c0_i32_1 = arith.constant 0 : i32
    %c0_i32_2 = arith.constant 0 : i32
    return %c0_i32, %c0_i32_0, %c0_i32_1 : i32, i32, i32
  }
  func.func @transform_10(%arg0: i32) -> (i32, i32, i32) {
    %c0_i32 = arith.constant 0 : i32
    %c0_i32_0 = arith.constant 0 : i32
    %c0_i32_1 = arith.constant 0 : i32
    %c0_i32_2 = arith.constant 0 : i32
    return %c0_i32, %c0_i32_0, %c0_i32_1 : i32, i32, i32
  }
  func.func @transform_11(%arg0: i32) -> (i32, i32, i32) {
    %c0_i32 = arith.constant 0 : i32
    %c0_i32_0 = arith.constant 0 : i32
    %c0_i32_1 = arith.constant 0 : i32
    %c0_i32_2 = arith.constant 0 : i32
    return %c0_i32, %c0_i32_0, %c0_i32_1 : i32, i32, i32
  }
  func.func @transform_12(%arg0: i32) -> (i32, i32, i32) {
    %c0_i32 = arith.constant 0 : i32
    %c0_i32_0 = arith.constant 0 : i32
    %c0_i32_1 = arith.constant 0 : i32
    %c0_i32_2 = arith.constant 0 : i32
    return %c0_i32, %c0_i32_0, %c0_i32_1 : i32, i32, i32
  }
  func.func @transform_13(%arg0: i32) -> (i32, i32, i32) {
    %c0_i32 = arith.constant 0 : i32
    %c0_i32_0 = arith.constant 0 : i32
    %c0_i32_1 = arith.constant 0 : i32
    %c0_i32_2 = arith.constant 0 : i32
    return %c0_i32, %c0_i32_0, %c0_i32_1 : i32, i32, i32
  }
  func.func @transform_14(%arg0: i32) -> (i32, i32, i32) {
    %c0_i32 = arith.constant 0 : i32
    %c0_i32_0 = arith.constant 0 : i32
    %c0_i32_1 = arith.constant 0 : i32
    %c0_i32_2 = arith.constant 0 : i32
    return %c0_i32, %c0_i32_0, %c0_i32_1 : i32, i32, i32
  }
  func.func @transform_15(%arg0: i32) -> (i32, i32, i32) {
    %c0_i32 = arith.constant 0 : i32
    %c0_i32_0 = arith.constant 0 : i32
    %c0_i32_1 = arith.constant 0 : i32
    %c0_i32_2 = arith.constant 0 : i32
    return %c0_i32, %c0_i32_0, %c0_i32_1 : i32, i32, i32
  }
  func.func @transform_16(%arg0: i32) -> (i32, i32, i32) {
    %c0_i32 = arith.constant 0 : i32
    %c0_i32_0 = arith.constant 0 : i32
    %c0_i32_1 = arith.constant 0 : i32
    %c0_i32_2 = arith.constant 0 : i32
    return %c0_i32, %c0_i32_0, %c0_i32_1 : i32, i32, i32
  }
  func.func @transform_17(%arg0: i32) -> (i32, i32) {
    %c0_i32 = arith.constant 0 : i32
    %c0_i32_0 = arith.constant 0 : i32
    %c0_i32_1 = arith.constant 0 : i32
    return %c0_i32, %c0_i32_0 : i32, i32
  }
  func.func @transform_18(%arg0: i32) -> (i32, i32) {
    %c0_i32 = arith.constant 0 : i32
    %c0_i32_0 = arith.constant 0 : i32
    %c0_i32_1 = arith.constant 0 : i32
    return %c0_i32, %c0_i32_0 : i32, i32
  }
  func.func @transform_19(%arg0: i32) -> (i32, i32) {
    %c0_i32 = arith.constant 0 : i32
    %c0_i32_0 = arith.constant 0 : i32
    %c0_i32_1 = arith.constant 0 : i32
    return %c0_i32, %c0_i32_0 : i32, i32
  }
  func.func @transform_20(%arg0: i32) -> (i32, i32) {
    %c0_i32 = arith.constant 0 : i32
    %c0_i32_0 = arith.constant 0 : i32
    %c0_i32_1 = arith.constant 0 : i32
    return %c0_i32, %c0_i32_0 : i32, i32
  }
  func.func @transform_21(%arg0: i32) -> (i32, i32) {
    %c0_i32 = arith.constant 0 : i32
    %c0_i32_0 = arith.constant 0 : i32
    %c0_i32_1 = arith.constant 0 : i32
    return %c0_i32, %c0_i32_0 : i32, i32
  }
  func.func @transform_22(%arg0: i32) -> (i32, i32) {
    %c0_i32 = arith.constant 0 : i32
    %c0_i32_0 = arith.constant 0 : i32
    %c0_i32_1 = arith.constant 0 : i32
    return %c0_i32, %c0_i32_0 : i32, i32
  }
  func.func @transform_23(%arg0: i32) -> (i32, i32) {
    %c0_i32 = arith.constant 0 : i32
    %c0_i32_0 = arith.constant 0 : i32
    %c0_i32_1 = arith.constant 0 : i32
    return %c0_i32, %c0_i32_0 : i32, i32
  }
  func.func @transform_24(%arg0: i32) -> (i32, i32) {
    %c0_i32 = arith.constant 0 : i32
    %c0_i32_0 = arith.constant 0 : i32
    %c0_i32_1 = arith.constant 0 : i32
    return %c0_i32, %c0_i32_0 : i32, i32
  }
  func.func @transform_25(%arg0: i32) -> (i32, i32) {
    %c0_i32 = arith.constant 0 : i32
    %c0_i32_0 = arith.constant 0 : i32
    %c0_i32_1 = arith.constant 0 : i32
    return %c0_i32, %c0_i32_0 : i32, i32
  }
  func.func @transform_26(%arg0: i32) -> (i32, i32) {
    %c0_i32 = arith.constant 0 : i32
    %c0_i32_0 = arith.constant 0 : i32
    %c0_i32_1 = arith.constant 0 : i32
    return %c0_i32, %c0_i32_0 : i32, i32
  }
  func.func @transform_27(%arg0: i32) -> (i32, i32) {
    %c0_i32 = arith.constant 0 : i32
    %c0_i32_0 = arith.constant 0 : i32
    %c0_i32_1 = arith.constant 0 : i32
    return %c0_i32, %c0_i32_0 : i32, i32
  }
  func.func @transform_28(%arg0: i32) -> (i32, i32) {
    %c0_i32 = arith.constant 0 : i32
    %c0_i32_0 = arith.constant 0 : i32
    %c0_i32_1 = arith.constant 0 : i32
    return %c0_i32, %c0_i32_0 : i32, i32
  }
  func.func @transform_29(%arg0: i32) -> (i32, i32) {
    %c0_i32 = arith.constant 0 : i32
    %c0_i32_0 = arith.constant 0 : i32
    %c0_i32_1 = arith.constant 0 : i32
    return %c0_i32, %c0_i32_0 : i32, i32
  }
  func.func @transform_30(%arg0: i32) -> (i32, i32) {
    %c0_i32 = arith.constant 0 : i32
    %c0_i32_0 = arith.constant 0 : i32
    %c0_i32_1 = arith.constant 0 : i32
    return %c0_i32, %c0_i32_0 : i32, i32
  }
  func.func @transform_31(%arg0: i32) -> (i32, i32) {
    %c0_i32 = arith.constant 0 : i32
    %c0_i32_0 = arith.constant 0 : i32
    %c0_i32_1 = arith.constant 0 : i32
    return %c0_i32, %c0_i32_0 : i32, i32
  }
  func.func @transform_32(%arg0: i32) -> (i32, i32) {
    %c0_i32 = arith.constant 0 : i32
    %c0_i32_0 = arith.constant 0 : i32
    %c0_i32_1 = arith.constant 0 : i32
    return %c0_i32, %c0_i32_0 : i32, i32
  }
  func.func @transform_33(%arg0: i32) -> (i32, i32) {
    %c0_i32 = arith.constant 0 : i32
    %c0_i32_0 = arith.constant 0 : i32
    %c0_i32_1 = arith.constant 0 : i32
    return %c0_i32, %c0_i32_0 : i32, i32
  }
  func.func @transform_34(%arg0: i32) -> (i32, i32) {
    %c0_i32 = arith.constant 0 : i32
    %c0_i32_0 = arith.constant 0 : i32
    %c0_i32_1 = arith.constant 0 : i32
    return %c0_i32, %c0_i32_0 : i32, i32
  }
  func.func @transform_35(%arg0: i32) -> (i32, i32) {
    %c0_i32 = arith.constant 0 : i32
    %c0_i32_0 = arith.constant 0 : i32
    %c0_i32_1 = arith.constant 0 : i32
    return %c0_i32, %c0_i32_0 : i32, i32
  }
  func.func @transform_36(%arg0: i32) -> (i32, i32) {
    %c0_i32 = arith.constant 0 : i32
    %c0_i32_0 = arith.constant 0 : i32
    %c0_i32_1 = arith.constant 0 : i32
    return %c0_i32, %c0_i32_0 : i32, i32
  }
  func.func @transform_37(%arg0: i32) -> (i32, i32) {
    %c0_i32 = arith.constant 0 : i32
    %c0_i32_0 = arith.constant 0 : i32
    %c0_i32_1 = arith.constant 0 : i32
    return %c0_i32, %c0_i32_0 : i32, i32
  }
  func.func @transform_38(%arg0: i32) -> (i32, i32) {
    %c0_i32 = arith.constant 0 : i32
    %c0_i32_0 = arith.constant 0 : i32
    %c0_i32_1 = arith.constant 0 : i32
    return %c0_i32, %c0_i32_0 : i32, i32
  }
  func.func @transform_39(%arg0: i32) -> (i32, i32) {
    %c0_i32 = arith.constant 0 : i32
    %c0_i32_0 = arith.constant 0 : i32
    %c0_i32_1 = arith.constant 0 : i32
    return %c0_i32, %c0_i32_0 : i32, i32
  }
  func.func @transform_40(%arg0: i32) -> (i32, i32) {
    %c0_i32 = arith.constant 0 : i32
    %c0_i32_0 = arith.constant 0 : i32
    %c0_i32_1 = arith.constant 0 : i32
    return %c0_i32, %c0_i32_0 : i32, i32
  }
  func.func @transform_41(%arg0: i32) -> (i32, i32) {
    %c0_i32 = arith.constant 0 : i32
    %c0_i32_0 = arith.constant 0 : i32
    %c0_i32_1 = arith.constant 0 : i32
    return %c0_i32, %c0_i32_0 : i32, i32
  }
  func.func @transform_42(%arg0: i32) -> (i32, i32) {
    %c0_i32 = arith.constant 0 : i32
    %c0_i32_0 = arith.constant 0 : i32
    %c0_i32_1 = arith.constant 0 : i32
    return %c0_i32, %c0_i32_0 : i32, i32
  }
  func.func @transform_43(%arg0: i32) -> (i32, i32, i32) {
    %c0_i32 = arith.constant 0 : i32
    %c0_i32_0 = arith.constant 0 : i32
    %c0_i32_1 = arith.constant 0 : i32
    return %arg0, %c0_i32, %c0_i32_0 : i32, i32, i32
  }
}

</mosaic_0001>

<bundles_post_ra>
// kernel: double_trouble_forward.1
= control target key start
LH: loop header
LB: loop body
LE: loop exit
PB: predicated region body
PF: predicated region fallthrough
CT: control target
= control target key end

     0   :  { %s9212_s6 = smov 1   ;;  %s9213_s10 = smov 2   ;;  %s10542_s0 = inlined_call_operand.smem [shape: u32[44], index: -1, kind: input, shape index: {}] }
   0x1   :  { %s9316_s5 = sld [smem:[%s10542_s0]]   ;;  %s9214_s14 = smov 3  }
   0x2   :  { %s9321_s9 = sld [smem:[%s10542_s0 + %s9212_s6]]   ;;  %s9215_s18 = smov 4  }
   0x3   :  { %s9326_s13 = sld [smem:[%s10542_s0 + %s9213_s10]]   ;;  %s9216_s22 = smov 5  }
   0x4   :  { %s9331_s17 = sld [smem:[%s10542_s0 + %s9214_s14]]   ;;  %s9217_s26 = smov 6  }
   0x5   :  { %s9336_s21 = sld [smem:[%s10542_s0 + %s9215_s18]]   ;;  %s9218_s30 = smov 7  }
   0x6   :  { %s9341_s25 = sld [smem:[%s10542_s0 + %s9216_s22]]   ;;  %s9219_s4 = smov 8  }
   0x7   :  { %10618 = sst [smem:[#allocation79_spill]] %s9316_s5  ;;  %s9220_s10 = smov 9  }
   0x8   :  { %10619 = sst [smem:[#allocation80_spill]] %s9321_s9  ;;  %s9221_s15 = smov 10  }
   0x9   :  { %10620 = sst [smem:[#allocation81_spill]] %s9326_s13  ;;  %s9222_s20 = smov 11  }
   0xa   :  { %10621 = sst [smem:[#allocation82_spill]] %s9331_s17  ;;  %s9224_s1 = smov 13  }
   0xb   :  { %10622 = sst [smem:[#allocation83_spill]] %s9336_s21  ;;  %s9225_s7 = smov 14  }
   0xc   :  { %10623 = sst [smem:[#allocation84_spill]] %s9341_s25  ;;  %s9227_s22 = smov 16  }
   0xd   :  { %s9346_s29 = sld [smem:[%s10542_s0 + %s9217_s26]]   ;;  %s9223_s26 = smov 12  }
   0xe   :  { %s9351_s3 = sld [smem:[%s10542_s0 + %s9218_s30]]   ;;  %s9228_s28 = smov 17  }
   0xf   :  { %s9356_s8 = sld [smem:[%s10542_s0 + %s9219_s4]]  }
  0x10   :  { %s9361_s14 = sld [smem:[%s10542_s0 + %s9220_s10]]  }
  0x11   :  { %s9366_s19 = sld [smem:[%s10542_s0 + %s9221_s15]]   ;;  %s9226_s15 = smov 15  }
  0x12   :  { %s9371_s24 = sld [smem:[%s10542_s0 + %s9222_s20]]  }
  0x13   :  { %10624 = sst [smem:[#allocation85_spill]] %s9346_s29 }
  0x14   :  { %10625 = sst [smem:[#allocation86_spill]] %s9351_s3 }
  0x15   :  { %10626 = sst [smem:[#allocation87_spill]] %s9356_s8 }
  0x16   :  { %10627 = sst [smem:[#allocation88_spill]] %s9361_s14 }
  0x17   :  { %10628 = sst [smem:[#allocation89_spill]] %s9366_s19 }
  0x18   :  { %10629 = sst [smem:[#allocation90_spill]] %s9371_s24 }
  0x19   :  { %s9376_s30 = sld [smem:[%s10542_s0 + %s9223_s26]]  }
  0x1a   :  { %s9381_s6 = sld [smem:[%s10542_s0 + %s9224_s1]]  }
  0x1b   :  { %s9386_s12 = sld [smem:[%s10542_s0 + %s9225_s7]]   ;;  %s9229_s7 = smov 18  }
  0x1c   :  { %s9391_s20 = sld [smem:[%s10542_s0 + %s9226_s15]]   ;;  %s9230_s15 = smov 19  }
  0x1d   :  { %s9396_s27 = sld [smem:[%s10542_s0 + %s9227_s22]]   ;;  %s9231_s22 = smov 20  }
  0x1e   :  { %s9401_s4 = sld [smem:[%s10542_s0 + %s9228_s28]]   ;;  %s9232_s28 = smov 21  }
  0x1f   :  { %10630 = sst [smem:[#allocation91_spill]] %s9376_s30 }
  0x20   :  { %10631 = sst [smem:[#allocation92_spill]] %s9381_s6 }
  0x21   :  { %10632 = sst [smem:[#allocation93_spill]] %s9386_s12 }
  0x22   :  { %10633 = sst [smem:[#allocation94_spill]] %s9391_s20 }
  0x23   :  { %s9406_s5 = sld [smem:[%s10542_s0 + %s9229_s7]]   ;;  %s9233_s7 = smov 22  }
  0x24   :  { %10634 = sst [smem:[#allocation95_spill]] %s9401_s4 }
  0x25   :  { %s9411_s24 = sld [smem:[%s10542_s0 + %s9230_s15]]   ;;  %s9234_s15 = smov 23  }
  0x26   :  { %s9416_s8 = sld [smem:[%s10542_s0 + %s9231_s22]]   ;;  %s9235_s22 = smov 24  }
  0x27   :  { %s9421_s25 = sld [smem:[%s10542_s0 + %s9232_s28]]   ;;  %s9236_s28 = smov 25  }
  0x28   :  { %s9426_s21 = sld [smem:[%s10542_s0 + %s9233_s7]]   ;;  %s9237_s7 = smov 26  }
  0x29   :  { %10635 = sst [smem:[#allocation96_spill]] %s9406_s5 }
  0x2a   :  { %s9431_s17 = sld [smem:[%s10542_s0 + %s9234_s15]]   ;;  %s9238_s15 = smov 27  }
  0x2b   :  { %10636 = sst [smem:[#allocation97_spill]] %s9411_s24 }
  0x2c   :  { %10637 = sst [smem:[#allocation98_spill]] %s9416_s8 }
  0x2d   :  { %10638 = sst [smem:[#allocation99_spill]] %s9421_s25 }
  0x2e   :  { %s9436_s13 = sld [smem:[%s10542_s0 + %s9235_s22]]   ;;  %s9239_s22 = smov 28  }
  0x2f   :  { %s9441_s9 = sld [smem:[%s10542_s0 + %s9236_s28]]   ;;  %s9240_s28 = smov 29  }
  0x30   :  { %10639 = sst [smem:[#allocation100_spill]] %s9431_s17 }
  0x31   :  { %s9446_s25 = sld [smem:[%s10542_s0 + %s9237_s7]]   ;;  %s9241_s7 = smov 30  }
  0x32   :  { %s9451_s17 = sld [smem:[%s10542_s0 + %s9238_s15]]   ;;  %s9242_s15 = smov 31  }
  0x33   :  { %s9456_s24 = sld [smem:[%s10542_s0 + %s9239_s22]]   ;;  %s9243_s22 = smov 32  }
  0x34   :  { %10640 = sst [smem:[#allocation101_spill]] %s9436_s13 }
  0x35   :  { %10641 = sst [smem:[#allocation102_spill]] %s9441_s9 }
  0x36   :  { %s9461_s9 = sld [smem:[%s10542_s0 + %s9240_s28]]   ;;  %s9244_s28 = smov 33  }
  0x37   :  { %s9466_s4 = sld [smem:[%s10542_s0 + %s9241_s7]]   ;;  %s9245_s7 = smov 34  }
  0x38   :  { %10642 = sst [smem:[#allocation103_spill]] %s9451_s17 }
  0x39   :  { %s9471_s17 = sld [smem:[%s10542_s0 + %s9242_s15]]   ;;  %s9246_s15 = smov 35  }
  0x3a   :  { %s9476_s20 = sld [smem:[%s10542_s0 + %s9243_s22]]   ;;  %s9247_s22 = smov 36  }
  0x3b   :  { %s9486_s6 = sld [smem:[%s10542_s0 + %s9245_s7]]   ;;  %s9249_s7 = smov 38  }
  0x3c   :  { %10643 = sst [smem:[#allocation104_spill]] %s9461_s9 }
  0x3d   :  { %10644 = sst [smem:[#allocation105_spill]] %s9466_s4 }
  0x3e   :  { %s9481_s9 = sld [smem:[%s10542_s0 + %s9244_s28]]   ;;  %s9248_s28 = smov 37  }
  0x3f   :  { %10645 = sst [smem:[#allocation106_spill]] %s9471_s17 }
  0x40   :  { %s9491_s17 = sld [smem:[%s10542_s0 + %s9246_s15]]   ;;  %s9250_s15 = smov 39  }
  0x41   :  { %10647 = sst [smem:[#allocation108_spill]] %s9486_s6 }
  0x42   :  { %s9496_s19 = sld [smem:[%s10542_s0 + %s9247_s22]]   ;;  %s9251_s22 = smov 40  }
  0x43   :  { %s9506_s3 = sld [smem:[%s10542_s0 + %s9249_s7]]   ;;  %s9253_s7 = smov 42  }
  0x44   :  { %10646 = sst [smem:[#allocation107_spill]] %s9481_s9 }
  0x45   :  { %s9501_s9 = sld [smem:[%s10542_s0 + %s9248_s28]]   ;;  %s9252_s28 = smov 41  }
  0x46   :  { %10648 = sst [smem:[#allocation109_spill]] %s9491_s17 }
  0x47   :  { %s9511_s17 = sld [smem:[%s10542_s0 + %s9250_s15]]   ;;  %s9254_s15 = smov 43  }
  0x48   :  { %10649 = sst [smem:[#allocation110_spill]] %s9496_s19 }
  0x49   :  { %10651 = sst [smem:[#allocation112_spill]] %s9506_s3 }
  0x4a   :  { %s9516_s19 = sld [smem:[%s10542_s0 + %s9251_s22]]  }
  0x4b   :  { %10650 = sst [smem:[#allocation111_spill]] %s9501_s9 }
  0x4c   :  { %s9521_s9 = sld [smem:[%s10542_s0 + %s9252_s28]]  }
  0x4d   :  { %10652 = sst [smem:[#allocation113_spill]] %s9511_s17 }
  0x4e   :  { %s9526_s3 = sld [smem:[%s10542_s0 + %s9253_s7]]  }
  0x4f   :  { %s9531_s17 = sld [smem:[%s10542_s0 + %s9254_s15]]  }
  0x54   :  { %10653 = sst [smem:[#allocation114_spill]] %s9526_s3 }
  0x55   :  { %10654 = sst [smem:[#allocation115_spill]] %s9531_s17 }
  0x56   :  { %92 = vsyncpa [#allocation3], 0 }
  0x57   :  { %94 = vsyncpa [#allocation3 + $0x1], 0 }
  0x58   :  { %95 = vsyncpa [#allocation6], 0 }
  0x59   :  { %96 = vsyncpa [#allocation9], 0 }
  0x5a   :  { %97 = vsyncpa [#allocation12], 0 }
  0x5b   :  { %98 = vsyncpa [#allocation15], 0 }
  0x5c   :  { %99 = vsyncpa [#allocation18], 0 }
  0x5d   :  { %100 = vsyncpa [#allocation21], 0 }
  0x5e   :  { %101 = vsyncpa [#allocation24], 0 }
  0x5f   :  { %102 = vsyncpa [#allocation27], 0 }
  0x60   :  { %103 = vsyncpa [#allocation30], 0 }
  0x61   :  { %104 = vsyncpa [#allocation33], 0 }
  0x62   :  { %105 = vsyncpa [#allocation36], 0 }
  0x63   :  { %106 = vsyncpa [#allocation39], 0 }
  0x64   :  { %107 = vsyncpa [#allocation42], 0 }
  0x65   :  { %108 = vsyncpa [#allocation45], 0 }
  0x66   :  { %109 = vsyncpa [#allocation48], 0 }
  0x67   :  { %110 = vsyncpa [#allocation51], 0 }
  0x68   :  { %111 = vsyncpa [#allocation54], 0 }
  0x69   :  { %112 = vsyncpa [#allocation57], 0 }
  0x6a   :  { %113 = vsyncpa [#allocation4], 0 }
  0x6b   :  { %115 = vsyncpa [#allocation4 + $0x1], 0  ;;  %s9533_s0 = smov 0   ;;  %s9535_s22 = smov 0  }
  0x6c   :  { %s9537_s23 = smov 0   ;;  %s9539_s26 = smov 0  }
  0x6d LB: > { %s10655_s3 = sld [smem:[#allocation114_spill]]  ;;  %s9554_s28 = sadd.s32 4294967295, %s9210_s26   ;;  %s9202_s22 = sphi %s9535_s22, %s10760_s22   ;;  %s9198_s0 = sphi %s9533_s0, %s10758_s0   ;;  %s9210_s26 = sphi %s9539_s26, %s10757_s26   ;;  %s9206_s23 = sphi %s9537_s23, %s10761_s23  }
  0x6e   : > { %s10656_s13 = sld [smem:[#allocation101_spill]]  ;;  %s6171_s1 = sadd.s32 4294967294, %s9210_s26  }
  0x6f   : > { %s10657_s12 = sld [smem:[#allocation93_spill]]  ;;  %s9558_s2 = sadd.s32 1, %s9210_s26  }
  0x70   : > { %s10658_s8 = sld [smem:[#allocation98_spill]]  ;;  %s154_s7 = sadd.s32 1, %s9206_s23 }
  0x71   : > { %s10659_s6 = sld [smem:[#allocation108_spill]]  ;;  %s151_s10 = ssub.s32 %s9210_s26, %s9558_s2 }
  0x72   : > { %s10660_s5 = sld [smem:[#allocation96_spill]]  ;;  %p161_p0 = scmp.ne.s32.totalorder %s9206_s23, %s9202_s22 }
  0x73   : > { %s10661_s4 = sld [smem:[#allocation105_spill]]  ;;  %p152_p1 = scmp.eq.s32.totalorder %s151_s10, 0 }
  0x74   : > { %s10662_s30 = sld [smem:[#allocation91_spill]]  ;;  %p162_p2 = scmp.eq.s32.totalorder %s9210_s26, 0 }
  0x75   : > { %s10663_s14 = sld [smem:[#allocation88_spill]]  ;;  %p167_p3 = scmp.ne.s32.totalorder %s9202_s22, %s9198_s0 }
  0x76   : > { %s10664_s29 = sld [smem:[#allocation85_spill]]  ;;  %p10613_p4 = scmp.eq.s32.totalorder %s9554_s28, 0 }
  0x77   : > { %10665 = sst [smem:[#allocation116_spill]] %s9198_s0  ;;  %p9572_p5 = por %p162_p2, %p161_p0 }
  0x78   : > { %10666 = sst [smem:[#allocation117_spill]] %s9202_s22  ;;  %p9578_p6 = por %p10613_p4, %p167_p3 }
  0x79   : > { %10667 = sst [smem:[#allocation118_spill]] %s9558_s2  ;;  %p1052_p7 = scmp.eq.s32.totalorder %s9554_s28, 1 }
  0x7a   : > { %s9570_s11 = scalar_select %p152_p1, %s9206_s23, %s154_s7  }
  0x7b   : > { %s10670_s16 = scalar_select %p9578_p6, 1, 0 }
  0x7c   : > { %10668 = sst [smem:[#allocation119_spill]] %s9570_s11  ;;  %p1058_p8 = scmp.eq.s32.totalorder %s6171_s1, 1 }
  0x7d   : > { %10671 = sst [smem:[#allocation120_spill]] %s10670_s16  ;;  %p6172_p9 = scmp.ge.s32.totalorder %s9210_s26, 1 }
  0x7e   : > { %p1065_p10 = scmp.lt.s32.totalorder %s9210_s26, 3  ;;  %p9585_p11 = por %p1052_p7, %p161_p0 }
  0x7f   : > { %p9589_p12 = por %p1058_p8, %p167_p3 }
  0x80   : > { %s10672_s18 = scalar_select %p9585_p11, 1, 0 }
  0x81   : > { %s10674_s7 = scalar_select %p9589_p12, 1, 0 }
  0x82   : > { %10673 = sst [smem:[#allocation121_spill]] %s10672_s18  ;;  %p9593_p13 = pnand %p6172_p9, %p1065_p10 }
  0x83   : > { %10675 = sst [smem:[#allocation122_spill]] %s10674_s7  ;;  %s1088_s1 = sshll.u32 (!%p9593_p13), %s10664_s29, 4  ;;  %s1089_s1 = int_to_ptr.hbm [resolvable:$true] %s1088_s1 }
  0x84   : > { %s10676_s10 = scalar_select %p9593_p13, 1, 0 }
  0x85   : > { %1069 = sbr.rel (%p9593_p13) target bundleno = 598 (0x256), region = 12  ;;  %s9255_s11 = smov (!%p9593_p13), [#allocation5]  }
  0x86   : > { %10677 = sst [smem:[#allocation123_spill]] %s10676_s10  ;;  %s1090_s2 = sshll.u32 (!%p9593_p13), %s9255_s11, 4  ;;  %s1091_s2 = int_to_ptr.vmem [resolvable:$true] %s1090_s2 }
  0x87   : > { %s8062_s0 = sshra.s32 (!%p9593_p13), %s1089_s1, 4  ;;  %s8068_s7 = scalar_lea.hbm (!%p9593_p13), %s10664_s29, 2  ;;  %s8063_s0 = int_to_ptr.hbm [resolvable:$true] %s8062_s0 }
  0x88   : > { %s8064_s18 = scalar_lea.hbm (!%p9593_p13), %s8063_s0, 2  ;;  %p8069_p3 = scmp.lt.s32.totalorder (!%p9593_p13), %s8063_s0, %s10664_s29 }
  0x89   : > { %p8065_p0 = scmp.ne.s32.totalorder (!%p9593_p13), %s8063_s0, %s8064_s18  ;;  %p8070_p7 = scmp.lt.s32.totalorder (!%p9593_p13), %s8068_s7, %s8064_s18 }
  0x8b   : > { %p8066_p1 = pnand %p8065_p0, %p10613_p4  ;;  %p8071_p8 = por %p8070_p7, %p8069_p3 }
  0x8d   : > { %p8067_p2 = pneg %p8066_p1 }
  0x8f   : > { %p8072_p9 = pnand %p8071_p8, %p8067_p2 }
  0x91   : > { %8075 = shalt.err (!%p8072_p9)
}
  0x92   : > { %s10579_s17 = smov 16   ;;  %s10581_s11 = smov 1  }
  0x93   : > { %7511 = dma.hbm_to_vmem [thread:$0]  (%p10613_p4), %s1089_s1, 32, %s1091_s2, [#allocation6], %s10579_s17, %s10579_s17, %s10581_s11  }
  0x94   : > { %s1119_s16 = sshll.u32 %s10663_s14, 4  ;;  %s9258_s0 = smov [#allocation8]   ;;  %s1120_s16 = int_to_ptr.hbm [resolvable:$true] %s1119_s16 }
  0x95   : > { %s1121_s18 = sshll.u32 %s9258_s0, 4  ;;  %s1150_s7 = sshll.u32 %s10662_s30, 4  ;;  %s1122_s18 = int_to_ptr.vmem [resolvable:$true] %s1121_s18  ;;  %s1151_s7 = int_to_ptr.hbm [resolvable:$true] %s1150_s7 }
  0x96   : > { %s8090_s29 = sshra.s32 %s1120_s16, 4  ;;  %s8096_s10 = scalar_lea.hbm %s10663_s14, 128  ;;  %s8091_s29 = int_to_ptr.hbm [resolvable:$true] %s8090_s29 }
  0x97   : > { %s8092_s22 = scalar_lea.hbm %s8091_s29, 128  ;;  %p8097_p2 = scmp.lt.s32.totalorder %s8091_s29, %s10663_s14 }
  0x98   : > { %p8093_p10 = scmp.ne.s32.totalorder %s8091_s29, %s8092_s22  ;;  %p8098_p3 = scmp.lt.s32.totalorder %s8096_s10, %s8092_s22 }
  0x9a   : > { %p8094_p0 = pnand %p8093_p10, %p10613_p4  ;;  %p8099_p7 = por %p8098_p3, %p8097_p2 }
  0x9c   : > { %p8095_p1 = pneg %p8094_p0 }
  0x9e   : > { %p8100_p8 = pnand %p8099_p7, %p8095_p1 }
  0xa0   : > { %8103 = shalt.err (!%p8100_p8)
}
  0xa1   : > { %s10583_s2 = smov 64   ;;  %s10585_s1 = smov 4  }
  0xa2   : > { %7515 = dma.hbm_to_vmem [thread:$0]  (%p10613_p4), %s1120_s16, 2048, %s1122_s18, [#allocation9], %s10583_s2, %s10583_s2, %s10585_s1  }
  0xa3   : > { %s9261_s0 = smov [#allocation11]   ;;  %s1178_s29 = sshll.u32 %s10657_s12, 4  ;;  %s9621_s29 = int_to_ptr.hbm [resolvable:$true] %s1178_s29 }
  0xa4   : > { %s1152_s17 = sshll.u32 %s9261_s0, 4  ;;  %s8118_s22 = sshra.s32 %s1151_s7, 4  ;;  %s1153_s17 = int_to_ptr.vmem [resolvable:$true] %s1152_s17  ;;  %s8119_s22 = int_to_ptr.hbm [resolvable:$true] %s8118_s22 }
  0xa5   : > { %s8120_s10 = scalar_lea.hbm %s8119_s22, 2  ;;  %s8124_s11 = scalar_lea.hbm %s10662_s30, 2 }
  0xa6   : > { %p8121_p9 = scmp.ne.s32.totalorder %s8119_s22, %s8120_s10  ;;  %p8125_p1 = scmp.lt.s32.totalorder %s8119_s22, %s10662_s30 }
  0xa7   : > { %p8126_p2 = scmp.lt.s32.totalorder %s8124_s11, %s8120_s10 }
  0xa8   : > { %p8122_p10 = pnand %p8121_p9, %p10613_p4 }
  0xa9   : > { %p8127_p3 = por %p8126_p2, %p8125_p1 }
  0xaa   : > { %p8123_p0 = pneg %p8122_p10 }
  0xac   : > { %p8128_p7 = pnand %p8127_p3, %p8123_p0 }
  0xae   : > { %8131 = shalt.err (!%p8128_p7)
}
  0xaf   : > { %s10678_s16 = smov 1   ;;  %s10679_s18 = smov 16  }
  0xb0   : > { %7519 = dma.hbm_to_vmem [thread:$0]  (%p10613_p4), %s1151_s7, 32, %s1153_s17, [#allocation12], %s10679_s18, %s10679_s18, %s10678_s16  }
  0xb1   : > { %s9262_s0 = smov [#allocation14]   ;;  %s1206_s1 = sshll.u32 %s9396_s27, 4  ;;  %s1207_s1 = int_to_ptr.hbm [resolvable:$true] %s1206_s1 }
  0xb2   : > { %s1180_s2 = sshll.u32 %s9262_s0, 4  ;;  %s8146_s22 = sshra.s32 %s9621_s29, 4  ;;  %s1181_s2 = int_to_ptr.vmem [resolvable:$true] %s1180_s2  ;;  %s8147_s22 = int_to_ptr.hbm [resolvable:$true] %s8146_s22 }
  0xb3   : > { %s8148_s11 = scalar_lea.hbm %s8147_s22, 4  ;;  %s8152_s10 = scalar_lea.hbm %s10657_s12, 4 }
  0xb4   : > { %p8149_p8 = scmp.ne.s32.totalorder %s8147_s22, %s8148_s11  ;;  %p8153_p0 = scmp.lt.s32.totalorder %s8147_s22, %s10657_s12 }
  0xb5   : > { %p8154_p1 = scmp.lt.s32.totalorder %s8152_s10, %s8148_s11 }
  0xb6   : > { %p8150_p9 = pnand %p8149_p8, %p10613_p4 }
  0xb7   : > { %p8155_p2 = por %p8154_p1, %p8153_p0 }
  0xb8   : > { %p8151_p10 = pneg %p8150_p9 }
  0xba   : > { %p8156_p3 = pnand %p8155_p2, %p8151_p10 }
  0xbc   : > { %8159 = shalt.err (!%p8156_p3)
}
  0xbd   : > { %s9263_s14 = smov 32   ;;  %s9264_s17 = smov 2  }
  0xbe   : > { %7523 = dma.hbm_to_vmem [thread:$0]  (%p10613_p4), %s9621_s29, 64, %s1181_s2, [#allocation15], %s9263_s14, %s9263_s14, %s9264_s17  }
  0xbf   : > { %s9265_s7 = smov [#allocation17]   ;;  %s1235_s30 = sshll.u32 %s10660_s5, 4  ;;  %s9642_s30 = int_to_ptr.hbm [resolvable:$true] %s1235_s30 }
  0xc0   : > { %s1208_s0 = sshll.u32 %s9265_s7, 4  ;;  %s8174_s22 = sshra.s32 %s1207_s1, 4  ;;  %s1209_s0 = int_to_ptr.vmem [resolvable:$true] %s1208_s0  ;;  %s8175_s22 = int_to_ptr.hbm [resolvable:$true] %s8174_s22 }
  0xc1   : > { %s8176_s11 = scalar_lea.hbm %s8175_s22, 2  ;;  %s8180_s10 = scalar_lea.hbm %s9396_s27, 2 }
  0xc2   : > { %p8177_p7 = scmp.ne.s32.totalorder %s8175_s22, %s8176_s11  ;;  %p8181_p10 = scmp.lt.s32.totalorder %s8175_s22, %s9396_s27 }
  0xc3   : > { %p8182_p0 = scmp.lt.s32.totalorder %s8180_s10, %s8176_s11 }
  0xc4   : > { %p8178_p8 = pnand %p8177_p7, %p10613_p4 }
  0xc5   : > { %p8183_p1 = por %p8182_p0, %p8181_p10 }
  0xc6   : > { %p8179_p9 = pneg %p8178_p8 }
  0xc8   : > { %p8184_p2 = pnand %p8183_p1, %p8179_p9 }
  0xca   : > { %8187 = shalt.err (!%p8184_p2)
}
  0xcb   : > { %7527 = dma.hbm_to_vmem [thread:$0]  (%p10613_p4), %s1207_s1, 32, %s1209_s0, [#allocation18], %s10679_s18, %s10679_s18, %s10678_s16  }
  0xcc   : > { %s1259_s14 = sshll.u32 %s10658_s8, 4  ;;  %s9266_s2 = smov [#allocation20]   ;;  %s9654_s14 = int_to_ptr.hbm [resolvable:$true] %s1259_s14 }
  0xcd   : > { %s1237_s29 = sshll.u32 %s9266_s2, 4  ;;  %s8202_s17 = sshra.s32 %s9642_s30, 4  ;;  %s1238_s29 = int_to_ptr.vmem [resolvable:$true] %s1237_s29  ;;  %s8203_s17 = int_to_ptr.hbm [resolvable:$true] %s8202_s17 }
  0xce   : > { %s8204_s7 = scalar_lea.hbm %s8203_s17, 8  ;;  %s8208_s22 = scalar_lea.hbm %s10660_s5, 8 }
  0xcf   : > { %p8205_p3 = scmp.ne.s32.totalorder %s8203_s17, %s8204_s7  ;;  %p8209_p9 = scmp.lt.s32.totalorder %s8203_s17, %s10660_s5 }
  0xd0   : > { %p8210_p10 = scmp.lt.s32.totalorder %s8208_s22, %s8204_s7 }
  0xd1   : > { %p8206_p7 = pnand %p8205_p3, %p10613_p4 }
  0xd2   : > { %p8211_p0 = por %p8210_p10, %p8209_p9 }
  0xd3   : > { %p8207_p8 = pneg %p8206_p7 }
  0xd5   : > { %p8212_p1 = pnand %p8211_p0, %p8207_p8 }
  0xd7   : > { %8215 = shalt.err (!%p8212_p1)
}
  0xd8   : > { %7531 = dma.hbm_to_vmem [thread:$0]  (%p10613_p4), %s9642_s30, 128, %s1238_s29, [#allocation21]  }
  0xd9   : > { %s9267_s1 = smov [#allocation23]   ;;  %s1285_s11 = sshll.u32 %s9426_s21, 4  ;;  %s9665_s11 = int_to_ptr.hbm [resolvable:$true] %s1285_s11 }
  0xda   : > { %s1261_s0 = sshll.u32 %s9267_s1, 4  ;;  %s8230_s10 = sshra.s32 %s9654_s14, 4  ;;  %s1262_s0 = int_to_ptr.vmem [resolvable:$true] %s1261_s0  ;;  %s8231_s10 = int_to_ptr.hbm [resolvable:$true] %s8230_s10 }
  0xdb   : > { %s8232_s2 = scalar_lea.hbm %s8231_s10, 1  ;;  %s8236_s17 = scalar_lea.hbm %s10658_s8, 1 }
  0xdc   : > { %p8233_p2 = scmp.ne.s32.totalorder %s8231_s10, %s8232_s2  ;;  %p8237_p8 = scmp.lt.s32.totalorder %s8231_s10, %s10658_s8 }
  0xdd   : > { %p8238_p9 = scmp.lt.s32.totalorder %s8236_s17, %s8232_s2 }
  0xde   : > { %p8234_p3 = pnand %p8233_p2, %p10613_p4 }
  0xdf   : > { %p8239_p10 = por %p8238_p9, %p8237_p8 }
  0xe0   : > { %p8235_p7 = pneg %p8234_p3 }
  0xe2   : > { %p8240_p0 = pnand %p8239_p10, %p8235_p7 }
  0xe4   : > { %8243 = shalt.err (!%p8240_p0)
}
  0xe5   : > { %7535 = dma.hbm_to_vmem [thread:$0]  (%p10613_p4), %s9654_s14, 16, %s1262_s0, [#allocation24]  }
  0xe6   : > { %s1311_s30 = sshll.u32 %s10656_s13, 4  ;;  %s9268_s29 = smov [#allocation26]   ;;  %s9676_s30 = int_to_ptr.hbm [resolvable:$true] %s1311_s30 }
  0xe7   : > { %s1287_s7 = sshll.u32 %s9268_s29, 4  ;;  %s8258_s22 = sshra.s32 %s9665_s11, 4  ;;  %s1288_s7 = int_to_ptr.vmem [resolvable:$true] %s1287_s7  ;;  %s8259_s22 = int_to_ptr.hbm [resolvable:$true] %s8258_s22 }
  0xe8   : > { %s8260_s1 = scalar_lea.hbm %s8259_s22, 3  ;;  %s8264_s10 = scalar_lea.hbm %s9426_s21, 3 }
  0xe9   : > { %p8261_p1 = scmp.ne.s32.totalorder %s8259_s22, %s8260_s1  ;;  %p8265_p7 = scmp.lt.s32.totalorder %s8259_s22, %s9426_s21 }
  0xea   : > { %p8266_p8 = scmp.lt.s32.totalorder %s8264_s10, %s8260_s1 }
  0xeb   : > { %p8262_p2 = pnand %p8261_p1, %p10613_p4 }
  0xec   : > { %p8267_p9 = por %p8266_p8, %p8265_p7 }
  0xed   : > { %p8263_p3 = pneg %p8262_p2 }
  0xef   : > { %p8268_p10 = pnand %p8267_p9, %p8263_p3 }
  0xf1   : > { %8271 = shalt.err (!%p8268_p10)
}
  0xf2   : > { %7539 = dma.hbm_to_vmem [thread:$0]  (%p10613_p4), %s9665_s11, 48, %s1288_s7, [#allocation27]  }
  0xf3   : > { %s9269_s14 = smov [#allocation29]   ;;  %s1335_s2 = sshll.u32 %s9446_s25, 4  ;;  %s9687_s2 = int_to_ptr.hbm [resolvable:$true] %s1335_s2 }
  0xf4   : > { %s1313_s0 = sshll.u32 %s9269_s14, 4  ;;  %s8286_s17 = sshra.s32 %s9676_s30, 4  ;;  %s1314_s0 = int_to_ptr.vmem [resolvable:$true] %s1313_s0  ;;  %s8287_s17 = int_to_ptr.hbm [resolvable:$true] %s8286_s17 }
  0xf5   : > { %s8288_s29 = scalar_lea.hbm %s8287_s17, 1  ;;  %s8292_s22 = scalar_lea.hbm %s10656_s13, 1 }
  0xf6   : > { %p8289_p0 = scmp.ne.s32.totalorder %s8287_s17, %s8288_s29  ;;  %p8293_p3 = scmp.lt.s32.totalorder %s8287_s17, %s10656_s13 }
  0xf7   : > { %p8294_p7 = scmp.lt.s32.totalorder %s8292_s22, %s8288_s29 }
  0xf8   : > { %p8290_p1 = pnand %p8289_p0, %p10613_p4 }
  0xf9   : > { %p8295_p8 = por %p8294_p7, %p8293_p3 }
  0xfa   : > { %p8291_p2 = pneg %p8290_p1 }
  0xfc   : > { %p8296_p9 = pnand %p8295_p8, %p8291_p2 }
  0xfe   : > { %8299 = shalt.err (!%p8296_p9)
}
  0xff   : > { %7543 = dma.hbm_to_vmem [thread:$0]  (%p10613_p4), %s9676_s30, 16, %s1314_s0, [#allocation30]  }
 0x100   : > { %s1361_s11 = sshll.u32 %s9456_s24, 4  ;;  %s9270_s7 = smov [#allocation32]   ;;  %s9698_s11 = int_to_ptr.hbm [resolvable:$true] %s1361_s11 }
 0x101   : > { %s1337_s1 = sshll.u32 %s9270_s7, 4  ;;  %s8314_s10 = sshra.s32 %s9687_s2, 4  ;;  %s1338_s1 = int_to_ptr.vmem [resolvable:$true] %s1337_s1  ;;  %s8315_s10 = int_to_ptr.hbm [resolvable:$true] %s8314_s10 }
 0x102   : > { %s8316_s14 = scalar_lea.hbm %s8315_s10, 1  ;;  %s8320_s17 = scalar_lea.hbm %s9446_s25, 1 }
 0x103   : > { %p8317_p10 = scmp.ne.s32.totalorder %s8315_s10, %s8316_s14  ;;  %p8321_p2 = scmp.lt.s32.totalorder %s8315_s10, %s9446_s25 }
 0x104   : > { %p8322_p3 = scmp.lt.s32.totalorder %s8320_s17, %s8316_s14 }
 0x105   : > { %p8318_p0 = pnand %p8317_p10, %p10613_p4 }
 0x106   : > { %p8323_p7 = por %p8322_p3, %p8321_p2 }
 0x107   : > { %p8319_p1 = pneg %p8318_p0 }
 0x109   : > { %p8324_p8 = pnand %p8323_p7, %p8319_p1 }
 0x10b   : > { %8327 = shalt.err (!%p8324_p8)
}
 0x10c   : > { %7547 = dma.hbm_to_vmem [thread:$0]  (%p10613_p4), %s9687_s2, 16, %s1338_s1, [#allocation33]  }
 0x10d   : > { %s9271_s30 = smov [#allocation35]   ;;  %s1387_s29 = sshll.u32 %s10661_s4, 4  ;;  %s9709_s29 = int_to_ptr.hbm [resolvable:$true] %s1387_s29 }
 0x10e   : > { %s1363_s0 = sshll.u32 %s9271_s30, 4  ;;  %s8342_s22 = sshra.s32 %s9698_s11, 4  ;;  %s1364_s0 = int_to_ptr.vmem [resolvable:$true] %s1363_s0  ;;  %s8343_s22 = int_to_ptr.hbm [resolvable:$true] %s8342_s22 }
 0x10f   : > { %s8344_s7 = scalar_lea.hbm %s8343_s22, 1  ;;  %s8348_s10 = scalar_lea.hbm %s9456_s24, 1 }
 0x110   : > { %p8345_p9 = scmp.ne.s32.totalorder %s8343_s22, %s8344_s7  ;;  %p8349_p1 = scmp.lt.s32.totalorder %s8343_s22, %s9456_s24 }
 0x111   : > { %p8350_p2 = scmp.lt.s32.totalorder %s8348_s10, %s8344_s7 }
 0x112   : > { %p8346_p10 = pnand %p8345_p9, %p10613_p4 }
 0x113   : > { %p8351_p3 = por %p8350_p2, %p8349_p1 }
 0x114   : > { %p8347_p0 = pneg %p8346_p10 }
 0x116   : > { %p8352_p7 = pnand %p8351_p3, %p8347_p0 }
 0x118   : > { %8355 = shalt.err (!%p8352_p7)
}
 0x119   : > { %7551 = dma.hbm_to_vmem [thread:$0]  (%p10613_p4), %s9698_s11, 16, %s1364_s0, [#allocation36]  }
 0x11a   : > { %s1413_s2 = sshll.u32 %s9476_s20, 4  ;;  %s9272_s1 = smov [#allocation38]   ;;  %s9720_s2 = int_to_ptr.hbm [resolvable:$true] %s1413_s2 }
 0x11b   : > { %s1389_s14 = sshll.u32 %s9272_s1, 4  ;;  %s8370_s17 = sshra.s32 %s9709_s29, 4  ;;  %s1390_s14 = int_to_ptr.vmem [resolvable:$true] %s1389_s14  ;;  %s8371_s17 = int_to_ptr.hbm [resolvable:$true] %s8370_s17 }
 0x11c   : > { %s8372_s30 = scalar_lea.hbm %s8371_s17, 2  ;;  %s8376_s22 = scalar_lea.hbm %s10661_s4, 2 }
 0x11d   : > { %p8373_p8 = scmp.ne.s32.totalorder %s8371_s17, %s8372_s30  ;;  %p8377_p0 = scmp.lt.s32.totalorder %s8371_s17, %s10661_s4 }
 0x11e   : > { %p8378_p1 = scmp.lt.s32.totalorder %s8376_s22, %s8372_s30 }
 0x11f   : > { %p8374_p9 = pnand %p8373_p8, %p10613_p4 }
 0x120   : > { %p8379_p2 = por %p8378_p1, %p8377_p0 }
 0x121   : > { %p8375_p10 = pneg %p8374_p9 }
 0x123   : > { %p8380_p3 = pnand %p8379_p2, %p8375_p10 }
 0x125   : > { %8383 = shalt.err (!%p8380_p3)
}
 0x126   : > { %7555 = dma.hbm_to_vmem [thread:$0]  (%p10613_p4), %s9709_s29, 32, %s1390_s14, [#allocation39]  }
 0x127   : > { %s9273_s11 = smov [#allocation41]   ;;  %s1437_s7 = sshll.u32 %s10659_s6, 4  ;;  %s9731_s7 = int_to_ptr.hbm [resolvable:$true] %s1437_s7 }
 0x128   : > { %s1415_s0 = sshll.u32 %s9273_s11, 4  ;;  %s8398_s10 = sshra.s32 %s9720_s2, 4  ;;  %s1416_s0 = int_to_ptr.vmem [resolvable:$true] %s1415_s0  ;;  %s8399_s10 = int_to_ptr.hbm [resolvable:$true] %s8398_s10 }
 0x129   : > { %s8400_s1 = scalar_lea.hbm %s8399_s10, 1  ;;  %s8404_s17 = scalar_lea.hbm %s9476_s20, 1 }
 0x12a   : > { %p8401_p7 = scmp.ne.s32.totalorder %s8399_s10, %s8400_s1  ;;  %p8405_p10 = scmp.lt.s32.totalorder %s8399_s10, %s9476_s20 }
 0x12b   : > { %p8406_p0 = scmp.lt.s32.totalorder %s8404_s17, %s8400_s1 }
 0x12c   : > { %p8402_p8 = pnand %p8401_p7, %p10613_p4 }
 0x12d   : > { %p8407_p1 = por %p8406_p0, %p8405_p10 }
 0x12e   : > { %p8403_p9 = pneg %p8402_p8 }
 0x130   : > { %p8408_p2 = pnand %p8407_p1, %p8403_p9 }
 0x132   : > { %8411 = shalt.err (!%p8408_p2)
}
 0x133   : > { %s10680_s29 = sld [smem:[#allocation110_spill]]  ;;  %s9274_s30 = smov [#allocation44]  }
 0x134   : > { %7559 = dma.hbm_to_vmem [thread:$0]  (%p10613_p4), %s9720_s2, 16, %s1416_s0, [#allocation42]  }
 0x135   : > { %s1439_s22 = sshll.u32 %s9274_s30, 4  ;;  %s8426_s11 = sshra.s32 %s9731_s7, 4  ;;  %s1440_s22 = int_to_ptr.vmem [resolvable:$true] %s1439_s22  ;;  %s8427_s11 = int_to_ptr.hbm [resolvable:$true] %s8426_s11 }
 0x136   : > { %s8428_s10 = scalar_lea.hbm %s8427_s11, 1  ;;  %s8432_s1 = scalar_lea.hbm %s10659_s6, 1 }
 0x137   : > { %p8429_p3 = scmp.ne.s32.totalorder %s8427_s11, %s8428_s10  ;;  %p8433_p9 = scmp.lt.s32.totalorder %s8427_s11, %s10659_s6 }
 0x138   : > { %p8434_p10 = scmp.lt.s32.totalorder %s8432_s1, %s8428_s10 }
 0x139   : > { %s1463_s14 = sshll.u32 %s10680_s29, 4  ;;  %p8430_p7 = pnand %p8429_p3, %p10613_p4  ;;  %s9742_s14 = int_to_ptr.hbm [resolvable:$true] %s1463_s14 }
 0x13a   : > { %p8435_p0 = por %p8434_p10, %p8433_p9 }
 0x13b   : > { %p8431_p8 = pneg %p8430_p7 }
 0x13d   : > { %p8436_p1 = pnand %p8435_p0, %p8431_p8 }
 0x13f   : > { %8439 = shalt.err (!%p8436_p1)
}
 0x140   : > { %s10681_s2 = sld [smem:[#allocation112_spill]]  ;;  %s9275_s0 = smov [#allocation47]  }
 0x141   : > { %7563 = dma.hbm_to_vmem [thread:$0]  (%p10613_p4), %s9731_s7, 16, %s1440_s22, [#allocation45]  }
 0x142   : > { %s1465_s17 = sshll.u32 %s9275_s0, 4  ;;  %s8454_s11 = sshra.s32 %s9742_s14, 4  ;;  %s1466_s17 = int_to_ptr.vmem [resolvable:$true] %s1465_s17  ;;  %s8455_s11 = int_to_ptr.hbm [resolvable:$true] %s8454_s11 }
 0x143   : > { %s8456_s10 = scalar_lea.hbm %s8455_s11, 2  ;;  %s8460_s1 = scalar_lea.hbm %s10680_s29, 2 }
 0x144   : > { %p8457_p2 = scmp.ne.s32.totalorder %s8455_s11, %s8456_s10  ;;  %p8461_p8 = scmp.lt.s32.totalorder %s8455_s11, %s10680_s29 }
 0x145   : > { %p8462_p9 = scmp.lt.s32.totalorder %s8460_s1, %s8456_s10 }
 0x146   : > { %s1489_s30 = sshll.u32 %s10681_s2, 4  ;;  %p8458_p3 = pnand %p8457_p2, %p10613_p4  ;;  %s9753_s30 = int_to_ptr.hbm [resolvable:$true] %s1489_s30 }
 0x147   : > { %p8463_p10 = por %p8462_p9, %p8461_p8 }
 0x148   : > { %p8459_p7 = pneg %p8458_p3 }
 0x14a   : > { %p8464_p0 = pnand %p8463_p10, %p8459_p7 }
 0x14c   : > { %8467 = shalt.err (!%p8464_p0)
}
 0x14d   : > { %7567 = dma.hbm_to_vmem [thread:$0]  (%p10613_p4), %s9742_s14, 32, %s1466_s17, [#allocation48]  }
 0x14e   : > { %s1513_s7 = sshll.u32 %s9516_s19, 4  ;;  %s9276_s22 = smov [#allocation50]   ;;  %s9764_s7 = int_to_ptr.hbm [resolvable:$true] %s1513_s7 }
 0x14f   : > { %s1491_s0 = sshll.u32 %s9276_s22, 4  ;;  %s8482_s11 = sshra.s32 %s9753_s30, 4  ;;  %s1492_s0 = int_to_ptr.vmem [resolvable:$true] %s1491_s0  ;;  %s8483_s11 = int_to_ptr.hbm [resolvable:$true] %s8482_s11 }
 0x150   : > { %s8484_s10 = scalar_lea.hbm %s8483_s11, 1  ;;  %s8488_s1 = scalar_lea.hbm %s10681_s2, 1 }
 0x151   : > { %p8485_p1 = scmp.ne.s32.totalorder %s8483_s11, %s8484_s10  ;;  %p8489_p7 = scmp.lt.s32.totalorder %s8483_s11, %s10681_s2 }
 0x152   : > { %p8490_p8 = scmp.lt.s32.totalorder %s8488_s1, %s8484_s10 }
 0x153   : > { %p8486_p2 = pnand %p8485_p1, %p10613_p4 }
 0x154   : > { %p8491_p9 = por %p8490_p8, %p8489_p7 }
 0x155   : > { %p8487_p3 = pneg %p8486_p2 }
 0x157   : > { %p8492_p10 = pnand %p8491_p9, %p8487_p3 }
 0x159   : > { %8495 = shalt.err (!%p8492_p10)
}
 0x15a   : > { %s10682_s14 = sld [smem:[#allocation86_spill]]  ;;  %s9277_s17 = smov [#allocation53]  }
 0x15b   : > { %7571 = dma.hbm_to_vmem [thread:$0]  (%p10613_p4), %s9753_s30, 16, %s1492_s0, [#allocation51]  }
 0x15c   : > { %s1515_s22 = sshll.u32 %s9277_s17, 4  ;;  %s8510_s11 = sshra.s32 %s9764_s7, 4  ;;  %s1516_s22 = int_to_ptr.vmem [resolvable:$true] %s1515_s22  ;;  %s8511_s11 = int_to_ptr.hbm [resolvable:$true] %s8510_s11 }
 0x15d   : > { %s8512_s10 = scalar_lea.hbm %s8511_s11, 1  ;;  %s8516_s1 = scalar_lea.hbm %s9516_s19, 1 }
 0x15e   : > { %p8513_p0 = scmp.ne.s32.totalorder %s8511_s11, %s8512_s10  ;;  %p8517_p3 = scmp.lt.s32.totalorder %s8511_s11, %s9516_s19 }
 0x15f   : > { %p8518_p7 = scmp.lt.s32.totalorder %s8516_s1, %s8512_s10 }
 0x160   : > { %s1102_s4 = sshll.u32 %s10682_s14, 4  ;;  %p8514_p1 = pnand %p8513_p0, %p10613_p4  ;;  %s9775_s4 = int_to_ptr.hbm [resolvable:$true] %s1102_s4 }
 0x161   : > { %p8519_p8 = por %p8518_p7, %p8517_p3 }
 0x162   : > { %p8515_p2 = pneg %p8514_p1 }
 0x164   : > { %p8520_p9 = pnand %p8519_p8, %p8515_p2 }
 0x166   : > { %8523 = shalt.err (!%p8520_p9)
}
 0x167   : > { %s10683_s30 = sld [smem:[#allocation89_spill]]  ;;  %s9278_s0 = smov [#allocation7]  }
 0x168   : > { %7575 = dma.hbm_to_vmem [thread:$0]  (%p10613_p4), %s9764_s7, 16, %s1516_s22, [#allocation54]  }
 0x169   : > { %s1104_s17 = sshll.u32 %s9278_s0, 4  ;;  %s8538_s5 = sshra.s32 %s9775_s4, 4  ;;  %s1105_s17 = int_to_ptr.vmem [resolvable:$true] %s1104_s17  ;;  %s8539_s5 = int_to_ptr.hbm [resolvable:$true] %s8538_s5 }
 0x16a   : > { %s8540_s11 = scalar_lea.hbm %s8539_s5, 384  ;;  %s8544_s10 = scalar_lea.hbm %s10682_s14, 384 }
 0x16b   : > { %p8541_p10 = scmp.ne.s32.totalorder %s8539_s5, %s8540_s11  ;;  %p8545_p2 = scmp.lt.s32.totalorder %s8539_s5, %s10682_s14 }
 0x16c   : > { %p8546_p3 = scmp.lt.s32.totalorder %s8544_s10, %s8540_s11 }
 0x16d   : > { %s1133_s2 = sshll.u32 %s10683_s30, 4  ;;  %p8542_p0 = pnand %p8541_p10, %p10613_p4  ;;  %s1134_s2 = int_to_ptr.hbm [resolvable:$true] %s1133_s2 }
 0x16e   : > { %p8547_p7 = por %p8546_p3, %p8545_p2 }
 0x16f   : > { %p8543_p1 = pneg %p8542_p0 }
 0x171   : > { %p8548_p8 = pnand %p8547_p7, %p8543_p1 }
 0x173   : > { %8551 = shalt.err (!%p8548_p8)
}
 0x174   : > { %s10594_s1 = smov 192   ;;  %s10684_s7 = sld [smem:[#allocation92_spill]] }
 0x175   : > { %s10595_s22 = smov 12   ;;  %s9281_s0 = smov [#allocation10]  }
 0x176   : > { %7513 = dma.hbm_to_vmem [thread:$0]  (%p10613_p4), %s9775_s4, 6144, %s1105_s17, [#allocation6], %s10594_s1, %s10594_s1, %s10595_s22  }
 0x177   : > { %s1135_s5 = sshll.u32 %s9281_s0, 4  ;;  %s8566_s10 = sshra.s32 %s1134_s2, 4  ;;  %s1136_s5 = int_to_ptr.vmem [resolvable:$true] %s1135_s5  ;;  %s8567_s10 = int_to_ptr.hbm [resolvable:$true] %s8566_s10 }
 0x178   : > { %s8568_s6 = scalar_lea.hbm %s8567_s10, 2  ;;  %s8572_s8 = scalar_lea.hbm %s10683_s30, 2 }
 0x179   : > { %p8569_p9 = scmp.ne.s32.totalorder %s8567_s10, %s8568_s6  ;;  %p8573_p1 = scmp.lt.s32.totalorder %s8567_s10, %s10683_s30 }
 0x17a   : > { %s1164_s11 = sshll.u32 %s10684_s7, 4  ;;  %p8574_p2 = scmp.lt.s32.totalorder %s8572_s8, %s8568_s6  ;;  %s9798_s11 = int_to_ptr.hbm [resolvable:$true] %s1164_s11 }
 0x17b   : > { %p8570_p10 = pnand %p8569_p9, %p10613_p4 }
 0x17c   : > { %p8575_p3 = por %p8574_p2, %p8573_p1 }
 0x17d   : > { %p8571_p0 = pneg %p8570_p10 }
 0x17f   : > { %p8576_p7 = pnand %p8575_p3, %p8571_p0 }
 0x181   : > { %8579 = shalt.err (!%p8576_p7)
}
 0x182   : > { %s10685_s4 = sld [smem:[#allocation94_spill]]  ;;  %s9282_s17 = smov [#allocation13]  }
 0x183   : > { %7517 = dma.hbm_to_vmem [thread:$0]  (%p10613_p4), %s1134_s2, 32, %s1136_s5, [#allocation9], %s10679_s18, %s10679_s18, %s10678_s16  }
 0x184   : > { %s1166_s0 = sshll.u32 %s9282_s17, 4  ;;  %s8594_s10 = sshra.s32 %s9798_s11, 4  ;;  %s1167_s0 = int_to_ptr.vmem [resolvable:$true] %s1166_s0  ;;  %s8595_s10 = int_to_ptr.hbm [resolvable:$true] %s8594_s10 }
 0x185   : > { %s8596_s8 = scalar_lea.hbm %s8595_s10, 256  ;;  %s8600_s6 = scalar_lea.hbm %s10684_s7, 256 }
 0x186   : > { %p8597_p8 = scmp.ne.s32.totalorder %s8595_s10, %s8596_s8  ;;  %p8601_p0 = scmp.lt.s32.totalorder %s8595_s10, %s10684_s7 }
 0x187   : > { %p8602_p1 = scmp.lt.s32.totalorder %s8600_s6, %s8596_s8 }
 0x188   : > { %s1192_s1 = sshll.u32 %s10685_s4, 4  ;;  %p8598_p9 = pnand %p8597_p8, %p10613_p4  ;;  %s1193_s1 = int_to_ptr.hbm [resolvable:$true] %s1192_s1 }
 0x189   : > { %p8603_p2 = por %p8602_p1, %p8601_p0 }
 0x18a   : > { %p8599_p10 = pneg %p8598_p9 }
 0x18c   : > { %p8604_p3 = pnand %p8603_p2, %p8599_p10 }
 0x18e   : > { %8607 = shalt.err (!%p8604_p3)
}
 0x18f   : > { %s10596_s22 = smov 128   ;;  %s10686_s16 = sld [smem:[#allocation95_spill]] }
 0x190   : > { %s10598_s18 = smov 8   ;;  %s9285_s2 = smov [#allocation16]  }
 0x191   : > { %7521 = dma.hbm_to_vmem [thread:$0]  (%p10613_p4), %s9798_s11, 4096, %s1167_s0, [#allocation12], %s10596_s22, %s10596_s22, %s10598_s18  }
 0x192   : > { %s1194_s5 = sshll.u32 %s9285_s2, 4  ;;  %s8622_s10 = sshra.s32 %s1193_s1, 4  ;;  %s1195_s5 = int_to_ptr.vmem [resolvable:$true] %s1194_s5  ;;  %s8623_s10 = int_to_ptr.hbm [resolvable:$true] %s8622_s10 }
 0x193   : > { %s8624_s8 = scalar_lea.hbm %s8623_s10, 256  ;;  %s8628_s6 = scalar_lea.hbm %s10685_s4, 256 }
 0x194   : > { %p8625_p7 = scmp.ne.s32.totalorder %s8623_s10, %s8624_s8  ;;  %p8629_p10 = scmp.lt.s32.totalorder %s8623_s10, %s10685_s4 }
 0x195   : > { %s1220_s17 = sshll.u32 %s10686_s16, 4  ;;  %p8630_p0 = scmp.lt.s32.totalorder %s8628_s6, %s8624_s8  ;;  %s9822_s17 = int_to_ptr.hbm [resolvable:$true] %s1220_s17 }
 0x196   : > { %p8626_p8 = pnand %p8625_p7, %p10613_p4 }
 0x197   : > { %p8631_p1 = por %p8630_p0, %p8629_p10 }
 0x198   : > { %p8627_p9 = pneg %p8626_p8 }
 0x19a   : > { %p8632_p2 = pnand %p8631_p1, %p8627_p9 }
 0x19c   : > { %8635 = shalt.err (!%p8632_p2)
}
 0x19d   : > { %s10687_s11 = smov 4   ;;  %s10688_s0 = smov 64  }
 0x19e   : > { %s10689_s2 = sld [smem:[#allocation97_spill]]  ;;  %s9286_s18 = smov [#allocation19]  }
 0x19f   : > { %7525 = dma.hbm_to_vmem [thread:$0]  (%p10613_p4), %s1193_s1, 4096, %s1195_s5, [#allocation15], %s10688_s0, %s10688_s0, %s10687_s11  }
 0x1a0   : > { %s1222_s7 = sshll.u32 %s9286_s18, 4  ;;  %s8650_s10 = sshra.s32 %s9822_s17, 4  ;;  %s1223_s7 = int_to_ptr.vmem [resolvable:$true] %s1222_s7  ;;  %s8651_s10 = int_to_ptr.hbm [resolvable:$true] %s8650_s10 }
 0x1a1   : > { %s8652_s8 = scalar_lea.hbm %s8651_s10, 64  ;;  %s8656_s6 = scalar_lea.hbm %s10686_s16, 64 }
 0x1a2   : > { %p8653_p3 = scmp.ne.s32.totalorder %s8651_s10, %s8652_s8  ;;  %p8657_p9 = scmp.lt.s32.totalorder %s8651_s10, %s10686_s16 }
 0x1a3   : > { %p8658_p10 = scmp.lt.s32.totalorder %s8656_s6, %s8652_s8 }
 0x1a4   : > { %s1247_s22 = sshll.u32 %s10689_s2, 4  ;;  %p8654_p7 = pnand %p8653_p3, %p10613_p4  ;;  %s9834_s22 = int_to_ptr.hbm [resolvable:$true] %s1247_s22 }
 0x1a5   : > { %p8659_p0 = por %p8658_p10, %p8657_p9 }
 0x1a6   : > { %p8655_p8 = pneg %p8654_p7 }
 0x1a8   : > { %p8660_p1 = pnand %p8659_p0, %p8655_p8 }
 0x1aa   : > { %8663 = shalt.err (!%p8660_p1)
}
 0x1ab   : > { %s10690_s1 = sld [smem:[#allocation99_spill]]  ;;  %s9287_s18 = smov [#allocation22]  }
 0x1ac   : > { %7529 = dma.hbm_to_vmem [thread:$0]  (%p10613_p4), %s9822_s17, 1024, %s1223_s7, [#allocation18], %s10688_s0, %s10688_s0, %s10687_s11  }
 0x1ad   : > { %s1249_s5 = sshll.u32 %s9287_s18, 4  ;;  %s8678_s10 = sshra.s32 %s9834_s22, 4  ;;  %s1250_s5 = int_to_ptr.vmem [resolvable:$true] %s1249_s5  ;;  %s8679_s10 = int_to_ptr.hbm [resolvable:$true] %s8678_s10 }
 0x1ae   : > { %s8680_s8 = scalar_lea.hbm %s8679_s10, 1  ;;  %s8684_s6 = scalar_lea.hbm %s10689_s2, 1 }
 0x1af   : > { %p8681_p2 = scmp.ne.s32.totalorder %s8679_s10, %s8680_s8  ;;  %p8685_p8 = scmp.lt.s32.totalorder %s8679_s10, %s10689_s2 }
 0x1b0   : > { %p8686_p9 = scmp.lt.s32.totalorder %s8684_s6, %s8680_s8 }
 0x1b1   : > { %s1270_s4 = sshll.u32 %s10690_s1, 4  ;;  %p8682_p3 = pnand %p8681_p2, %p10613_p4  ;;  %s9848_s4 = int_to_ptr.hbm [resolvable:$true] %s1270_s4 }
 0x1b2   : > { %p8687_p10 = por %p8686_p9, %p8685_p8 }
 0x1b3   : > { %p8683_p7 = pneg %p8682_p3 }
 0x1b5   : > { %p8688_p0 = pnand %p8687_p10, %p8683_p7 }
 0x1b7   : > { %8691 = shalt.err (!%p8688_p0)
}
 0x1b8   : > { %s10691_s7 = sld [smem:[#allocation100_spill]]  ;;  %s9288_s18 = smov [#allocation25]  }
 0x1b9   : > { %7533 = dma.hbm_to_vmem [thread:$0]  (%p10613_p4), %s9834_s22, 16, %s1250_s5, [#allocation21]  }
 0x1ba   : > { %s1272_s12 = sshll.u32 %s9288_s18, 4  ;;  %s8706_s10 = sshra.s32 %s9848_s4, 4  ;;  %s1273_s12 = int_to_ptr.vmem [resolvable:$true] %s1272_s12  ;;  %s8707_s10 = int_to_ptr.hbm [resolvable:$true] %s8706_s10 }
 0x1bb   : > { %s8708_s8 = scalar_lea.hbm %s8707_s10, 192  ;;  %s8712_s6 = scalar_lea.hbm %s10690_s1, 192 }
 0x1bc   : > { %p8709_p1 = scmp.ne.s32.totalorder %s8707_s10, %s8708_s8  ;;  %p8713_p7 = scmp.lt.s32.totalorder %s8707_s10, %s10690_s1 }
 0x1bd   : > { %p8714_p8 = scmp.lt.s32.totalorder %s8712_s6, %s8708_s8 }
 0x1be   : > { %s1296_s17 = sshll.u32 %s10691_s7, 4  ;;  %p8710_p2 = pnand %p8709_p1, %p10613_p4  ;;  %s9859_s17 = int_to_ptr.hbm [resolvable:$true] %s1296_s17 }
 0x1bf   : > { %p8715_p9 = por %p8714_p8, %p8713_p7 }
 0x1c0   : > { %p8711_p3 = pneg %p8710_p2 }
 0x1c2   : > { %p8716_p10 = pnand %p8715_p9, %p8711_p3 }
 0x1c4   : > { %8719 = shalt.err (!%p8716_p10)
}
 0x1c5   : > { %s10692_s22 = smov 12   ;;  %s10693_s5 = smov 192  }
 0x1c6   : > { %s10694_s18 = sld [smem:[#allocation102_spill]]  ;;  %s9289_s2 = smov [#allocation28]  }
 0x1c7   : > { %7537 = dma.hbm_to_vmem [thread:$0]  (%p10613_p4), %s9848_s4, 3072, %s1273_s12, [#allocation24], %s10693_s5, %s10693_s5, %s10692_s22  }
 0x1c8   : > { %s1298_s13 = sshll.u32 %s9289_s2, 4  ;;  %s8734_s10 = sshra.s32 %s9859_s17, 4  ;;  %s1299_s13 = int_to_ptr.vmem [resolvable:$true] %s1298_s13  ;;  %s8735_s10 = int_to_ptr.hbm [resolvable:$true] %s8734_s10 }
 0x1c9   : > { %s8736_s8 = scalar_lea.hbm %s8735_s10, 64  ;;  %s8740_s6 = scalar_lea.hbm %s10691_s7, 64 }
 0x1ca   : > { %p8737_p0 = scmp.ne.s32.totalorder %s8735_s10, %s8736_s8  ;;  %p8741_p3 = scmp.lt.s32.totalorder %s8735_s10, %s10691_s7 }
 0x1cb   : > { %p8742_p7 = scmp.lt.s32.totalorder %s8740_s6, %s8736_s8 }
 0x1cc   : > { %s1323_s14 = sshll.u32 %s10694_s18, 4  ;;  %p8738_p1 = pnand %p8737_p0, %p10613_p4  ;;  %s9873_s14 = int_to_ptr.hbm [resolvable:$true] %s1323_s14 }
 0x1cd   : > { %p8743_p8 = por %p8742_p7, %p8741_p3 }
 0x1ce   : > { %p8739_p2 = pneg %p8738_p1 }
 0x1d0   : > { %p8744_p9 = pnand %p8743_p8, %p8739_p2 }
 0x1d2   : > { %8747 = shalt.err (!%p8744_p9)
}
 0x1d3   : > { %s10695_s12 = sld [smem:[#allocation103_spill]]  ;;  %s9290_s2 = smov [#allocation31]  }
 0x1d4   : > { %7541 = dma.hbm_to_vmem [thread:$0]  (%p10613_p4), %s9859_s17, 1024, %s1299_s13, [#allocation27], %s10688_s0, %s10688_s0, %s10687_s11  }
 0x1d5   : > { %s1325_s22 = sshll.u32 %s9290_s2, 4  ;;  %s8762_s5 = sshra.s32 %s9873_s14, 4  ;;  %s1326_s22 = int_to_ptr.vmem [resolvable:$true] %s1325_s22  ;;  %s8763_s5 = int_to_ptr.hbm [resolvable:$true] %s8762_s5 }
 0x1d6   : > { %s8764_s10 = scalar_lea.hbm %s8763_s5, 1  ;;  %s8768_s8 = scalar_lea.hbm %s10694_s18, 1 }
 0x1d7   : > { %p8765_p10 = scmp.ne.s32.totalorder %s8763_s5, %s8764_s10  ;;  %p8769_p2 = scmp.lt.s32.totalorder %s8763_s5, %s10694_s18 }
 0x1d8   : > { %p8770_p3 = scmp.lt.s32.totalorder %s8768_s8, %s8764_s10 }
 0x1d9   : > { %s1346_s4 = sshll.u32 %s10695_s12, 4  ;;  %p8766_p0 = pnand %p8765_p10, %p10613_p4  ;;  %s9887_s4 = int_to_ptr.hbm [resolvable:$true] %s1346_s4 }
 0x1da   : > { %p8771_p7 = por %p8770_p3, %p8769_p2 }
 0x1db   : > { %p8767_p1 = pneg %p8766_p0 }
 0x1dd   : > { %p8772_p8 = pnand %p8771_p7, %p8767_p1 }
 0x1df   : > { %8775 = shalt.err (!%p8772_p8)
}
 0x1e0   : > { %s10696_s13 = sld [smem:[#allocation104_spill]]  ;;  %s9291_s17 = smov [#allocation34]  }
 0x1e1   : > { %7545 = dma.hbm_to_vmem [thread:$0]  (%p10613_p4), %s9873_s14, 16, %s1326_s22, [#allocation30]  }
 0x1e2   : > { %s1348_s6 = sshll.u32 %s9291_s17, 4  ;;  %s8790_s5 = sshra.s32 %s9887_s4, 4  ;;  %s1349_s6 = int_to_ptr.vmem [resolvable:$true] %s1348_s6  ;;  %s8791_s5 = int_to_ptr.hbm [resolvable:$true] %s8790_s5 }
 0x1e3   : > { %s8792_s10 = scalar_lea.hbm %s8791_s5, 64  ;;  %s8796_s8 = scalar_lea.hbm %s10695_s12, 64 }
 0x1e4   : > { %p8793_p9 = scmp.ne.s32.totalorder %s8791_s5, %s8792_s10  ;;  %p8797_p1 = scmp.lt.s32.totalorder %s8791_s5, %s10695_s12 }
 0x1e5   : > { %p8798_p2 = scmp.lt.s32.totalorder %s8796_s8, %s8792_s10 }
 0x1e6   : > { %s1372_s2 = sshll.u32 %s10696_s13, 4  ;;  %p8794_p10 = pnand %p8793_p9, %p10613_p4  ;;  %s9898_s2 = int_to_ptr.hbm [resolvable:$true] %s1372_s2 }
 0x1e7   : > { %p8799_p3 = por %p8798_p2, %p8797_p1 }
 0x1e8   : > { %p8795_p0 = pneg %p8794_p10 }
 0x1ea   : > { %p8800_p7 = pnand %p8799_p3, %p8795_p0 }
 0x1ec   : > { %8803 = shalt.err (!%p8800_p7)
}
 0x1ed   : > { %s10697_s14 = sld [smem:[#allocation106_spill]]  ;;  %s9292_s17 = smov [#allocation37]  }
 0x1ee   : > { %7549 = dma.hbm_to_vmem [thread:$0]  (%p10613_p4), %s9887_s4, 1024, %s1349_s6, [#allocation33], %s10688_s0, %s10688_s0, %s10687_s11  }
 0x1ef   : > { %s1374_s1 = sshll.u32 %s9292_s17, 4  ;;  %s8818_s5 = sshra.s32 %s9898_s2, 4  ;;  %s1375_s1 = int_to_ptr.vmem [resolvable:$true] %s1374_s1  ;;  %s8819_s5 = int_to_ptr.hbm [resolvable:$true] %s8818_s5 }
 0x1f0   : > { %s8820_s10 = scalar_lea.hbm %s8819_s5, 128  ;;  %s8824_s8 = scalar_lea.hbm %s10696_s13, 128 }
 0x1f1   : > { %p8821_p8 = scmp.ne.s32.totalorder %s8819_s5, %s8820_s10  ;;  %p8825_p0 = scmp.lt.s32.totalorder %s8819_s5, %s10696_s13 }
 0x1f2   : > { %p8826_p1 = scmp.lt.s32.totalorder %s8824_s8, %s8820_s10 }
 0x1f3   : > { %s1398_s22 = sshll.u32 %s10697_s14, 4  ;;  %p8822_p9 = pnand %p8821_p8, %p10613_p4  ;;  %s9912_s22 = int_to_ptr.hbm [resolvable:$true] %s1398_s22 }
 0x1f4   : > { %p8827_p2 = por %p8826_p1, %p8825_p0 }
 0x1f5   : > { %p8823_p10 = pneg %p8822_p9 }
 0x1f7   : > { %p8828_p3 = pnand %p8827_p2, %p8823_p10 }
 0x1f9   : > { %8831 = shalt.err (!%p8828_p3)
}
 0x1fa   : > { %s10698_s4 = smov 8   ;;  %s10699_s6 = smov 128  }
 0x1fb   : > { %s10700_s17 = sld [smem:[#allocation107_spill]]  ;;  %s9293_s7 = smov [#allocation40]  }
 0x1fc   : > { %7553 = dma.hbm_to_vmem [thread:$0]  (%p10613_p4), %s9898_s2, 2048, %s1375_s1, [#allocation36], %s10699_s6, %s10699_s6, %s10698_s4  }
 0x1fd   : > { %s1400_s12 = sshll.u32 %s9293_s7, 4  ;;  %s8846_s5 = sshra.s32 %s9912_s22, 4  ;;  %s1401_s12 = int_to_ptr.vmem [resolvable:$true] %s1400_s12  ;;  %s8847_s5 = int_to_ptr.hbm [resolvable:$true] %s8846_s5 }
 0x1fe   : > { %s8848_s10 = scalar_lea.hbm %s8847_s5, 64  ;;  %s8852_s8 = scalar_lea.hbm %s10697_s14, 64 }
 0x1ff   : > { %p8849_p7 = scmp.ne.s32.totalorder %s8847_s5, %s8848_s10  ;;  %p8853_p10 = scmp.lt.s32.totalorder %s8847_s5, %s10697_s14 }
 0x200   : > { %p8854_p0 = scmp.lt.s32.totalorder %s8852_s8, %s8848_s10 }
 0x201   : > { %s1425_s16 = sshll.u32 %s10700_s17, 4  ;;  %p8850_p8 = pnand %p8849_p7, %p10613_p4  ;;  %s9926_s16 = int_to_ptr.hbm [resolvable:$true] %s1425_s16 }
 0x202   : > { %p8855_p1 = por %p8854_p0, %p8853_p10 }
 0x203   : > { %p8851_p9 = pneg %p8850_p8 }
 0x205   : > { %p8856_p2 = pnand %p8855_p1, %p8851_p9 }
 0x207   : > { %8859 = shalt.err (!%p8856_p2)
}
 0x208   : > { %s10701_s1 = sld [smem:[#allocation109_spill]]  ;;  %s9294_s2 = smov [#allocation43]  }
 0x209   : > { %7557 = dma.hbm_to_vmem [thread:$0]  (%p10613_p4), %s9912_s22, 1024, %s1401_s12, [#allocation39], %s10688_s0, %s10688_s0, %s10687_s11  }
 0x20a   : > { %s1427_s13 = sshll.u32 %s9294_s2, 4  ;;  %s8874_s5 = sshra.s32 %s9926_s16, 4  ;;  %s1428_s13 = int_to_ptr.vmem [resolvable:$true] %s1427_s13  ;;  %s8875_s5 = int_to_ptr.hbm [resolvable:$true] %s8874_s5 }
 0x20b   : > { %s8876_s10 = scalar_lea.hbm %s8875_s5, 1  ;;  %s8880_s8 = scalar_lea.hbm %s10700_s17, 1 }
 0x20c   : > { %p8877_p3 = scmp.ne.s32.totalorder %s8875_s5, %s8876_s10  ;;  %p8881_p9 = scmp.lt.s32.totalorder %s8875_s5, %s10700_s17 }
 0x20d   : > { %p8882_p10 = scmp.lt.s32.totalorder %s8880_s8, %s8876_s10 }
 0x20e   : > { %s1448_s7 = sshll.u32 %s10701_s1, 4  ;;  %p8878_p7 = pnand %p8877_p3, %p10613_p4  ;;  %s9940_s7 = int_to_ptr.hbm [resolvable:$true] %s1448_s7 }
 0x20f   : > { %p8883_p0 = por %p8882_p10, %p8881_p9 }
 0x210   : > { %p8879_p8 = pneg %p8878_p7 }
 0x212   : > { %p8884_p1 = pnand %p8883_p0, %p8879_p8 }
 0x214   : > { %8887 = shalt.err (!%p8884_p1)
}
 0x215   : > { %s10702_s12 = sld [smem:[#allocation111_spill]]  ;;  %s9295_s22 = smov [#allocation46]  }
 0x216   : > { %7561 = dma.hbm_to_vmem [thread:$0]  (%p10613_p4), %s9926_s16, 16, %s1428_s13, [#allocation42]  }
 0x217   : > { %s1450_s2 = sshll.u32 %s9295_s22, 4  ;;  %s8902_s5 = sshra.s32 %s9940_s7, 4  ;;  %s1451_s2 = int_to_ptr.vmem [resolvable:$true] %s1450_s2  ;;  %s8903_s5 = int_to_ptr.hbm [resolvable:$true] %s8902_s5 }
 0x218   : > { %s8904_s10 = scalar_lea.hbm %s8903_s5, 128  ;;  %s8908_s8 = scalar_lea.hbm %s10701_s1, 128 }
 0x219   : > { %p8905_p2 = scmp.ne.s32.totalorder %s8903_s5, %s8904_s10  ;;  %p8909_p8 = scmp.lt.s32.totalorder %s8903_s5, %s10701_s1 }
 0x21a   : > { %p8910_p9 = scmp.lt.s32.totalorder %s8908_s8, %s8904_s10 }
 0x21b   : > { %s1474_s14 = sshll.u32 %s10702_s12, 4  ;;  %p8906_p3 = pnand %p8905_p2, %p10613_p4  ;;  %s9951_s14 = int_to_ptr.hbm [resolvable:$true] %s1474_s14 }
 0x21c   : > { %p8911_p10 = por %p8910_p9, %p8909_p8 }
 0x21d   : > { %p8907_p7 = pneg %p8906_p3 }
 0x21f   : > { %p8912_p0 = pnand %p8911_p10, %p8907_p7 }
 0x221   : > { %8915 = shalt.err (!%p8912_p0)
}
 0x222   : > { %s10703_s16 = sld [smem:[#allocation113_spill]]  ;;  %s9296_s22 = smov [#allocation49]  }
 0x223   : > { %7565 = dma.hbm_to_vmem [thread:$0]  (%p10613_p4), %s9940_s7, 2048, %s1451_s2, [#allocation45], %s10699_s6, %s10699_s6, %s10698_s4  }
 0x224   : > { %s1476_s17 = sshll.u32 %s9296_s22, 4  ;;  %s8930_s5 = sshra.s32 %s9951_s14, 4  ;;  %s1477_s17 = int_to_ptr.vmem [resolvable:$true] %s1476_s17  ;;  %s8931_s5 = int_to_ptr.hbm [resolvable:$true] %s8930_s5 }
 0x225   : > { %s8932_s10 = scalar_lea.hbm %s8931_s5, 128  ;;  %s8936_s8 = scalar_lea.hbm %s10702_s12, 128 }
 0x226   : > { %p8933_p1 = scmp.ne.s32.totalorder %s8931_s5, %s8932_s10  ;;  %p8937_p7 = scmp.lt.s32.totalorder %s8931_s5, %s10702_s12 }
 0x227   : > { %p8938_p8 = scmp.lt.s32.totalorder %s8936_s8, %s8932_s10 }
 0x228   : > { %s1501_s13 = sshll.u32 %s10703_s16, 4  ;;  %p8934_p2 = pnand %p8933_p1, %p10613_p4  ;;  %s9965_s13 = int_to_ptr.hbm [resolvable:$true] %s1501_s13 }
 0x229   : > { %p8939_p9 = por %p8938_p8, %p8937_p7 }
 0x22a   : > { %p8935_p3 = pneg %p8934_p2 }
 0x22c   : > { %p8940_p10 = pnand %p8939_p9, %p8935_p3 }
 0x22e   : > { %8943 = shalt.err (!%p8940_p10)
}
 0x22f   : > { %7569 = dma.hbm_to_vmem [thread:$0]  (%p10613_p4), %s9951_s14, 2048, %s1477_s17, [#allocation48], %s10688_s0, %s10688_s0, %s10687_s11  }
 0x230   : > { %s9297_s4 = smov [#allocation52]   ;;  %s1524_s7 = sshll.u32 %s9521_s9, 4  ;;  %s9979_s7 = int_to_ptr.hbm [resolvable:$true] %s1524_s7 }
 0x231   : > { %s1503_s6 = sshll.u32 %s9297_s4, 4  ;;  %s8958_s2 = sshra.s32 %s9965_s13, 4  ;;  %s1504_s6 = int_to_ptr.vmem [resolvable:$true] %s1503_s6  ;;  %s8959_s2 = int_to_ptr.hbm [resolvable:$true] %s8958_s2 }
 0x232   : > { %s8960_s22 = scalar_lea.hbm %s8959_s2, 1  ;;  %s8964_s5 = scalar_lea.hbm %s10703_s16, 1 }
 0x233   : > { %p8961_p0 = scmp.ne.s32.totalorder %s8959_s2, %s8960_s22  ;;  %p8965_p3 = scmp.lt.s32.totalorder %s8959_s2, %s10703_s16 }
 0x234   : > { %p8966_p7 = scmp.lt.s32.totalorder %s8964_s5, %s8960_s22 }
 0x235   : > { %p8962_p1 = pnand %p8961_p0, %p10613_p4 }
 0x236   : > { %p8967_p8 = por %p8966_p7, %p8965_p3 }
 0x237   : > { %p8963_p2 = pneg %p8962_p1 }
 0x239   : > { %p8968_p9 = pnand %p8967_p8, %p8963_p2 }
 0x23b   : > { %8971 = shalt.err (!%p8968_p9)
}
 0x23c   : > { %7573 = dma.hbm_to_vmem [thread:$0]  (%p10613_p4), %s9965_s13, 16, %s1504_s6, [#allocation51]  }
 0x23d   : > { %s1539_s14 = sshll.u32 %s10655_s3, 4  ;;  %s9298_s17 = smov [#allocation55]   ;;  %s9990_s14 = int_to_ptr.hbm [resolvable:$true] %s1539_s14 }
 0x23e   : > { %s1526_s10 = sshll.u32 %s9298_s17, 4  ;;  %s8986_s8 = sshra.s32 %s9979_s7, 4  ;;  %s1527_s10 = int_to_ptr.vmem [resolvable:$true] %s1526_s10  ;;  %s8987_s8 = int_to_ptr.hbm [resolvable:$true] %s8986_s8 }
 0x23f   : > { %s8988_s4 = scalar_lea.hbm %s8987_s8, 64  ;;  %s8992_s2 = scalar_lea.hbm %s9521_s9, 64 }
 0x240   : > { %p8989_p10 = scmp.ne.s32.totalorder %s8987_s8, %s8988_s4  ;;  %p8993_p2 = scmp.lt.s32.totalorder %s8987_s8, %s9521_s9 }
 0x241   : > { %p8994_p3 = scmp.lt.s32.totalorder %s8992_s2, %s8988_s4 }
 0x242   : > { %p8990_p0 = pnand %p8989_p10, %p10613_p4 }
 0x243   : > { %p8995_p7 = por %p8994_p3, %p8993_p2 }
 0x244   : > { %p8991_p1 = pneg %p8990_p0 }
 0x246   : > { %p8996_p8 = pnand %p8995_p7, %p8991_p1 }
 0x248   : > { %8999 = shalt.err (!%p8996_p8)
}
 0x249   : > { %7577 = dma.hbm_to_vmem [thread:$0]  (%p10613_p4), %s9979_s7, 1024, %s1527_s10, [#allocation54], %s10688_s0, %s10688_s0, %s10687_s11  }
 0x24a   : > { %s9299_s13 = smov [#allocation56]   ;;  %s9014_s22 = sshra.s32 %s9990_s14, 4  ;;  %s9015_s22 = int_to_ptr.hbm [resolvable:$true] %s9014_s22 }
 0x24b   : > { %s1541_s6 = sshll.u32 %s9299_s13, 4  ;;  %s9016_s5 = scalar_lea.hbm %s9015_s22, 1  ;;  %s1542_s6 = int_to_ptr.vmem [resolvable:$true] %s1541_s6 }
 0x24c   : > { %p9017_p9 = scmp.ne.s32.totalorder %s9015_s22, %s9016_s5  ;;  %s9020_s17 = scalar_lea.hbm %s10655_s3, 1 }
 0x24d   : > { %p9021_p1 = scmp.lt.s32.totalorder %s9015_s22, %s10655_s3  ;;  %p9022_p2 = scmp.lt.s32.totalorder %s9020_s17, %s9016_s5 }
 0x24e   : > { %p9018_p10 = pnand %p9017_p9, %p10613_p4 }
 0x24f   : > { %p9023_p3 = por %p9022_p2, %p9021_p1 }
 0x250   : > { %p9019_p0 = pneg %p9018_p10 }
 0x252   : > { %p9024_p7 = pnand %p9023_p3, %p9019_p0 }
 0x254   : > { %9027 = shalt.err (!%p9024_p7)
}
 0x255   : > { %7579 = dma.hbm_to_vmem [thread:$0]  (%p10613_p4), %s9990_s14, 16, %s1542_s6, [#allocation57]  }
 0x256 PF: > { %s10704_s11 = sld [smem:[#allocation80_spill]]  ;;  %p7697_p9 = scmp.lt.s32.totalorder %s9210_s26, 2 }
 0x257   : > { %s1559_s0 = sand.u32 1, %s9206_s23   ;;  %s7266_s7 = sshll.u32 %s9210_s26, 4 }
 0x258   : > { %s6209_s10 = sshll.u32 %s1559_s0, 4  ;;  %p10018_p10 = pnand %p7697_p9, %p9572_p5 }
 0x259   : > { %s1563_s2 = scalar_lea.vmem [#allocation2], %s6209_s10  ;;  %s1560_s6 = scalar_lea.sflag [#allocation3], %s1559_s0 }
 0x25a   : > { %s1571_s13 = sshll.u32 %s1563_s2, 4  ;;  %p9046_p1 = pneg %p10018_p10  ;;  %s1572_s13 = int_to_ptr.vmem [resolvable:$true] %s1571_s13 }
 0x25c   : > { %s1568_s8 = scalar_lea.hbm %s10704_s11, %s7266_s7  ;;  %s9049_s17 = scalar_lea.hbm %s10704_s11, 32 }
 0x25d   : > { %s1569_s4 = sshll.u32 %s1568_s8, 4  ;;  %s1570_s4 = int_to_ptr.hbm [resolvable:$true] %s1569_s4 }
 0x25e   : > { %s9042_s22 = sshra.s32 %s1570_s4, 4  ;;  %s9043_s22 = int_to_ptr.hbm [resolvable:$true] %s9042_s22 }
 0x25f   : > { %s9044_s5 = scalar_lea.hbm %s9043_s22, 16  ;;  %p9050_p7 = scmp.lt.s32.totalorder %s9043_s22, %s10704_s11 }
 0x260   : > { %p9045_p0 = scmp.ne.s32.totalorder %s9043_s22, %s9044_s5  ;;  %p9051_p8 = scmp.lt.s32.totalorder %s9049_s17, %s9044_s5 }
 0x262   : > { %p9047_p2 = pnand %p9046_p1, %p9045_p0  ;;  %p9052_p4 = por %p9051_p8, %p9050_p7 }
 0x264   : > { %p9048_p3 = pneg %p9047_p2 }
 0x266   : > { %p9053_p12 = pnand %p9052_p4, %p9048_p3 }
 0x268   : > { %9056 = shalt.err (!%p9053_p12)
}
 0x269   : > { %s9300_s15 = smov 128   ;;  %s9301_s7 = smov 8  }
 0x26a   : > { %7657 = dma.hbm_to_vmem [thread:$0]  (!%p10018_p10), %s1570_s4, 256, %s1572_s13, %s1560_s6, %s9300_s15, %s9300_s15, %s9301_s7  }
 0x26b   : > { %1583 = sbr.rel (%p9593_p13) target bundleno = 8359 (0x20a7), region = 192  ;;  %s10707_s10 = sld [smem:[#allocation117_spill]] (!%p9593_p13) }
 0x271   : > { %s10031_s2 = sand.u32 1, %s10707_s10  }
 0x272   : > { %s6213_s1 = sshll.u32 %s10031_s2, 4  ;;  %s1586_s22 = scalar_lea.sflag [#allocation3], %s10031_s2 }
 0x273   : > { %s10035_s5 = scalar_lea.vmem [#allocation2], %s6213_s1 }
 0x274   : > { %9117 = dma.done.wait (%p9578_p6), %s1586_s22, 256  }
 0x275   : > { %9119 = vsyncadd (%p9578_p6), %s1586_s22, 4294967040  ;;  %p10709_p4 = scmp.eq.s32.totalorder %s9554_s28, 0 }
 0x277   : > { %9121 = dma.done.wait (%p10709_p4), [#allocation6], 6176   ;;  %p10710_p5 = pmov %p10709_p4 }
 0x278   : > { %p10711_p12 = pmov %p10709_p4 }
 0x279   : > { %9123 = vsyncadd (%p10710_p5), [#allocation6], 4294961120 }
 0x27a   : > { %9125 = dma.done.wait (%p10711_p12), [#allocation9], 2080   ;;  %p10712_p13 = pmov %p10709_p4 }
 0x27b   : > { %p10713_p8 = pmov %p10709_p4 }
 0x27c   : > { %9127 = vsyncadd (%p10712_p13), [#allocation9], 4294965216 }
 0x27d   : > { %9129 = dma.done.wait (%p10713_p8), [#allocation12], 4128   ;;  %p10714_p9 = pmov %p10709_p4 }
 0x27e   : > { %p10715_p6 = pmov %p10709_p4 }
 0x27f   : > { %9131 = vsyncadd (%p10714_p9), [#allocation12], 4294963168 }
 0x280   : > { %9133 = dma.done.wait (%p10715_p6), [#allocation15], 4160   ;;  %p10716_p10 = pmov %p10709_p4 }
 0x281   : > { %p10717_p0 = pmov %p10709_p4 }
 0x282   : > { %9135 = vsyncadd (%p10716_p10), [#allocation15], 4294963136 }
 0x283   : > { %9137 = dma.done.wait (%p10717_p0), [#allocation18], 1056   ;;  %p10718_p1 = pmov %p10717_p0 }
 0x284   : > { %p10719_p2 = pmov %p10717_p0 }
 0x285   : > { %9139 = vsyncadd (%p10718_p1), [#allocation18], 4294966240 }
 0x286   : > { %9141 = dma.done.wait (%p10719_p2), [#allocation21], 144   ;;  %p10720_p3 = pmov %p10717_p0 }
 0x287   : > { %p10721_p7 = pmov %p10717_p0 }
 0x288   : > { %9143 = vsyncadd (%p10720_p3), [#allocation21], 4294967152 }
 0x289   : > { %9145 = dma.done.wait (%p10721_p7), [#allocation24], 3088   ;;  %p10722_p4 = pmov %p10717_p0 }
 0x28a   : > { %p10723_p5 = pmov %p10717_p0 }
 0x28b   : > { %9147 = vsyncadd (%p10722_p4), [#allocation24], 4294964208 }
 0x28c   : > { %9149 = dma.done.wait (%p10723_p5), [#allocation27], 1072   ;;  %p10724_p12 = pmov %p10717_p0 }
 0x28d   : > { %p10725_p13 = pmov %p10717_p0 }
 0x28e   : > { %9151 = vsyncadd (%p10724_p12), [#allocation27], 4294966224 }
 0x28f   : > { %9153 = dma.done.wait (%p10725_p13), [#allocation30], 32   ;;  %p10726_p8 = pmov %p10717_p0 }
 0x290   : > { %p10727_p9 = pmov %p10717_p0 }
 0x291   : > { %9155 = vsyncadd (%p10726_p8), [#allocation30], 4294967264 }
 0x292   : > { %9157 = dma.done.wait (%p10727_p9), [#allocation33], 1040   ;;  %p10728_p6 = pmov %p10717_p0 }
 0x293   : > { %p10729_p10 = pmov %p10717_p0 }
 0x294   : > { %9159 = vsyncadd (%p10728_p6), [#allocation33], 4294966256 }
 0x295   : > { %9161 = dma.done.wait (%p10729_p10), [#allocation36], 2064  }
 0x296   : > { %9163 = vsyncadd (%p10717_p0), [#allocation36], 4294965232  ;;  %p10730_p1 = pmov %p10717_p0 }
 0x297   : > { %p10731_p2 = pmov %p10717_p0 }
 0x298   : > { %9165 = dma.done.wait (%p10730_p1), [#allocation39], 1056  }
 0x299   : > { %9167 = vsyncadd (%p10731_p2), [#allocation39], 4294966240  ;;  %p10732_p3 = pmov %p10717_p0 }
 0x29a   : > { %p10733_p7 = pmov %p10717_p0 }
 0x29b   : > { %9169 = dma.done.wait (%p10732_p3), [#allocation42], 32  }
 0x29c   : > { %9171 = vsyncadd (%p10733_p7), [#allocation42], 4294967264  ;;  %p10734_p4 = pmov %p10717_p0 }
 0x29d   : > { %p10735_p5 = pmov %p10717_p0 }
 0x29e   : > { %9173 = dma.done.wait (%p10734_p4), [#allocation45], 2064  }
 0x29f   : > { %9175 = vsyncadd (%p10735_p5), [#allocation45], 4294965232  ;;  %p10736_p12 = pmov %p10717_p0 }
 0x2a0   : > { %p10737_p13 = pmov %p10717_p0 }
 0x2a1   : > { %9177 = dma.done.wait (%p10736_p12), [#allocation48], 2080  }
 0x2a2   : > { %9179 = vsyncadd (%p10737_p13), [#allocation48], 4294965216  ;;  %p10738_p8 = pmov %p10717_p0 }
 0x2a3   : > { %p10739_p9 = pmov %p10717_p0 }
 0x2a4   : > { %9181 = dma.done.wait (%p10738_p8), [#allocation51], 32  }
 0x2a5   : > { %9183 = vsyncadd (%p10739_p9), [#allocation51], 4294967264  ;;  %p10740_p6 = pmov %p10717_p0 }
 0x2a6   : > { %p10741_p10 = pmov %p10717_p0 }
 0x2a7   : > { %9185 = dma.done.wait (%p10740_p6), [#allocation54], 1040  }
 0x2a8   : > { %9187 = vsyncadd (%p10741_p10), [#allocation54], 4294966256 }
 0x2a9   : > { %9189 = dma.done.wait (%p10717_p0), [#allocation57], 16   ;;  %p10742_p1 = pmov %p10717_p0 }
 0x2aa   : > { %s10743_s1 = sld [smem:[#allocation81_spill]]  ;;  %v1877_v3 = vld [vmem:[%s10035_s5] sm:$0xff]  ;;  %v1878_v4 = vld [vmem:[%s10035_s5 + $0x8] sm:$0xff]  ;;  %vm1908_vm0 = vcmask 392192   ;;  %v9302_v15 = vmov 128.0   ;;  %vm2203_vm8 = vcmask 261120  }
 0x2ab   : > { %9191 = vsyncadd (%p10742_p1), [#allocation57], 4294967280  ;;  %s10744_s4 = sld [smem:[#allocation82_spill]]  ;;  %v1879_v5 = vpack.c.bf16 %v1878_v4, %v1877_v3  ;;  %7920 = vrcp.f32 %v9302_v15  ;;  %v6350_v30 = vld [vmem:[#allocation7 + $0xa8] sm:$0xf]  ;;  %s9303_s17 = smov 32  }
 0x2ac   : > { %s10745_s13 = sld [smem:[#allocation83_spill]]  ;;  %v7292_v31 = vld [vmem:[#allocation7 + $0xb0] sm:$0xf0]  ;;  %v7291_v32 = vld [vmem:[#allocation7 + $0xac] sm:$0xf]  ;;  %s9304_s15 = smov 64  }
 0x2ad   : > { %v6351_v33 = vor.u32 %v7292_v31, %v6350_v30  ;;  %v6352_v34 = vld [vmem:[#allocation7 + $0xb4] sm:$0xf0]  ;;  %v6358_v35 = vld [vmem:[#allocation7 + $0xb0] sm:$0xf]  ;;  %v7293_v36 = vld [vmem:[#allocation7 + $0xb8] sm:$0xf0] }
 0x2ae   : > { %v6355_v37 = vor.u32 %v7291_v32, %v6352_v34  ;;  %v6359_v38 = vor.u32 %v7293_v36, %v6358_v35  ;;  %v6338_v39 = vld [vmem:[#allocation7 + $0x90] sm:$0xf]  ;;  %v7289_v40 = vld [vmem:[#allocation7 + $0x98] sm:$0xf0]  ;;  %v7288_v41 = vld [vmem:[#allocation7 + $0x94] sm:$0xf] }
 0x2af   : > { %2158 = vmatpush.bf16.msra.mxu1 %v6351_v33  ;;  %v6339_v42 = vor.u32 %v7289_v40, %v6338_v39  ;;  %v6340_v43 = vld [vmem:[#allocation7 + $0x9c] sm:$0xf0]  ;;  %v6346_v44 = vld [vmem:[#allocation7 + $0x98] sm:$0xf]  ;;  %v7290_v45 = vld [vmem:[#allocation7 + $0xa0] sm:$0xf0] }
 0x2b0   : > { %v7269_v0 = vld [vmem:[%s10743_s1 + $0x10] sm:$0xff]  ;;  %v7268_v1 = vld [vmem:[%s10743_s1 + $0x8] sm:$0xff]  ;;  %v7267_v2 = vld [vmem:[%s10743_s1] sm:$0xff]  ;;  %2172 = vmatpush.bf16.msra.mxu2 %v6355_v37  ;;  %2186 = vmatpush.bf16.msra.mxu3 %v6359_v38  ;;  %v6343_v46 = vor.u32 %v7288_v41, %v6340_v43  ;;  %v6347_v47 = vor.u32 %v7290_v45, %v6346_v44  ;;  %s10746_s14 = sld [smem:[#allocation84_spill]]  ;;  %s9305_s7 = smov 96   ;;  %vm2226_vm9 = vcmask 130048  }
 0x2b1   : > { %1917 = vmatpush.bf16.msra.mxu0 %v7269_v0  ;;  %v7894_v6 = vld [vmem:[%s10744_s4] ss:$0 sm:$0xff]  ;;  %v7921_v16 = vpop.eup %7920  ;;  %v6326_v48 = vld [vmem:[#allocation7 + $0x78] sm:$0xf]  ;;  %v7286_v49 = vld [vmem:[#allocation7 + $0x80] sm:$0xf0] }
 0x2b2   : > { %v1926_v8 = vld [vmem:[%s10745_s13] sm:$0xff]  ;;  %v1927_v12 = vld [vmem:[%s10745_s13 + $0x8] sm:$0xff]  ;;  %v1937_v17 = vmul.f32 128.0, %v7921_v16  ;;  %vm1941_vm1 = vweird.f32 %v7921_v16  ;;  %v6327_v51 = vor.u32 %v7286_v49, %v6326_v48  ;;  %v6316_v61 = vld [vmem:[#allocation7 + $0x6c] sm:$0xf0]  ;;  %s10747_s6 = sld [smem:[#allocation87_spill]] }
 0x2b3   : > { %2159 = vmatpush.bf16.msra.mxu1 %v6339_v42  ;;  %v7285_v50 = vld [vmem:[#allocation7 + $0x7c] sm:$0xf]  ;;  %v6328_v52 = vld [vmem:[#allocation7 + $0x84] sm:$0xf0]  ;;  %v6334_v53 = vld [vmem:[#allocation7 + $0x80] sm:$0xf] }
 0x2b4   : > { %v1938_v18 = vsub.f32 1.0, %v1937_v17  ;;  %2173 = vmatpush.bf16.msra.mxu2 %v6343_v46  ;;  %2187 = vmatpush.bf16.msra.mxu3 %v6347_v47  ;;  %v7287_v54 = vld [vmem:[#allocation7 + $0x88] sm:$0xf0]  ;;  %v6331_v55 = vor.u32 %v7285_v50, %v6328_v52  ;;  %v6314_v57 = vld [vmem:[#allocation7 + $0x60] sm:$0xf]  ;;  %vm2503_vm10 = vcmask 523264  }
 0x2b5   : > { %1918 = vmatpush.bf16.msra.mxu0 %v7268_v1  ;;  %v6335_v56 = vor.u32 %v7287_v54, %v6334_v53  ;;  %v7283_v58 = vld [vmem:[#allocation7 + $0x68] sm:$0xf0]  ;;  %v7282_v59 = vld [vmem:[#allocation7 + $0x64] sm:$0xf]  ;;  %v6322_v62 = vld [vmem:[#allocation7 + $0x68] sm:$0xf] }
 0x2b6   : > { %v1939_v19 = vmul.f32 %v7921_v16, %v1938_v18  ;;  %v6315_v60 = vor.u32 %v7283_v58, %v6314_v57  ;;  %v7284_v63 = vld [vmem:[#allocation7 + $0x70] sm:$0xf0]  ;;  %v6319_v0 = vor.u32 %v7282_v59, %v6316_v61  ;;  %v7279_v4 = vld [vmem:[#allocation7 + $0x4c] sm:$0xf]  ;;  %v6292_v17 = vld [vmem:[#allocation7 + $0x3c] sm:$0xf0] }
 0x2b7   : > { %2160 = vmatpush.bf16.msra.mxu1 %v6327_v51  ;;  %v6323_v1 = vor.u32 %v7284_v63, %v6322_v62  ;;  %v7280_v3 = vld [vmem:[#allocation7 + $0x50] sm:$0xf0]  ;;  %v6298_v18 = vld [vmem:[#allocation7 + $0x38] sm:$0xf]  ;;  %v6286_v30 = vld [vmem:[#allocation7 + $0x20] sm:$0xf] }
 0x2b8   : > { %v1940_v20 = vadd.f32 %v7921_v16, %v1939_v19  ;;  %2174 = vmatpush.bf16.msra.mxu2 %v6331_v55  ;;  %2188 = vmatpush.bf16.msra.mxu3 %v6335_v56  ;;  %v7276_v15 = vld [vmem:[#allocation7 + $0x34] sm:$0xf]  ;;  %v7278_v19 = vld [vmem:[#allocation7 + $0x40] sm:$0xf0]  ;;  %v7275_v31 = vld [vmem:[#allocation7 + $0x28] sm:$0xf0] }
 0x2b9   : > { %1919 = vmatpush.bf16.msra.mxu0 %v7267_v2  ;;  %v6302_v2 = vld [vmem:[#allocation7 + $0x48] sm:$0xf]  ;;  %v6287_v33 = vor.u32 %v7275_v31, %v6286_v30  ;;  %v6266_v34 = vld [vmem:[#allocation7] sm:$0xf]  ;;  %v7271_v35 = vld [vmem:[#allocation7 + $0x8] sm:$0xf0] }
 0x2ba   : > { %v10127_v21 = vsel %vm1941_vm1, %v7921_v16, %v1940_v20  ;;  %v6295_v20 = vor.u32 %v7276_v15, %v6292_v17  ;;  %v7270_v36 = vld [vmem:[#allocation7 + $0x4] sm:$0xf]  ;;  %v6267_v38 = vor.u32 %v7271_v35, %v6266_v34  ;;  %v6268_v39 = vld [vmem:[#allocation7 + $0xc] sm:$0xf0]  ;;  %v6274_v40 = vld [vmem:[#allocation7 + $0x8] sm:$0xf] }
 0x2bb   : > { %2161 = vmatpush.bf16.msra.mxu1 %v6315_v60  ;;  %v7272_v41 = vld [vmem:[#allocation7 + $0x10] sm:$0xf0]  ;;  %v6271_v43 = vor.u32 %v7270_v36, %v6268_v39  ;;  %v7895_v62 = vld [vmem:[%s10746_s14] ss:$0 sm:$0xff]  ;;  %vm2506_vm11 = vcmask 785408   ;;  %s10748_s0 = sld [smem:[#allocation90_spill]] }
 0x2bc   : > { %6263 = vmatmul.msk.bf16.vlgmr.msra.gmra.mxu0 %vm1908_vm0, %v1879_v5  ;;  %2175 = vmatpush.bf16.msra.mxu2 %v6319_v0  ;;  %v6303_v5 = vor.u32 %v7280_v3, %v6302_v2  ;;  %v6275_v44 = vor.u32 %v7272_v41, %v6274_v40  ;;  %v7896_v3 = vld [vmem:[#allocation5] ss:$0 sm:$0xff]  ;;  %s10750_s8 = sld [smem:[#allocation79_spill]]  ;;  %p1872_p2 = scmp.lt.s32.totalorder %s9554_s28, 1 }
 0x2bd   : > { %2189 = vmatpush.bf16.msra.mxu3 %v6323_v1  ;;  %s5698_s1 = scalar_lea.sflag [#allocation4], %s10031_s2 }
 0x2be   : > { %s1873_s22 = scalar_select %p1872_p2, %s9554_s28, 1 }
 0x2bf   : > { %2162 = vmatpush.bf16.msra.mxu1 %v6303_v5 }
 0x2c0   : > { %s6250_s5 = sshll.u32 %s1873_s22, 3 }
 0x2c1   : > { %s10749_s10 = smov %s10748_s0 }
 0x2c2   : > { %s1875_s4 = scalar_lea.vmem %s10750_s8, %s6250_s5 }
 0x339   : > { %v1921_v7 = vpop.f32.mrf.mxu0 }
 0x33a   : > { %v1922_v9 = vadd.f32 %v7894_v6, %v1921_v7  ;;  %v6310_v7 = vld [vmem:[#allocation7 + $0x50] sm:$0xf] }
 0x33c   : > { %v10120_v10 = vadd.f32 %v1926_v8, %v1922_v9  ;;  %v7281_v8 = vld [vmem:[#allocation7 + $0x58] sm:$0xf0] }
 0x33e   : > { %1932 = vadd.xlane.f32.xlu0 %v10120_v10 }
 0x341   : > { %v1923_v11 = vpop.f32.mrf.mxu0 }
 0x342   : > { %v1924_v13 = vadd.f32 %v7894_v6, %v1923_v11  ;;  %v6304_v6 = vld [vmem:[#allocation7 + $0x54] sm:$0xf0]  ;;  %v6311_v11 = vor.u32 %v7281_v8, %v6310_v7 }
 0x343   : > { %v6307_v9 = vor.u32 %v7279_v4, %v6304_v6 }
 0x344   : > { %v10124_v14 = vadd.f32 %v1927_v12, %v1924_v13  ;;  %2190 = vmatpush.bf16.msra.mxu3 %v6311_v11  ;;  %v6290_v12 = vld [vmem:[#allocation7 + $0x30] sm:$0xf]  ;;  %v7277_v13 = vld [vmem:[#allocation7 + $0x38] sm:$0xf0] }
 0x345   : > { %2176 = vmatpush.bf16.msra.mxu2 %v6307_v9  ;;  %v6291_v16 = vor.u32 %v7277_v13, %v6290_v12  ;;  %v2022_v11 = vld [vmem:[%s10747_s6] sm:$0x7] }
 0x346   : > { %1934 = vadd.xlane.f32.xlu0 %v10124_v14  ;;  %v2025_v12 = vperm.slane %v2022_v11, 1  ;;  %v2026_v13 = vperm.slane %v2022_v11, 2 }
 0x347   : > { %2163 = vmatpush.bf16.msra.mxu1 %v6291_v16 }
 0x349   : > { %2177 = vmatpush.bf16.msra.mxu2 %v6295_v20 }
 0x3b1   : > { %v1933_v22 = vpop.xlane.xlu0 %1932 }
 0x3b2   : > { %v1943_v23 = vmul.f32 %v10127_v21, %v1933_v22  ;;  %v6299_v22 = vor.u32 %v7278_v19, %v6298_v18 }
 0x3b4   : > { %v10131_v24 = vsub.f32 %v10120_v10, %v1943_v23  ;;  %2191 = vmatpush.bf16.msra.mxu3 %v6299_v22  ;;  %v6278_v23 = vld [vmem:[#allocation7 + $0x18] sm:$0xf] }
 0x3b6   : > { %v1947_v25 = vmul.f32 %v10131_v24, %v10131_v24 }
 0x3b8   : > { %1949 = vadd.xlane.f32.xlu1 %v1947_v25  ;;  %v7274_v25 = vld [vmem:[#allocation7 + $0x20] sm:$0xf0]  ;;  %2192 = vmatpush.bf16.msra.mxu3 %v6287_v33 }
 0x3b9   : > { %v1935_v26 = vpop.xlane.xlu0 %1934 }
 0x3ba   : > { %v1944_v27 = vmul.f32 %v10127_v21, %v1935_v26  ;;  %v7273_v26 = vld [vmem:[#allocation7 + $0x1c] sm:$0xf] }
 0x3bc   : > { %v10137_v28 = vsub.f32 %v10124_v14, %v1944_v27  ;;  %v6279_v27 = vor.u32 %v7274_v25, %v6278_v23  ;;  %2193 = vmatpush.bf16.msra.mxu3 %v6275_v44  ;;  %v2024_v23 = vperm.slane %v2022_v11, 0 }
 0x3be   : > { %v1948_v29 = vmul.f32 %v10137_v28, %v10137_v28  ;;  %2164 = vmatpush.bf16.msra.mxu1 %v6279_v27 }
 0x3c0   : > { %1951 = vadd.xlane.f32.xlu1 %v1948_v29  ;;  %v6280_v29 = vld [vmem:[#allocation7 + $0x24] sm:$0xf0] }
 0x3c1   : > { %v6283_v32 = vor.u32 %v7273_v26, %v6280_v29 }
 0x3c2   : > { %2165 = vmatpush.bf16.msra.mxu1 %v6267_v38 }
 0x3c3   : > { %2178 = vmatpush.bf16.msra.mxu2 %v6283_v32 }
 0x3c7   : > { %2179 = vmatpush.bf16.msra.mxu2 %v6271_v43 }
 0x42b   : > { %v1950_v37 = vpop.xlane.xlu1 %1949 }
 0x42c   : > { %v1953_v42 = vmul.f32 %v1950_v37, %v10127_v21 }
 0x42e   : > { %v1955_v45 = vadd.f32 1e-05, %v1953_v42 }
 0x430   : > { %7922 = vrsqrt.f32 %v1955_v45  ;;  %vm1963_vm3 = vweird.f32 %v1955_v45 }
 0x433   : > { %v1952_v46 = vpop.xlane.xlu1 %1951 }
 0x434   : > { %v1954_v47 = vmul.f32 %v1952_v46, %v10127_v21 }
 0x436   : > { %v7923_v48 = vpop.eup %7922  ;;  %v1956_v49 = vadd.f32 1e-05, %v1954_v47 }
 0x437   : > { %v1958_v50 = vmul.f32 %v7923_v48, %v1955_v45  ;;  %vm1964_vm2 = vweird.f32 %v7923_v48 }
 0x438   : > { %7924 = vrsqrt.f32 %v1956_v49  ;;  %vm1965_vm4 = vmor %vm1963_vm3, %vm1964_vm2  ;;  %vm1973_vm6 = vweird.f32 %v1956_v49 }
 0x439   : > { %v1959_v51 = vmul.f32 %v7923_v48, %v1958_v50 }
 0x43b   : > { %v1960_v52 = vmul.f32 0.5, %v1959_v51 }
 0x43d   : > { %v1961_v53 = vsub.f32 1.5, %v1960_v52 }
 0x43e   : > { %v7925_v54 = vpop.eup %7924 }
 0x43f   : > { %v1962_v55 = vmul.f32 %v7923_v48, %v1961_v53  ;;  %v1968_v56 = vmul.f32 %v7925_v54, %v1956_v49  ;;  %vm1974_vm5 = vweird.f32 %v7925_v54 }
 0x440   : > { %vm1975_vm7 = vmor %vm1973_vm6, %vm1974_vm5 }
 0x441   : > { %v1969_v57 = vmul.f32 %v7925_v54, %v1968_v56  ;;  %v1966_v58 = vsel %vm1965_vm4, %v7923_v48, %v1962_v55 }
 0x442   : > { %v1977_v61 = vmul.f32 %v1966_v58, %v10131_v24 }
 0x443   : > { %v1970_v59 = vmul.f32 0.5, %v1969_v57 }
 0x444   : > { %v1982_v2 = vmul.f32 %v7895_v62, %v1977_v61 }
 0x445   : > { %v1971_v60 = vsub.f32 1.5, %v1970_v59 }
 0x446   : > { %v1987_v5 = vadd.f32 %v7896_v3, %v1982_v2 }
 0x447   : > { %v1972_v63 = vmul.f32 %v7925_v54, %v1971_v60 }
 0x449   : > { %v1976_v0 = vsel %vm1975_vm7, %v7925_v54, %v1972_v63 }
 0x44a   : > { %v1978_v1 = vmul.f32 %v1976_v0, %v10137_v28 }
 0x44c   : > { %v1983_v4 = vmul.f32 %v7895_v62, %v1978_v1 }
 0x44e   : > { %v1988_v6 = vadd.f32 %v7896_v3, %v1983_v4 }
 0x450   : > { %v1989_v7 = vpack.c.bf16 %v1988_v6, %v1987_v5 }
 0x452   : > { %2166 = vmatmul.bf16.vlgmr.msra.gmra.mxu1 %v1989_v7  ;;  %2180 = vmatmul.bf16.vlgmr.msra.gmra.mxu2 %v1989_v7 }
 0x453   : > { %2194 = vmatmul.bf16.vlgmr.msra.gmra.mxu3 %v1989_v7 }
 0x4cf   : > { %v2167_v24 = vpop.f32.mrf.mxu1 }
 0x4d0   : > { %v2168_v29 = vadd.f32 %v2167_v24, %v2024_v23 }
 0x4d5   : > { %v2181_v8 = vpop.f32.mrf.mxu2 }
 0x4d6   : > { %v2195_v9 = vpop.f32.mrf.mxu3  ;;  %v2182_v16 = vadd.f32 %v2181_v8, %v2025_v12 }
 0x4d7   : > { %v2196_v19 = vadd.f32 %v2195_v9, %v2026_v13  ;;  %v2169_v22 = vpop.f32.mrf.mxu1 }
 0x4d8   : > { %v2170_v27 = vadd.f32 %v2169_v22, %v2024_v23 }
 0x4da   : > { %v2200_v30 = vpack.c.bf16 %v2170_v27, %v2168_v29 }
 0x4dd   : > { %v2183_v15 = vpop.f32.mrf.mxu2 }
 0x4de   : > { %v2184_v17 = vadd.f32 %v2183_v15, %v2025_v12  ;;  %v2197_v18 = vpop.f32.mrf.mxu3 }
 0x4df   : > { %v2198_v28 = vadd.f32 %v2197_v18, %v2026_v13 }
 0x4e0   : > { %v2201_v20 = vpack.c.bf16 %v2184_v17, %v2182_v16 }
 0x4e1   : > { %v10147_v25 = vpack.c.bf16 %v2198_v28, %v2196_v19 }
 0x4e2   : > { %2410 = vrot.lane.b32.xlu1 %v2201_v20, %s9303_s17  ;;  %2341 = vrot.lane.b32.xlu0 %v2201_v20, %s9304_s15  ;;  %v2208_v26 = vsel %vm2203_vm8, %v2201_v20, 0 }
 0x4e3   : > { %2271 = vrot.lane.b32.xlu2 %v2201_v20, %s9305_s7  ;;  %2217 = vmatpush.bf16.xpose.msrb.mxu0 %v2208_v26 }
 0x4ea   : > { %6360 = vmatmul.msk.bf16.vlgmr.msrb.gmra.mxu0 %vm2203_vm8, %v2200_v30 }
 0x4eb   : > { %2260 = vmatpush.bf16.msra.mxu0 %v10147_v25  ;;  %2268 = vrot.lane.b32.xlu2 %v2200_v30, %s9305_s7 }
 0x4f3   : > { %2339 = vrot.lane.b32.xlu2 %v2200_v30, %s9304_s15 }
 0x4fb   : > { %2408 = vrot.lane.b32.xlu2 %v2200_v30, %s9303_s17 }
 0x53d   : > { %v2272_v31 = vpop.permute.xlu2 %2271 }
 0x53e   : > { %v2277_v32 = vsel %vm2203_vm8, %v2272_v31, 0 }
 0x53f   : > { %2286 = vmatpush.bf16.xpose.msrb.mxu3 %v2277_v32 }
 0x545   : > { %v2269_v33 = vpop.permute.xlu2 %2268 }
 0x546   : > { %6362 = vmatmul.msk.bf16.vlgmr.msrb.gmra.mxu3 %vm2203_vm8, %v2269_v33 }
 0x54d   : > { %v2340_v34 = vpop.permute.xlu2 %2339 }
 0x554   : > { %v2411_v35 = vpop.permute.xlu1 %2410  ;;  %v2342_v36 = vpop.permute.xlu0 %2341 }
 0x555   : > { %v2347_v37 = vsel %vm2203_vm8, %v2342_v36, 0  ;;  %v2416_v38 = vsel %vm2203_vm8, %v2411_v35, 0  ;;  %v2409_v39 = vpop.permute.xlu2 %2408 }
 0x556   : > { %2356 = vmatpush.bf16.xpose.msra.mxu3 %v2347_v37  ;;  %2425 = vmatpush.bf16.xpose.msrb.mxu1 %v2416_v38 }
 0x55d   : > { %6364 = vmatmul.msk.bf16.vlgmr.msra.gmra.mxu3 %vm2203_vm8, %v2340_v34  ;;  %6366 = vmatmul.msk.bf16.vlgmr.msrb.gmra.mxu1 %vm2203_vm8, %v2409_v39 }
 0x567   : > { %v2219_v40 = vpop.f32.mrf.mxu0 }
 0x568   : > { %v2224_v41 = vmul.f32 0.17677669, %v2219_v40 }
 0x56a   : > { %v2227_v42 = vsel %vm2226_vm9, %v2224_v41, -inf }
 0x56b   : > { %2228 = vmax.xlane.f32.xlu2 %v2227_v42 }
 0x56f   : > { %v2221_v43 = vpop.f32.mrf.mxu0 }
 0x570   : > { %v2225_v44 = vmul.f32 0.17677669, %v2221_v43 }
 0x572   : > { %v2230_v45 = vsel %vm2226_vm9, %v2225_v44, -inf }
 0x573   : > { %2231 = vmax.xlane.f32.xlu0 %v2230_v45 }
 0x5c9   : > { %v2288_v46 = vpop.f32.mrf.mxu3 }
 0x5ca   : > { %v2293_v47 = vmul.f32 0.17677669, %v2288_v46 }
 0x5cc   : > { %v2295_v48 = vsel %vm2226_vm9, %v2293_v47, -inf }
 0x5cd   : > { %2296 = vmax.xlane.f32.xlu1 %v2295_v48 }
 0x5d1   : > { %v2290_v49 = vpop.f32.mrf.mxu3 }
 0x5d2   : > { %v2294_v50 = vmul.f32 0.17677669, %v2290_v49 }
 0x5d4   : > { %v2298_v51 = vsel %vm2226_vm9, %v2294_v50, -inf }
 0x5d5   : > { %2299 = vmax.xlane.f32.xlu2 %v2298_v51 }
 0x5da   : > { %v2427_v52 = vpop.f32.mrf.mxu1 }
 0x5db   : > { %v2432_v53 = vmul.f32 0.17677669, %v2427_v52 }
 0x5dd   : > { %v2434_v54 = vsel %vm2226_vm9, %v2432_v53, -inf }
 0x5de   : > { %v2229_v55 = vpop.xlane.xlu2 %2228  ;;  %2435 = vmax.xlane.f32.xlu0 %v2434_v54 }
 0x5df   : > { %v2233_v56 = vsub.f32 %v2224_v41, %v2229_v55 }
 0x5e0   : > { %v2358_v57 = vpop.f32.mrf.mxu3 }
 0x5e1   : > { %v2235_v58 = vmul.f32 1.442695, %v2233_v56  ;;  %v2363_v59 = vmul.f32 0.17677669, %v2358_v57 }
 0x5e2   : > { %v2429_v60 = vpop.f32.mrf.mxu1 }
 0x5e3   : > { %v2433_v61 = vmul.f32 0.17677669, %v2429_v60  ;;  %v2365_v62 = vsel %vm2226_vm9, %v2363_v59, -inf  ;;  %7926 = vpow2.f32 %v2235_v58 }
 0x5e4   : > { %2366 = vmax.xlane.f32.xlu1 %v2365_v62 }
 0x5e5   : > { %v2437_v63 = vsel %vm2226_vm9, %v2433_v61, -inf }
 0x5e6   : > { %2438 = vmax.xlane.f32.xlu2 %v2437_v63  ;;  %v2232_v0 = vpop.xlane.xlu0 %2231 }
 0x5e7   : > { %v2234_v1 = vsub.f32 %v2225_v44, %v2232_v0 }
 0x5e8   : > { %v2360_v2 = vpop.f32.mrf.mxu3 }
 0x5e9   : > { %v2237_v3 = vmul.f32 1.442695, %v2234_v1  ;;  %v2364_v4 = vmul.f32 0.17677669, %v2360_v2  ;;  %v7927_v5 = vpop.eup %7926 }
 0x5ea   : > { %v2239_v7 = vsel %vm2226_vm9, %v7927_v5, 0.0 }
 0x5eb   : > { %7928 = vpow2.f32 %v2237_v3  ;;  %v2368_v6 = vsel %vm2226_vm9, %v2364_v4, -inf }
 0x5ec   : > { %2369 = vmax.xlane.f32.xlu0 %v2368_v6 }
 0x5ee   : > { %2240 = vadd.xlane.f32.xlu2 %v2239_v7 }
 0x5f1   : > { %v7929_v8 = vpop.eup %7928 }
 0x5f2   : > { %v2242_v9 = vsel %vm2226_vm9, %v7929_v8, 0.0 }
 0x5f3   : > { %2243 = vadd.xlane.f32.xlu1 %v2242_v9 }
 0x60c   : > { %2319 = vrot.lane.b32.xlu1 %v10147_v25, %s9305_s7 }
 0x640   : > { %v2297_v24 = vpop.xlane.xlu1 %2296 }
 0x641   : > { %v2301_v15 = vsub.f32 %v2293_v47, %v2297_v24 }
 0x643   : > { %v2303_v17 = vmul.f32 1.442695, %v2301_v15 }
 0x648   : > { %v2300_v11 = vpop.xlane.xlu2 %2299 }
 0x649   : > { %v2302_v20 = vsub.f32 %v2294_v50, %v2300_v11 }
 0x64b   : > { %v2305_v29 = vmul.f32 1.442695, %v2302_v20 }
 0x651   : > { %v2436_v12 = vpop.xlane.xlu0 %2435 }
 0x652   : > { %v2440_v13 = vsub.f32 %v2432_v53, %v2436_v12  ;;  %v7301_v12 = vld [vmem:[#allocation8 + $0x38] sm:$0xff] }
 0x653   : > { %2578 = vmatpush.bf16.msrb.mxu3 %v7301_v12 }
 0x654   : > { %v2442_v16 = vmul.f32 1.442695, %v2440_v13  ;;  %v7300_v13 = vld [vmem:[#allocation8 + $0x30] sm:$0xff] }
 0x656   : > { %7930 = vpow2.f32 %v2442_v16  ;;  %v7299_v16 = vld [vmem:[#allocation8 + $0x28] sm:$0xff] }
 0x657   : > { %v2367_v18 = vpop.xlane.xlu1 %2366  ;;  %7932 = vpow2.f32 %v2303_v17  ;;  %2579 = vmatpush.bf16.msrb.mxu3 %v7300_v13  ;;  %v6444_v13 = vld [vmem:[#allocation13 + $0x58] sm:$0xf0] }
 0x658   : > { %v2371_v23 = vsub.f32 %v2363_v59, %v2367_v18 }
 0x659   : > { %v2439_v28 = vpop.xlane.xlu2 %2438 }
 0x65a   : > { %v2441_v19 = vsub.f32 %v2433_v61, %v2439_v28  ;;  %v2373_v30 = vmul.f32 1.442695, %v2371_v23 }
 0x65b   : > { %2580 = vmatpush.bf16.msrb.mxu3 %v7299_v16  ;;  %v6434_v16 = vld [vmem:[#allocation13 + $0x40] sm:$0xf] }
 0x65c   : > { %v10176_v22 = vpop.eup %7930  ;;  %v2444_v26 = vmul.f32 1.442695, %v2441_v19 }
 0x65d   : > { %v2446_v27 = vsel %vm2226_vm9, %v10176_v22, 0.0  ;;  %v7933_v32 = vpop.eup %7932 }
 0x65e   : > { %7934 = vpow2.f32 %v2444_v26  ;;  %2447 = vadd.xlane.f32.xlu0 %v2446_v27  ;;  %v2307_v37 = vsel %vm2226_vm9, %v7933_v32, 0.0  ;;  %v7298_v27 = vld [vmem:[#allocation8 + $0x20] sm:$0xff] }
 0x65f   : > { %v2370_v31 = vpop.xlane.xlu0 %2369  ;;  %7936 = vpow2.f32 %v2305_v29  ;;  %2581 = vmatpush.bf16.msrb.mxu3 %v7298_v27  ;;  %v7297_v29 = vld [vmem:[#allocation8 + $0x18] sm:$0xff] }
 0x660   : > { %7938 = vpow2.f32 %v2373_v30  ;;  %v2372_v35 = vsub.f32 %v2364_v4, %v2370_v31  ;;  %v7296_v30 = vld [vmem:[#allocation8 + $0x10] sm:$0xff]  ;;  %v7295_v31 = vld [vmem:[#allocation8 + $0x8] sm:$0xff] }
 0x661   : > { %v2241_v33 = vpop.xlane.xlu2 %2240 }
 0x662   : > { %7940 = vrcp.f32 %v2241_v33  ;;  %v2375_v39 = vmul.f32 1.442695, %v2372_v35 }
 0x663   : > { %2582 = vmatpush.bf16.msrb.mxu3 %v7297_v29  ;;  %v6428_v29 = vld [vmem:[#allocation13 + $0x38] sm:$0xf0] }
 0x664   : > { %v7935_v34 = vpop.eup %7934 }
 0x665   : > { %v2449_v36 = vsel %vm2226_vm9, %v7935_v34, 0.0  ;;  %v7937_v40 = vpop.eup %7936 }
 0x666   : > { %2450 = vadd.xlane.f32.xlu2 %v2449_v36  ;;  %v2244_v38 = vpop.xlane.xlu1 %2243  ;;  %2308 = vadd.xlane.f32.xlu0 %v2307_v37  ;;  %v7939_v41 = vpop.eup %7938  ;;  %v2310_v44 = vsel %vm2226_vm9, %v7937_v40, 0.0 }
 0x667   : > { %7942 = vrcp.f32 %v2244_v38  ;;  %v2377_v45 = vsel %vm2226_vm9, %v7939_v41, 0.0  ;;  %2583 = vmatpush.bf16.msrb.mxu3 %v7296_v30 }
 0x668   : > { %v7941_v42 = vpop.eup %7940  ;;  %7944 = vpow2.f32 %v2375_v39 }
 0x669   : > { %v2247_v46 = vmul.f32 %v7941_v42, %v7927_v5 }
 0x66b   : > { %2584 = vmatpush.bf16.msrb.mxu3 %v7295_v31  ;;  %v6418_v31 = vld [vmem:[#allocation13 + $0x20] sm:$0xf] }
 0x66d   : > { %v7943_v43 = vpop.eup %7942 }
 0x66e   : > { %v2248_v47 = vmul.f32 %v7943_v43, %v7929_v8  ;;  %2311 = vadd.xlane.f32.xlu2 %v2310_v44  ;;  %2378 = vadd.xlane.f32.xlu0 %v2377_v45  ;;  %v7945_v49 = vpop.eup %7944 }
 0x66f   : > { %v2380_v50 = vsel %vm2226_vm9, %v7945_v49, 0.0 }
 0x670   : > { %v2249_v48 = vpack.c.bf16 %v2248_v47, %v2247_v46 }
 0x672   : > { %6361 = vmatmul.msk.bf16.vlgmr.msra.gmra.mxu0 %vm2226_vm9, %v2249_v48 }
 0x676   : > { %2381 = vadd.xlane.f32.xlu2 %v2380_v50 }
 0x67e   : > { %v2320_v51 = vpop.permute.xlu1 %2319 }
 0x67f   : > { %2332 = vmatpush.bf16.msrb.mxu0 %v2320_v51 }
 0x682   : > { %2457 = vrot.lane.b32.xlu0 %v10147_v25, %s9303_s17 }
 0x68e   : > { %2388 = vrot.lane.b32.xlu2 %v10147_v25, %s9304_s15 }
 0x6d1   : > { %v2448_v52 = vpop.xlane.xlu0 %2447 }
 0x6d9   : > { %v2451_v53 = vpop.xlane.xlu2 %2450  ;;  %v2309_v54 = vpop.xlane.xlu0 %2308 }
 0x6da   : > { %7946 = vrcp.f32 %v2309_v54 }
 0x6e0   : > { %v7947_v56 = vpop.eup %7946 }
 0x6e1   : > { %v2312_v55 = vpop.xlane.xlu2 %2311  ;;  %v2315_v58 = vmul.f32 %v7947_v56, %v7933_v32  ;;  %v2379_v62 = vpop.xlane.xlu0 %2378  ;;  %v7294_v32 = vld [vmem:[#allocation8] sm:$0xff] }
 0x6e2   : > { %7948 = vrcp.f32 %v2312_v55  ;;  %2585 = vmatpush.bf16.msrb.mxu3 %v7294_v32  ;;  %v7307_v32 = vld [vmem:[#allocation13 + $0x24] sm:$0xf0] }
 0x6e3   : > { %7950 = vrcp.f32 %v2451_v53 }
 0x6e4   : > { %7952 = vrcp.f32 %v2448_v52 }
 0x6e8   : > { %v7949_v57 = vpop.eup %7948 }
 0x6e9   : > { %v2316_v59 = vmul.f32 %v7949_v57, %v7937_v40  ;;  %v2382_v60 = vpop.xlane.xlu2 %2381  ;;  %v7951_v63 = vpop.eup %7950 }
 0x6ea   : > { %7954 = vrcp.f32 %v2382_v60  ;;  %v7953_v25 = vpop.eup %7952  ;;  %v2455_v1 = vmul.f32 %v7951_v63, %v7935_v34  ;;  %v7317_v63 = vld [vmem:[#allocation13 + $0x74] sm:$0xf0] }
 0x6eb   : > { %v2317_v61 = vpack.c.bf16 %v2316_v59, %v2315_v58  ;;  %7956 = vrcp.f32 %v2379_v62  ;;  %v2454_v3 = vmul.f32 %v7953_v25, %v10176_v22  ;;  %v6458_v62 = vld [vmem:[#allocation13 + $0x70] sm:$0xf]  ;;  %v7316_v25 = vld [vmem:[#allocation13 + $0x74] sm:$0xf] }
 0x6ed   : > { %6363 = vmatmul.msk.bf16.vlgmr.msrb.gmra.mxu0 %vm2226_vm9, %v2317_v61  ;;  %v2456_v6 = vpack.c.bf16 %v2455_v1, %v2454_v3  ;;  %v6460_v1 = vld [vmem:[#allocation13 + $0x78] sm:$0xf0]  ;;  %v6450_v3 = vld [vmem:[#allocation13 + $0x60] sm:$0xf] }
 0x6ef   : > { %v2262_v24 = vpop.f32.mrf.mxu0 }
 0x6f0   : > { %v7955_v2 = vpop.eup %7954 }
 0x6f1   : > { %v2389_v0 = vpop.permute.xlu2 %2388  ;;  %v7957_v5 = vpop.eup %7956  ;;  %v2386_v7 = vmul.f32 %v7955_v2, %v7945_v49  ;;  %v7897_v49 = vld [vmem:[#allocation10] ss:$0 sm:$0xff]  ;;  %v6463_v2 = vor.u32 %v7316_v25, %v6460_v1 }
 0x6f2   : > { %2401 = vmatpush.bf16.msra.mxu0 %v2389_v0  ;;  %v2385_v8 = vmul.f32 %v7957_v5, %v7939_v41  ;;  %v6459_v0 = vor.u32 %v7317_v63, %v6458_v62  ;;  %v7314_v5 = vld [vmem:[#allocation13 + $0x64] sm:$0xf] }
 0x6f3   : > { %2763 = vmatpush.bf16.msra.mxu1 %v6463_v2 }
 0x6f4   : > { %v2458_v4 = vpop.permute.xlu0 %2457  ;;  %v2387_v9 = vpack.c.bf16 %v2386_v7, %v2385_v8  ;;  %v6452_v7 = vld [vmem:[#allocation13 + $0x68] sm:$0xf0] }
 0x6f5   : > { %2470 = vmatpush.bf16.msrb.mxu2 %v2458_v4  ;;  %v7315_v4 = vld [vmem:[#allocation13 + $0x64] sm:$0xf0]  ;;  %v6455_v8 = vor.u32 %v7314_v5, %v6452_v7  ;;  %v7898_v5 = vld [vmem:[%s10748_s0] ss:$0 sm:$0xff] }
 0x6f6   : > { %2749 = vmatpush.bf16.msrb.mxu0 %v6459_v0 }
 0x6f7   : > { %v2264_v11 = vpop.f32.mrf.mxu0  ;;  %2764 = vmatpush.bf16.msra.mxu1 %v6455_v8 }
 0x6f8   : > { %6367 = vmatmul.msk.bf16.vlgmr.msrb.gmra.mxu2 %vm2226_vm9, %v2456_v6  ;;  %v6451_v6 = vor.u32 %v7315_v4, %v6450_v3 }
 0x6fa   : > { %2750 = vmatpush.bf16.msrb.mxu0 %v6451_v6 }
 0x6fd   : > { %6365 = vmatmul.msk.bf16.vlgmr.msra.gmra.mxu0 %vm2226_vm9, %v2387_v9  ;;  %v6442_v9 = vld [vmem:[#allocation13 + $0x50] sm:$0xf] }
 0x76a   : > { %v2334_v15 = vpop.f32.mrf.mxu0 }
 0x772   : > { %v2336_v17 = vpop.f32.mrf.mxu0 }
 0x773   : > { %v7862_v18 = vpack.i.bf16 %v2336_v17, %v2334_v15  ;;  %v7311_v17 = vld [vmem:[#allocation13 + $0x44] sm:$0xf0] }
 0x775   : > { %7863 = vrot.lane.b32.xlu1 %v7862_v18, %s9303_s17  ;;  %v7310_v18 = vld [vmem:[#allocation13 + $0x44] sm:$0xf] }
 0x77a   : > { %v2403_v28 = vpop.f32.mrf.mxu0 }
 0x77b   : > { %v2472_v19 = vpop.f32.mrf.mxu2 }
 0x782   : > { %v2405_v20 = vpop.f32.mrf.mxu0 }
 0x783   : > { %v7867_v22 = vpack.i.bf16 %v2405_v20, %v2403_v28  ;;  %v2474_v23 = vpop.f32.mrf.mxu2  ;;  %v6435_v28 = vor.u32 %v7311_v17, %v6434_v16  ;;  %v7325_v16 = vld [vmem:[#allocation16 + $0x38] sm:$0xff] }
 0x784   : > { %v7872_v26 = vpack.i.bf16 %v2474_v23, %v2472_v19  ;;  %v6436_v19 = vld [vmem:[#allocation13 + $0x48] sm:$0xf0]  ;;  %v7309_v23 = vld [vmem:[#allocation13 + $0x34] sm:$0xf0]  ;;  %v7333_v17 = vld [vmem:[#allocation16 + $0x78] sm:$0xff]  ;;  %2947 = vmatpush.bf16.msra.mxu2 %v7325_v16 }
 0x785   : > { %7868 = vrot.lane.b32.xlu1 %v7867_v22, %s9304_s15  ;;  %v6439_v20 = vor.u32 %v7310_v18, %v6436_v19  ;;  %v6426_v22 = vld [vmem:[#allocation13 + $0x30] sm:$0xf]  ;;  %2961 = vmatpush.bf16.msra.mxu3 %v7333_v17  ;;  %v7332_v18 = vld [vmem:[#allocation16 + $0x70] sm:$0xff] }
 0x786   : > { %7873 = vrot.lane.b32.xlu0 %v7872_v26, %s9305_s7  ;;  %v7308_v26 = vld [vmem:[#allocation13 + $0x34] sm:$0xf]  ;;  %v6427_v27 = vor.u32 %v7309_v23, %v6426_v22  ;;  %v7331_v19 = vld [vmem:[#allocation16 + $0x68] sm:$0xff]  ;;  %v7321_v22 = vld [vmem:[#allocation16 + $0x18] sm:$0xff] }
 0x787   : > { %v6431_v30 = vor.u32 %v7308_v26, %v6428_v29  ;;  %v7329_v23 = vld [vmem:[#allocation16 + $0x58] sm:$0xff]  ;;  %v7320_v26 = vld [vmem:[#allocation16 + $0x10] sm:$0xff] }
 0x788   : > { %v2663_v29 = vld [vmem:[#allocation14] sm:$0x3] }
 0x789   : > { %2962 = vmatpush.bf16.msra.mxu3 %v7332_v18 }
 0x78d   : > { %2963 = vmatpush.bf16.msra.mxu3 %v7331_v19 }
 0x7e7   : > { %v7864_v33 = vpop.permute.xlu1 %7863 }
 0x7e8   : > { %v7866_v34 = vunpack.i.h.bf16 %v7864_v33  ;;  %v7865_v35 = vunpack.i.l.bf16 %v7864_v33  ;;  %v7306_v33 = vld [vmem:[#allocation13 + $0x24] sm:$0xf] }
 0x7ea   : > { %v2502_v40 = vsel %vm2203_vm8, %v2264_v11, %v7866_v34  ;;  %v2501_v41 = vsel %vm2203_vm8, %v2262_v24, %v7865_v35  ;;  %v7313_v24 = vld [vmem:[#allocation13 + $0x54] sm:$0xf0]  ;;  %v7312_v11 = vld [vmem:[#allocation13 + $0x54] sm:$0xf]  ;;  %v6419_v34 = vor.u32 %v7307_v32, %v6418_v31  ;;  %v6420_v35 = vld [vmem:[#allocation13 + $0x28] sm:$0xf0] }
 0x7eb   : > { %v6443_v12 = vor.u32 %v7313_v24, %v6442_v9  ;;  %v6447_v15 = vor.u32 %v7312_v11, %v6444_v13  ;;  %v7899_v24 = vld [vmem:[#allocation11] ss:$0 sm:$0xff]  ;;  %v7327_v31 = vld [vmem:[#allocation16 + $0x48] sm:$0xff]  ;;  %v2665_v32 = vperm.slane %v2663_v29, 0 }
 0x7ed   : > { %2751 = vmatpush.bf16.msrb.mxu0 %v6443_v12  ;;  %2765 = vmatpush.bf16.msra.mxu1 %v6447_v15 }
 0x7f1   : > { %2752 = vmatpush.bf16.msrb.mxu0 %v6435_v28  ;;  %2766 = vmatpush.bf16.msra.mxu1 %v6439_v20  ;;  %v7323_v28 = vld [vmem:[#allocation16 + $0x28] sm:$0xff]  ;;  %v7330_v20 = vld [vmem:[#allocation16 + $0x60] sm:$0xff] }
 0x7f2   : > { %2964 = vmatpush.bf16.msra.mxu3 %v7330_v20 }
 0x7f5   : > { %2753 = vmatpush.bf16.msrb.mxu0 %v6427_v27  ;;  %2767 = vmatpush.bf16.msra.mxu1 %v6431_v30  ;;  %v7328_v27 = vld [vmem:[#allocation16 + $0x50] sm:$0xff]  ;;  %v7319_v30 = vld [vmem:[#allocation16 + $0x8] sm:$0xff] }
 0x7f6   : > { %2965 = vmatpush.bf16.msra.mxu3 %v7329_v23 }
 0x7f7   : > { %v7869_v36 = vpop.permute.xlu1 %7868 }
 0x7f8   : > { %v7871_v37 = vunpack.i.h.bf16 %v7869_v36  ;;  %v7870_v38 = vunpack.i.l.bf16 %v7869_v36  ;;  %v7874_v39 = vpop.permute.xlu0 %7873  ;;  %v6423_v36 = vor.u32 %v7306_v33, %v6420_v35  ;;  %v2666_v33 = vperm.slane %v2663_v29, 1  ;;  %v7326_v35 = vld [vmem:[#allocation16 + $0x40] sm:$0xff] }
 0x7f9   : > { %v7876_v42 = vunpack.i.h.bf16 %v7874_v39  ;;  %v7875_v43 = vunpack.i.l.bf16 %v7874_v39  ;;  %2754 = vmatpush.bf16.msrb.mxu0 %v6419_v34  ;;  %v7304_v39 = vld [vmem:[#allocation13 + $0x14] sm:$0xf]  ;;  %v7318_v34 = vld [vmem:[#allocation16] sm:$0xff] }
 0x7fa   : > { %v2505_v44 = vsel %vm2503_vm10, %v2502_v40, %v7871_v37  ;;  %v2504_v45 = vsel %vm2503_vm10, %v2501_v41, %v7870_v38  ;;  %2768 = vmatpush.bf16.msra.mxu1 %v6423_v36  ;;  %v6410_v37 = vld [vmem:[#allocation13 + $0x10] sm:$0xf]  ;;  %v7305_v38 = vld [vmem:[#allocation13 + $0x14] sm:$0xf0]  ;;  %v6412_v41 = vld [vmem:[#allocation13 + $0x18] sm:$0xf0]  ;;  %2966 = vmatpush.bf16.msra.mxu3 %v7328_v27 }
 0x7fb   : > { %v2508_v46 = vsel %vm2506_vm11, %v2505_v44, %v7876_v42  ;;  %v2507_v47 = vsel %vm2506_vm11, %v2504_v45, %v7875_v43  ;;  %v6411_v40 = vor.u32 %v7305_v38, %v6410_v37  ;;  %v6402_v42 = vld [vmem:[#allocation13] sm:$0xf]  ;;  %v7303_v43 = vld [vmem:[#allocation13 + $0x4] sm:$0xf0]  ;;  %v6415_v45 = vor.u32 %v7304_v39, %v6412_v41 }
 0x7fc   : > { %v2509_v48 = vpack.c.bf16 %v2508_v46, %v2507_v47  ;;  %v7302_v46 = vld [vmem:[#allocation13 + $0x4] sm:$0xf]  ;;  %v6404_v47 = vld [vmem:[#allocation13 + $0x8] sm:$0xf0] }
 0x7fd   : > { %2755 = vmatpush.bf16.msrb.mxu0 %v6411_v40 }
 0x7fe   : > { %2586 = vmatmul.bf16.vlgmr.msrb.gmra.mxu3 %v2509_v48  ;;  %2769 = vmatpush.bf16.msra.mxu1 %v6415_v45 }
 0x7ff   : > { %2967 = vmatpush.bf16.msra.mxu3 %v7327_v31 }
 0x803   : > { %2968 = vmatpush.bf16.msra.mxu3 %v7326_v35 }
 0x881   : > { %v2587_v50 = vpop.f32.mrf.mxu3 }
 0x882   : > { %v2588_v51 = vadd.f32 %v7897_v49, %v2587_v50  ;;  %v6407_v50 = vor.u32 %v7302_v46, %v6404_v47 }
 0x884   : > { %v10204_v52 = vadd.f32 %v2588_v51, %v10120_v10  ;;  %2770 = vmatpush.bf16.msra.mxu1 %v6407_v50 }
 0x886   : > { %2596 = vadd.xlane.f32.xlu1 %v10204_v52 }
 0x889   : > { %v2589_v53 = vpop.f32.mrf.mxu3 }
 0x88a   : > { %v2590_v54 = vadd.f32 %v7897_v49, %v2589_v53  ;;  %v6403_v49 = vor.u32 %v7303_v43, %v6402_v42 }
 0x88c   : > { %v10208_v55 = vadd.f32 %v2590_v54, %v10124_v14  ;;  %2756 = vmatpush.bf16.msrb.mxu0 %v6403_v49 }
 0x88e   : > { %2598 = vadd.xlane.f32.xlu2 %v10208_v55 }
 0x8f9   : > { %v2597_v56 = vpop.xlane.xlu1 %2596 }
 0x8fa   : > { %v2600_v57 = vmul.f32 %v2597_v56, %v10127_v21 }
 0x8fc   : > { %v10213_v58 = vsub.f32 %v10204_v52, %v2600_v57 }
 0x8fe   : > { %v2604_v59 = vmul.f32 %v10213_v58, %v10213_v58 }
 0x900   : > { %2606 = vadd.xlane.f32.xlu0 %v2604_v59 }
 0x901   : > { %v2599_v10 = vpop.xlane.xlu2 %2598 }
 0x902   : > { %v2601_v60 = vmul.f32 %v2599_v10, %v10127_v21 }
 0x904   : > { %v10219_v61 = vsub.f32 %v10208_v55, %v2601_v60 }
 0x906   : > { %v2605_v14 = vmul.f32 %v10219_v61, %v10219_v61 }
 0x908   : > { %2608 = vadd.xlane.f32.xlu1 %v2605_v14 }
 0x973   : > { %v2607_v44 = vpop.xlane.xlu0 %2606 }
 0x974   : > { %v2610_v48 = vmul.f32 %v2607_v44, %v10127_v21 }
 0x976   : > { %v2612_v51 = vadd.f32 1e-05, %v2610_v48 }
 0x978   : > { %7958 = vrsqrt.f32 %v2612_v51  ;;  %vm2620_vm13 = vweird.f32 %v2612_v51 }
 0x97b   : > { %v2609_v53 = vpop.xlane.xlu1 %2608 }
 0x97c   : > { %v2611_v54 = vmul.f32 %v2609_v53, %v10127_v21 }
 0x97e   : > { %v7959_v56 = vpop.eup %7958  ;;  %v2613_v57 = vadd.f32 1e-05, %v2611_v54 }
 0x97f   : > { %v2615_v59 = vmul.f32 %v7959_v56, %v2612_v51  ;;  %vm2621_vm12 = vweird.f32 %v7959_v56 }
 0x980   : > { %7960 = vrsqrt.f32 %v2613_v57  ;;  %vm2622_vm14 = vmor %vm2620_vm13, %vm2621_vm12  ;;  %vm2630_vm0 = vweird.f32 %v2613_v57 }
 0x981   : > { %v2616_v10 = vmul.f32 %v7959_v56, %v2615_v59 }
 0x983   : > { %v2617_v60 = vmul.f32 0.5, %v2616_v10 }
 0x985   : > { %v2618_v14 = vsub.f32 1.5, %v2617_v60 }
 0x986   : > { %v7961_v62 = vpop.eup %7960 }
 0x987   : > { %v2619_v63 = vmul.f32 %v7959_v56, %v2618_v14  ;;  %v2625_v25 = vmul.f32 %v7961_v62, %v2613_v57  ;;  %vm2631_vm15 = vweird.f32 %v7961_v62 }
 0x988   : > { %vm2632_vm1 = vmor %vm2630_vm0, %vm2631_vm15 }
 0x989   : > { %v2626_v0 = vmul.f32 %v7961_v62, %v2625_v25  ;;  %v2623_v1 = vsel %vm2622_vm14, %v7959_v56, %v2619_v63 }
 0x98a   : > { %v2634_v4 = vmul.f32 %v2623_v1, %v10213_v58  ;;  %v7324_v58 = vld [vmem:[#allocation16 + $0x30] sm:$0xff] }
 0x98b   : > { %v2627_v2 = vmul.f32 0.5, %v2626_v0  ;;  %2948 = vmatpush.bf16.msra.mxu2 %v7324_v58 }
 0x98c   : > { %v2639_v9 = vmul.f32 %v7898_v5, %v2634_v4 }
 0x98d   : > { %v2628_v3 = vsub.f32 1.5, %v2627_v2 }
 0x98e   : > { %v2644_v12 = vadd.f32 %v7899_v24, %v2639_v9 }
 0x98f   : > { %v2629_v6 = vmul.f32 %v7961_v62, %v2628_v3  ;;  %2949 = vmatpush.bf16.msra.mxu2 %v7323_v28  ;;  %v7900_v28 = vld [vmem:[#allocation17] ss:$0 sm:$0xff] }
 0x991   : > { %v2633_v7 = vsel %vm2632_vm1, %v7961_v62, %v2629_v6 }
 0x992   : > { %v2635_v8 = vmul.f32 %v2633_v7, %v10219_v61  ;;  %v7322_v61 = vld [vmem:[#allocation16 + $0x20] sm:$0xff] }
 0x993   : > { %2950 = vmatpush.bf16.msra.mxu2 %v7322_v61 }
 0x994   : > { %v2640_v11 = vmul.f32 %v7898_v5, %v2635_v8 }
 0x996   : > { %v2645_v13 = vadd.f32 %v7899_v24, %v2640_v11 }
 0x997   : > { %2951 = vmatpush.bf16.msra.mxu2 %v7321_v22 }
 0x998   : > { %v2646_v15 = vpack.c.bf16 %v2645_v13, %v2644_v12 }
 0x99a   : > { %2757 = vmatmul.bf16.vlgmr.msrb.gmra.mxu0 %v2646_v15  ;;  %2771 = vmatmul.bf16.vlgmr.msra.gmra.mxu1 %v2646_v15 }
 0x99b   : > { %2952 = vmatpush.bf16.msra.mxu2 %v7320_v26 }
 0x99f   : > { %2953 = vmatpush.bf16.msra.mxu2 %v7319_v30 }
 0x9a3   : > { %2954 = vmatpush.bf16.msra.mxu2 %v7318_v34 }
 0xa17   : > { %v2758_v36 = vpop.f32.mrf.mxu0  ;;  %v2772_v37 = vpop.f32.mrf.mxu1 }
 0xa18   : > { %v2759_v38 = vadd.f32 %v2758_v36, %v2665_v32  ;;  %v2773_v39 = vadd.f32 %v2772_v37, %v2666_v33 }
 0xa1a   : > { %v2777_v40 = vmul.f32 %v2759_v38, %v2759_v38  ;;  %v2778_v41 = vmul.f32 %v2773_v39, %v2773_v39 }
 0xa1c   : > { %v2781_v42 = vmul.f32 %v2777_v40, %v2759_v38  ;;  %v2782_v43 = vmul.f32 %v2778_v41, %v2773_v39  ;;  %v7355_v40 = vld [vmem:[#allocation7 + $0x16c] sm:$0xf] }
 0xa1e   : > { %v2785_v44 = vmul.f32 0.044715, %v2781_v42  ;;  %v2786_v45 = vmul.f32 0.044715, %v2782_v43  ;;  %v6618_v42 = vld [vmem:[#allocation7 + $0x174] sm:$0xf0] }
 0xa1f   : > { %v2760_v46 = vpop.f32.mrf.mxu0  ;;  %v2774_v47 = vpop.f32.mrf.mxu1  ;;  %v6624_v43 = vld [vmem:[#allocation7 + $0x170] sm:$0xf] }
 0xa20   : > { %v2789_v48 = vadd.f32 %v2785_v44, %v2759_v38  ;;  %v2790_v49 = vadd.f32 %v2786_v45, %v2773_v39  ;;  %v2761_v50 = vadd.f32 %v2760_v46, %v2665_v32  ;;  %v2775_v51 = vadd.f32 %v2774_v47, %v2666_v33  ;;  %v7357_v44 = vld [vmem:[#allocation7 + $0x178] sm:$0xf0]  ;;  %v6604_v47 = vld [vmem:[#allocation7 + $0x150] sm:$0xf] }
 0xa21   : > { %v6621_v45 = vor.u32 %v7355_v40, %v6618_v42  ;;  %v6625_v46 = vor.u32 %v7357_v44, %v6624_v43  ;;  %v6532_v43 = vld [vmem:[#allocation7 + $0xc0] sm:$0xf]  ;;  %v7335_v44 = vld [vmem:[#allocation7 + $0xc8] sm:$0xf0] }
 0xa22   : > { %v2793_v53 = vmul.f32 0.7978846, %v2789_v48  ;;  %v2779_v54 = vmul.f32 %v2761_v50, %v2761_v50  ;;  %v2780_v56 = vmul.f32 %v2775_v51, %v2775_v51  ;;  %v2794_v57 = vmul.f32 0.7978846, %v2790_v49  ;;  %v7353_v48 = vld [vmem:[#allocation7 + $0x158] sm:$0xf0] }
 0xa23   : > { %3216 = vmatpush.bf16.msrb.mxu1 %v6621_v45  ;;  %3230 = vmatpush.bf16.msrb.mxu2 %v6625_v46  ;;  %v7352_v49 = vld [vmem:[#allocation7 + $0x154] sm:$0xf]  ;;  %v7334_v45 = vld [vmem:[#allocation7 + $0xc4] sm:$0xf] }
 0xa24   : > { %v2783_v59 = vmul.f32 %v2779_v54, %v2761_v50  ;;  %v2784_v10 = vmul.f32 %v2780_v56, %v2775_v51  ;;  %7962 = vtanh.f32 %v2793_v53  ;;  %v6612_v53 = vld [vmem:[#allocation7 + $0x158] sm:$0xf]  ;;  %v7354_v54 = vld [vmem:[#allocation7 + $0x160] sm:$0xf0] }
 0xa25   : > { %7964 = vtanh.f32 %v2794_v57  ;;  %v6613_v57 = vor.u32 %v7354_v54, %v6612_v53 }
 0xa26   : > { %v2787_v60 = vmul.f32 0.044715, %v2783_v59  ;;  %v2788_v14 = vmul.f32 0.044715, %v2784_v10  ;;  %v6592_v59 = vld [vmem:[#allocation7 + $0x138] sm:$0xf] }
 0xa27   : > { %3231 = vmatpush.bf16.msrb.mxu2 %v6613_v57  ;;  %v7350_v10 = vld [vmem:[#allocation7 + $0x140] sm:$0xf0] }
 0xa28   : > { %v2791_v62 = vadd.f32 %v2787_v60, %v2761_v50  ;;  %v2792_v63 = vadd.f32 %v2788_v14, %v2775_v51  ;;  %v7349_v60 = vld [vmem:[#allocation7 + $0x13c] sm:$0xf]  ;;  %v6593_v14 = vor.u32 %v7350_v10, %v6592_v59 }
 0xa2a   : > { %v2795_v25 = vmul.f32 0.7978846, %v2791_v62  ;;  %v2796_v0 = vmul.f32 0.7978846, %v2792_v63  ;;  %v7963_v1 = vpop.eup %7962  ;;  %v6594_v62 = vld [vmem:[#allocation7 + $0x144] sm:$0xf0] }
 0xa2b   : > { %v7965_v2 = vpop.eup %7964  ;;  %v2801_v3 = vadd.f32 1.0, %v7963_v1  ;;  %v6600_v63 = vld [vmem:[#allocation7 + $0x140] sm:$0xf] }
 0xa2c   : > { %7966 = vtanh.f32 %v2795_v25  ;;  %v2802_v4 = vadd.f32 1.0, %v7965_v2  ;;  %v7351_v25 = vld [vmem:[#allocation7 + $0x148] sm:$0xf0]  ;;  %v6580_v2 = vld [vmem:[#allocation7 + $0x120] sm:$0xf] }
 0xa2d   : > { %7968 = vtanh.f32 %v2796_v0  ;;  %v2805_v7 = vmul.f32 0.5, %v2801_v3  ;;  %v6597_v0 = vor.u32 %v7349_v60, %v6594_v62  ;;  %v6601_v1 = vor.u32 %v7351_v25, %v6600_v63  ;;  %v7347_v3 = vld [vmem:[#allocation7 + $0x128] sm:$0xf0] }
 0xa2e   : > { %v2806_v9 = vmul.f32 0.5, %v2802_v4  ;;  %v7346_v4 = vld [vmem:[#allocation7 + $0x124] sm:$0xf] }
 0xa2f   : > { %v2809_v13 = vmul.f32 %v2805_v7, %v2759_v38  ;;  %v6616_v38 = vld [vmem:[#allocation7 + $0x168] sm:$0xf]  ;;  %3232 = vmatpush.bf16.msrb.mxu2 %v6601_v1 }
 0xa30   : > { %v2810_v16 = vmul.f32 %v2806_v9, %v2773_v39  ;;  %v7356_v39 = vld [vmem:[#allocation7 + $0x170] sm:$0xf0]  ;;  %v6588_v7 = vld [vmem:[#allocation7 + $0x128] sm:$0xf] }
 0xa31   : > { %v6617_v41 = vor.u32 %v7356_v39, %v6616_v38  ;;  %v6552_v38 = vld [vmem:[#allocation7 + $0xe0] sm:$0xf]  ;;  %v7339_v39 = vld [vmem:[#allocation7 + $0xe8] sm:$0xf0] }
 0xa32   : > { %v7967_v5 = vpop.eup %7966  ;;  %v6553_v42 = vor.u32 %v7339_v39, %v6552_v38 }
 0xa33   : > { %v7969_v6 = vpop.eup %7968  ;;  %v2803_v8 = vadd.f32 1.0, %v7967_v5  ;;  %3202 = vmatpush.bf16.msra.mxu0 %v6617_v41  ;;  %v6581_v5 = vor.u32 %v7347_v3, %v6580_v2 }
 0xa34   : > { %v2804_v24 = vadd.f32 1.0, %v7969_v6  ;;  %v6582_v6 = vld [vmem:[#allocation7 + $0x12c] sm:$0xf0] }
 0xa35   : > { %v2807_v11 = vmul.f32 0.5, %v2803_v8  ;;  %v7348_v8 = vld [vmem:[#allocation7 + $0x130] sm:$0xf0]  ;;  %v6585_v9 = vor.u32 %v7346_v4, %v6582_v6 }
 0xa36   : > { %v2808_v12 = vmul.f32 0.5, %v2804_v24  ;;  %v6589_v24 = vor.u32 %v7348_v8, %v6588_v7  ;;  %v7901_v7 = vld [vmem:[%s10746_s14 + $0x1] ss:$0 sm:$0xff] }
 0xa37   : > { %v2811_v15 = vmul.f32 %v2807_v11, %v2761_v50  ;;  %v6605_v50 = vor.u32 %v7353_v48, %v6604_v47  ;;  %v6568_v11 = vld [vmem:[#allocation7 + $0x108] sm:$0xf]  ;;  %v6533_v47 = vor.u32 %v7335_v44, %v6532_v43  ;;  %v6534_v48 = vld [vmem:[#allocation7 + $0xcc] sm:$0xf0] }
 0xa38   : > { %v2812_v17 = vmul.f32 %v2808_v12, %v2775_v51  ;;  %v6606_v51 = vld [vmem:[#allocation7 + $0x15c] sm:$0xf0]  ;;  %3233 = vmatpush.bf16.msrb.mxu2 %v6589_v24  ;;  %v7344_v12 = vld [vmem:[#allocation7 + $0x110] sm:$0xf0] }
 0xa39   : > { %v2813_v58 = vpack.c.bf16 %v2811_v15, %v2809_v13  ;;  %v6609_v56 = vor.u32 %v7352_v49, %v6606_v51  ;;  %3203 = vmatpush.bf16.msra.mxu0 %v6605_v50  ;;  %v7343_v13 = vld [vmem:[#allocation7 + $0x10c] sm:$0xf]  ;;  %v6569_v15 = vor.u32 %v7344_v12, %v6568_v11  ;;  %v6540_v49 = vld [vmem:[#allocation7 + $0xc8] sm:$0xf]  ;;  %v7336_v50 = vld [vmem:[#allocation7 + $0xd0] sm:$0xf0]  ;;  %v6537_v51 = vor.u32 %v7334_v45, %v6534_v48 }
 0xa3a   : > { %v2814_v18 = vpack.c.bf16 %v2812_v17, %v2810_v16  ;;  %v6570_v16 = vld [vmem:[#allocation7 + $0x114] sm:$0xf0]  ;;  %v6576_v17 = vld [vmem:[#allocation7 + $0x110] sm:$0xf]  ;;  %v6541_v53 = vor.u32 %v7336_v50, %v6540_v49  ;;  %v7902_v12 = vld [vmem:[#allocation5 + $0x1] ss:$0 sm:$0xff] }
 0xa3b   : > { %2955 = vmatmul.bf16.vlgmr.msra.gmra.mxu2 %v2813_v58  ;;  %3217 = vmatpush.bf16.msrb.mxu1 %v6609_v56  ;;  %v7345_v58 = vld [vmem:[#allocation7 + $0x118] sm:$0xf0] }
 0xa3c   : > { %2969 = vmatmul.bf16.vlgmr.msra.gmra.mxu3 %v2814_v18  ;;  %v6573_v18 = vor.u32 %v7343_v13, %v6570_v16 }
 0xa3d   : > { %3204 = vmatpush.bf16.msra.mxu0 %v6593_v14 }
 0xa3f   : > { %3218 = vmatpush.bf16.msrb.mxu1 %v6597_v0 }
 0xa41   : > { %3205 = vmatpush.bf16.msra.mxu0 %v6581_v5 }
 0xa43   : > { %3219 = vmatpush.bf16.msrb.mxu1 %v6585_v9 }
 0xa45   : > { %3206 = vmatpush.bf16.msra.mxu0 %v6569_v15 }
 0xa47   : > { %3220 = vmatpush.bf16.msrb.mxu1 %v6573_v18 }
 0xabe   : > { %v2956_v19 = vpop.f32.mrf.mxu2 }
 0xabf   : > { %v2957_v61 = vadd.f32 %v7900_v28, %v2956_v19  ;;  %v2970_v20 = vpop.f32.mrf.mxu3  ;;  %v6556_v19 = vld [vmem:[#allocation7 + $0xf0] sm:$0xf] }
 0xac1   : > { %v2971_v22 = vadd.f32 %v2970_v20, %v2957_v61  ;;  %v7341_v61 = vld [vmem:[#allocation7 + $0xf8] sm:$0xf0]  ;;  %v7340_v20 = vld [vmem:[#allocation7 + $0xf4] sm:$0xf] }
 0xac3   : > { %v10229_v23 = vadd.f32 %v2971_v22, %v10204_v52  ;;  %v6557_v22 = vor.u32 %v7341_v61, %v6556_v19 }
 0xac5   : > { %2981 = vadd.xlane.f32.xlu2 %v10229_v23  ;;  %3207 = vmatpush.bf16.msra.mxu0 %v6557_v22 }
 0xac6   : > { %v2958_v26 = vpop.f32.mrf.mxu2 }
 0xac7   : > { %v2959_v27 = vadd.f32 %v7900_v28, %v2958_v26  ;;  %v2972_v29 = vpop.f32.mrf.mxu3  ;;  %v6577_v28 = vor.u32 %v7345_v58, %v6576_v17  ;;  %v6558_v26 = vld [vmem:[#allocation7 + $0xfc] sm:$0xf0] }
 0xac9   : > { %v2973_v30 = vadd.f32 %v2972_v29, %v2959_v27  ;;  %3234 = vmatpush.bf16.msrb.mxu2 %v6577_v28  ;;  %v6564_v27 = vld [vmem:[#allocation7 + $0xf8] sm:$0xf]  ;;  %v7342_v29 = vld [vmem:[#allocation7 + $0x100] sm:$0xf0] }
 0xacb   : > { %v10233_v31 = vadd.f32 %v2973_v30, %v10208_v55  ;;  %v6561_v30 = vor.u32 %v7340_v20, %v6558_v26 }
 0xacd   : > { %2983 = vadd.xlane.f32.xlu0 %v10233_v31  ;;  %3221 = vmatpush.bf16.msrb.mxu1 %v6561_v30 }
 0xb38   : > { %v2982_v32 = vpop.xlane.xlu2 %2981 }
 0xb39   : > { %v2985_v33 = vmul.f32 %v2982_v32, %v10127_v21  ;;  %v6565_v32 = vor.u32 %v7342_v29, %v6564_v27 }
 0xb3b   : > { %v10238_v34 = vsub.f32 %v10229_v23, %v2985_v33  ;;  %3235 = vmatpush.bf16.msrb.mxu2 %v6565_v32  ;;  %v6544_v33 = vld [vmem:[#allocation7 + $0xd8] sm:$0xf] }
 0xb3d   : > { %v2989_v52 = vmul.f32 %v10238_v34, %v10238_v34 }
 0xb3f   : > { %2991 = vadd.xlane.f32.xlu1 %v2989_v52  ;;  %v7338_v52 = vld [vmem:[#allocation7 + $0xe0] sm:$0xf0]  ;;  %3236 = vmatpush.bf16.msrb.mxu2 %v6553_v42 }
 0xb40   : > { %v2984_v35 = vpop.xlane.xlu0 %2983 }
 0xb41   : > { %v2986_v36 = vmul.f32 %v2984_v35, %v10127_v21  ;;  %v7337_v35 = vld [vmem:[#allocation7 + $0xdc] sm:$0xf] }
 0xb43   : > { %v10244_v37 = vsub.f32 %v10233_v31, %v2986_v36  ;;  %v6545_v36 = vor.u32 %v7338_v52, %v6544_v33  ;;  %3237 = vmatpush.bf16.msrb.mxu2 %v6541_v53 }
 0xb45   : > { %v2990_v55 = vmul.f32 %v10244_v37, %v10244_v37  ;;  %3208 = vmatpush.bf16.msra.mxu0 %v6545_v36 }
 0xb47   : > { %2993 = vadd.xlane.f32.xlu2 %v2990_v55  ;;  %v6546_v55 = vld [vmem:[#allocation7 + $0xe4] sm:$0xf0] }
 0xb48   : > { %v6549_v41 = vor.u32 %v7337_v35, %v6546_v55 }
 0xb49   : > { %3209 = vmatpush.bf16.msra.mxu0 %v6533_v47 }
 0xb4a   : > { %3222 = vmatpush.bf16.msrb.mxu1 %v6549_v41 }
 0xb4e   : > { %3223 = vmatpush.bf16.msrb.mxu1 %v6537_v51 }
 0xbb2   : > { %v2992_v40 = vpop.xlane.xlu1 %2991 }
 0xbb3   : > { %v2995_v46 = vmul.f32 %v2992_v40, %v10127_v21 }
 0xbb5   : > { %v2997_v54 = vadd.f32 1e-05, %v2995_v46 }
 0xbb7   : > { %7970 = vrsqrt.f32 %v2997_v54  ;;  %vm3005_vm3 = vweird.f32 %v2997_v54 }
 0xbba   : > { %v2994_v56 = vpop.xlane.xlu2 %2993 }
 0xbbb   : > { %v2996_v57 = vmul.f32 %v2994_v56, %v10127_v21 }
 0xbbd   : > { %v7971_v59 = vpop.eup %7970  ;;  %v2998_v10 = vadd.f32 1e-05, %v2996_v57 }
 0xbbe   : > { %v3000_v60 = vmul.f32 %v7971_v59, %v2997_v54  ;;  %vm3006_vm2 = vweird.f32 %v7971_v59 }
 0xbbf   : > { %7972 = vrsqrt.f32 %v2998_v10  ;;  %vm3007_vm4 = vmor %vm3005_vm3, %vm3006_vm2  ;;  %vm3015_vm6 = vweird.f32 %v2998_v10 }
 0xbc0   : > { %v3001_v14 = vmul.f32 %v7971_v59, %v3000_v60 }
 0xbc2   : > { %v3002_v62 = vmul.f32 0.5, %v3001_v14 }
 0xbc4   : > { %v3003_v63 = vsub.f32 1.5, %v3002_v62 }
 0xbc5   : > { %v7973_v25 = vpop.eup %7972 }
 0xbc6   : > { %v3004_v0 = vmul.f32 %v7971_v59, %v3003_v63  ;;  %v3010_v1 = vmul.f32 %v7973_v25, %v2998_v10  ;;  %vm3016_vm5 = vweird.f32 %v7973_v25 }
 0xbc7   : > { %vm3017_vm7 = vmor %vm3015_vm6, %vm3016_vm5 }
 0xbc8   : > { %v3011_v2 = vmul.f32 %v7973_v25, %v3010_v1  ;;  %v3008_v3 = vsel %vm3007_vm4, %v7971_v59, %v3004_v0 }
 0xbc9   : > { %v3019_v6 = vmul.f32 %v3008_v3, %v10238_v34  ;;  %v6529_v34 = vld [vmem:[%s10747_s6 + $0x3] sm:$0x7] }
 0xbca   : > { %v3012_v4 = vmul.f32 0.5, %v3011_v2  ;;  %v3068_v28 = vperm.slane %v6529_v34, 0  ;;  %v3069_v19 = vperm.slane %v6529_v34, 1  ;;  %v3070_v33 = vperm.slane %v6529_v34, 2 }
 0xbcb   : > { %v3024_v11 = vmul.f32 %v7901_v7, %v3019_v6 }
 0xbcc   : > { %v3013_v5 = vsub.f32 1.5, %v3012_v4 }
 0xbcd   : > { %v3029_v15 = vadd.f32 %v7902_v12, %v3024_v11 }
 0xbce   : > { %v3014_v8 = vmul.f32 %v7973_v25, %v3013_v5 }
 0xbd0   : > { %v3018_v9 = vsel %vm3017_vm7, %v7973_v25, %v3014_v8 }
 0xbd1   : > { %v3020_v24 = vmul.f32 %v3018_v9, %v10244_v37 }
 0xbd3   : > { %v3025_v13 = vmul.f32 %v7901_v7, %v3020_v24 }
 0xbd5   : > { %v3030_v16 = vadd.f32 %v7902_v12, %v3025_v13 }
 0xbd7   : > { %v3031_v17 = vpack.c.bf16 %v3030_v16, %v3029_v15 }
 0xbd9   : > { %3210 = vmatmul.bf16.vlgmr.msra.gmra.mxu0 %v3031_v17  ;;  %3224 = vmatmul.bf16.vlgmr.msrb.gmra.mxu1 %v3031_v17 }
 0xbda   : > { %3238 = vmatmul.bf16.vlgmr.msrb.gmra.mxu2 %v3031_v17 }
 0xc56   : > { %v3211_v58 = vpop.f32.mrf.mxu0  ;;  %v3225_v18 = vpop.f32.mrf.mxu1 }
 0xc57   : > { %v3212_v26 = vadd.f32 %v3211_v58, %v3068_v28  ;;  %v3226_v27 = vadd.f32 %v3225_v18, %v3069_v19 }
 0xc5d   : > { %v3239_v61 = vpop.f32.mrf.mxu2 }
 0xc5e   : > { %v3213_v20 = vpop.f32.mrf.mxu0  ;;  %v3227_v22 = vpop.f32.mrf.mxu1  ;;  %v3240_v36 = vadd.f32 %v3239_v61, %v3070_v33 }
 0xc5f   : > { %v3214_v37 = vadd.f32 %v3213_v20, %v3068_v28  ;;  %v3228_v29 = vadd.f32 %v3227_v22, %v3069_v19 }
 0xc61   : > { %v3244_v30 = vpack.c.bf16 %v3214_v37, %v3212_v26  ;;  %v3245_v32 = vpack.c.bf16 %v3228_v29, %v3226_v27 }
 0xc63   : > { %3383 = vrot.lane.b32.xlu2 %v3245_v32, %s9304_s15  ;;  %3313 = vrot.lane.b32.xlu0 %v3245_v32, %s9305_s7  ;;  %v3251_v52 = vsel %vm2203_vm8, %v3245_v32, 0 }
 0xc64   : > { %3310 = vrot.lane.b32.xlu1 %v3244_v30, %s9305_s7  ;;  %3260 = vmatpush.bf16.xpose.msrb.mxu3 %v3251_v52 }
 0xc65   : > { %v3241_v35 = vpop.f32.mrf.mxu2 }
 0xc66   : > { %v3242_v55 = vadd.f32 %v3241_v35, %v3070_v33 }
 0xc68   : > { %v10258_v38 = vpack.c.bf16 %v3242_v55, %v3240_v36 }
 0xc6a   : > { %3302 = vmatpush.bf16.msrb.mxu0 %v10258_v38 }
 0xc6b   : > { %3452 = vrot.lane.b32.xlu0 %v3245_v32, %s9303_s17  ;;  %6626 = vmatmul.msk.bf16.vlgmr.msrb.gmra.mxu3 %vm2203_vm8, %v3244_v30 }
 0xc6c   : > { %3381 = vrot.lane.b32.xlu1 %v3244_v30, %s9304_s15 }
 0xc73   : > { %3450 = vrot.lane.b32.xlu0 %v3244_v30, %s9303_s17 }
 0xcbd   : > { %v3384_v39 = vpop.permute.xlu2 %3383 }
 0xcbe   : > { %v3389_v40 = vsel %vm2203_vm8, %v3384_v39, 0 }
 0xcbf   : > { %3398 = vmatpush.bf16.xpose.msra.mxu3 %v3389_v40 }
 0xcd5   : > { %v3314_v41 = vpop.permute.xlu0 %3313 }
 0xcd6   : > { %v3319_v42 = vsel %vm2203_vm8, %v3314_v41, 0  ;;  %v3311_v43 = vpop.permute.xlu1 %3310 }
 0xcd7   : > { %3328 = vmatpush.bf16.xpose.msra.mxu1 %v3319_v42 }
 0xcdd   : > { %v3453_v44 = vpop.permute.xlu0 %3452 }
 0xcde   : > { %v3458_v45 = vsel %vm2203_vm8, %v3453_v44, 0  ;;  %v3382_v46 = vpop.permute.xlu1 %3381  ;;  %6628 = vmatmul.msk.bf16.vlgmr.msra.gmra.mxu1 %vm2203_vm8, %v3311_v43 }
 0xcdf   : > { %6630 = vmatmul.msk.bf16.vlgmr.msra.gmra.mxu3 %vm2203_vm8, %v3382_v46  ;;  %3467 = vmatpush.bf16.xpose.msrb.mxu1 %v3458_v45 }
 0xce5   : > { %v3451_v47 = vpop.permute.xlu0 %3450 }
 0xcee   : > { %v3262_v48 = vpop.f32.mrf.mxu3  ;;  %6632 = vmatmul.msk.bf16.vlgmr.msrb.gmra.mxu1 %vm2203_vm8, %v3451_v47 }
 0xcef   : > { %v3267_v49 = vmul.f32 0.17677669, %v3262_v48 }
 0xcf1   : > { %v3269_v50 = vsel %vm2226_vm9, %v3267_v49, -inf }
 0xcf2   : > { %3270 = vmax.xlane.f32.xlu0 %v3269_v50 }
 0xcf6   : > { %v3264_v51 = vpop.f32.mrf.mxu3 }
 0xcf7   : > { %v3268_v57 = vmul.f32 0.17677669, %v3264_v51 }
 0xcf9   : > { %v3272_v62 = vsel %vm2226_vm9, %v3268_v57, -inf }
 0xd5b   : > { %v3330_v53 = vpop.f32.mrf.mxu1 }
 0xd5c   : > { %v3335_v54 = vmul.f32 0.17677669, %v3330_v53 }
 0xd5e   : > { %v3337_v56 = vsel %vm2226_vm9, %v3335_v54, -inf }
 0xd5f   : > { %3338 = vmax.xlane.f32.xlu2 %v3337_v56 }
 0xd62   : > { %v3400_v59 = vpop.f32.mrf.mxu3 }
 0xd63   : > { %v3332_v10 = vpop.f32.mrf.mxu1  ;;  %v3405_v63 = vmul.f32 0.17677669, %v3400_v59 }
 0xd64   : > { %v3336_v60 = vmul.f32 0.17677669, %v3332_v10 }
 0xd65   : > { %v3271_v25 = vpop.xlane.xlu0 %3270  ;;  %v3407_v5 = vsel %vm2226_vm9, %v3405_v63, -inf }
 0xd66   : > { %v3340_v14 = vsel %vm2226_vm9, %v3336_v60, -inf  ;;  %v3275_v3 = vsub.f32 %v3267_v49, %v3271_v25 }
 0xd67   : > { %3341 = vmax.xlane.f32.xlu1 %v3340_v14  ;;  %3273 = vmax.xlane.f32.xlu2 %v3272_v62 }
 0xd68   : > { %v3277_v6 = vmul.f32 1.442695, %v3275_v3 }
 0xd6a   : > { %v3402_v0 = vpop.f32.mrf.mxu3  ;;  %7974 = vpow2.f32 %v3277_v6 }
 0xd6b   : > { %v3406_v1 = vmul.f32 0.17677669, %v3402_v0  ;;  %v3469_v2 = vpop.f32.mrf.mxu1 }
 0xd6c   : > { %v3474_v7 = vmul.f32 0.17677669, %v3469_v2 }
 0xd6d   : > { %v3410_v4 = vsel %vm2226_vm9, %v3406_v1, -inf }
 0xd6e   : > { %v3476_v11 = vsel %vm2226_vm9, %v3474_v7, -inf }
 0xd6f   : > { %3411 = vmax.xlane.f32.xlu1 %v3410_v4  ;;  %3408 = vmax.xlane.f32.xlu2 %v3407_v5 }
 0xd70   : > { %v10279_v12 = vpop.eup %7974 }
 0xd71   : > { %v3281_v13 = vsel %vm2226_vm9, %v10279_v12, 0.0 }
 0xd73   : > { %v3471_v8 = vpop.f32.mrf.mxu1 }
 0xd74   : > { %v3475_v9 = vmul.f32 0.17677669, %v3471_v8 }
 0xd76   : > { %v3479_v24 = vsel %vm2226_vm9, %v3475_v9, -inf }
 0xd77   : > { %3480 = vmax.xlane.f32.xlu0 %v3479_v24  ;;  %3477 = vmax.xlane.f32.xlu1 %v3476_v11 }
 0xd7f   : > { %3282 = vadd.xlane.f32.xlu1 %v3281_v13 }
 0xdd2   : > { %v3339_v15 = vpop.xlane.xlu2 %3338 }
 0xdd3   : > { %v3343_v19 = vsub.f32 %v3335_v54, %v3339_v15 }
 0xdd5   : > { %v3345_v61 = vmul.f32 1.442695, %v3343_v19 }
 0xdda   : > { %v3342_v16 = vpop.xlane.xlu1 %3341  ;;  %v3274_v17 = vpop.xlane.xlu2 %3273 }
 0xddb   : > { %v3344_v58 = vsub.f32 %v3336_v60, %v3342_v16  ;;  %v3276_v18 = vsub.f32 %v3268_v57, %v3274_v17 }
 0xddd   : > { %v3347_v34 = vmul.f32 1.442695, %v3344_v58  ;;  %v3279_v28 = vmul.f32 1.442695, %v3276_v18 }
 0xddf   : > { %7976 = vpow2.f32 %v3347_v34 }
 0xde0   : > { %7978 = vpow2.f32 %v3279_v28 }
 0xde1   : > { %7980 = vpow2.f32 %v3345_v61 }
 0xde2   : > { %v3412_v20 = vpop.xlane.xlu1 %3411  ;;  %v3409_v22 = vpop.xlane.xlu2 %3408 }
 0xde3   : > { %v3413_v26 = vsub.f32 %v3405_v63, %v3409_v22  ;;  %v3414_v30 = vsub.f32 %v3406_v1, %v3412_v20 }
 0xde5   : > { %v7977_v27 = vpop.eup %7976  ;;  %v3415_v37 = vmul.f32 1.442695, %v3413_v26  ;;  %v3417_v52 = vmul.f32 1.442695, %v3414_v30 }
 0xde6   : > { %v7979_v29 = vpop.eup %7978  ;;  %v3352_v32 = vsel %vm2226_vm9, %v7977_v27, 0.0 }
 0xde7   : > { %3353 = vadd.xlane.f32.xlu2 %v3352_v32  ;;  %v3284_v33 = vsel %vm2226_vm9, %v7979_v29, 0.0  ;;  %7982 = vpow2.f32 %v3415_v37  ;;  %v7981_v39 = vpop.eup %7980  ;;  %v7365_v32 = vld [vmem:[#allocation8 + $0x78] sm:$0xff] }
 0xde8   : > { %3285 = vadd.xlane.f32.xlu0 %v3284_v33  ;;  %7984 = vpow2.f32 %v3417_v52  ;;  %v3349_v43 = vsel %vm2226_vm9, %v7981_v39, 0.0  ;;  %3620 = vmatpush.bf16.msrb.mxu3 %v7365_v32  ;;  %v7364_v33 = vld [vmem:[#allocation8 + $0x70] sm:$0xff]  ;;  %v7363_v52 = vld [vmem:[#allocation8 + $0x68] sm:$0xff] }
 0xde9   : > { %v7371_v32 = vld [vmem:[#allocation13 + $0xa4] sm:$0xf0] }
 0xdea   : > { %v3478_v35 = vpop.xlane.xlu1 %3477  ;;  %v3481_v36 = vpop.xlane.xlu0 %3480 }
 0xdeb   : > { %v3482_v55 = vsub.f32 %v3474_v7, %v3478_v35  ;;  %v3483_v42 = vsub.f32 %v3475_v9, %v3481_v36  ;;  %v7362_v35 = vld [vmem:[#allocation8 + $0x60] sm:$0xff]  ;;  %v7361_v36 = vld [vmem:[#allocation8 + $0x58] sm:$0xff] }
 0xdec   : > { %3621 = vmatpush.bf16.msrb.mxu3 %v7364_v33 }
 0xded   : > { %v3484_v40 = vmul.f32 1.442695, %v3482_v55  ;;  %v7983_v41 = vpop.eup %7982  ;;  %v3486_v45 = vmul.f32 1.442695, %v3483_v42  ;;  %v7360_v55 = vld [vmem:[#allocation8 + $0x50] sm:$0xff] }
 0xdee   : > { %v3419_v44 = vsel %vm2226_vm9, %v7983_v41, 0.0  ;;  %v7985_v46 = vpop.eup %7984 }
 0xdef   : > { %7986 = vpow2.f32 %v3484_v40  ;;  %3420 = vadd.xlane.f32.xlu1 %v3419_v44  ;;  %v3422_v48 = vsel %vm2226_vm9, %v7985_v46, 0.0  ;;  %v7358_v40 = vld [vmem:[#allocation8 + $0x40] sm:$0xff] }
 0xdf0   : > { %3350 = vadd.xlane.f32.xlu0 %v3349_v43  ;;  %7988 = vpow2.f32 %v3486_v45  ;;  %3622 = vmatpush.bf16.msrb.mxu3 %v7363_v52  ;;  %v7376_v52 = vld [vmem:[#allocation13 + $0xd4] sm:$0xf] }
 0xdf2   : > { %v3283_v53 = vpop.xlane.xlu1 %3282 }
 0xdf3   : > { %7990 = vrcp.f32 %v3283_v53 }
 0xdf4   : > { %3623 = vmatpush.bf16.msrb.mxu3 %v7362_v35  ;;  %v6711_v35 = vld [vmem:[#allocation13 + $0xd8] sm:$0xf0] }
 0xdf5   : > { %v7987_v47 = vpop.eup %7986 }
 0xdf6   : > { %v3488_v49 = vsel %vm2226_vm9, %v7987_v47, 0.0  ;;  %v7989_v50 = vpop.eup %7988 }
 0xdf7   : > { %3489 = vadd.xlane.f32.xlu1 %v3488_v49  ;;  %v3491_v51 = vsel %vm2226_vm9, %v7989_v50, 0.0 }
 0xdf8   : > { %3423 = vadd.xlane.f32.xlu0 %v3422_v48  ;;  %3624 = vmatpush.bf16.msrb.mxu3 %v7361_v36  ;;  %v6714_v36 = vor.u32 %v7376_v52, %v6711_v35  ;;  %v7905_v52 = vld [vmem:[#allocation11 + $0x1] ss:$0 sm:$0xff] }
 0xdf9   : > { %v7991_v57 = vpop.eup %7990 }
 0xdfa   : > { %v3289_v60 = vmul.f32 %v7991_v57, %v10279_v12 }
 0xdfc   : > { %3625 = vmatpush.bf16.msrb.mxu3 %v7360_v55  ;;  %v6677_v55 = vld [vmem:[#allocation13 + $0x90] sm:$0xf] }
 0xdff   : > { %3361 = vrot.lane.b32.xlu2 %v10258_v38, %s9305_s7 }
 0xe00   : > { %3492 = vadd.xlane.f32.xlu0 %v3491_v51 }
 0xe10   : > { %3499 = vrot.lane.b32.xlu1 %v10258_v38, %s9303_s17 }
 0xe14   : > { %3430 = vrot.lane.b32.xlu0 %v10258_v38, %s9304_s15 }
 0xe5a   : > { %v3354_v54 = vpop.xlane.xlu2 %3353 }
 0xe5b   : > { %v3286_v56 = vpop.xlane.xlu0 %3285 }
 0xe5c   : > { %7992 = vrcp.f32 %v3286_v56 }
 0xe5d   : > { %7994 = vrcp.f32 %v3354_v54 }
 0xe62   : > { %v7993_v59 = vpop.eup %7992  ;;  %v3362_v10 = vpop.permute.xlu2 %3361 }
 0xe63   : > { %v3290_v14 = vmul.f32 %v7993_v59, %v7979_v29  ;;  %v3351_v62 = vpop.xlane.xlu0 %3350  ;;  %3374 = vmatpush.bf16.msra.mxu2 %v3362_v10  ;;  %v7995_v25 = vpop.eup %7994  ;;  %v7903_v10 = vld [vmem:[#allocation10 + $0x1] ss:$0 sm:$0xff] }
 0xe64   : > { %7996 = vrcp.f32 %v3351_v62  ;;  %v3358_v0 = vmul.f32 %v7995_v25, %v7977_v27  ;;  %v3421_v4 = vpop.xlane.xlu1 %3420 }
 0xe65   : > { %v3291_v63 = vpack.c.bf16 %v3290_v14, %v3289_v60 }
 0xe67   : > { %6627 = vmatmul.msk.bf16.vlgmr.msrb.gmra.mxu0 %vm2226_vm9, %v3291_v63 }
 0xe6a   : > { %v7997_v38 = vpop.eup %7996 }
 0xe6b   : > { %v3357_v1 = vmul.f32 %v7997_v38, %v7981_v39  ;;  %v3424_v2 = vpop.xlane.xlu0 %3423  ;;  %v7359_v39 = vld [vmem:[#allocation8 + $0x48] sm:$0xff] }
 0xe6c   : > { %v3490_v6 = vpop.xlane.xlu1 %3489  ;;  %3626 = vmatpush.bf16.msrb.mxu3 %v7359_v39  ;;  %v7369_v39 = vld [vmem:[#allocation13 + $0x94] sm:$0xf0] }
 0xe6d   : > { %v3359_v3 = vpack.c.bf16 %v3358_v0, %v3357_v1  ;;  %v4026_v0 = vld [vmem:[%s1875_s4] sm:$0xff]  ;;  %v6725_v1 = vld [vmem:[#allocation13 + $0xf0] sm:$0xf] }
 0xe6f   : > { %6629 = vmatmul.msk.bf16.vlgmr.msra.gmra.mxu2 %vm2226_vm9, %v3359_v3  ;;  %v9306_v3 = vmov 0  }
 0xe70   : > { %3627 = vmatpush.bf16.msrb.mxu3 %v7358_v40  ;;  %7892 = vset.pattern.permute.xlu1 %v9306_v3  ;;  %v6678_v40 = vor.u32 %v7369_v39, %v6677_v55 }
 0xe71   : > { %7893 = vset.pattern.permute.xlu0 %v9306_v3 }
 0xe73   : > { %v3493_v5 = vpop.xlane.xlu0 %3492 }
 0xe74   : > { %7998 = vrcp.f32 %v3493_v5  ;;  %v7379_v5 = vld [vmem:[#allocation13 + $0xe4] sm:$0xf0] }
 0xe75   : > { %8000 = vrcp.f32 %v3490_v6 }
 0xe76   : > { %8002 = vrcp.f32 %v3424_v2  ;;  %v7381_v2 = vld [vmem:[#allocation13 + $0xf4] sm:$0xf0] }
 0xe77   : > { %8004 = vrcp.f32 %v3421_v4  ;;  %v6717_v4 = vld [vmem:[#allocation13 + $0xe0] sm:$0xf] }
 0xe78   : > { %v6718_v6 = vor.u32 %v7379_v5, %v6717_v4  ;;  %v4027_v4 = vlaneseq }
 0xe7a   : > { %v7999_v7 = vpop.eup %7998 }
 0xe7b   : > { %v8001_v8 = vpop.eup %8000  ;;  %v3497_v24 = vmul.f32 %v7999_v7, %v7989_v50 }
 0xe7c   : > { %v8003_v9 = vpop.eup %8002  ;;  %v3496_v12 = vmul.f32 %v8001_v8, %v7987_v47 }
 0xe7d   : > { %v8005_v11 = vpop.eup %8004  ;;  %v3428_v15 = vmul.f32 %v8003_v9, %v7985_v46 }
 0xe7e   : > { %v3498_v16 = vpack.c.bf16 %v3497_v24, %v3496_v12  ;;  %v3427_v17 = vmul.f32 %v8005_v11, %v7983_v41 }
 0xe80   : > { %v3429_v18 = vpack.c.bf16 %v3428_v15, %v3427_v17  ;;  %v6709_v15 = vld [vmem:[#allocation13 + $0xd0] sm:$0xf] }
 0xe82   : > { %v3500_v13 = vpop.permute.xlu1 %3499 }
 0xe83   : > { %3512 = vmatpush.bf16.msrb.mxu2 %v3500_v13 }
 0xe86   : > { %v3431_v58 = vpop.permute.xlu0 %3430  ;;  %6633 = vmatmul.msk.bf16.vlgmr.msrb.gmra.mxu2 %vm2226_vm9, %v3498_v16  ;;  %v7377_v16 = vld [vmem:[#allocation13 + $0xd4] sm:$0xf0] }
 0xe87   : > { %3443 = vmatpush.bf16.msra.mxu0 %v3431_v58  ;;  %v6710_v17 = vor.u32 %v7377_v16, %v6709_v15  ;;  %v6701_v58 = vld [vmem:[#allocation13 + $0xc0] sm:$0xf]  ;;  %v7399_v15 = vld [vmem:[#allocation19 + $0x8] sm:$0xff] }
 0xe8a   : > { %6631 = vmatmul.msk.bf16.vlgmr.msra.gmra.mxu0 %vm2226_vm9, %v3429_v18  ;;  %v7375_v18 = vld [vmem:[#allocation13 + $0xc4] sm:$0xf0] }
 0xee4   : > { %v3304_v28 = vpop.f32.mrf.mxu0 }
 0xeec   : > { %v3306_v20 = vpop.f32.mrf.mxu0 }
 0xef2   : > { %v3376_v34 = vpop.f32.mrf.mxu2 }
 0xefa   : > { %v3378_v19 = vpop.f32.mrf.mxu2 }
 0xefb   : > { %v7877_v61 = vpack.i.bf16 %v3378_v19, %v3376_v34  ;;  %v6702_v34 = vor.u32 %v7375_v18, %v6701_v58  ;;  %v6727_v19 = vld [vmem:[#allocation13 + $0xf8] sm:$0xf0]  ;;  %v7398_v58 = vld [vmem:[#allocation19] sm:$0xff] }
 0xefd   : > { %7878 = vrot.lane.b32.xlu2 %v7877_v61, %s9303_s17 }
 0xf07   : > { %v3445_v22 = vpop.f32.mrf.mxu0 }
 0xf09   : > { %v3514_v26 = vpop.f32.mrf.mxu2 }
 0xf0f   : > { %v3447_v27 = vpop.f32.mrf.mxu0 }
 0xf10   : > { %v7882_v37 = vpack.i.bf16 %v3447_v27, %v3445_v22  ;;  %v7373_v22 = vld [vmem:[#allocation13 + $0xb4] sm:$0xf0]  ;;  %v7378_v27 = vld [vmem:[#allocation13 + $0xe4] sm:$0xf] }
 0xf11   : > { %v3516_v29 = vpop.f32.mrf.mxu2 }
 0xf12   : > { %7883 = vrot.lane.b32.xlu2 %v7882_v37, %s9304_s15  ;;  %v7887_v30 = vpack.i.bf16 %v3516_v29, %v3514_v26  ;;  %v6719_v37 = vld [vmem:[#allocation13 + $0xe8] sm:$0xf0] }
 0xf13   : > { %v6722_v29 = vor.u32 %v7378_v27, %v6719_v37  ;;  %v7904_v37 = vld [vmem:[%s10749_s10 + $0x1] ss:$0 sm:$0xff] }
 0xf1a   : > { %7888 = vrot.lane.b32.xlu2 %v7887_v30, %s9305_s7  ;;  %v6685_v30 = vld [vmem:[#allocation13 + $0xa0] sm:$0xf] }
 0xf1b   : > { %v6686_v33 = vor.u32 %v7371_v32, %v6685_v30 }
 0xf57   : > { %v7879_v41 = vpop.permute.xlu2 %7878 }
 0xf58   : > { %v7881_v43 = vunpack.i.h.bf16 %v7879_v41  ;;  %v7880_v44 = vunpack.i.l.bf16 %v7879_v41  ;;  %v7374_v41 = vld [vmem:[#allocation13 + $0xc4] sm:$0xf] }
 0xf5a   : > { %v3544_v48 = vsel %vm2203_vm8, %v3306_v20, %v7881_v43  ;;  %v3543_v49 = vsel %vm2203_vm8, %v3304_v28, %v7880_v44  ;;  %v7380_v28 = vld [vmem:[#allocation13 + $0xf4] sm:$0xf]  ;;  %v6693_v20 = vld [vmem:[#allocation13 + $0xb0] sm:$0xf]  ;;  %v6669_v44 = vld [vmem:[#allocation13 + $0x80] sm:$0xf] }
 0xf5b   : > { %v6730_v61 = vor.u32 %v7380_v28, %v6727_v19  ;;  %v6694_v26 = vor.u32 %v7373_v22, %v6693_v20 }
 0xf5d   : > { %3809 = vmatpush.bf16.msra.mxu1 %v6730_v61 }
 0xf61   : > { %3810 = vmatpush.bf16.msra.mxu1 %v6722_v29 }
 0xf65   : > { %3811 = vmatpush.bf16.msra.mxu1 %v6714_v36 }
 0xf6c   : > { %v7884_v42 = vpop.permute.xlu2 %7883 }
 0xf6d   : > { %v7886_v45 = vunpack.i.h.bf16 %v7884_v42  ;;  %v7885_v46 = vunpack.i.l.bf16 %v7884_v42  ;;  %v6703_v42 = vld [vmem:[#allocation13 + $0xc8] sm:$0xf0] }
 0xf6e   : > { %v6706_v43 = vor.u32 %v7374_v41, %v6703_v42  ;;  %v7389_v41 = vld [vmem:[#allocation16 + $0xb8] sm:$0xff] }
 0xf6f   : > { %v3545_v53 = vsel %vm2503_vm10, %v3543_v49, %v7885_v46  ;;  %v3546_v54 = vsel %vm2503_vm10, %v3544_v48, %v7886_v45  ;;  %v7367_v45 = vld [vmem:[#allocation13 + $0x84] sm:$0xf0]  ;;  %v6695_v48 = vld [vmem:[#allocation13 + $0xb8] sm:$0xf0]  ;;  %3995 = vmatpush.bf16.msra.mxu2 %v7389_v41 }
 0xf70   : > { %3812 = vmatpush.bf16.msra.mxu1 %v6706_v43  ;;  %v6670_v46 = vor.u32 %v7367_v45, %v6669_v44  ;;  %v7397_v42 = vld [vmem:[#allocation16 + $0xf8] sm:$0xff]  ;;  %v7388_v43 = vld [vmem:[#allocation16 + $0xb0] sm:$0xff]  ;;  %v7387_v44 = vld [vmem:[#allocation16 + $0xa8] sm:$0xff] }
 0xf71   : > { %4009 = vmatpush.bf16.msra.mxu3 %v7397_v42  ;;  %v7395_v45 = vld [vmem:[#allocation16 + $0xe8] sm:$0xff] }
 0xf73   : > { %3996 = vmatpush.bf16.msra.mxu2 %v7388_v43 }
 0xf74   : > { %v7889_v47 = vpop.permute.xlu2 %7888 }
 0xf75   : > { %v7891_v50 = vunpack.i.h.bf16 %v7889_v47  ;;  %v7890_v51 = vunpack.i.l.bf16 %v7889_v47  ;;  %v7372_v47 = vld [vmem:[#allocation13 + $0xb4] sm:$0xf] }
 0xf76   : > { %v6698_v49 = vor.u32 %v7372_v47, %v6695_v48  ;;  %v7394_v47 = vld [vmem:[#allocation16 + $0xe0] sm:$0xff]  ;;  %v7385_v48 = vld [vmem:[#allocation16 + $0x98] sm:$0xff] }
 0xf77   : > { %v3548_v56 = vsel %vm2506_vm11, %v3546_v54, %v7891_v50  ;;  %v3547_v57 = vsel %vm2506_vm11, %v3545_v53, %v7890_v51  ;;  %v7405_v50 = vld [vmem:[#allocation19 + $0x38] sm:$0xff]  ;;  %v6687_v53 = vld [vmem:[#allocation13 + $0xa8] sm:$0xf0]  ;;  %3997 = vmatpush.bf16.msra.mxu2 %v7387_v44 }
 0xf78   : > { %v3549_v59 = vpack.c.bf16 %v3548_v56, %v3547_v57  ;;  %3813 = vmatpush.bf16.msra.mxu1 %v6698_v49  ;;  %v7370_v51 = vld [vmem:[#allocation13 + $0xa4] sm:$0xf]  ;;  %v7404_v56 = vld [vmem:[#allocation19 + $0x30] sm:$0xff] }
 0xf79   : > { %v6690_v54 = vor.u32 %v7370_v51, %v6687_v53  ;;  %v7368_v57 = vld [vmem:[#allocation13 + $0x94] sm:$0xf]  ;;  %v7393_v49 = vld [vmem:[#allocation16 + $0xd8] sm:$0xff] }
 0xf7a   : > { %3628 = vmatmul.bf16.vlgmr.msrb.gmra.mxu3 %v3549_v59  ;;  %v6679_v59 = vld [vmem:[#allocation13 + $0x98] sm:$0xf0]  ;;  %v7392_v51 = vld [vmem:[#allocation16 + $0xd0] sm:$0xff]  ;;  %v3709_v53 = vld [vmem:[#allocation14 + $0x2] sm:$0x3] }
 0xf7c   : > { %3814 = vmatpush.bf16.msra.mxu1 %v6690_v54  ;;  %v7383_v54 = vld [vmem:[#allocation16 + $0x88] sm:$0xff] }
 0xffd   : > { %v3629_v60 = vpop.f32.mrf.mxu3 }
 0xffe   : > { %v3630_v14 = vadd.f32 %v7903_v10, %v3629_v60  ;;  %v7403_v60 = vld [vmem:[#allocation19 + $0x28] sm:$0xff] }
0x1000   : > { %v10311_v62 = vadd.f32 %v3630_v14, %v10229_v23  ;;  %v6726_v23 = vor.u32 %v7381_v2, %v6725_v1  ;;  %v7366_v14 = vld [vmem:[#allocation13 + $0x84] sm:$0xf] }
0x1001   : > { %v7402_v2 = vld [vmem:[#allocation19 + $0x20] sm:$0xff] }
0x1002   : > { %3640 = vadd.xlane.f32.xlu0 %v10311_v62  ;;  %3795 = vmatpush.bf16.msrb.mxu0 %v6726_v23  ;;  %v7401_v23 = vld [vmem:[#allocation19 + $0x18] sm:$0xff] }
0x1005   : > { %v3631_v63 = vpop.f32.mrf.mxu3 }
0x1006   : > { %v3632_v25 = vadd.f32 %v7903_v10, %v3631_v63  ;;  %3796 = vmatpush.bf16.msrb.mxu0 %v6718_v6  ;;  %v6682_v10 = vor.u32 %v7368_v57, %v6679_v59  ;;  %v6671_v63 = vld [vmem:[#allocation13 + $0x88] sm:$0xf0]  ;;  %v3711_v57 = vperm.slane %v3709_v53, 0  ;;  %v3712_v59 = vperm.slane %v3709_v53, 1 }
0x1007   : > { %v6674_v1 = vor.u32 %v7366_v14, %v6671_v63  ;;  %v7382_v14 = vld [vmem:[#allocation16 + $0x80] sm:$0xff] }
0x1008   : > { %v10315_v38 = vadd.f32 %v3632_v25, %v10233_v31  ;;  %3815 = vmatpush.bf16.msra.mxu1 %v6682_v10  ;;  %v7390_v63 = vld [vmem:[#allocation16 + $0xc0] sm:$0xff] }
0x100a   : > { %3642 = vadd.xlane.f32.xlu1 %v10315_v38  ;;  %3797 = vmatpush.bf16.msrb.mxu0 %v6710_v17 }
0x100c   : > { %3816 = vmatpush.bf16.msra.mxu1 %v6674_v1 }
0x100e   : > { %3798 = vmatpush.bf16.msrb.mxu0 %v6702_v34 }
0x1012   : > { %3799 = vmatpush.bf16.msrb.mxu0 %v6694_v26 }
0x1016   : > { %3800 = vmatpush.bf16.msrb.mxu0 %v6686_v33 }
0x101a   : > { %3801 = vmatpush.bf16.msrb.mxu0 %v6678_v40 }
0x101e   : > { %3802 = vmatpush.bf16.msrb.mxu0 %v6670_v46  ;;  %v7386_v46 = vld [vmem:[#allocation16 + $0xa0] sm:$0xff] }
0x101f   : > { %3998 = vmatpush.bf16.msra.mxu2 %v7386_v46 }
0x1022   : > { %4101 = vmatpush.bf16.msra.mxu0 %v7405_v50  ;;  %v7384_v50 = vld [vmem:[#allocation16 + $0x90] sm:$0xff] }
0x1023   : > { %4030 = vperm.xlu1 %7892, %v4026_v0   ;;  %3999 = vmatpush.bf16.msra.mxu2 %v7385_v48 }
0x1026   : > { %4102 = vmatpush.bf16.msra.mxu0 %v7404_v56  ;;  %v7391_v56 = vld [vmem:[#allocation16 + $0xc8] sm:$0xff] }
0x1027   : > { %4000 = vmatpush.bf16.msra.mxu2 %v7384_v50 }
0x102a   : > { %4103 = vmatpush.bf16.msra.mxu0 %v7403_v60 }
0x102b   : > { %4001 = vmatpush.bf16.msra.mxu2 %v7383_v54 }
0x102e   : > { %4104 = vmatpush.bf16.msra.mxu0 %v7402_v2 }
0x102f   : > { %4002 = vmatpush.bf16.msra.mxu2 %v7382_v14  ;;  %v6924_v14 = vld [vmem:[#allocation25 + $0xb0] sm:$0xf] }
0x1032   : > { %4105 = vmatpush.bf16.msra.mxu0 %v7401_v23 }
0x1075   : > { %v3641_v31 = vpop.xlane.xlu0 %3640 }
0x1076   : > { %v3644_v7 = vmul.f32 %v3641_v31, %v10127_v21  ;;  %v7400_v31 = vld [vmem:[#allocation19 + $0x10] sm:$0xff] }
0x1077   : > { %4106 = vmatpush.bf16.msra.mxu0 %v7400_v31 }
0x1078   : > { %v10323_v8 = vsub.f32 %v10311_v62, %v3644_v7  ;;  %v10335_v7 = vand.u32 127, %v4027_v4 }
0x107a   : > { %v3648_v9 = vmul.f32 %v10323_v8, %v10323_v8 }
0x107b   : > { %4107 = vmatpush.bf16.msra.mxu0 %v7399_v15 }
0x107c   : > { %3650 = vadd.xlane.f32.xlu2 %v3648_v9  ;;  %v10337_v9 = vshrl.u32 %v4027_v4, 7 }
0x107d   : > { %v3643_v24 = vpop.xlane.xlu1 %3642 }
0x107e   : > { %v3645_v11 = vmul.f32 %v3643_v24, %v10127_v21  ;;  %vm4354_vm12 = vcmp.le.s32.totalorder %v10335_v7, %v10337_v9 }
0x107f   : > { %4108 = vmatpush.bf16.msra.mxu0 %v7398_v58 }
0x1080   : > { %v10329_v12 = vsub.f32 %v10315_v38, %v3645_v11 }
0x1082   : > { %v3649_v13 = vmul.f32 %v10329_v12, %v10329_v12 }
0x1084   : > { %3652 = vadd.xlane.f32.xlu0 %v3649_v13 }
0x1095   : > { %v4031_v40 = vpop.permute.xlu1 %4030 }
0x1096   : > { %vm4032_vm3 = vcmp.eq.s32.totalorder %v10335_v7, %v4031_v40 }
0x1097   : > { %vm6828_vm4 = vmpackc.low %vm4032_vm3, %vm4032_vm3 }
0x10ef   : > { %v3651_v25 = vpop.xlane.xlu2 %3650 }
0x10f0   : > { %v3654_v0 = vmul.f32 %v3651_v25, %v10127_v21 }
0x10f2   : > { %v3656_v3 = vadd.f32 1e-05, %v3654_v0 }
0x10f4   : > { %8006 = vrsqrt.f32 %v3656_v3  ;;  %vm3664_vm14 = vweird.f32 %v3656_v3 }
0x10f7   : > { %v3653_v5 = vpop.xlane.xlu0 %3652 }
0x10f8   : > { %v3655_v6 = vmul.f32 %v3653_v5, %v10127_v21 }
0x10fa   : > { %v8007_v24 = vpop.eup %8006  ;;  %v3657_v11 = vadd.f32 1e-05, %v3655_v6 }
0x10fb   : > { %v3659_v13 = vmul.f32 %v8007_v24, %v3656_v3  ;;  %vm3665_vm13 = vweird.f32 %v8007_v24 }
0x10fc   : > { %8008 = vrsqrt.f32 %v3657_v11  ;;  %vm3666_vm15 = vmor %vm3664_vm14, %vm3665_vm13  ;;  %vm3674_vm1 = vweird.f32 %v3657_v11  ;;  %vm4395_vm13 = vcmask 1043456   ;;  %vm4379_vm14 = vcmask 64512  }
0x10fd   : > { %v3660_v16 = vmul.f32 %v8007_v24, %v3659_v13 }
0x10ff   : > { %v3661_v17 = vmul.f32 0.5, %v3660_v16 }
0x1101   : > { %v3662_v18 = vsub.f32 1.5, %v3661_v17 }
0x1102   : > { %v8009_v34 = vpop.eup %8008 }
0x1103   : > { %v3663_v28 = vmul.f32 %v8007_v24, %v3662_v18  ;;  %v3669_v19 = vmul.f32 %v8009_v34, %v3657_v11  ;;  %vm3675_vm0 = vweird.f32 %v8009_v34 }
0x1104   : > { %vm3676_vm2 = vmor %vm3674_vm1, %vm3675_vm0 }
0x1105   : > { %v3670_v61 = vmul.f32 %v8009_v34, %v3669_v19  ;;  %v3667_v20 = vsel %vm3666_vm15, %v8007_v24, %v3663_v28  ;;  %v4052_v19 = vld [vmem:[#allocation20] sm:$0xff] }
0x1106   : > { %v3678_v27 = vmul.f32 %v3667_v20, %v10323_v8  ;;  %v9307_v8 = vmov 1.0|1.0  }
0x1107   : > { %v3671_v22 = vmul.f32 0.5, %v3670_v61 }
0x1108   : > { %v3683_v33 = vmul.f32 %v7904_v37, %v3678_v27 }
0x1109   : > { %v3672_v26 = vsub.f32 1.5, %v3671_v22 }
0x110a   : > { %v3688_v36 = vadd.f32 %v7905_v52, %v3683_v33 }
0x110b   : > { %v3673_v29 = vmul.f32 %v8009_v34, %v3672_v26 }
0x110d   : > { %v3677_v30 = vsel %vm3676_vm2, %v8009_v34, %v3673_v29 }
0x110e   : > { %v3679_v32 = vmul.f32 %v3677_v30, %v10329_v12  ;;  %v7396_v12 = vld [vmem:[#allocation16 + $0xf0] sm:$0xff] }
0x110f   : > { %4010 = vmatpush.bf16.msra.mxu3 %v7396_v12 }
0x1110   : > { %v3684_v35 = vmul.f32 %v7904_v37, %v3679_v32 }
0x1112   : > { %v3689_v55 = vadd.f32 %v7905_v52, %v3684_v35 }
0x1113   : > { %4011 = vmatpush.bf16.msra.mxu3 %v7395_v45 }
0x1114   : > { %v3690_v39 = vpack.c.bf16 %v3689_v55, %v3688_v36 }
0x1116   : > { %3803 = vmatmul.bf16.vlgmr.msrb.gmra.mxu0 %v3690_v39  ;;  %3817 = vmatmul.bf16.vlgmr.msra.gmra.mxu1 %v3690_v39 }
0x1117   : > { %4012 = vmatpush.bf16.msra.mxu3 %v7394_v47 }
0x111b   : > { %4013 = vmatpush.bf16.msra.mxu3 %v7393_v49 }
0x111f   : > { %4014 = vmatpush.bf16.msra.mxu3 %v7392_v51 }
0x1123   : > { %4015 = vmatpush.bf16.msra.mxu3 %v7391_v56  ;;  %v6916_v56 = vld [vmem:[#allocation25 + $0xa8] sm:$0xf] }
0x1126   : > { %6829 = vmatmul.msk.bf16.vlgmr.msra.gmra.mxu0 %vm6828_vm4, %v9307_v8 }
0x1127   : > { %4016 = vmatpush.bf16.msra.mxu3 %v7390_v63  ;;  %v7429_v63 = vld [vmem:[#allocation25 + $0xb8] sm:$0xf0] }
0x1193   : > { %v3804_v10 = vpop.f32.mrf.mxu0  ;;  %v3818_v60 = vpop.f32.mrf.mxu1 }
0x1194   : > { %v3805_v25 = vadd.f32 %v3804_v10, %v3711_v57  ;;  %v3819_v0 = vadd.f32 %v3818_v60, %v3712_v59  ;;  %v6918_v60 = vld [vmem:[#allocation25 + $0xb4] sm:$0xf0] }
0x1196   : > { %v3823_v1 = vmul.f32 %v3805_v25, %v3805_v25  ;;  %v3824_v2 = vmul.f32 %v3819_v0, %v3819_v0 }
0x1198   : > { %v3827_v3 = vmul.f32 %v3823_v1, %v3805_v25  ;;  %v3828_v23 = vmul.f32 %v3824_v2, %v3819_v0  ;;  %v10354_v1 = vld [vmem:[#allocation17 + $0x1] ss:$0 sm:$0xff] }
0x119a   : > { %v3831_v4 = vmul.f32 0.044715, %v3827_v3  ;;  %v3832_v5 = vmul.f32 0.044715, %v3828_v23 }
0x119b   : > { %v3806_v6 = vpop.f32.mrf.mxu0  ;;  %v3820_v31 = vpop.f32.mrf.mxu1 }
0x119c   : > { %v3835_v24 = vadd.f32 %v3831_v4, %v3805_v25  ;;  %v3836_v11 = vadd.f32 %v3832_v5, %v3819_v0  ;;  %v3807_v13 = vadd.f32 %v3806_v6, %v3711_v57  ;;  %v3821_v15 = vadd.f32 %v3820_v31, %v3712_v59  ;;  %v7428_v57 = vld [vmem:[#allocation25 + $0xb0] sm:$0xf0]  ;;  %v7427_v59 = vld [vmem:[#allocation25 + $0xac] sm:$0xf]  ;;  %v6904_v5 = vld [vmem:[#allocation25 + $0x90] sm:$0xf] }
0x119d   : > { %v6917_v10 = vor.u32 %v7428_v57, %v6916_v56  ;;  %v7425_v6 = vld [vmem:[#allocation25 + $0x98] sm:$0xf0]  ;;  %v7424_v31 = vld [vmem:[#allocation25 + $0x94] sm:$0xf] }
0x119e   : > { %v3839_v16 = vmul.f32 0.7978846, %v3835_v24  ;;  %v3825_v17 = vmul.f32 %v3807_v13, %v3807_v13  ;;  %v3826_v58 = vmul.f32 %v3821_v15, %v3821_v15  ;;  %v3840_v18 = vmul.f32 0.7978846, %v3836_v11  ;;  %v6906_v11 = vld [vmem:[#allocation25 + $0x9c] sm:$0xf0] }
0x119f   : > { %4313 = vmatpush.bf16.msrb.mxu1 %v6917_v10  ;;  %v6905_v24 = vor.u32 %v7425_v6, %v6904_v5  ;;  %v7410_v10 = vld [vmem:[#allocation25 + $0x20] sm:$0xf0]  ;;  %v7407_v5 = vld [vmem:[#allocation25 + $0x8] sm:$0xf0] }
0x11a0   : > { %v3829_v34 = vmul.f32 %v3825_v17, %v3807_v13  ;;  %v3830_v28 = vmul.f32 %v3826_v58, %v3821_v15  ;;  %8010 = vtanh.f32 %v3839_v16  ;;  %v6909_v16 = vor.u32 %v7424_v31, %v6906_v11  ;;  %v6892_v58 = vld [vmem:[#allocation25 + $0x78] sm:$0xf]  ;;  %v7406_v6 = vld [vmem:[#allocation25 + $0x4] sm:$0xf]  ;;  %v6840_v11 = vld [vmem:[#allocation25 + $0x8] sm:$0xf] }
0x11a1   : > { %8012 = vtanh.f32 %v3840_v18  ;;  %v7422_v18 = vld [vmem:[#allocation25 + $0x80] sm:$0xf0] }
0x11a2   : > { %v3833_v61 = vmul.f32 0.044715, %v3829_v34  ;;  %v3834_v20 = vmul.f32 0.044715, %v3830_v28  ;;  %v7421_v34 = vld [vmem:[#allocation25 + $0x7c] sm:$0xf]  ;;  %v6893_v28 = vor.u32 %v7422_v18, %v6892_v58 }
0x11a3   : > { %v4110_v22 = vpop.f32.mrf.mxu0  ;;  %4314 = vmatpush.bf16.msrb.mxu1 %v6905_v24  ;;  %v6834_v24 = vld [vmem:[#allocation25 + $0xc] sm:$0xf0] }
0x11a4   : > { %v3837_v26 = vadd.f32 %v3833_v61, %v3807_v13  ;;  %v3838_v27 = vadd.f32 %v3834_v20, %v3821_v15  ;;  %v10345_v37 = vadd.f32 %v4110_v22, %v4052_v19  ;;  %v6894_v19 = vld [vmem:[#allocation25 + $0x84] sm:$0xf0]  ;;  %v6900_v61 = vld [vmem:[#allocation25 + $0x80] sm:$0xf]  ;;  %v7423_v20 = vld [vmem:[#allocation25 + $0x88] sm:$0xf0] }
0x11a5   : > { %v6897_v22 = vor.u32 %v7421_v34, %v6894_v19 }
0x11a6   : > { %v3841_v29 = vmul.f32 0.7978846, %v3837_v26  ;;  %v3842_v30 = vmul.f32 0.7978846, %v3838_v27  ;;  %4116 = vadd.xlane.f32.xlu2 %v10345_v37  ;;  %v8011_v32 = vpop.eup %8010  ;;  %v6901_v26 = vor.u32 %v7423_v20, %v6900_v61  ;;  %v6880_v27 = vld [vmem:[#allocation25 + $0x60] sm:$0xf] }
0x11a7   : > { %v8013_v33 = vpop.eup %8012  ;;  %v3847_v52 = vadd.f32 1.0, %v8011_v32  ;;  %4315 = vmatpush.bf16.msrb.mxu1 %v6893_v28 }
0x11a8   : > { %8014 = vtanh.f32 %v3841_v29  ;;  %v3848_v36 = vadd.f32 1.0, %v8013_v33  ;;  %v7419_v29 = vld [vmem:[#allocation25 + $0x68] sm:$0xf0]  ;;  %v6882_v33 = vld [vmem:[#allocation25 + $0x6c] sm:$0xf0] }
0x11a9   : > { %8016 = vtanh.f32 %v3842_v30  ;;  %v3851_v40 = vmul.f32 0.5, %v3847_v52  ;;  %v7418_v30 = vld [vmem:[#allocation25 + $0x64] sm:$0xf]  ;;  %v6881_v32 = vor.u32 %v7419_v29, %v6880_v27  ;;  %v6888_v52 = vld [vmem:[#allocation25 + $0x68] sm:$0xf] }
0x11aa   : > { %v3852_v41 = vmul.f32 0.5, %v3848_v36  ;;  %v6885_v36 = vor.u32 %v7418_v30, %v6882_v33  ;;  %v7908_v30 = vld [vmem:[#allocation23] ss:$0 sm:$0xff] }
0x11ab   : > { %v4112_v35 = vpop.f32.mrf.mxu0  ;;  %v3855_v44 = vmul.f32 %v3851_v40, %v3805_v25  ;;  %v6921_v25 = vor.u32 %v7427_v59, %v6918_v60  ;;  %4316 = vmatpush.bf16.msrb.mxu1 %v6881_v32  ;;  %v7416_v40 = vld [vmem:[#allocation25 + $0x50] sm:$0xf0]  ;;  %v6844_v59 = vld [vmem:[#allocation25 + $0x18] sm:$0xf]  ;;  %v7409_v60 = vld [vmem:[#allocation25 + $0x1c] sm:$0xf] }
0x11ac   : > { %v3856_v46 = vmul.f32 %v3852_v41, %v3819_v0  ;;  %v6925_v0 = vor.u32 %v7429_v63, %v6924_v14  ;;  %v7420_v35 = vld [vmem:[#allocation25 + $0x70] sm:$0xf0]  ;;  %v6845_v14 = vor.u32 %v7410_v10, %v6844_v59  ;;  %v6846_v63 = vld [vmem:[#allocation25 + $0x24] sm:$0xf0] }
0x11ad   : > { %4326 = vmatpush.bf16.msrb.mxu2 %v6921_v25  ;;  %v6852_v25 = vld [vmem:[#allocation25 + $0x20] sm:$0xf] }
0x11ae   : > { %v8015_v55 = vpop.eup %8014  ;;  %4339 = vmatpush.bf16.msrb.mxu3 %v6925_v0  ;;  %v7411_v0 = vld [vmem:[#allocation25 + $0x28] sm:$0xf0] }
0x11af   : > { %v8017_v39 = vpop.eup %8016  ;;  %v3849_v8 = vadd.f32 1.0, %v8015_v55  ;;  %v6889_v55 = vor.u32 %v7420_v35, %v6888_v52  ;;  %v4177_v35 = vld [vmem:[#allocation26] sm:$0x7] }
0x11b0   : > { %v3850_v42 = vadd.f32 1.0, %v8017_v39  ;;  %v6868_v39 = vld [vmem:[#allocation25 + $0x48] sm:$0xf] }
0x11b1   : > { %v3853_v43 = vmul.f32 0.5, %v3849_v8  ;;  %4327 = vmatpush.bf16.msrb.mxu2 %v6909_v16  ;;  %v7415_v8 = vld [vmem:[#allocation25 + $0x4c] sm:$0xf]  ;;  %v6869_v41 = vor.u32 %v7416_v40, %v6868_v39 }
0x11b2   : > { %v3854_v12 = vmul.f32 0.5, %v3850_v42  ;;  %v6870_v42 = vld [vmem:[#allocation25 + $0x54] sm:$0xf0] }
0x11b3   : > { %v3857_v45 = vmul.f32 %v3853_v43, %v3807_v13  ;;  %v6912_v13 = vld [vmem:[#allocation25 + $0x98] sm:$0xf]  ;;  %v6876_v43 = vld [vmem:[#allocation25 + $0x50] sm:$0xf]  ;;  %4317 = vmatpush.bf16.msrb.mxu1 %v6869_v41 }
0x11b4   : > { %v3858_v47 = vmul.f32 %v3854_v12, %v3821_v15  ;;  %v7426_v15 = vld [vmem:[#allocation25 + $0xa0] sm:$0xf0]  ;;  %v7417_v12 = vld [vmem:[#allocation25 + $0x58] sm:$0xf0] }
0x11b5   : > { %v3859_v48 = vpack.c.bf16 %v3857_v45, %v3855_v44  ;;  %v6913_v17 = vor.u32 %v7426_v15, %v6912_v13  ;;  %4328 = vmatpush.bf16.msrb.mxu2 %v6897_v22  ;;  %v6873_v44 = vor.u32 %v7415_v8, %v6870_v42  ;;  %v6877_v45 = vor.u32 %v7417_v12, %v6876_v43  ;;  %v7408_v13 = vld [vmem:[#allocation25 + $0x10] sm:$0xf0] }
0x11b6   : > { %v3860_v49 = vpack.c.bf16 %v3858_v47, %v3856_v46  ;;  %v6856_v46 = vld [vmem:[#allocation25 + $0x30] sm:$0xf]  ;;  %v7413_v47 = vld [vmem:[#allocation25 + $0x38] sm:$0xf0]  ;;  %v6837_v15 = vor.u32 %v7406_v6, %v6834_v24  ;;  %v6841_v16 = vor.u32 %v7408_v13, %v6840_v11  ;;  %v4180_v42 = vperm.slane %v4177_v35, 1 }
0x11b7   : > { %4003 = vmatmul.bf16.vlgmr.msra.gmra.mxu2 %v3859_v48  ;;  %4340 = vmatpush.bf16.msrb.mxu3 %v6913_v17  ;;  %v7412_v48 = vld [vmem:[#allocation25 + $0x34] sm:$0xf]  ;;  %v4181_v43 = vperm.slane %v4177_v35, 2  ;;  %v7040_v24 = vld [vmem:[#allocation37 + $0x50] sm:$0xf] }
0x11b8   : > { %4017 = vmatmul.bf16.vlgmr.msra.gmra.mxu3 %v3860_v49  ;;  %v6857_v49 = vor.u32 %v7413_v47, %v6856_v46  ;;  %v7459_v6 = vld [vmem:[#allocation37 + $0x64] sm:$0xf0]  ;;  %v7457_v11 = vld [vmem:[#allocation37 + $0x54] sm:$0xf0] }
0x11b9   : > { %4329 = vmatpush.bf16.msrb.mxu2 %v6885_v36  ;;  %v4179_v36 = vperm.slane %v4177_v35, 0  ;;  %v7041_v13 = vor.u32 %v7457_v11, %v7040_v24 }
0x11ba   : > { %4318 = vmatpush.bf16.msrb.mxu1 %v6857_v49 }
0x11bb   : > { %4341 = vmatpush.bf16.msrb.mxu3 %v6901_v26  ;;  %v7907_v26 = vld [vmem:[#allocation22] ss:$0 sm:$0xff] }
0x11bd   : > { %4330 = vmatpush.bf16.msrb.mxu2 %v6873_v44 }
0x11be   : > { %4319 = vmatpush.bf16.msrb.mxu1 %v6845_v14 }
0x11bf   : > { %4342 = vmatpush.bf16.msrb.mxu3 %v6889_v55 }
0x11c3   : > { %4343 = vmatpush.bf16.msrb.mxu3 %v6877_v45 }
0x1219   : > { %v4117_v50 = vpop.xlane.xlu2 %4116 }
0x121a   : > { %v4118_v51 = vmul.f32 %v4117_v50, %v10127_v21  ;;  %v6858_v50 = vld [vmem:[#allocation25 + $0x3c] sm:$0xf0] }
0x121b   : > { %v6861_v56 = vor.u32 %v7412_v48, %v6858_v50 }
0x121c   : > { %v10350_v53 = vsub.f32 %v10345_v37, %v4118_v51  ;;  %v6864_v51 = vld [vmem:[#allocation25 + $0x38] sm:$0xf] }
0x121d   : > { %4331 = vmatpush.bf16.msrb.mxu2 %v6861_v56 }
0x121e   : > { %v4120_v54 = vmul.f32 %v10350_v53, %v10350_v53 }
0x1220   : > { %4121 = vadd.xlane.f32.xlu0 %v4120_v54  ;;  %v7414_v54 = vld [vmem:[#allocation25 + $0x40] sm:$0xf0] }
0x1221   : > { %v6865_v57 = vor.u32 %v7414_v54, %v6864_v51 }
0x1223   : > { %4344 = vmatpush.bf16.msrb.mxu3 %v6865_v57 }
0x123a   : > { %v4004_v2 = vpop.f32.mrf.mxu2 }
0x123b   : > { %v4005_v3 = vadd.f32 %v10354_v1, %v4004_v2  ;;  %v4018_v23 = vpop.f32.mrf.mxu3  ;;  %v6849_v2 = vor.u32 %v7409_v60, %v6846_v63 }
0x123d   : > { %v10357_v4 = vadd.f32 %v4018_v23, %v4005_v3  ;;  %v6853_v3 = vor.u32 %v7411_v0, %v6852_v25  ;;  %v6832_v23 = vld [vmem:[#allocation25] sm:$0xf]  ;;  %4332 = vmatpush.bf16.msrb.mxu2 %v6849_v2  ;;  %v7056_v2 = vld [vmem:[#allocation37 + $0x70] sm:$0xf] }
0x123e   : > { %v6833_v31 = vor.u32 %v7407_v5, %v6832_v23  ;;  %v7048_v5 = vld [vmem:[#allocation37 + $0x60] sm:$0xf] }
0x123f   : > { %4345 = vmatpush.bf16.msrb.mxu3 %v6853_v3  ;;  %v7461_v3 = vld [vmem:[#allocation37 + $0x74] sm:$0xf0] }
0x1240   : > { %4320 = vmatpush.bf16.msrb.mxu1 %v6833_v31  ;;  %v7057_v23 = vor.u32 %v7461_v3, %v7056_v2  ;;  %v7049_v31 = vor.u32 %v7459_v6, %v7048_v5  ;;  %v7431_v2 = vld [vmem:[#allocation28 + $0x8] sm:$0xff]  ;;  %v7430_v5 = vld [vmem:[#allocation28] sm:$0xff] }
0x1241   : > { %4333 = vmatpush.bf16.msrb.mxu2 %v6837_v15  ;;  %v7032_v15 = vld [vmem:[#allocation37 + $0x40] sm:$0xf] }
0x1242   : > { %v10361_v55 = vpop.f32.mrf.mxu2 }
0x1243   : > { %4346 = vmatpush.bf16.msrb.mxu3 %v6841_v16  ;;  %v10363_v39 = vpop.f32.mrf.mxu3  ;;  %v7455_v16 = vld [vmem:[#allocation37 + $0x44] sm:$0xf0] }
0x1293   : > { %v4122_v17 = vpop.xlane.xlu0 %4121 }
0x1294   : > { %v4123_v58 = vmul.f32 %v4122_v17, %v10127_v21  ;;  %v7033_v17 = vor.u32 %v7455_v16, %v7032_v15 }
0x1296   : > { %v4124_v18 = vadd.f32 1e-05, %v4123_v58  ;;  %v7024_v58 = vld [vmem:[#allocation37 + $0x30] sm:$0xf] }
0x1298   : > { %8018 = vrsqrt.f32 %v4124_v18  ;;  %vm4131_vm6 = vweird.f32 %v4124_v18 }
0x129e   : > { %v8019_v34 = vpop.eup %8018 }
0x129f   : > { %v4126_v28 = vmul.f32 %v8019_v34, %v4124_v18  ;;  %vm4132_vm5 = vweird.f32 %v8019_v34  ;;  %v7453_v18 = vld [vmem:[#allocation37 + $0x34] sm:$0xf0] }
0x12a0   : > { %vm4133_vm7 = vmor %vm4131_vm6, %vm4132_vm5 }
0x12a1   : > { %v4127_v19 = vmul.f32 %v8019_v34, %v4126_v28  ;;  %v7016_v28 = vld [vmem:[#allocation37 + $0x20] sm:$0xf] }
0x12a3   : > { %v4128_v61 = vmul.f32 0.5, %v4127_v19  ;;  %v7451_v19 = vld [vmem:[#allocation37 + $0x24] sm:$0xf0] }
0x12a5   : > { %v4129_v20 = vsub.f32 1.5, %v4128_v61  ;;  %v7017_v61 = vor.u32 %v7451_v19, %v7016_v28 }
0x12a7   : > { %v4130_v22 = vmul.f32 %v8019_v34, %v4129_v20  ;;  %v7008_v20 = vld [vmem:[#allocation37 + $0x10] sm:$0xf] }
0x12a9   : > { %v4134_v27 = vsel %vm4133_vm7, %v8019_v34, %v4130_v22  ;;  %v7025_v34 = vor.u32 %v7453_v18, %v7024_v58  ;;  %v7449_v22 = vld [vmem:[#allocation37 + $0x14] sm:$0xf0] }
0x12aa   : > { %v4135_v29 = vmul.f32 %v4134_v27, %v10350_v53  ;;  %v7000_v27 = vld [vmem:[#allocation37] sm:$0xf] }
0x12ac   : > { %v4139_v32 = vmul.f32 %v7907_v26, %v4135_v29  ;;  %v7009_v26 = vor.u32 %v7449_v22, %v7008_v20  ;;  %v7447_v29 = vld [vmem:[#allocation37 + $0x4] sm:$0xf0] }
0x12ae   : > { %v4143_v33 = vadd.f32 %v7908_v30, %v4139_v32  ;;  %v7001_v30 = vor.u32 %v7447_v29, %v7000_v27 }
0x12b0   : > { %v4144_v52 = vpack.c.bf16 %v4143_v33, %v4143_v33 }
0x12b2   : > { %4321 = vmatmul.bf16.vlgmr.msrb.gmra.mxu1 %v4144_v52  ;;  %4334 = vmatmul.bf16.vlgmr.msrb.gmra.mxu2 %v4144_v52 }
0x12b3   : > { %4347 = vmatmul.bf16.vlgmr.msrb.gmra.mxu3 %v4144_v52 }
0x132f   : > { %v4322_v40 = vpop.f32.mrf.mxu1 }
0x1330   : > { %v4323_v8 = vadd.f32 %v4322_v40, %v4179_v36 }
0x1332   : > { %v10365_v41 = vpack.c.bf16 %v4323_v8, %v4323_v8 }
0x1334   : > { %4413 = vrot.lane.b32.xlu0 %v10365_v41, %s9305_s7 }
0x1335   : > { %v4335_v53 = vpop.f32.mrf.mxu2 }
0x1336   : > { %v4336_v12 = vadd.f32 %v4335_v53, %v4180_v42  ;;  %v4348_v44 = vpop.f32.mrf.mxu3  ;;  %v4007_v53 = vadd.f32 %v10354_v1, %v10361_v55  ;;  %v7435_v55 = vld [vmem:[#allocation28 + $0x28] sm:$0xff] }
0x1337   : > { %v4349_v45 = vadd.f32 %v4348_v44, %v4181_v43  ;;  %v4324_v46 = vpop.f32.mrf.mxu1 }
0x1338   : > { %v4356_v47 = vpack.c.bf16 %v4336_v12, %v4336_v12  ;;  %v4021_v12 = vadd.f32 %v10363_v39, %v4007_v53 }
0x1339   : > { %v10369_v48 = vpack.c.bf16 %v4349_v45, %v4349_v45  ;;  %v4023_v45 = vadd.f32 %v10357_v4, %v10311_v62 }
0x133a   : > { %4475 = vrot.lane.b32.xlu1 %v4356_v47, %s9304_s15  ;;  %v4362_v49 = vsel %vm2203_vm8, %v4356_v47, 0  ;;  %v4024_v44 = vadd.f32 %v4021_v12, %v10315_v38  ;;  %v7436_v38 = vld [vmem:[#allocation28 + $0x30] sm:$0xff] }
0x133b   : > { %4371 = vmatpush.bf16.xpose.msrb.mxu0 %v4362_v49  ;;  %v4397_v50 = vsel %vm4395_vm13, %v10369_v48, 0 }
0x133c   : > { %4406 = vmatpush.bf16.msra.mxu1 %v4397_v50  ;;  %v10397_v46 = vpack.c.bf16 %v4024_v44, %v4023_v45 }
0x133d   : > { %v4337_v51 = vpop.f32.mrf.mxu2 }
0x133e   : > { %v4350_v54 = vpop.f32.mrf.mxu3  ;;  %v7437_v51 = vld [vmem:[#allocation28 + $0x38] sm:$0xff] }
0x1342   : > { %4533 = vrot.lane.b32.xlu1 %v4356_v47, %s9303_s17  ;;  %6926 = vmatmul.msk.bf16.vlgmr.msrb.gmra.mxu0 %vm2203_vm8, %v10365_v41 }
0x13a6   : > { %v4414_v42 = vpop.permute.xlu0 %4413 }
0x13ac   : > { %v4476_v56 = vpop.permute.xlu1 %4475 }
0x13ad   : > { %v4481_v57 = vsel %vm2203_vm8, %v4476_v56, 0 }
0x13ae   : > { %4490 = vmatpush.bf16.xpose.msrb.mxu1 %v4481_v57 }
0x13b4   : > { %v4534_v59 = vpop.permute.xlu1 %4533 }
0x13b5   : > { %v4539_v10 = vsel %vm2203_vm8, %v4534_v59, 0 }
0x13b6   : > { %4548 = vmatpush.bf16.xpose.msra.mxu3 %v4539_v10 }
0x13be   : > { %4901 = vmatpush.bf16.msrb.mxu3 %v7057_v23  ;;  %v10412_v23 = vld [vmem:[#allocation38] sm:$0x3] }
0x13bf   : > { %v4373_v60 = vpop.f32.mrf.mxu0  ;;  %v4817_v6 = vperm.slane %v10412_v23, 0 }
0x13c0   : > { %v4377_v14 = vmul.f32 0.17677669, %v4373_v60  ;;  %v7433_v60 = vld [vmem:[#allocation28 + $0x18] sm:$0xff] }
0x13c2   : > { %v4378_v63 = vsel %vm4354_vm12, %v4377_v14, -1e+30  ;;  %4902 = vmatpush.bf16.msrb.mxu3 %v7049_v31 }
0x13c3   : > { %v4380_v25 = vsel %vm4379_vm14, %v4378_v63, -inf }
0x13c4   : > { %4381 = vmax.xlane.f32.xlu2 %v4380_v25 }
0x13c6   : > { %4903 = vmatpush.bf16.msrb.mxu3 %v7041_v13 }
0x13c7   : > { %v4375_v0 = vpop.f32.mrf.mxu0 }
0x13c8   : > { %v7432_v0 = vld [vmem:[#allocation28 + $0x10] sm:$0xff] }
0x13ca   : > { %4904 = vmatpush.bf16.msrb.mxu3 %v7033_v17 }
0x13ce   : > { %4905 = vmatpush.bf16.msrb.mxu3 %v7025_v34 }
0x13d2   : > { %4906 = vmatpush.bf16.msrb.mxu3 %v7017_v61 }
0x13d6   : > { %4907 = vmatpush.bf16.msrb.mxu3 %v7009_v26 }
0x13da   : > { %4908 = vmatpush.bf16.msrb.mxu3 %v7001_v30 }
0x13dc   : > { %4416 = vrot.lane.b32.xlu2 %v4356_v47, %s9305_s7 }
0x13e4   : > { %4531 = vrot.lane.b32.xlu2 %v10365_v41, %s9303_s17 }
0x1437   : > { %v4382_v32 = vpop.xlane.xlu2 %4381 }
0x1438   : > { %v4383_v33 = vsub.f32 %v4378_v63, %v4382_v32 }
0x143a   : > { %v4384_v52 = vmul.f32 1.442695, %v4383_v33 }
0x143c   : > { %8020 = vpow2.f32 %v4384_v52 }
0x143f   : > { %v4417_v35 = vpop.permute.xlu2 %4416 }
0x1440   : > { %v4422_v36 = vsel %vm2203_vm8, %v4417_v35, 0 }
0x1441   : > { %4431 = vmatpush.bf16.xpose.msra.mxu2 %v4422_v36 }
0x1442   : > { %v8021_v40 = vpop.eup %8020 }
0x1443   : > { %v4386_v8 = vsel %vm4379_vm14, %v8021_v40, 0.0 }
0x1444   : > { %4387 = vadd.xlane.f32.xlu0 %v4386_v8 }
0x1447   : > { %v4532_v43 = vpop.permute.xlu2 %4531 }
0x1448   : > { %6928 = vmatmul.msk.bf16.vlgmr.msra.gmra.mxu2 %vm2203_vm8, %v4414_v42  ;;  %6932 = vmatmul.msk.bf16.vlgmr.msra.gmra.mxu3 %vm2203_vm8, %v4532_v43 }
0x1458   : > { %4473 = vrot.lane.b32.xlu0 %v10365_v41, %s9304_s15  ;;  %4909 = vmatmul.bf16.vlgmr.msrb.gmra.mxu3 %v10397_v46  ;;  %v7434_v41 = vld [vmem:[#allocation28 + $0x20] sm:$0xff] }
0x14b7   : > { %v4388_v47 = vpop.xlane.xlu0 %4387 }
0x14b8   : > { %8022 = vrcp.f32 %v4388_v47 }
0x14be   : > { %v8023_v49 = vpop.eup %8022 }
0x14bf   : > { %v4390_v50 = vmul.f32 %v8023_v49, %v8021_v40  ;;  %v7460_v49 = vld [vmem:[#allocation37 + $0x74] sm:$0xf] }
0x14c1   : > { %v4391_v1 = vpack.c.bf16 %v4390_v50, %v4390_v50  ;;  %v7058_v50 = vld [vmem:[#allocation37 + $0x78] sm:$0xf0] }
0x14c3   : > { %6927 = vmatmul.msk.bf16.vlgmr.msra.gmra.mxu1 %vm4379_vm14, %v4391_v1  ;;  %v7061_v1 = vor.u32 %v7460_v49, %v7058_v50 }
0x14c4   : > { %4673 = vmatpush.bf16.msra.mxu1 %v7437_v51 }
0x14c8   : > { %4674 = vmatpush.bf16.msra.mxu1 %v7436_v38 }
0x14ca   : > { %v4474_v14 = vpop.permute.xlu0 %4473 }
0x14cb   : > { %v4433_v62 = vpop.f32.mrf.mxu2  ;;  %v4550_v4 = vpop.f32.mrf.mxu3 }
0x14cc   : > { %v4437_v39 = vmul.f32 0.17677669, %v4433_v62  ;;  %v4554_v54 = vmul.f32 0.17677669, %v4550_v4  ;;  %4675 = vmatpush.bf16.msra.mxu1 %v7435_v55  ;;  %v7458_v55 = vld [vmem:[#allocation37 + $0x64] sm:$0xf] }
0x14cd   : > { %v7050_v62 = vld [vmem:[#allocation37 + $0x68] sm:$0xf0] }
0x14ce   : > { %v4438_v56 = vsel %vm4354_vm12, %v4437_v39, -1e+30  ;;  %v4555_v57 = vsel %vm4354_vm12, %v4554_v54, -1e+30  ;;  %v7053_v54 = vor.u32 %v7458_v55, %v7050_v62  ;;  %v7909_v55 = vld [vmem:[#allocation29] ss:$0 sm:$0xff] }
0x14cf   : > { %v4439_v59 = vsel %vm4379_vm14, %v4438_v56, -inf  ;;  %v4556_v10 = vsel %vm4379_vm14, %v4555_v57, -inf }
0x14d0   : > { %4440 = vmax.xlane.f32.xlu1 %v4439_v59  ;;  %4557 = vmax.xlane.f32.xlu2 %v4556_v10  ;;  %v7454_v59 = vld [vmem:[#allocation37 + $0x44] sm:$0xf]  ;;  %v7034_v10 = vld [vmem:[#allocation37 + $0x48] sm:$0xf0] }
0x14d1   : > { %4676 = vmatpush.bf16.msra.mxu1 %v7434_v41  ;;  %v7456_v41 = vld [vmem:[#allocation37 + $0x54] sm:$0xf] }
0x14d3   : > { %v4435_v63 = vpop.f32.mrf.mxu2  ;;  %6930 = vmatmul.msk.bf16.vlgmr.msrb.gmra.mxu1 %vm2203_vm8, %v4474_v14  ;;  %v4552_v25 = vpop.f32.mrf.mxu3  ;;  %v7452_v14 = vld [vmem:[#allocation37 + $0x34] sm:$0xf] }
0x14d4   : > { %v7026_v63 = vld [vmem:[#allocation37 + $0x38] sm:$0xf0] }
0x14d5   : > { %4677 = vmatpush.bf16.msra.mxu1 %v7433_v60  ;;  %v7037_v60 = vor.u32 %v7454_v59, %v7034_v10  ;;  %v7029_v25 = vor.u32 %v7452_v14, %v7026_v63 }
0x14d9   : > { %4678 = vmatpush.bf16.msra.mxu1 %v7432_v0  ;;  %v7450_v0 = vld [vmem:[#allocation37 + $0x24] sm:$0xf] }
0x14db   : > { %v4910_v3 = vpop.f32.mrf.mxu3 }
0x14dc   : > { %v4911_v24 = vadd.f32 %v4910_v3, %v4817_v6 }
0x14dd   : > { %4679 = vmatpush.bf16.msra.mxu1 %v7431_v2  ;;  %v7018_v2 = vld [vmem:[#allocation37 + $0x28] sm:$0xf0] }
0x14de   : > { %v7021_v3 = vor.u32 %v7450_v0, %v7018_v2 }
0x14e1   : > { %4680 = vmatpush.bf16.msra.mxu1 %v7430_v5  ;;  %v7448_v5 = vld [vmem:[#allocation37 + $0x14] sm:$0xf] }
0x14e3   : > { %v4912_v31 = vpop.f32.mrf.mxu3 }
0x14e4   : > { %v4913_v11 = vadd.f32 %v4912_v31, %v4817_v6  ;;  %v7010_v6 = vld [vmem:[#allocation37 + $0x18] sm:$0xf0] }
0x14e5   : > { %v7013_v31 = vor.u32 %v7448_v5, %v7010_v6 }
0x14e6   : > { %v10415_v13 = vpack.c.bf16 %v4913_v11, %v4911_v24  ;;  %v7446_v24 = vld [vmem:[#allocation37 + $0x4] sm:$0xf] }
0x14e8   : > { %4452 = vrot.lane.b32.xlu2 %v10369_v48, %s9305_s7  ;;  %v4936_v15 = vsel %vm2203_vm8, %v10415_v13, 0 }
0x14e9   : > { %4945 = vmatpush.bf16.xpose.msrb.mxu1 %v4936_v15 }
0x1540   : > { %v10421_v16 = vpop.f32.mrf.mxu1 }
0x1543   : > { %v4441_v17 = vpop.xlane.xlu1 %4440  ;;  %v4558_v58 = vpop.xlane.xlu2 %4557 }
0x1544   : > { %v4442_v18 = vsub.f32 %v4438_v56, %v4441_v17  ;;  %v4559_v28 = vsub.f32 %v4555_v57, %v4558_v58  ;;  %v7042_v56 = vld [vmem:[#allocation37 + $0x58] sm:$0xf0] }
0x1545   : > { %v7045_v57 = vor.u32 %v7456_v41, %v7042_v56 }
0x1546   : > { %v4443_v34 = vmul.f32 1.442695, %v4442_v18  ;;  %v4560_v61 = vmul.f32 1.442695, %v4559_v28  ;;  %v7445_v28 = vld [vmem:[#allocation34 + $0x38] sm:$0xff] }
0x1548   : > { %8024 = vpow2.f32 %v4443_v34  ;;  %v4410_v19 = vpop.f32.mrf.mxu1 }
0x1549   : > { %8026 = vpow2.f32 %v4560_v61 }
0x154b   : > { %v4453_v20 = vpop.permute.xlu2 %4452 }
0x154c   : > { %v4458_v22 = vsel %vm4395_vm13, %v4453_v20, 0 }
0x154d   : > { %4467 = vmatpush.bf16.msra.mxu0 %v4458_v22  ;;  %v7444_v22 = vld [vmem:[#allocation34 + $0x30] sm:$0xff] }
0x154e   : > { %v8025_v26 = vpop.eup %8024 }
0x154f   : > { %v4445_v27 = vsel %vm4379_vm14, %v8025_v26, 0.0  ;;  %v8027_v33 = vpop.eup %8026 }
0x1550   : > { %v4492_v29 = vpop.f32.mrf.mxu1  ;;  %4446 = vadd.xlane.f32.xlu1 %v4445_v27  ;;  %v4562_v35 = vsel %vm4379_vm14, %v8027_v33, 0.0  ;;  %v7442_v27 = vld [vmem:[#allocation34 + $0x20] sm:$0xff] }
0x1551   : > { %v4496_v30 = vmul.f32 0.17677669, %v4492_v29  ;;  %v7441_v29 = vld [vmem:[#allocation34 + $0x18] sm:$0xff] }
0x1553   : > { %v4497_v32 = vsel %vm4354_vm12, %v4496_v30, -1e+30 }
0x1554   : > { %v4498_v52 = vsel %vm4379_vm14, %v4497_v32, -inf }
0x1555   : > { %4499 = vmax.xlane.f32.xlu0 %v4498_v52  ;;  %v7438_v52 = vld [vmem:[#allocation34] sm:$0xff] }
0x1558   : > { %v4494_v36 = vpop.f32.mrf.mxu1  ;;  %4563 = vadd.xlane.f32.xlu1 %v4562_v35 }
0x1559   : > { %v4818_v36 = vperm.slane %v10412_v23, 1 }
0x1571   : > { %4568 = vrot.lane.b32.xlu1 %v10369_v48, %s9303_s17 }
0x15c3   : > { %v4447_v40 = vpop.xlane.xlu1 %4446 }
0x15c4   : > { %8028 = vrcp.f32 %v4447_v40 }
0x15c8   : > { %v4500_v8 = vpop.xlane.xlu0 %4499 }
0x15c9   : > { %v4501_v42 = vsub.f32 %v4497_v32, %v4500_v8  ;;  %v7440_v32 = vld [vmem:[#allocation34 + $0x10] sm:$0xff] }
0x15ca   : > { %v8029_v43 = vpop.eup %8028 }
0x15cb   : > { %v4449_v53 = vmul.f32 %v8029_v43, %v8025_v26  ;;  %v4502_v12 = vmul.f32 1.442695, %v4501_v42  ;;  %v4564_v45 = vpop.xlane.xlu1 %4563 }
0x15cd   : > { %v4450_v7 = vpack.c.bf16 %v4449_v53, %v4449_v53  ;;  %8030 = vpow2.f32 %v4502_v12 }
0x15ce   : > { %8032 = vrcp.f32 %v4564_v45 }
0x15cf   : > { %6929 = vmatmul.msk.bf16.vlgmr.msra.gmra.mxu0 %vm4379_vm14, %v4450_v7 }
0x15d3   : > { %v8031_v9 = vpop.eup %8030 }
0x15d4   : > { %v4504_v44 = vsel %vm4379_vm14, %v8031_v9, 0.0  ;;  %v8033_v47 = vpop.eup %8032 }
0x15d5   : > { %4505 = vadd.xlane.f32.xlu0 %v4504_v44  ;;  %v4566_v51 = vmul.f32 %v8033_v47, %v8027_v33  ;;  %v7439_v33 = vld [vmem:[#allocation34 + $0x8] sm:$0xff] }
0x15d7   : > { %v4567_v39 = vpack.c.bf16 %v4566_v51, %v4566_v51 }
0x15e3   : > { %v4569_v38 = vpop.permute.xlu1 %4568 }
0x15e4   : > { %v4574_v4 = vsel %vm4395_vm13, %v4569_v38, 0 }
0x15e5   : > { %4583 = vmatpush.bf16.msrb.mxu0 %v4574_v4 }
0x15e8   : > { %6933 = vmatmul.msk.bf16.vlgmr.msrb.gmra.mxu0 %vm4379_vm14, %v4567_v39 }
0x15e9   : > { %4915 = vmatpush.bf16.msra.mxu0 %v7061_v1  ;;  %4510 = vrot.lane.b32.xlu0 %v10369_v48, %s9304_s15  ;;  %v7002_v48 = vld [vmem:[#allocation37 + $0x8] sm:$0xf0] }
0x15ea   : > { %v7005_v11 = vor.u32 %v7446_v24, %v7002_v48 }
0x15ed   : > { %4916 = vmatpush.bf16.msra.mxu0 %v7053_v54 }
0x15f1   : > { %4917 = vmatpush.bf16.msra.mxu0 %v7045_v57 }
0x15f5   : > { %4918 = vmatpush.bf16.msra.mxu0 %v7037_v60 }
0x15f9   : > { %4919 = vmatpush.bf16.msra.mxu0 %v7029_v25 }
0x15fd   : > { %4920 = vmatpush.bf16.msra.mxu0 %v7021_v3  ;;  %v7910_v3 = vld [vmem:[#allocation31] ss:$0 sm:$0xff] }
0x1601   : > { %4921 = vmatpush.bf16.msra.mxu0 %v7013_v31  ;;  %v7911_v31 = vld [vmem:[#allocation32] ss:$0 sm:$0xff] }
0x1605   : > { %4922 = vmatpush.bf16.msra.mxu0 %v7005_v11 }
0x1608   : > { %4923 = vmatmul.bf16.vlgmr.msra.gmra.mxu0 %v10397_v46  ;;  %v7443_v46 = vld [vmem:[#allocation34 + $0x28] sm:$0xff] }
0x1648   : > { %v4506_v17 = vpop.xlane.xlu0 %4505 }
0x1649   : > { %8034 = vrcp.f32 %v4506_v17 }
0x164c   : > { %v4469_v15 = vpop.f32.mrf.mxu0 }
0x164d   : > { %4590 = vrot.lane.b32.xlu2 %v4469_v15, %s9303_s17  ;;  %v7912_v15 = vld [vmem:[#allocation35] ss:$0 sm:$0xff] }
0x164f   : > { %v8035_v18 = vpop.eup %8034 }
0x1650   : > { %v4508_v34 = vmul.f32 %v8035_v18, %v8031_v9 }
0x1652   : > { %v4509_v20 = vpack.c.bf16 %v4508_v34, %v4508_v34 }
0x1654   : > { %v4471_v58 = vpop.f32.mrf.mxu0 }
0x165b   : > { %v4511_v19 = vpop.permute.xlu0 %4510 }
0x165c   : > { %v4516_v61 = vsel %vm4395_vm13, %v4511_v19, 0 }
0x165d   : > { %4525 = vmatpush.bf16.msrb.mxu2 %v4516_v61 }
0x1660   : > { %6931 = vmatmul.msk.bf16.vlgmr.msrb.gmra.mxu2 %vm4379_vm14, %v4509_v20 }
0x1661   : > { %4786 = vmatpush.bf16.msra.mxu2 %v7445_v28 }
0x1665   : > { %4787 = vmatpush.bf16.msra.mxu2 %v7444_v22  ;;  %v4585_v26 = vpop.f32.mrf.mxu0 }
0x1666   : > { %4598 = vrot.lane.b32.xlu2 %v4585_v26, %s9305_s7 }
0x1669   : > { %4788 = vmatpush.bf16.msra.mxu2 %v7443_v46 }
0x166d   : > { %4789 = vmatpush.bf16.msra.mxu2 %v7442_v27  ;;  %v4587_v30 = vpop.f32.mrf.mxu0 }
0x166e   : > { %4984 = vrot.lane.b32.xlu2 %v10415_v13, %s9305_s7 }
0x1671   : > { %4790 = vmatpush.bf16.msra.mxu2 %v7441_v29 }
0x1675   : > { %4791 = vmatpush.bf16.msra.mxu2 %v7440_v32 }
0x1676   : > { %5040 = vrot.lane.b32.xlu2 %v10415_v13, %s9304_s15 }
0x1679   : > { %4792 = vmatpush.bf16.msra.mxu2 %v7439_v33 }
0x167d   : > { %4793 = vmatpush.bf16.msra.mxu2 %v7438_v52 }
0x1685   : > { %v4924_v35 = vpop.f32.mrf.mxu0 }
0x1686   : > { %v4925_v8 = vadd.f32 %v4924_v35, %v4818_v36 }
0x168d   : > { %v4926_v40 = vpop.f32.mrf.mxu0 }
0x168e   : > { %v4927_v42 = vadd.f32 %v4926_v40, %v4818_v36 }
0x1690   : > { %v10448_v43 = vpack.c.bf16 %v4927_v42, %v4925_v8 }
0x1692   : > { %4974 = vmatpush.bf16.msrb.mxu2 %v10448_v43 }
0x16a7   : > { %v4591_v53 = vpop.permute.xlu2 %4590 }
0x16a8   : > { %v4601_v23 = vsel %vm2203_vm8, %v10421_v16, %v4591_v53 }
0x16c0   : > { %v4599_v12 = vpop.permute.xlu2 %4598 }
0x16c8   : > { %v4985_v7 = vpop.permute.xlu2 %4984 }
0x16c9   : > { %v4990_v9 = vsel %vm2203_vm8, %v4985_v7, 0 }
0x16ca   : > { %4999 = vmatpush.bf16.xpose.msra.mxu3 %v4990_v9 }
0x16d0   : > { %v5041_v50 = vpop.permute.xlu2 %5040 }
0x16d1   : > { %v5046_v38 = vsel %vm2203_vm8, %v5041_v50, 0 }
0x16e3   : > { %v4527_v44 = vpop.f32.mrf.mxu2 }
0x16e4   : > { %4594 = vrot.lane.b32.xlu0 %v4527_v44, %s9304_s15 }
0x16eb   : > { %v4529_v45 = vpop.f32.mrf.mxu2 }
0x1756   : > { %v4595_v47 = vpop.permute.xlu0 %4594 }
0x1757   : > { %v4602_v49 = vsel %vm2503_vm10, %v4601_v23, %v4595_v47 }
0x1758   : > { %v4603_v51 = vsel %vm2506_vm11, %v4602_v49, %v4599_v12 }
0x1759   : > { %v4604_v1 = vpack.c.bf16 %v4603_v51, %v4603_v51 }
0x175b   : > { %4681 = vmatmul.bf16.vlgmr.msra.gmra.mxu1 %v4604_v1 }
0x175c   : > { %5055 = vmatpush.bf16.xpose.msra.mxu1 %v5046_v38 }
0x17d8   : > { %v4682_v62 = vpop.f32.mrf.mxu1 }
0x17d9   : > { %v4683_v4 = vadd.f32 %v7909_v55, %v4682_v62 }
0x17db   : > { %v10459_v39 = vadd.f32 %v4683_v4, %v10345_v37 }
0x17dd   : > { %4689 = vadd.xlane.f32.xlu1 %v10459_v39 }
0x17e0   : > { %v4684_v16 = vpop.f32.mrf.mxu1 }
0x1850   : > { %v4690_v54 = vpop.xlane.xlu1 %4689 }
0x1851   : > { %v4691_v41 = vmul.f32 %v4690_v54, %v10127_v21 }
0x1853   : > { %v4692_v56 = vsub.f32 %v10459_v39, %v4691_v41 }
0x1855   : > { %v4693_v57 = vmul.f32 %v4692_v56, %v4692_v56 }
0x1857   : > { %4694 = vadd.xlane.f32.xlu0 %v4693_v57 }
0x18ca   : > { %v4695_v59 = vpop.xlane.xlu0 %4694 }
0x18cb   : > { %v4696_v10 = vmul.f32 %v4695_v59, %v10127_v21 }
0x18cd   : > { %v4697_v60 = vadd.f32 1e-05, %v4696_v10 }
0x18cf   : > { %8036 = vrsqrt.f32 %v4697_v60  ;;  %vm4704_vm15 = vweird.f32 %v4697_v60 }
0x18d5   : > { %v8037_v14 = vpop.eup %8036 }
0x18d6   : > { %v4699_v63 = vmul.f32 %v8037_v14, %v4697_v60  ;;  %vm4705_vm12 = vweird.f32 %v8037_v14 }
0x18d7   : > { %vm4706_vm0 = vmor %vm4704_vm15, %vm4705_vm12 }
0x18d8   : > { %v4700_v25 = vmul.f32 %v8037_v14, %v4699_v63 }
0x18da   : > { %v4701_v37 = vmul.f32 0.5, %v4700_v25 }
0x18dc   : > { %v4702_v0 = vsub.f32 1.5, %v4701_v37 }
0x18de   : > { %v4703_v2 = vmul.f32 %v8037_v14, %v4702_v0 }
0x18e0   : > { %v4707_v5 = vsel %vm4706_vm0, %v8037_v14, %v4703_v2 }
0x18e1   : > { %v4708_v6 = vmul.f32 %v4707_v5, %v4692_v56 }
0x18e3   : > { %v4712_v24 = vmul.f32 %v7910_v3, %v4708_v6 }
0x18e5   : > { %v4716_v48 = vadd.f32 %v7911_v31, %v4712_v24 }
0x18e7   : > { %v4717_v11 = vpack.c.bf16 %v4716_v48, %v4716_v48 }
0x18e9   : > { %4794 = vmatmul.bf16.vlgmr.msra.gmra.mxu2 %v4717_v11 }
0x196c   : > { %v4795_v17 = vpop.f32.mrf.mxu2 }
0x196d   : > { %v4796_v58 = vadd.f32 %v7912_v15, %v4795_v17 }
0x196f   : > { %v4929_v18 = vpack.c.bf16 %v4796_v58, %v4796_v58 }
0x1971   : > { %5093 = vrot.lane.b32.xlu1 %v4929_v18, %s9303_s17  ;;  %4981 = vrot.lane.b32.xlu2 %v4929_v18, %s9305_s7 }
0x1972   : > { %7062 = vmatmul.msk.bf16.vlgmr.msrb.gmra.mxu1 %vm2203_vm8, %v4929_v18 }
0x1974   : > { %v4797_v34 = vpop.f32.mrf.mxu2 }
0x1979   : > { %5095 = vrot.lane.b32.xlu2 %v10415_v13, %s9303_s17 }
0x1981   : > { %5038 = vrot.lane.b32.xlu2 %v4929_v18, %s9304_s15 }
0x19cb   : > { %v4982_v28 = vpop.permute.xlu2 %4981 }
0x19cc   : > { %7064 = vmatmul.msk.bf16.vlgmr.msra.gmra.mxu3 %vm2203_vm8, %v4982_v28 }
0x19d3   : > { %v5096_v19 = vpop.permute.xlu2 %5095 }
0x19d4   : > { %v5101_v61 = vsel %vm2203_vm8, %v5096_v19, 0  ;;  %v7469_v19 = vld [vmem:[#allocation40 + $0x38] sm:$0xff] }
0x19d5   : > { %5110 = vmatpush.bf16.xpose.msrb.mxu3 %v5101_v61  ;;  %5232 = vmatpush.bf16.msrb.mxu1 %v7469_v19  ;;  %v7122_v19 = vld [vmem:[#allocation46 + $0x28] sm:$0xf0] }
0x19db   : > { %v5039_v20 = vpop.permute.xlu2 %5038 }
0x19dc   : > { %7066 = vmatmul.msk.bf16.vlgmr.msra.gmra.mxu1 %vm2203_vm8, %v5039_v20 }
0x19e3   : > { %v5094_v22 = vpop.permute.xlu1 %5093 }
0x19e4   : > { %7068 = vmatmul.msk.bf16.vlgmr.msrb.gmra.mxu3 %vm2203_vm8, %v5094_v22 }
0x19ef   : > { %v4947_v46 = vpop.f32.mrf.mxu1 }
0x19f0   : > { %v4951_v26 = vmul.f32 0.17677669, %v4947_v46 }
0x19f2   : > { %v4952_v27 = vsel %vm2226_vm9, %v4951_v26, -inf }
0x19f3   : > { %4953 = vmax.xlane.f32.xlu0 %v4952_v27  ;;  %v7468_v27 = vld [vmem:[#allocation40 + $0x30] sm:$0xff] }
0x19f4   : > { %5233 = vmatpush.bf16.msrb.mxu1 %v7468_v27  ;;  %v7114_v27 = vld [vmem:[#allocation46 + $0x18] sm:$0xf0] }
0x19f7   : > { %v4949_v13 = vpop.f32.mrf.mxu1 }
0x19f8   : > { %v7467_v13 = vld [vmem:[#allocation40 + $0x28] sm:$0xff] }
0x19f9   : > { %5234 = vmatpush.bf16.msrb.mxu1 %v7467_v13 }
0x1a4f   : > { %v5001_v29 = vpop.f32.mrf.mxu3 }
0x1a50   : > { %v5005_v30 = vmul.f32 0.17677669, %v5001_v29  ;;  %v7466_v29 = vld [vmem:[#allocation40 + $0x20] sm:$0xff] }
0x1a51   : > { %5235 = vmatpush.bf16.msrb.mxu1 %v7466_v29  ;;  %v7104_v29 = vld [vmem:[#allocation46] sm:$0xf] }
0x1a52   : > { %v5006_v32 = vsel %vm2226_vm9, %v5005_v30, -inf }
0x1a53   : > { %5007 = vmax.xlane.f32.xlu2 %v5006_v32  ;;  %v7464_v32 = vld [vmem:[#allocation40 + $0x10] sm:$0xff] }
0x1a57   : > { %v5003_v33 = vpop.f32.mrf.mxu3 }
0x1a58   : > { %v7463_v33 = vld [vmem:[#allocation40 + $0x8] sm:$0xff] }
0x1a59   : > { %v5057_v52 = vpop.f32.mrf.mxu1 }
0x1a5a   : > { %v5061_v35 = vmul.f32 0.17677669, %v5057_v52  ;;  %v7462_v52 = vld [vmem:[#allocation40] sm:$0xff] }
0x1a5c   : > { %v5062_v36 = vsel %vm2226_vm9, %v5061_v35, -inf }
0x1a5d   : > { %5063 = vmax.xlane.f32.xlu0 %v5062_v36 }
0x1a61   : > { %v5059_v40 = vpop.f32.mrf.mxu1 }
0x1a66   : > { %v4954_v8 = vpop.xlane.xlu0 %4953 }
0x1a67   : > { %v4955_v42 = vsub.f32 %v4951_v26, %v4954_v8  ;;  %v5112_v53 = vpop.f32.mrf.mxu3 }
0x1a68   : > { %v5116_v12 = vmul.f32 0.17677669, %v5112_v53 }
0x1a69   : > { %v4956_v7 = vmul.f32 1.442695, %v4955_v42 }
0x1a6a   : > { %v5117_v9 = vsel %vm2226_vm9, %v5116_v12, -inf }
0x1a6b   : > { %8038 = vpow2.f32 %v4956_v7  ;;  %5118 = vmax.xlane.f32.xlu0 %v5117_v9  ;;  %v7913_v7 = vld [vmem:[#allocation41] ss:$0 sm:$0xff] }
0x1a6f   : > { %v5114_v44 = vpop.f32.mrf.mxu3 }
0x1a71   : > { %v8039_v45 = vpop.eup %8038 }
0x1a72   : > { %v4958_v23 = vsel %vm2226_vm9, %v8039_v45, 0.0 }
0x1a73   : > { %4959 = vadd.xlane.f32.xlu1 %v4958_v23 }
0x1a7f   : > { %5019 = vrot.lane.b32.xlu0 %v10448_v43, %s9305_s7 }
0x1ac6   : > { %v5008_v47 = vpop.xlane.xlu2 %5007 }
0x1ac7   : > { %v5009_v49 = vsub.f32 %v5005_v30, %v5008_v47  ;;  %v7465_v30 = vld [vmem:[#allocation40 + $0x18] sm:$0xff] }
0x1ac8   : > { %5236 = vmatpush.bf16.msrb.mxu1 %v7465_v30  ;;  %v7160_v47 = vld [vmem:[#allocation46 + $0x70] sm:$0xf]  ;;  %v7471_v30 = vld [vmem:[#allocation46 + $0x4] sm:$0xf0] }
0x1ac9   : > { %v5010_v50 = vmul.f32 1.442695, %v5009_v49  ;;  %v7485_v49 = vld [vmem:[#allocation46 + $0x74] sm:$0xf0] }
0x1acb   : > { %8040 = vpow2.f32 %v5010_v50  ;;  %v7484_v50 = vld [vmem:[#allocation46 + $0x74] sm:$0xf] }
0x1acc   : > { %5237 = vmatpush.bf16.msrb.mxu1 %v7464_v32  ;;  %v7470_v32 = vld [vmem:[#allocation46 + $0x4] sm:$0xf] }
0x1ad0   : > { %v5064_v51 = vpop.xlane.xlu0 %5063  ;;  %5238 = vmatpush.bf16.msrb.mxu1 %v7463_v33  ;;  %v7105_v33 = vor.u32 %v7471_v30, %v7104_v29 }
0x1ad1   : > { %v8041_v1 = vpop.eup %8040  ;;  %v5065_v38 = vsub.f32 %v5061_v35, %v5064_v51  ;;  %v7161_v51 = vor.u32 %v7485_v49, %v7160_v47  ;;  %v7914_v49 = vld [vmem:[#allocation43] ss:$0 sm:$0xff] }
0x1ad2   : > { %v5012_v55 = vsel %vm2226_vm9, %v8041_v1, 0.0 }
0x1ad3   : > { %v5066_v62 = vmul.f32 1.442695, %v5065_v38  ;;  %5013 = vadd.xlane.f32.xlu0 %v5012_v55 }
0x1ad4   : > { %5239 = vmatpush.bf16.msrb.mxu1 %v7462_v52  ;;  %v7106_v52 = vld [vmem:[#allocation46 + $0x8] sm:$0xf0] }
0x1ad5   : > { %8042 = vpow2.f32 %v5066_v62 }
0x1adb   : > { %v8043_v4 = vpop.eup %8042 }
0x1adc   : > { %v5068_v16 = vsel %vm2226_vm9, %v8043_v4, 0.0 }
0x1add   : > { %5069 = vadd.xlane.f32.xlu2 %v5068_v16  ;;  %v7152_v16 = vld [vmem:[#allocation46 + $0x60] sm:$0xf] }
0x1ade   : > { %v5119_v54 = vpop.xlane.xlu0 %5118 }
0x1adf   : > { %v5120_v41 = vsub.f32 %v5116_v12, %v5119_v54  ;;  %v7483_v54 = vld [vmem:[#allocation46 + $0x64] sm:$0xf0] }
0x1ae1   : > { %v5121_v56 = vmul.f32 1.442695, %v5120_v41  ;;  %v7482_v41 = vld [vmem:[#allocation46 + $0x64] sm:$0xf] }
0x1ae3   : > { %8044 = vpow2.f32 %v5121_v56  ;;  %v7153_v56 = vor.u32 %v7483_v54, %v7152_v16  ;;  %v7500_v16 = vld [vmem:[#allocation49 + $0x70] sm:$0xff]  ;;  %v7491_v54 = vld [vmem:[#allocation49 + $0x28] sm:$0xff] }
0x1ae6   : > { %v4960_v57 = vpop.xlane.xlu1 %4959 }
0x1ae7   : > { %8046 = vrcp.f32 %v4960_v57  ;;  %5074 = vrot.lane.b32.xlu0 %v10448_v43, %s9304_s15  ;;  %v7154_v57 = vld [vmem:[#allocation46 + $0x68] sm:$0xf0] }
0x1ae9   : > { %v8045_v59 = vpop.eup %8044 }
0x1aea   : > { %v5123_v10 = vsel %vm2226_vm9, %v8045_v59, 0.0 }
0x1aeb   : > { %5124 = vadd.xlane.f32.xlu2 %v5123_v10  ;;  %v7144_v10 = vld [vmem:[#allocation46 + $0x50] sm:$0xf] }
0x1aed   : > { %v8047_v60 = vpop.eup %8046 }
0x1aee   : > { %v4962_v14 = vmul.f32 %v8047_v60, %v8039_v45  ;;  %v7481_v60 = vld [vmem:[#allocation46 + $0x54] sm:$0xf0] }
0x1af0   : > { %v4963_v63 = vpack.c.bf16 %v4962_v14, %v4962_v14  ;;  %v7480_v14 = vld [vmem:[#allocation46 + $0x54] sm:$0xf] }
0x1af1   : > { %v5020_v25 = vpop.permute.xlu0 %5019 }
0x1af2   : > { %7063 = vmatmul.msk.bf16.vlgmr.msrb.gmra.mxu2 %vm2226_vm9, %v4963_v63  ;;  %5032 = vmatpush.bf16.msrb.mxu0 %v5020_v25  ;;  %v7145_v63 = vor.u32 %v7481_v60, %v7144_v10  ;;  %v7146_v25 = vld [vmem:[#allocation46 + $0x58] sm:$0xf0]  ;;  %v7488_v10 = vld [vmem:[#allocation49 + $0x10] sm:$0xff] }
0x1af3   : > { %v7496_v60 = vld [vmem:[#allocation49 + $0x50] sm:$0xff] }
0x1b03   : > { %5129 = vrot.lane.b32.xlu2 %v10448_v43, %s9303_s17 }
0x1b46   : > { %v5014_v37 = vpop.xlane.xlu0 %5013 }
0x1b47   : > { %8048 = vrcp.f32 %v5014_v37  ;;  %v7149_v37 = vor.u32 %v7480_v14, %v7146_v25  ;;  %v7487_v14 = vld [vmem:[#allocation49 + $0x8] sm:$0xff]  ;;  %v7486_v25 = vld [vmem:[#allocation49] sm:$0xff] }
0x1b4d   : > { %v8049_v0 = vpop.eup %8048 }
0x1b4e   : > { %v5016_v2 = vmul.f32 %v8049_v0, %v8041_v1  ;;  %v7162_v1 = vld [vmem:[#allocation46 + $0x78] sm:$0xf0]  ;;  %v7136_v0 = vld [vmem:[#allocation46 + $0x40] sm:$0xf] }
0x1b4f   : > { %v7165_v38 = vor.u32 %v7484_v50, %v7162_v1  ;;  %v7915_v1 = vld [vmem:[#allocation44] ss:$0 sm:$0xff] }
0x1b50   : > { %v5017_v3 = vpack.c.bf16 %v5016_v2, %v5016_v2  ;;  %v5070_v5 = vpop.xlane.xlu2 %5069  ;;  %v7479_v2 = vld [vmem:[#allocation46 + $0x44] sm:$0xf0] }
0x1b51   : > { %8050 = vrcp.f32 %v5070_v5  ;;  %5392 = vmatpush.bf16.msra.mxu3 %v7165_v38  ;;  %v7137_v5 = vor.u32 %v7479_v2, %v7136_v0  ;;  %v5293_v0 = vld [vmem:[#allocation47] sm:$0x3] }
0x1b52   : > { %7065 = vmatmul.msk.bf16.vlgmr.msrb.gmra.mxu0 %vm2226_vm9, %v5017_v3  ;;  %v7478_v3 = vld [vmem:[#allocation46 + $0x44] sm:$0xf]  ;;  %v5295_v2 = vperm.slane %v5293_v0, 0 }
0x1b57   : > { %v8051_v6 = vpop.eup %8050 }
0x1b58   : > { %v5072_v31 = vmul.f32 %v8051_v6, %v8043_v4  ;;  %v7138_v6 = vld [vmem:[#allocation46 + $0x48] sm:$0xf0] }
0x1b59   : > { %v5075_v24 = vpop.permute.xlu0 %5074 }
0x1b5a   : > { %v5073_v48 = vpack.c.bf16 %v5072_v31, %v5072_v31  ;;  %5087 = vmatpush.bf16.msra.mxu2 %v5075_v24  ;;  %v7141_v31 = vor.u32 %v7478_v3, %v7138_v6  ;;  %v7128_v24 = vld [vmem:[#allocation46 + $0x30] sm:$0xf]  ;;  %v5296_v3 = vperm.slane %v5293_v0, 1 }
0x1b5d   : > { %7067 = vmatmul.msk.bf16.vlgmr.msra.gmra.mxu2 %vm2226_vm9, %v5073_v48  ;;  %v7477_v48 = vld [vmem:[#allocation46 + $0x34] sm:$0xf0] }
0x1b5e   : > { %v5125_v11 = vpop.xlane.xlu2 %5124  ;;  %5379 = vmatpush.bf16.msrb.mxu2 %v7161_v51 }
0x1b5f   : > { %8052 = vrcp.f32 %v5125_v11  ;;  %v7476_v11 = vld [vmem:[#allocation46 + $0x34] sm:$0xf] }
0x1b62   : > { %5380 = vmatpush.bf16.msrb.mxu2 %v7153_v56  ;;  %v7490_v56 = vld [vmem:[#allocation49 + $0x20] sm:$0xff] }
0x1b65   : > { %v8053_v15 = vpop.eup %8052 }
0x1b66   : > { %v5127_v43 = vmul.f32 %v8053_v15, %v8045_v59  ;;  %v5130_v17 = vpop.permute.xlu2 %5129  ;;  %v7157_v59 = vor.u32 %v7482_v41, %v7154_v57  ;;  %5381 = vmatpush.bf16.msrb.mxu2 %v7145_v63  ;;  %v7129_v15 = vor.u32 %v7477_v48, %v7128_v24  ;;  %v7499_v41 = vld [vmem:[#allocation49 + $0x68] sm:$0xff]  ;;  %v7498_v57 = vld [vmem:[#allocation49 + $0x60] sm:$0xff] }
0x1b67   : > { %5142 = vmatpush.bf16.msra.mxu0 %v5130_v17  ;;  %v7495_v63 = vld [vmem:[#allocation49 + $0x48] sm:$0xff] }
0x1b68   : > { %v5128_v58 = vpack.c.bf16 %v5127_v43, %v5127_v43  ;;  %5393 = vmatpush.bf16.msra.mxu3 %v7157_v59  ;;  %v7130_v43 = vld [vmem:[#allocation46 + $0x38] sm:$0xf0] }
0x1b69   : > { %v7133_v17 = vor.u32 %v7476_v11, %v7130_v43  ;;  %v7489_v59 = vld [vmem:[#allocation49 + $0x18] sm:$0xff] }
0x1b6a   : > { %7069 = vmatmul.msk.bf16.vlgmr.msra.gmra.mxu0 %vm2226_vm9, %v5128_v58  ;;  %5382 = vmatpush.bf16.msrb.mxu2 %v7137_v5  ;;  %v7120_v58 = vld [vmem:[#allocation46 + $0x20] sm:$0xf] }
0x1b6c   : > { %5394 = vmatpush.bf16.msra.mxu3 %v7149_v37  ;;  %v7494_v37 = vld [vmem:[#allocation49 + $0x40] sm:$0xff] }
0x1b6e   : > { %5383 = vmatpush.bf16.msrb.mxu2 %v7129_v15 }
0x1b70   : > { %5395 = vmatpush.bf16.msra.mxu3 %v7141_v31 }
0x1b74   : > { %5396 = vmatpush.bf16.msra.mxu3 %v7133_v17 }
0x1b75   : > { %v4976_v18 = vpop.f32.mrf.mxu2 }
0x1b7d   : > { %v4978_v34 = vpop.f32.mrf.mxu2 }
0x1b7e   : > { %v7474_v34 = vld [vmem:[#allocation46 + $0x24] sm:$0xf] }
0x1bcf   : > { %v5034_v28 = vpop.f32.mrf.mxu0 }
0x1bd0   : > { %5149 = vrot.lane.b32.xlu0 %v5034_v28, %s9303_s17  ;;  %s10751_s17 = sld [smem:[#allocation115_spill]] }
0x1bd7   : > { %v5036_v61 = vpop.f32.mrf.mxu0 }
0x1bd8   : > { %v7125_v61 = vor.u32 %v7474_v34, %v7122_v19 }
0x1bda   : > { %5397 = vmatpush.bf16.msra.mxu3 %v7125_v61 }
0x1be0   : > { %v5089_v20 = vpop.f32.mrf.mxu2 }
0x1be1   : > { %5153 = vrot.lane.b32.xlu1 %v5089_v20, %s9304_s15  ;;  %v7112_v20 = vld [vmem:[#allocation46 + $0x10] sm:$0xf]  ;;  %s7263_s15 = sshll.u32 %s9554_s28, 3  ;;  %s9092_s28 = scalar_lea.hbm %s10751_s17, 16 }
0x1be2   : > { %s5708_s8 = scalar_lea.hbm %s10751_s17, %s7263_s15 }
0x1be3   : > { %s5712_s4 = sshll.u32 %s5708_s8, 4  ;;  %s5713_s4 = int_to_ptr.hbm [resolvable:$true] %s5712_s4 }
0x1be4   : > { %s9086_s3 = sshra.s32 %s5713_s4, 4  ;;  %s9087_s3 = int_to_ptr.hbm [resolvable:$true] %s9086_s3 }
0x1be5   : > { %s9088_s6 = scalar_lea.hbm %s9087_s3, 8  ;;  %p9093_p5 = scmp.lt.s32.totalorder %s9087_s3, %s10751_s17 }
0x1be6   : > { %p9089_p3 = scmp.ne.s32.totalorder %s9087_s3, %s9088_s6  ;;  %p9094_p12 = scmp.lt.s32.totalorder %s9092_s28, %s9088_s6 }
0x1be7   : > { %v5144_v22 = vpop.f32.mrf.mxu0 }
0x1be8   : > { %5157 = vrot.lane.b32.xlu0 %v5144_v22, %s9305_s7  ;;  %v5091_v46 = vpop.f32.mrf.mxu2  ;;  %v7473_v22 = vld [vmem:[#allocation46 + $0x14] sm:$0xf0]  ;;  %s6249_s7 = sshll.u32 %s10031_s2, 3  ;;  %p9090_p7 = pnand %p9089_p3, %p9585_p11 }
0x1be9   : > { %v7472_v46 = vld [vmem:[#allocation46 + $0x14] sm:$0xf]  ;;  %s1871_s22 = scalar_lea.vmem [#allocation58], %s6249_s7  ;;  %p9095_p13 = por %p9094_p12, %p9093_p5 }
0x1bea   : > { %v7117_v13 = vor.u32 %v7472_v46, %v7114_v27  ;;  %s5710_s5 = sshll.u32 %s1871_s22, 4  ;;  %p9091_p4 = pneg %p9090_p7  ;;  %s5711_s5 = int_to_ptr.vmem [resolvable:$true] %s5710_s5 }
0x1bec   : > { %5398 = vmatpush.bf16.msra.mxu3 %v7117_v13  ;;  %p9096_p8 = pnand %p9095_p13, %p9091_p4 }
0x1bef   : > { %v5146_v26 = vpop.f32.mrf.mxu0 }
0x1bf0   : > { %v7113_v26 = vor.u32 %v7473_v22, %v7112_v20 }
0x1c42   : > { %v5150_v35 = vpop.permute.xlu0 %5149 }
0x1c43   : > { %v5160_v40 = vsel %vm2203_vm8, %v4976_v18, %v5150_v35  ;;  %v7475_v18 = vld [vmem:[#allocation46 + $0x24] sm:$0xf0]  ;;  %v7109_v35 = vor.u32 %v7470_v32, %v7106_v52 }
0x1c44   : > { %v7121_v28 = vor.u32 %v7475_v18, %v7120_v58 }
0x1c45   : > { %5399 = vmatpush.bf16.msra.mxu3 %v7109_v35  ;;  %v7916_v35 = vld [vmem:[#allocation50] ss:$0 sm:$0xff] }
0x1c46   : > { %5384 = vmatpush.bf16.msrb.mxu2 %v7121_v28 }
0x1c4a   : > { %5385 = vmatpush.bf16.msrb.mxu2 %v7113_v26 }
0x1c4e   : > { %5386 = vmatpush.bf16.msrb.mxu2 %v7105_v33 }
0x1c53   : > { %v5154_v36 = vpop.permute.xlu1 %5153 }
0x1c54   : > { %v5161_v8 = vsel %vm2503_vm10, %v5160_v40, %v5154_v36  ;;  %v7493_v36 = vld [vmem:[#allocation49 + $0x38] sm:$0xff] }
0x1c55   : > { %v7501_v40 = vld [vmem:[#allocation49 + $0x78] sm:$0xff]  ;;  %5557 = vmatpush.bf16.msrb.mxu0 %v7493_v36 }
0x1c56   : > { %5570 = vmatpush.bf16.msra.mxu1 %v7501_v40 }
0x1c5a   : > { %v5158_v42 = vpop.permute.xlu0 %5157  ;;  %5571 = vmatpush.bf16.msra.mxu1 %v7500_v16 }
0x1c5b   : > { %v5162_v53 = vsel %vm2506_vm11, %v5161_v8, %v5158_v42 }
0x1c5c   : > { %v5163_v12 = vpack.c.bf16 %v5162_v53, %v5162_v53 }
0x1c5e   : > { %5240 = vmatmul.bf16.vlgmr.msrb.gmra.mxu1 %v5163_v12 }
0x1c5f   : > { %5572 = vmatpush.bf16.msra.mxu1 %v7499_v41 }
0x1c63   : > { %5573 = vmatpush.bf16.msra.mxu1 %v7498_v57 }
0x1cdb   : > { %v5241_v9 = vpop.f32.mrf.mxu1 }
0x1cdc   : > { %v5242_v44 = vadd.f32 %v7913_v7, %v5241_v9 }
0x1cde   : > { %v10500_v45 = vadd.f32 %v5242_v44, %v10459_v39 }
0x1ce0   : > { %5248 = vadd.xlane.f32.xlu0 %v10500_v45 }
0x1ce3   : > { %v5243_v23 = vpop.f32.mrf.mxu1 }
0x1d53   : > { %v5249_v55 = vpop.xlane.xlu0 %5248 }
0x1d54   : > { %v5250_v62 = vmul.f32 %v5249_v55, %v10127_v21 }
0x1d56   : > { %v10505_v4 = vsub.f32 %v10500_v45, %v5250_v62 }
0x1d58   : > { %v5252_v39 = vmul.f32 %v10505_v4, %v10505_v4 }
0x1d5a   : > { %5253 = vadd.xlane.f32.xlu2 %v5252_v39  ;;  %v7492_v39 = vld [vmem:[#allocation49 + $0x30] sm:$0xff] }
0x1d5b   : > { %5558 = vmatpush.bf16.msrb.mxu0 %v7492_v39 }
0x1d5f   : > { %5559 = vmatpush.bf16.msrb.mxu0 %v7491_v54 }
0x1d63   : > { %5560 = vmatpush.bf16.msrb.mxu0 %v7490_v56 }
0x1d67   : > { %5561 = vmatpush.bf16.msrb.mxu0 %v7489_v59 }
0x1d6b   : > { %5562 = vmatpush.bf16.msrb.mxu0 %v7488_v10 }
0x1d6f   : > { %5563 = vmatpush.bf16.msrb.mxu0 %v7487_v14 }
0x1d73   : > { %5564 = vmatpush.bf16.msrb.mxu0 %v7486_v25  ;;  %v7918_v25 = vld [vmem:[#allocation53] ss:$0 sm:$0xff] }
0x1dcd   : > { %v5254_v8 = vpop.xlane.xlu2 %5253 }
0x1dce   : > { %v5255_v42 = vmul.f32 %v5254_v8, %v10127_v21 }
0x1dd0   : > { %v5256_v53 = vadd.f32 1e-05, %v5255_v42 }
0x1dd2   : > { %8054 = vrsqrt.f32 %v5256_v53  ;;  %vm5263_vm9 = vweird.f32 %v5256_v53 }
0x1dd8   : > { %v8055_v12 = vpop.eup %8054 }
0x1dd9   : > { %v5258_v7 = vmul.f32 %v8055_v12, %v5256_v53  ;;  %vm5264_vm8 = vweird.f32 %v8055_v12 }
0x1dda   : > { %vm5265_vm10 = vmor %vm5263_vm9, %vm5264_vm8 }
0x1ddb   : > { %v5259_v9 = vmul.f32 %v8055_v12, %v5258_v7 }
0x1ddd   : > { %v5260_v44 = vmul.f32 0.5, %v5259_v9  ;;  %v7509_v9 = vld [vmem:[#allocation55 + $0x38] sm:$0xff] }
0x1dde   : > { %5683 = vmatpush.bf16.msra.mxu2 %v7509_v9 }
0x1ddf   : > { %v5261_v23 = vsub.f32 1.5, %v5260_v44 }
0x1de1   : > { %v5262_v47 = vmul.f32 %v8055_v12, %v5261_v23 }
0x1de3   : > { %v5266_v50 = vsel %vm5265_vm10, %v8055_v12, %v5262_v47 }
0x1de4   : > { %v5267_v51 = vmul.f32 %v5266_v50, %v10505_v4  ;;  %v7497_v4 = vld [vmem:[#allocation49 + $0x58] sm:$0xff] }
0x1de5   : > { %5574 = vmatpush.bf16.msra.mxu1 %v7497_v4  ;;  %v7508_v50 = vld [vmem:[#allocation55 + $0x30] sm:$0xff] }
0x1de6   : > { %v5271_v38 = vmul.f32 %v7914_v49, %v5267_v51  ;;  %5684 = vmatpush.bf16.msra.mxu2 %v7508_v50  ;;  %v7507_v51 = vld [vmem:[#allocation55 + $0x28] sm:$0xff] }
0x1de8   : > { %v5275_v55 = vadd.f32 %v7915_v1, %v5271_v38  ;;  %v7506_v1 = vld [vmem:[#allocation55 + $0x20] sm:$0xff]  ;;  %v7505_v38 = vld [vmem:[#allocation55 + $0x18] sm:$0xff] }
0x1de9   : > { %5575 = vmatpush.bf16.msra.mxu1 %v7496_v60  ;;  %v7917_v60 = vld [vmem:[#allocation52] ss:$0 sm:$0xff] }
0x1dea   : > { %v5276_v62 = vpack.c.bf16 %v5275_v55, %v5275_v55  ;;  %5685 = vmatpush.bf16.msra.mxu2 %v7507_v51  ;;  %v7503_v55 = vld [vmem:[#allocation55 + $0x8] sm:$0xff] }
0x1dec   : > { %5387 = vmatmul.bf16.vlgmr.msrb.gmra.mxu2 %v5276_v62  ;;  %5400 = vmatmul.bf16.vlgmr.msra.gmra.mxu3 %v5276_v62  ;;  %v7502_v62 = vld [vmem:[#allocation55] sm:$0xff] }
0x1ded   : > { %5576 = vmatpush.bf16.msra.mxu1 %v7495_v63 }
0x1dee   : > { %5686 = vmatpush.bf16.msra.mxu2 %v7506_v1 }
0x1df1   : > { %5577 = vmatpush.bf16.msra.mxu1 %v7494_v37 }
0x1df2   : > { %5687 = vmatpush.bf16.msra.mxu2 %v7505_v38 }
0x1e6f   : > { %v5388_v5 = vpop.f32.mrf.mxu2  ;;  %v5401_v6 = vpop.f32.mrf.mxu3 }
0x1e70   : > { %v5389_v31 = vadd.f32 %v5388_v5, %v5295_v2  ;;  %v5402_v24 = vadd.f32 %v5401_v6, %v5296_v3  ;;  %v7919_v2 = vld [vmem:[#allocation56] ss:$0 sm:$0xff] }
0x1e72   : > { %v5405_v48 = vmul.f32 %v5389_v31, %v5389_v31  ;;  %v5406_v11 = vmul.f32 %v5402_v24, %v5402_v24 }
0x1e74   : > { %v5407_v15 = vmul.f32 %v5405_v48, %v5389_v31  ;;  %v5408_v43 = vmul.f32 %v5406_v11, %v5402_v24 }
0x1e76   : > { %v5409_v17 = vmul.f32 0.044715, %v5407_v15  ;;  %v5410_v58 = vmul.f32 0.044715, %v5408_v43 }
0x1e77   : > { %v5390_v18 = vpop.f32.mrf.mxu2  ;;  %v5403_v34 = vpop.f32.mrf.mxu3 }
0x1e78   : > { %v5411_v28 = vadd.f32 %v5409_v17, %v5389_v31  ;;  %v5412_v19 = vadd.f32 %v5410_v58, %v5402_v24 }
0x1e7a   : > { %v5413_v61 = vmul.f32 0.7978846, %v5411_v28  ;;  %v5414_v20 = vmul.f32 0.7978846, %v5412_v19 }
0x1e7c   : > { %8056 = vtanh.f32 %v5413_v61 }
0x1e7d   : > { %8058 = vtanh.f32 %v5414_v20 }
0x1e82   : > { %v8057_v22 = vpop.eup %8056 }
0x1e83   : > { %v8059_v46 = vpop.eup %8058  ;;  %v5417_v26 = vadd.f32 1.0, %v8057_v22 }
0x1e84   : > { %v5418_v27 = vadd.f32 1.0, %v8059_v46 }
0x1e85   : > { %v5419_v13 = vmul.f32 0.5, %v5417_v26 }
0x1e86   : > { %v5420_v29 = vmul.f32 0.5, %v5418_v27 }
0x1e87   : > { %v5421_v30 = vmul.f32 %v5419_v13, %v5389_v31 }
0x1e88   : > { %v5422_v32 = vmul.f32 %v5420_v29, %v5402_v24 }
0x1e89   : > { %v5423_v33 = vpack.c.bf16 %v5421_v30, %v5421_v30 }
0x1e8a   : > { %v5424_v52 = vpack.c.bf16 %v5422_v32, %v5422_v32 }
0x1e8b   : > { %5565 = vmatmul.bf16.vlgmr.msrb.gmra.mxu0 %v5423_v33 }
0x1e8c   : > { %5578 = vmatmul.bf16.vlgmr.msra.gmra.mxu1 %v5424_v52 }
0x1f08   : > { %v5566_v36 = vpop.f32.mrf.mxu0 }
0x1f09   : > { %v5567_v40 = vadd.f32 %v7916_v35, %v5566_v36  ;;  %v5579_v8 = vpop.f32.mrf.mxu1 }
0x1f0b   : > { %v5580_v42 = vadd.f32 %v5579_v8, %v5567_v40 }
0x1f0d   : > { %v5583_v53 = vadd.f32 %v5580_v42, %v10500_v45  ;;  %v7504_v45 = vld [vmem:[#allocation55 + $0x10] sm:$0xff] }
0x1f0e   : > { %5688 = vmatpush.bf16.msra.mxu2 %v7504_v45 }
0x1f0f   : > { %5586 = vadd.xlane.f32.xlu1 %v5583_v53 }
0x1f10   : > { %v5568_v12 = vpop.f32.mrf.mxu0 }
0x1f11   : > { %v5581_v7 = vpop.f32.mrf.mxu1 }
0x1f12   : > { %5689 = vmatpush.bf16.msra.mxu2 %v7503_v55 }
0x1f16   : > { %5690 = vmatpush.bf16.msra.mxu2 %v7502_v62 }
0x1f82   : > { %v5587_v44 = vpop.xlane.xlu1 %5586 }
0x1f83   : > { %v5588_v23 = vmul.f32 %v5587_v44, %v10127_v21 }
0x1f85   : > { %v5589_v47 = vsub.f32 %v5583_v53, %v5588_v23 }
0x1f87   : > { %v5590_v49 = vmul.f32 %v5589_v47, %v5589_v47 }
0x1f89   : > { %5591 = vadd.xlane.f32.xlu0 %v5590_v49 }
0x1ffc   : > { %v5592_v39 = vpop.xlane.xlu0 %5591 }
0x1ffd   : > { %v5593_v16 = vmul.f32 %v5592_v39, %v10127_v21 }
0x1fff   : > { %v5594_v54 = vadd.f32 1e-05, %v5593_v16 }
0x2001   : > { %8060 = vrsqrt.f32 %v5594_v54  ;;  %vm5601_vm1 = vweird.f32 %v5594_v54 }
0x2007   : > { %v8061_v41 = vpop.eup %8060 }
0x2008   : > { %v5596_v56 = vmul.f32 %v8061_v41, %v5594_v54  ;;  %vm5602_vm11 = vweird.f32 %v8061_v41 }
0x2009   : > { %vm5603_vm2 = vmor %vm5601_vm1, %vm5602_vm11 }
0x200a   : > { %v5597_v57 = vmul.f32 %v8061_v41, %v5596_v56 }
0x200c   : > { %v5598_v59 = vmul.f32 0.5, %v5597_v57 }
0x200e   : > { %v5599_v4 = vsub.f32 1.5, %v5598_v59 }
0x2010   : > { %v5600_v10 = vmul.f32 %v8061_v41, %v5599_v4 }
0x2012   : > { %v5604_v14 = vsel %vm5603_vm2, %v8061_v41, %v5600_v10 }
0x2013   : > { %v5605_v63 = vmul.f32 %v5604_v14, %v5589_v47 }
0x2015   : > { %v5609_v37 = vmul.f32 %v7917_v60, %v5605_v63 }
0x2017   : > { %v5613_v21 = vadd.f32 %v7918_v25, %v5609_v37 }
0x2019   : > { %v5614_v0 = vpack.c.bf16 %v5613_v21, %v5613_v21 }
0x201b   : > { %5691 = vmatmul.bf16.vlgmr.msra.gmra.mxu2 %v5614_v0 }
0x209e   : > { %v5692_v3 = vpop.f32.mrf.mxu2 }
0x209f   : > { %v5693_v5 = vadd.f32 %v7919_v2, %v5692_v3 }
0x20a1   : > { %5696 = vst [vmem:[%s1871_s22] sm:$0xff] %v5693_v5 }
0x20a2   : > { %9099 = shalt.err (!%p9096_p8)
}
0x20a3   : > { %7652 = dma.vmem_to_hbm [thread:$0]  (%p9585_p11), %s5711_s5, 128, %s5713_s4, %s5698_s1  }
0x20a6   : > { %v5694_v6 = vpop.f32.mrf.mxu2 }
0x20a7 PF: > { %s10753_s15 = sld [smem:[#allocation116_spill]]  ;;  %p10756_p6 = scmp.ge.s32.totalorder %s9210_s26, 2 }
0x20a8   : > { %s10754_s2 = sld [smem:[#allocation122_spill]] }
0x20ad   : > { %s5724_s7 = sand.u32 1, %s10753_s15  }
0x20ae   : > { %p10755_p9 = scmp.ne.s32.totalorder %s10754_s2, 0  ;;  %s5725_s8 = scalar_lea.sflag [#allocation4], %s5724_s7 }
0x20b0   : > { %p7659_p10 = pnand %p10756_p6, %p10755_p9 }
0x20b2   : > { %p7660_p0 = pneg %p7659_p10 }
0x20b4   : > { %9193 = dma.done.wait (%p7660_p0), %s5725_s8, 128  }
0x20b5   : > { %9195 = vsyncadd (%p7660_p0), %s5725_s8, 4294967168  ;;  %s10757_s26 = sld [smem:[#allocation118_spill]]  ;;  %s10760_s22 = smov %s9206_s23 }
0x20b6   : > { %s10758_s0 = sld [smem:[#allocation117_spill]] }
0x20b7   : > { %s10759_s3 = sld [smem:[#allocation119_spill]] }
0x20bb   : > { %p118_p1 = scmp.ge.s32.totalorder %s10757_s26, 4  }
0x20bd   : > { %s10761_s23 = smov %s10759_s3  ;;  %120 = sbr.rel (!%p118_p1) target bundleno = 109 (0x6d), region = 435 }
0x20c2   :  { %5731 = vsyncpa [#allocation3], 1 }
0x20c3   :  { %5733 = vsyncpa [#allocation3 + $0x1], 1 }
0x20c4   :  { %5734 = vsyncpa [#allocation6], 1 }
0x20c5   :  { %5735 = vsyncpa [#allocation9], 1 }
0x20c6   :  { %5736 = vsyncpa [#allocation12], 1 }
0x20c7   :  { %5737 = vsyncpa [#allocation15], 1 }
0x20c8   :  { %5738 = vsyncpa [#allocation18], 1 }
0x20c9   :  { %5739 = vsyncpa [#allocation21], 1 }
0x20ca   :  { %5740 = vsyncpa [#allocation24], 1 }
0x20cb   :  { %5741 = vsyncpa [#allocation27], 1 }
0x20cc   :  { %5742 = vsyncpa [#allocation30], 1 }
0x20cd   :  { %5743 = vsyncpa [#allocation33], 1 }
0x20ce   :  { %5744 = vsyncpa [#allocation36], 1 }
0x20cf   :  { %5745 = vsyncpa [#allocation39], 1 }
0x20d0   :  { %5746 = vsyncpa [#allocation42], 1 }
0x20d1   :  { %5747 = vsyncpa [#allocation45], 1 }
0x20d2   :  { %5748 = vsyncpa [#allocation48], 1 }
0x20d3   :  { %5749 = vsyncpa [#allocation51], 1 }
0x20d4   :  { %5750 = vsyncpa [#allocation54], 1 }
0x20d5   :  { %5751 = vsyncpa [#allocation57], 1 }
0x20d6   :  { %5752 = vsyncpa [#allocation4], 1 }
0x20d7   :  { %5754 = vsyncpa [#allocation4 + $0x1], 1 }

</bundles_post_ra>
